<compile_context>
chip_gen: v7x
topology: tpu7x:2x2x1
jax: 0.10.0
libtpu: 0.0.40
codegen_flags: <defaults>
</compile_context>

<pallas_src>
import jax
import jax.numpy as jnp
from jax.experimental import pallas as pl
from jax.experimental.pallas import tpu as pltpu


def _round_up(x, m):
    return (x + m - 1) // m * m


_TAPS = tuple((dy, dx) for dy in range(3) for dx in range(3))

# VMEM budget used to decide how many images share one grid step.
_VMEM_BUDGET_BYTES = 16 * 1024 * 1024


def _make_fcn_kernel(wp, cin_pad, cbuf, cls_pad, n_mid, neg_slope=0.01):
    """Fused 5-layer conv kernel. Activations are (channels, flat_padded_spatial)."""

    def kernel(x_ref, w0_ref, wm_ref, wl_ref, bh_ref, bl_ref, mask_ref,
               o_ref, act_ref, stk_ref):
        # x_ref   : (1, cin_pad, Sp)        input, flat padded spatial on lanes
        # w0_ref  : (cbuf, 9*cin_pad)       layer-1 folded weight
        # wm_ref  : (n_mid, cbuf, 9*cbuf)   layers 2..4 folded weights
        # wl_ref  : (cls_pad, 9*cbuf)       layer-5 folded weight (narrow out)
        # bh_ref  : (n_mid+1, cbuf, 1)      hidden-layer biases
        # bl_ref  : (cls_pad, 1)            last-layer bias
        # mask_ref: (1, Sp)                 1.0 on interior pixels, else 0.0
        # o_ref   : (1, cls_pad, Sp)
        # act_ref : VMEM (cbuf, Sp)         current activation
        # stk_ref : VMEM (9*cstk, Sp)       stacked rolled copies (matmul RHS)
        sp = act_ref.shape[1]
        mask = mask_ref[...]                         # (1, Sp)

        def build_stacked(xv, crows):
            # xv loaded ONCE per layer; each tap is one static lane-roll (XLU).
            for t, (dy, dx) in enumerate(_TAPS):
                delta = (dy - 1) * wp + (dx - 1)     # flat-spatial tap offset
                v = xv if delta == 0 else pltpu.roll(
                    xv, shift=(-delta) % sp, axis=1)
                stk_ref[pl.ds(t * crows, crows), :] = v

        def conv(w, k_rows, bias):
            # ONE MXU matmul per layer, K = 9 * channels, f32 accumulation.
            y = jnp.dot(w, stk_ref[pl.ds(0, k_rows), :],
                        preferred_element_type=jnp.float32)
            y = y + bias                             # (C,1) lane-broadcast
            return jnp.maximum(y, neg_slope * y)     # LeakyReLU(0.01)

        # ---- layer 1: in_channels -> num_filters ---------------------------
        build_stacked(x_ref[0], cin_pad)
        act_ref[...] = conv(w0_ref[...], 9 * cin_pad, bh_ref[0]) * mask

        # ---- layers 2..4: num_filters -> num_filters ------------------------
        for l in range(n_mid):
            build_stacked(act_ref[...], cbuf)
            act_ref[...] = conv(wm_ref[l], 9 * cbuf, bh_ref[l + 1]) * mask

        # ---- layer 5: num_filters -> classes (no mask: wrapper crops) -------
        build_stacked(act_ref[...], cbuf)
        o_ref[0] = conv(wl_ref[...], 9 * cbuf, bl_ref[...]).astype(o_ref.dtype)

    return kernel


def fcn_forward_pallas(x_nchw, params):
    """Fused FCN forward. x_nchw: (N, C_in, H, W) -> (N, classes, H, W)."""
    N, c_in, H, W = x_nchw.shape
    L = len(params)
    num_filters = params[0][0].shape[-1]
    classes = params[-1][0].shape[-1]
    n_mid = L - 2

    cin_pad = _round_up(c_in, 8)
    cbuf = _round_up(num_filters, 8)
    cls_pad = _round_up(classes, 8)
    cstk = max(cbuf, cin_pad)

    wp = W + 2
    sp = (H + 2) * wp
    sp_pad = _round_up(sp, 128)          # lane-dense flat spatial axis

    # How many images share one grid step (concatenated on the lane axis).
    per_img = 4 * sp_pad * (2 * cin_pad + 2 * cls_pad + cbuf + 9 * cstk)
    nb = 1
    for cand in range(1, N + 1):
        if N % cand == 0 and cand * per_img <= _VMEM_BUDGET_BYTES:
            nb = cand
    spt = nb * sp_pad
    n_blk = N // nb

    # --- fold weights: (3,3,ci,co) -> (co_pad, 9*ci_pad) ---------------------
    def fold(w, ci_pad, co_pad):
        ci, co = w.shape[2], w.shape[3]
        wf = jnp.zeros((9, ci_pad, co_pad), jnp.float32)
        wf = wf.at[:, :ci, :co].set(w.reshape(9, ci, co).astype(jnp.float32))
        return jnp.transpose(wf, (2, 0, 1)).reshape(co_pad, 9 * ci_pad)

    w0 = fold(params[0][0], cin_pad, cbuf)
    wm = jnp.stack([fold(params[l][0], cbuf, cbuf) for l in range(1, L - 1)])
    wl = fold(params[-1][0], cbuf, cls_pad)

    bh = jnp.zeros((L - 1, cbuf, 1), jnp.float32)
    for l in range(L - 1):
        b = params[l][1]
        bh = bh.at[l, :b.shape[0], 0].set(b.astype(jnp.float32))
    bl = jnp.zeros((cls_pad, 1), jnp.float32)
    bl = bl.at[:classes, 0].set(params[-1][1].astype(jnp.float32))

    # --- interior mask (per image, tiled over lane-batched images) -----------
    r = jnp.arange(sp)
    hh, ww = r // wp, r % wp
    interior = (hh >= 1) & (hh <= H) & (ww >= 1) & (ww <= W)
    mask1 = jnp.pad(jnp.where(interior, 1.0, 0.0).astype(jnp.float32),
                    (0, sp_pad - sp))
    mask = jnp.tile(mask1, (nb,)).reshape(1, spt)

    # --- input -> (n_blk, cin_pad, nb*sp_pad) channel-major flat layout ------
    # TODO(synk): fuse the pad/flatten into the kernel (memset + interior DMA)
    # or enable allow_input_fusion to avoid an extra HBM pass on large images.
    xp = jnp.pad(x_nchw.astype(jnp.float32),
                 ((0, 0), (0, cin_pad - c_in), (1, 1), (1, 1)))
    xf = jnp.pad(xp.reshape(N, cin_pad, sp), ((0, 0), (0, 0), (0, sp_pad - sp)))
    xf = xf.reshape(n_blk, nb, cin_pad, sp_pad).transpose(0, 2, 1, 3)
    xf = xf.reshape(n_blk, cin_pad, spt)

    out_flat = pl.pallas_call(
        _make_fcn_kernel(wp, cin_pad, cbuf, cls_pad, n_mid),
        out_shape=jax.ShapeDtypeStruct((n_blk, cls_pad, spt), jnp.float32),
        grid=(n_blk,),
        in_specs=[
            pl.BlockSpec((1, cin_pad, spt), lambda n: (n, 0, 0)),
            pl.BlockSpec((cbuf, 9 * cin_pad), lambda n: (0, 0)),
            pl.BlockSpec((n_mid, cbuf, 9 * cbuf), lambda n: (0, 0, 0)),
            pl.BlockSpec((cls_pad, 9 * cbuf), lambda n: (0, 0)),
            pl.BlockSpec((L - 1, cbuf, 1), lambda n: (0, 0, 0)),
            pl.BlockSpec((cls_pad, 1), lambda n: (0, 0)),
            pl.BlockSpec((1, spt), lambda n: (0, 0)),
        ],
        out_specs=pl.BlockSpec((1, cls_pad, spt), lambda n: (n, 0, 0)),
        scratch_shapes=[pltpu.VMEM((cbuf, spt), jnp.float32),
                        pltpu.VMEM((9 * cstk, spt), jnp.float32)],
        compiler_params=pltpu.CompilerParams(
            dimension_semantics=("parallel",)),
    )(xf, w0, wm, wl, bh, bl, mask)

    out = out_flat.reshape(n_blk, cls_pad, nb, sp_pad).transpose(0, 2, 1, 3)
    out = out.reshape(N, cls_pad, sp_pad)[:, :classes, :sp]
    out = out.reshape(N, classes, H + 2, wp)
    return out[:, :, 1:H + 1, 1:W + 1]


fcn_forward = jax.jit(fcn_forward_pallas)


def init_fcn_params(key, in_channels, classes, num_filters=64):
    """Deterministic param init (PyTorch-ish uniform(-1/sqrt(fan_in), ...))."""
    chans = [in_channels] + [num_filters] * 4 + [classes]
    params = []
    for i in range(5):
        cin, cout = chans[i], chans[i + 1]
        key, kw, kb = jax.random.split(key, 3)
        bound = 1.0 / jnp.sqrt(cin * 9)
        w = jax.random.uniform(kw, (3, 3, cin, cout), jnp.float32,
                               minval=-bound, maxval=bound)
        b = jax.random.uniform(kb, (cout,), jnp.float32,
                               minval=-bound, maxval=bound)
        params.append((w, b))
    return params


def fcn_reference(x_nchw, params):
    """Pure-JAX reference (lax conv) for correctness checking."""
    x = x_nchw
    for w, b in params:
        x = jax.lax.conv_general_dilated(
            x, w, window_strides=(1, 1), padding="SAME",
            dimension_numbers=("NCHW", "HWIO", "NCHW"))
        x = x + b[None, :, None, None]
        x = jnp.where(x > 0, x, 0.01 * x)
    return x


if __name__ == "__main__":
    key = jax.random.PRNGKey(0)
    k_x, k_p = jax.random.split(key)

    # Small shapes consistent with the module: N=2, in_channels=4, 16x16,
    # classes=5, num_filters=32.
    N, C_IN, H, W = 2, 4, 16, 16
    CLASSES, NUM_FILTERS = 5, 32

    x = jax.random.normal(k_x, (N, C_IN, H, W), jnp.float32)
    params = init_fcn_params(k_p, C_IN, CLASSES, NUM_FILTERS)

    out = jax.block_until_ready(fcn_forward(x, params))
    assert out.shape == (N, CLASSES, H, W), out.shape

    ref = jax.block_until_ready(fcn_reference(x, params))
    err = float(jnp.max(jnp.abs(out - ref)))
    assert jnp.allclose(out, ref, atol=2e-4, rtol=2e-4), err

    print("KERNEL_OK")
</pallas_src>

<mosaic_0001>
module attributes {stable_mosaic.version = 11 : i64} {
  func.func @kernel(%arg0: i32, %arg1: memref<1x8x768xf32, #tpu.memory_space<vmem>>, %arg2: memref<32x72xf32, #tpu.memory_space<vmem>>, %arg3: memref<3x32x288xf32, #tpu.memory_space<vmem>>, %arg4: memref<8x288xf32, #tpu.memory_space<vmem>>, %arg5: memref<4x32x1xf32, #tpu.memory_space<vmem>>, %arg6: memref<8x1xf32, #tpu.memory_space<vmem>>, %arg7: memref<1x768xf32, #tpu.memory_space<vmem>>, %arg8: memref<1x8x768xf32, #tpu.memory_space<vmem>>, %arg9: memref<32x768xf32, #tpu.memory_space<vmem>>, %arg10: memref<288x768xf32, #tpu.memory_space<vmem>>) attributes {dimension_semantics = [#tpu.dimension_semantics<parallel>], iteration_bounds = array<i64: 1>, scalar_prefetch = 0 : i64, scratch_operands = 2 : i64, tpu.core_type = #tpu.core_type<tc>, window_params = [{transform_indices = @transform_0, window_bounds = array<i64: 1, 8, 768>}, {pipeline_mode = #tpu.pipeline_mode<synchronous>, transform_indices = @transform_1, window_bounds = array<i64: 32, 72>}, {pipeline_mode = #tpu.pipeline_mode<synchronous>, transform_indices = @transform_2, window_bounds = array<i64: 3, 32, 288>}, {pipeline_mode = #tpu.pipeline_mode<synchronous>, transform_indices = @transform_3, window_bounds = array<i64: 8, 288>}, {pipeline_mode = #tpu.pipeline_mode<synchronous>, transform_indices = @transform_4, window_bounds = array<i64: 4, 32, 1>}, {pipeline_mode = #tpu.pipeline_mode<synchronous>, transform_indices = @transform_5, window_bounds = array<i64: 8, 1>}, {pipeline_mode = #tpu.pipeline_mode<synchronous>, transform_indices = @transform_6, window_bounds = array<i64: 1, 768>}, {transform_indices = @transform_7, window_bounds = array<i64: 1, 8, 768>}]} {
    %c0 = arith.constant 0 : index
    %c0_0 = arith.constant 0 : index
    %0 = vector.load %arg7[%c0, %c0_0] : memref<1x768xf32, #tpu.memory_space<vmem>>, vector<1x768xf32>
    %c0_1 = arith.constant 0 : index
    %c0_2 = arith.constant 0 : index
    %c0_3 = arith.constant 0 : index
    %1 = vector.load %arg1[%c0_1, %c0_2, %c0_3] : memref<1x8x768xf32, #tpu.memory_space<vmem>>, vector<1x8x768xf32>
    %2 = vector.shape_cast %1 : vector<1x8x768xf32> to vector<8x768xf32>
    %c19_i32 = arith.constant 19 : i32
    %3 = tpu.dynamic_rotate %2 by %c19_i32 dim 1 : vector<8x768xf32>, i32 -> vector<8x768xf32>
    %c0_4 = arith.constant 0 : index
    %c0_5 = arith.constant 0 : index
    %4 = vector.load %arg10[%c0_4, %c0_5] : memref<288x768xf32, #tpu.memory_space<vmem>>, vector<8x768xf32>
    tpu.vector_store %arg10[%c0_4, %c0_5], %3 {strides = array<i32>} : memref<288x768xf32, #tpu.memory_space<vmem>>, vector<8x768xf32>,
    %c18_i32 = arith.constant 18 : i32
    %5 = tpu.dynamic_rotate %2 by %c18_i32 dim 1 : vector<8x768xf32>, i32 -> vector<8x768xf32>
    %c8 = arith.constant 8 : index
    %c0_6 = arith.constant 0 : index
    %6 = vector.load %arg10[%c8, %c0_6] : memref<288x768xf32, #tpu.memory_space<vmem>>, vector<8x768xf32>
    tpu.vector_store %arg10[%c8, %c0_6], %5 {strides = array<i32>} : memref<288x768xf32, #tpu.memory_space<vmem>>, vector<8x768xf32>,
    %c17_i32 = arith.constant 17 : i32
    %7 = tpu.dynamic_rotate %2 by %c17_i32 dim 1 : vector<8x768xf32>, i32 -> vector<8x768xf32>
    %c16 = arith.constant 16 : index
    %c0_7 = arith.constant 0 : index
    %8 = vector.load %arg10[%c16, %c0_7] : memref<288x768xf32, #tpu.memory_space<vmem>>, vector<8x768xf32>
    tpu.vector_store %arg10[%c16, %c0_7], %7 {strides = array<i32>} : memref<288x768xf32, #tpu.memory_space<vmem>>, vector<8x768xf32>,
    %c1_i32 = arith.constant 1 : i32
    %9 = tpu.dynamic_rotate %2 by %c1_i32 dim 1 : vector<8x768xf32>, i32 -> vector<8x768xf32>
    %c24 = arith.constant 24 : index
    %c0_8 = arith.constant 0 : index
    %10 = vector.load %arg10[%c24, %c0_8] : memref<288x768xf32, #tpu.memory_space<vmem>>, vector<8x768xf32>
    tpu.vector_store %arg10[%c24, %c0_8], %9 {strides = array<i32>} : memref<288x768xf32, #tpu.memory_space<vmem>>, vector<8x768xf32>,
    %c32 = arith.constant 32 : index
    %c0_9 = arith.constant 0 : index
    %11 = vector.load %arg10[%c32, %c0_9] : memref<288x768xf32, #tpu.memory_space<vmem>>, vector<8x768xf32>
    tpu.vector_store %arg10[%c32, %c0_9], %2 {strides = array<i32>} : memref<288x768xf32, #tpu.memory_space<vmem>>, vector<8x768xf32>,
    %c767_i32 = arith.constant 767 : i32
    %12 = tpu.dynamic_rotate %2 by %c767_i32 dim 1 : vector<8x768xf32>, i32 -> vector<8x768xf32>
    %c40 = arith.constant 40 : index
    %c0_10 = arith.constant 0 : index
    %13 = vector.load %arg10[%c40, %c0_10] : memref<288x768xf32, #tpu.memory_space<vmem>>, vector<8x768xf32>
    tpu.vector_store %arg10[%c40, %c0_10], %12 {strides = array<i32>} : memref<288x768xf32, #tpu.memory_space<vmem>>, vector<8x768xf32>,
    %c751_i32 = arith.constant 751 : i32
    %14 = tpu.dynamic_rotate %2 by %c751_i32 dim 1 : vector<8x768xf32>, i32 -> vector<8x768xf32>
    %c48 = arith.constant 48 : index
    %c0_11 = arith.constant 0 : index
    %15 = vector.load %arg10[%c48, %c0_11] : memref<288x768xf32, #tpu.memory_space<vmem>>, vector<8x768xf32>
    tpu.vector_store %arg10[%c48, %c0_11], %14 {strides = array<i32>} : memref<288x768xf32, #tpu.memory_space<vmem>>, vector<8x768xf32>,
    %c750_i32 = arith.constant 750 : i32
    %16 = tpu.dynamic_rotate %2 by %c750_i32 dim 1 : vector<8x768xf32>, i32 -> vector<8x768xf32>
    %c56 = arith.constant 56 : index
    %c0_12 = arith.constant 0 : index
    %17 = vector.load %arg10[%c56, %c0_12] : memref<288x768xf32, #tpu.memory_space<vmem>>, vector<8x768xf32>
    tpu.vector_store %arg10[%c56, %c0_12], %16 {strides = array<i32>} : memref<288x768xf32, #tpu.memory_space<vmem>>, vector<8x768xf32>,
    %c749_i32 = arith.constant 749 : i32
    %18 = tpu.dynamic_rotate %2 by %c749_i32 dim 1 : vector<8x768xf32>, i32 -> vector<8x768xf32>
    %c64 = arith.constant 64 : index
    %c0_13 = arith.constant 0 : index
    %19 = vector.load %arg10[%c64, %c0_13] : memref<288x768xf32, #tpu.memory_space<vmem>>, vector<8x768xf32>
    tpu.vector_store %arg10[%c64, %c0_13], %18 {strides = array<i32>} : memref<288x768xf32, #tpu.memory_space<vmem>>, vector<8x768xf32>,
    %c0_14 = arith.constant 0 : index
    %c0_15 = arith.constant 0 : index
    %20 = vector.load %arg2[%c0_14, %c0_15] : memref<32x72xf32, #tpu.memory_space<vmem>>, vector<32x72xf32>
    %c0_16 = arith.constant 0 : index
    %c0_17 = arith.constant 0 : index
    %c0_18 = arith.constant 0 : index
    %21 = vector.load %arg5[%c0_16, %c0_17, %c0_18] : memref<4x32x1xf32, #tpu.memory_space<vmem>>, vector<1x32x1xf32>
    %22 = vector.shape_cast %21 : vector<1x32x1xf32> to vector<32x1xf32>
    %c0_19 = arith.constant 0 : index
    %c0_20 = arith.constant 0 : index
    %23 = vector.load %arg10[%c0_19, %c0_20] : memref<288x768xf32, #tpu.memory_space<vmem>>, vector<72x768xf32>
    %cst = arith.constant dense<0.000000e+00> : vector<32x768xf32>
    %24 = tpu.matmul %20, %23, %cst {dimension_numbers = #tpu.dot_dimension_numbers<[1], [0], [0], [1], [0, 0, 1, 1], [], []>} : vector<32x72xf32>, vector<72x768xf32>, vector<32x768xf32> -> vector<32x768xf32>
    %25 = vector.broadcast %22 : vector<32x1xf32> to vector<32x768xf32>
    %26 = arith.addf %24, %25 : vector<32x768xf32>
    %cst_21 = arith.constant 0.00999999977 : f32
    %27 = vector.broadcast %cst_21 : f32 to vector<32x768xf32>
    %28 = arith.mulf %27, %26 : vector<32x768xf32>
    %29 = arith.maximumf %26, %28 : vector<32x768xf32>
    %30 = vector.broadcast %0 : vector<1x768xf32> to vector<32x768xf32>
    %31 = arith.mulf %29, %30 : vector<32x768xf32>
    %c0_22 = arith.constant 0 : index
    %c0_23 = arith.constant 0 : index
    %32 = vector.load %arg9[%c0_22, %c0_23] : memref<32x768xf32, #tpu.memory_space<vmem>>, vector<32x768xf32>
    tpu.vector_store %arg9[%c0_22, %c0_23], %31 {strides = array<i32>} : memref<32x768xf32, #tpu.memory_space<vmem>>, vector<32x768xf32>,
    %c0_24 = arith.constant 0 : index
    %c0_25 = arith.constant 0 : index
    %33 = vector.load %arg9[%c0_24, %c0_25] : memref<32x768xf32, #tpu.memory_space<vmem>>, vector<32x768xf32>
    %c19_i32_26 = arith.constant 19 : i32
    %34 = tpu.dynamic_rotate %33 by %c19_i32_26 dim 1 : vector<32x768xf32>, i32 -> vector<32x768xf32>
    %c0_27 = arith.constant 0 : index
    %c0_28 = arith.constant 0 : index
    %35 = vector.load %arg10[%c0_27, %c0_28] : memref<288x768xf32, #tpu.memory_space<vmem>>, vector<32x768xf32>
    tpu.vector_store %arg10[%c0_27, %c0_28], %34 {strides = array<i32>} : memref<288x768xf32, #tpu.memory_space<vmem>>, vector<32x768xf32>,
    %c18_i32_29 = arith.constant 18 : i32
    %36 = tpu.dynamic_rotate %33 by %c18_i32_29 dim 1 : vector<32x768xf32>, i32 -> vector<32x768xf32>
    %c32_30 = arith.constant 32 : index
    %c0_31 = arith.constant 0 : index
    %37 = vector.load %arg10[%c32_30, %c0_31] : memref<288x768xf32, #tpu.memory_space<vmem>>, vector<32x768xf32>
    tpu.vector_store %arg10[%c32_30, %c0_31], %36 {strides = array<i32>} : memref<288x768xf32, #tpu.memory_space<vmem>>, vector<32x768xf32>,
    %c17_i32_32 = arith.constant 17 : i32
    %38 = tpu.dynamic_rotate %33 by %c17_i32_32 dim 1 : vector<32x768xf32>, i32 -> vector<32x768xf32>
    %c64_33 = arith.constant 64 : index
    %c0_34 = arith.constant 0 : index
    %39 = vector.load %arg10[%c64_33, %c0_34] : memref<288x768xf32, #tpu.memory_space<vmem>>, vector<32x768xf32>
    tpu.vector_store %arg10[%c64_33, %c0_34], %38 {strides = array<i32>} : memref<288x768xf32, #tpu.memory_space<vmem>>, vector<32x768xf32>,
    %c1_i32_35 = arith.constant 1 : i32
    %40 = tpu.dynamic_rotate %33 by %c1_i32_35 dim 1 : vector<32x768xf32>, i32 -> vector<32x768xf32>
    %c96 = arith.constant 96 : index
    %c0_36 = arith.constant 0 : index
    %41 = vector.load %arg10[%c96, %c0_36] : memref<288x768xf32, #tpu.memory_space<vmem>>, vector<32x768xf32>
    tpu.vector_store %arg10[%c96, %c0_36], %40 {strides = array<i32>} : memref<288x768xf32, #tpu.memory_space<vmem>>, vector<32x768xf32>,
    %c128 = arith.constant 128 : index
    %c0_37 = arith.constant 0 : index
    %42 = vector.load %arg10[%c128, %c0_37] : memref<288x768xf32, #tpu.memory_space<vmem>>, vector<32x768xf32>
    tpu.vector_store %arg10[%c128, %c0_37], %33 {strides = array<i32>} : memref<288x768xf32, #tpu.memory_space<vmem>>, vector<32x768xf32>,
    %c767_i32_38 = arith.constant 767 : i32
    %43 = tpu.dynamic_rotate %33 by %c767_i32_38 dim 1 : vector<32x768xf32>, i32 -> vector<32x768xf32>
    %c160 = arith.constant 160 : index
    %c0_39 = arith.constant 0 : index
    %44 = vector.load %arg10[%c160, %c0_39] : memref<288x768xf32, #tpu.memory_space<vmem>>, vector<32x768xf32>
    tpu.vector_store %arg10[%c160, %c0_39], %43 {strides = array<i32>} : memref<288x768xf32, #tpu.memory_space<vmem>>, vector<32x768xf32>,
    %c751_i32_40 = arith.constant 751 : i32
    %45 = tpu.dynamic_rotate %33 by %c751_i32_40 dim 1 : vector<32x768xf32>, i32 -> vector<32x768xf32>
    %c192 = arith.constant 192 : index
    %c0_41 = arith.constant 0 : index
    %46 = vector.load %arg10[%c192, %c0_41] : memref<288x768xf32, #tpu.memory_space<vmem>>, vector<32x768xf32>
    tpu.vector_store %arg10[%c192, %c0_41], %45 {strides = array<i32>} : memref<288x768xf32, #tpu.memory_space<vmem>>, vector<32x768xf32>,
    %c750_i32_42 = arith.constant 750 : i32
    %47 = tpu.dynamic_rotate %33 by %c750_i32_42 dim 1 : vector<32x768xf32>, i32 -> vector<32x768xf32>
    %c224 = arith.constant 224 : index
    %c0_43 = arith.constant 0 : index
    %48 = vector.load %arg10[%c224, %c0_43] : memref<288x768xf32, #tpu.memory_space<vmem>>, vector<32x768xf32>
    tpu.vector_store %arg10[%c224, %c0_43], %47 {strides = array<i32>} : memref<288x768xf32, #tpu.memory_space<vmem>>, vector<32x768xf32>,
    %c749_i32_44 = arith.constant 749 : i32
    %49 = tpu.dynamic_rotate %33 by %c749_i32_44 dim 1 : vector<32x768xf32>, i32 -> vector<32x768xf32>
    %c256 = arith.constant 256 : index
    %c0_45 = arith.constant 0 : index
    %50 = vector.load %arg10[%c256, %c0_45] : memref<288x768xf32, #tpu.memory_space<vmem>>, vector<32x768xf32>
    tpu.vector_store %arg10[%c256, %c0_45], %49 {strides = array<i32>} : memref<288x768xf32, #tpu.memory_space<vmem>>, vector<32x768xf32>,
    %c0_46 = arith.constant 0 : index
    %c0_47 = arith.constant 0 : index
    %c0_48 = arith.constant 0 : index
    %51 = vector.load %arg3[%c0_46, %c0_47, %c0_48] : memref<3x32x288xf32, #tpu.memory_space<vmem>>, vector<1x32x288xf32>
    %52 = vector.shape_cast %51 : vector<1x32x288xf32> to vector<32x288xf32>
    %c1 = arith.constant 1 : index
    %c0_49 = arith.constant 0 : index
    %c0_50 = arith.constant 0 : index
    %53 = vector.load %arg5[%c1, %c0_49, %c0_50] : memref<4x32x1xf32, #tpu.memory_space<vmem>>, vector<1x32x1xf32>
    %54 = vector.shape_cast %53 : vector<1x32x1xf32> to vector<32x1xf32>
    %c0_51 = arith.constant 0 : index
    %c0_52 = arith.constant 0 : index
    %55 = vector.load %arg10[%c0_51, %c0_52] : memref<288x768xf32, #tpu.memory_space<vmem>>, vector<288x768xf32>
    %cst_53 = arith.constant dense<0.000000e+00> : vector<32x768xf32>
    %56 = tpu.matmul %52, %55, %cst_53 {dimension_numbers = #tpu.dot_dimension_numbers<[1], [0], [0], [1], [0, 0, 1, 1], [], []>} : vector<32x288xf32>, vector<288x768xf32>, vector<32x768xf32> -> vector<32x768xf32>
    %57 = vector.broadcast %54 : vector<32x1xf32> to vector<32x768xf32>
    %58 = arith.addf %56, %57 : vector<32x768xf32>
    %cst_54 = arith.constant 0.00999999977 : f32
    %59 = vector.broadcast %cst_54 : f32 to vector<32x768xf32>
    %60 = arith.mulf %59, %58 : vector<32x768xf32>
    %61 = arith.maximumf %58, %60 : vector<32x768xf32>
    %62 = vector.broadcast %0 : vector<1x768xf32> to vector<32x768xf32>
    %63 = arith.mulf %61, %62 : vector<32x768xf32>
    %c0_55 = arith.constant 0 : index
    %c0_56 = arith.constant 0 : index
    %64 = vector.load %arg9[%c0_55, %c0_56] : memref<32x768xf32, #tpu.memory_space<vmem>>, vector<32x768xf32>
    tpu.vector_store %arg9[%c0_55, %c0_56], %63 {strides = array<i32>} : memref<32x768xf32, #tpu.memory_space<vmem>>, vector<32x768xf32>,
    %c0_57 = arith.constant 0 : index
    %c0_58 = arith.constant 0 : index
    %65 = vector.load %arg9[%c0_57, %c0_58] : memref<32x768xf32, #tpu.memory_space<vmem>>, vector<32x768xf32>
    %c19_i32_59 = arith.constant 19 : i32
    %66 = tpu.dynamic_rotate %65 by %c19_i32_59 dim 1 : vector<32x768xf32>, i32 -> vector<32x768xf32>
    %c0_60 = arith.constant 0 : index
    %c0_61 = arith.constant 0 : index
    %67 = vector.load %arg10[%c0_60, %c0_61] : memref<288x768xf32, #tpu.memory_space<vmem>>, vector<32x768xf32>
    tpu.vector_store %arg10[%c0_60, %c0_61], %66 {strides = array<i32>} : memref<288x768xf32, #tpu.memory_space<vmem>>, vector<32x768xf32>,
    %c18_i32_62 = arith.constant 18 : i32
    %68 = tpu.dynamic_rotate %65 by %c18_i32_62 dim 1 : vector<32x768xf32>, i32 -> vector<32x768xf32>
    %c32_63 = arith.constant 32 : index
    %c0_64 = arith.constant 0 : index
    %69 = vector.load %arg10[%c32_63, %c0_64] : memref<288x768xf32, #tpu.memory_space<vmem>>, vector<32x768xf32>
    tpu.vector_store %arg10[%c32_63, %c0_64], %68 {strides = array<i32>} : memref<288x768xf32, #tpu.memory_space<vmem>>, vector<32x768xf32>,
    %c17_i32_65 = arith.constant 17 : i32
    %70 = tpu.dynamic_rotate %65 by %c17_i32_65 dim 1 : vector<32x768xf32>, i32 -> vector<32x768xf32>
    %c64_66 = arith.constant 64 : index
    %c0_67 = arith.constant 0 : index
    %71 = vector.load %arg10[%c64_66, %c0_67] : memref<288x768xf32, #tpu.memory_space<vmem>>, vector<32x768xf32>
    tpu.vector_store %arg10[%c64_66, %c0_67], %70 {strides = array<i32>} : memref<288x768xf32, #tpu.memory_space<vmem>>, vector<32x768xf32>,
    %c1_i32_68 = arith.constant 1 : i32
    %72 = tpu.dynamic_rotate %65 by %c1_i32_68 dim 1 : vector<32x768xf32>, i32 -> vector<32x768xf32>
    %c96_69 = arith.constant 96 : index
    %c0_70 = arith.constant 0 : index
    %73 = vector.load %arg10[%c96_69, %c0_70] : memref<288x768xf32, #tpu.memory_space<vmem>>, vector<32x768xf32>
    tpu.vector_store %arg10[%c96_69, %c0_70], %72 {strides = array<i32>} : memref<288x768xf32, #tpu.memory_space<vmem>>, vector<32x768xf32>,
    %c128_71 = arith.constant 128 : index
    %c0_72 = arith.constant 0 : index
    %74 = vector.load %arg10[%c128_71, %c0_72] : memref<288x768xf32, #tpu.memory_space<vmem>>, vector<32x768xf32>
    tpu.vector_store %arg10[%c128_71, %c0_72], %65 {strides = array<i32>} : memref<288x768xf32, #tpu.memory_space<vmem>>, vector<32x768xf32>,
    %c767_i32_73 = arith.constant 767 : i32
    %75 = tpu.dynamic_rotate %65 by %c767_i32_73 dim 1 : vector<32x768xf32>, i32 -> vector<32x768xf32>
    %c160_74 = arith.constant 160 : index
    %c0_75 = arith.constant 0 : index
    %76 = vector.load %arg10[%c160_74, %c0_75] : memref<288x768xf32, #tpu.memory_space<vmem>>, vector<32x768xf32>
    tpu.vector_store %arg10[%c160_74, %c0_75], %75 {strides = array<i32>} : memref<288x768xf32, #tpu.memory_space<vmem>>, vector<32x768xf32>,
    %c751_i32_76 = arith.constant 751 : i32
    %77 = tpu.dynamic_rotate %65 by %c751_i32_76 dim 1 : vector<32x768xf32>, i32 -> vector<32x768xf32>
    %c192_77 = arith.constant 192 : index
    %c0_78 = arith.constant 0 : index
    %78 = vector.load %arg10[%c192_77, %c0_78] : memref<288x768xf32, #tpu.memory_space<vmem>>, vector<32x768xf32>
    tpu.vector_store %arg10[%c192_77, %c0_78], %77 {strides = array<i32>} : memref<288x768xf32, #tpu.memory_space<vmem>>, vector<32x768xf32>,
    %c750_i32_79 = arith.constant 750 : i32
    %79 = tpu.dynamic_rotate %65 by %c750_i32_79 dim 1 : vector<32x768xf32>, i32 -> vector<32x768xf32>
    %c224_80 = arith.constant 224 : index
    %c0_81 = arith.constant 0 : index
    %80 = vector.load %arg10[%c224_80, %c0_81] : memref<288x768xf32, #tpu.memory_space<vmem>>, vector<32x768xf32>
    tpu.vector_store %arg10[%c224_80, %c0_81], %79 {strides = array<i32>} : memref<288x768xf32, #tpu.memory_space<vmem>>, vector<32x768xf32>,
    %c749_i32_82 = arith.constant 749 : i32
    %81 = tpu.dynamic_rotate %65 by %c749_i32_82 dim 1 : vector<32x768xf32>, i32 -> vector<32x768xf32>
    %c256_83 = arith.constant 256 : index
    %c0_84 = arith.constant 0 : index
    %82 = vector.load %arg10[%c256_83, %c0_84] : memref<288x768xf32, #tpu.memory_space<vmem>>, vector<32x768xf32>
    tpu.vector_store %arg10[%c256_83, %c0_84], %81 {strides = array<i32>} : memref<288x768xf32, #tpu.memory_space<vmem>>, vector<32x768xf32>,
    %c1_85 = arith.constant 1 : index
    %c0_86 = arith.constant 0 : index
    %c0_87 = arith.constant 0 : index
    %83 = vector.load %arg3[%c1_85, %c0_86, %c0_87] : memref<3x32x288xf32, #tpu.memory_space<vmem>>, vector<1x32x288xf32>
    %84 = vector.shape_cast %83 : vector<1x32x288xf32> to vector<32x288xf32>
    %c2 = arith.constant 2 : index
    %c0_88 = arith.constant 0 : index
    %c0_89 = arith.constant 0 : index
    %85 = vector.load %arg5[%c2, %c0_88, %c0_89] : memref<4x32x1xf32, #tpu.memory_space<vmem>>, vector<1x32x1xf32>
    %86 = vector.shape_cast %85 : vector<1x32x1xf32> to vector<32x1xf32>
    %c0_90 = arith.constant 0 : index
    %c0_91 = arith.constant 0 : index
    %87 = vector.load %arg10[%c0_90, %c0_91] : memref<288x768xf32, #tpu.memory_space<vmem>>, vector<288x768xf32>
    %cst_92 = arith.constant dense<0.000000e+00> : vector<32x768xf32>
    %88 = tpu.matmul %84, %87, %cst_92 {dimension_numbers = #tpu.dot_dimension_numbers<[1], [0], [0], [1], [0, 0, 1, 1], [], []>} : vector<32x288xf32>, vector<288x768xf32>, vector<32x768xf32> -> vector<32x768xf32>
    %89 = vector.broadcast %86 : vector<32x1xf32> to vector<32x768xf32>
    %90 = arith.addf %88, %89 : vector<32x768xf32>
    %cst_93 = arith.constant 0.00999999977 : f32
    %91 = vector.broadcast %cst_93 : f32 to vector<32x768xf32>
    %92 = arith.mulf %91, %90 : vector<32x768xf32>
    %93 = arith.maximumf %90, %92 : vector<32x768xf32>
    %94 = vector.broadcast %0 : vector<1x768xf32> to vector<32x768xf32>
    %95 = arith.mulf %93, %94 : vector<32x768xf32>
    %c0_94 = arith.constant 0 : index
    %c0_95 = arith.constant 0 : index
    %96 = vector.load %arg9[%c0_94, %c0_95] : memref<32x768xf32, #tpu.memory_space<vmem>>, vector<32x768xf32>
    tpu.vector_store %arg9[%c0_94, %c0_95], %95 {strides = array<i32>} : memref<32x768xf32, #tpu.memory_space<vmem>>, vector<32x768xf32>,
    %c0_96 = arith.constant 0 : index
    %c0_97 = arith.constant 0 : index
    %97 = vector.load %arg9[%c0_96, %c0_97] : memref<32x768xf32, #tpu.memory_space<vmem>>, vector<32x768xf32>
    %c19_i32_98 = arith.constant 19 : i32
    %98 = tpu.dynamic_rotate %97 by %c19_i32_98 dim 1 : vector<32x768xf32>, i32 -> vector<32x768xf32>
    %c0_99 = arith.constant 0 : index
    %c0_100 = arith.constant 0 : index
    %99 = vector.load %arg10[%c0_99, %c0_100] : memref<288x768xf32, #tpu.memory_space<vmem>>, vector<32x768xf32>
    tpu.vector_store %arg10[%c0_99, %c0_100], %98 {strides = array<i32>} : memref<288x768xf32, #tpu.memory_space<vmem>>, vector<32x768xf32>,
    %c18_i32_101 = arith.constant 18 : i32
    %100 = tpu.dynamic_rotate %97 by %c18_i32_101 dim 1 : vector<32x768xf32>, i32 -> vector<32x768xf32>
    %c32_102 = arith.constant 32 : index
    %c0_103 = arith.constant 0 : index
    %101 = vector.load %arg10[%c32_102, %c0_103] : memref<288x768xf32, #tpu.memory_space<vmem>>, vector<32x768xf32>
    tpu.vector_store %arg10[%c32_102, %c0_103], %100 {strides = array<i32>} : memref<288x768xf32, #tpu.memory_space<vmem>>, vector<32x768xf32>,
    %c17_i32_104 = arith.constant 17 : i32
    %102 = tpu.dynamic_rotate %97 by %c17_i32_104 dim 1 : vector<32x768xf32>, i32 -> vector<32x768xf32>
    %c64_105 = arith.constant 64 : index
    %c0_106 = arith.constant 0 : index
    %103 = vector.load %arg10[%c64_105, %c0_106] : memref<288x768xf32, #tpu.memory_space<vmem>>, vector<32x768xf32>
    tpu.vector_store %arg10[%c64_105, %c0_106], %102 {strides = array<i32>} : memref<288x768xf32, #tpu.memory_space<vmem>>, vector<32x768xf32>,
    %c1_i32_107 = arith.constant 1 : i32
    %104 = tpu.dynamic_rotate %97 by %c1_i32_107 dim 1 : vector<32x768xf32>, i32 -> vector<32x768xf32>
    %c96_108 = arith.constant 96 : index
    %c0_109 = arith.constant 0 : index
    %105 = vector.load %arg10[%c96_108, %c0_109] : memref<288x768xf32, #tpu.memory_space<vmem>>, vector<32x768xf32>
    tpu.vector_store %arg10[%c96_108, %c0_109], %104 {strides = array<i32>} : memref<288x768xf32, #tpu.memory_space<vmem>>, vector<32x768xf32>,
    %c128_110 = arith.constant 128 : index
    %c0_111 = arith.constant 0 : index
    %106 = vector.load %arg10[%c128_110, %c0_111] : memref<288x768xf32, #tpu.memory_space<vmem>>, vector<32x768xf32>
    tpu.vector_store %arg10[%c128_110, %c0_111], %97 {strides = array<i32>} : memref<288x768xf32, #tpu.memory_space<vmem>>, vector<32x768xf32>,
    %c767_i32_112 = arith.constant 767 : i32
    %107 = tpu.dynamic_rotate %97 by %c767_i32_112 dim 1 : vector<32x768xf32>, i32 -> vector<32x768xf32>
    %c160_113 = arith.constant 160 : index
    %c0_114 = arith.constant 0 : index
    %108 = vector.load %arg10[%c160_113, %c0_114] : memref<288x768xf32, #tpu.memory_space<vmem>>, vector<32x768xf32>
    tpu.vector_store %arg10[%c160_113, %c0_114], %107 {strides = array<i32>} : memref<288x768xf32, #tpu.memory_space<vmem>>, vector<32x768xf32>,
    %c751_i32_115 = arith.constant 751 : i32
    %109 = tpu.dynamic_rotate %97 by %c751_i32_115 dim 1 : vector<32x768xf32>, i32 -> vector<32x768xf32>
    %c192_116 = arith.constant 192 : index
    %c0_117 = arith.constant 0 : index
    %110 = vector.load %arg10[%c192_116, %c0_117] : memref<288x768xf32, #tpu.memory_space<vmem>>, vector<32x768xf32>
    tpu.vector_store %arg10[%c192_116, %c0_117], %109 {strides = array<i32>} : memref<288x768xf32, #tpu.memory_space<vmem>>, vector<32x768xf32>,
    %c750_i32_118 = arith.constant 750 : i32
    %111 = tpu.dynamic_rotate %97 by %c750_i32_118 dim 1 : vector<32x768xf32>, i32 -> vector<32x768xf32>
    %c224_119 = arith.constant 224 : index
    %c0_120 = arith.constant 0 : index
    %112 = vector.load %arg10[%c224_119, %c0_120] : memref<288x768xf32, #tpu.memory_space<vmem>>, vector<32x768xf32>
    tpu.vector_store %arg10[%c224_119, %c0_120], %111 {strides = array<i32>} : memref<288x768xf32, #tpu.memory_space<vmem>>, vector<32x768xf32>,
    %c749_i32_121 = arith.constant 749 : i32
    %113 = tpu.dynamic_rotate %97 by %c749_i32_121 dim 1 : vector<32x768xf32>, i32 -> vector<32x768xf32>
    %c256_122 = arith.constant 256 : index
    %c0_123 = arith.constant 0 : index
    %114 = vector.load %arg10[%c256_122, %c0_123] : memref<288x768xf32, #tpu.memory_space<vmem>>, vector<32x768xf32>
    tpu.vector_store %arg10[%c256_122, %c0_123], %113 {strides = array<i32>} : memref<288x768xf32, #tpu.memory_space<vmem>>, vector<32x768xf32>,
    %c2_124 = arith.constant 2 : index
    %c0_125 = arith.constant 0 : index
    %c0_126 = arith.constant 0 : index
    %115 = vector.load %arg3[%c2_124, %c0_125, %c0_126] : memref<3x32x288xf32, #tpu.memory_space<vmem>>, vector<1x32x288xf32>
    %116 = vector.shape_cast %115 : vector<1x32x288xf32> to vector<32x288xf32>
    %c3 = arith.constant 3 : index
    %c0_127 = arith.constant 0 : index
    %c0_128 = arith.constant 0 : index
    %117 = vector.load %arg5[%c3, %c0_127, %c0_128] : memref<4x32x1xf32, #tpu.memory_space<vmem>>, vector<1x32x1xf32>
    %118 = vector.shape_cast %117 : vector<1x32x1xf32> to vector<32x1xf32>
    %c0_129 = arith.constant 0 : index
    %c0_130 = arith.constant 0 : index
    %119 = vector.load %arg10[%c0_129, %c0_130] : memref<288x768xf32, #tpu.memory_space<vmem>>, vector<288x768xf32>
    %cst_131 = arith.constant dense<0.000000e+00> : vector<32x768xf32>
    %120 = tpu.matmul %116, %119, %cst_131 {dimension_numbers = #tpu.dot_dimension_numbers<[1], [0], [0], [1], [0, 0, 1, 1], [], []>} : vector<32x288xf32>, vector<288x768xf32>, vector<32x768xf32> -> vector<32x768xf32>
    %121 = vector.broadcast %118 : vector<32x1xf32> to vector<32x768xf32>
    %122 = arith.addf %120, %121 : vector<32x768xf32>
    %cst_132 = arith.constant 0.00999999977 : f32
    %123 = vector.broadcast %cst_132 : f32 to vector<32x768xf32>
    %124 = arith.mulf %123, %122 : vector<32x768xf32>
    %125 = arith.maximumf %122, %124 : vector<32x768xf32>
    %126 = vector.broadcast %0 : vector<1x768xf32> to vector<32x768xf32>
    %127 = arith.mulf %125, %126 : vector<32x768xf32>
    %c0_133 = arith.constant 0 : index
    %c0_134 = arith.constant 0 : index
    %128 = vector.load %arg9[%c0_133, %c0_134] : memref<32x768xf32, #tpu.memory_space<vmem>>, vector<32x768xf32>
    tpu.vector_store %arg9[%c0_133, %c0_134], %127 {strides = array<i32>} : memref<32x768xf32, #tpu.memory_space<vmem>>, vector<32x768xf32>,
    %c0_135 = arith.constant 0 : index
    %c0_136 = arith.constant 0 : index
    %129 = vector.load %arg9[%c0_135, %c0_136] : memref<32x768xf32, #tpu.memory_space<vmem>>, vector<32x768xf32>
    %c19_i32_137 = arith.constant 19 : i32
    %130 = tpu.dynamic_rotate %129 by %c19_i32_137 dim 1 : vector<32x768xf32>, i32 -> vector<32x768xf32>
    %c0_138 = arith.constant 0 : index
    %c0_139 = arith.constant 0 : index
    %131 = vector.load %arg10[%c0_138, %c0_139] : memref<288x768xf32, #tpu.memory_space<vmem>>, vector<32x768xf32>
    tpu.vector_store %arg10[%c0_138, %c0_139], %130 {strides = array<i32>} : memref<288x768xf32, #tpu.memory_space<vmem>>, vector<32x768xf32>,
    %c18_i32_140 = arith.constant 18 : i32
    %132 = tpu.dynamic_rotate %129 by %c18_i32_140 dim 1 : vector<32x768xf32>, i32 -> vector<32x768xf32>
    %c32_141 = arith.constant 32 : index
    %c0_142 = arith.constant 0 : index
    %133 = vector.load %arg10[%c32_141, %c0_142] : memref<288x768xf32, #tpu.memory_space<vmem>>, vector<32x768xf32>
    tpu.vector_store %arg10[%c32_141, %c0_142], %132 {strides = array<i32>} : memref<288x768xf32, #tpu.memory_space<vmem>>, vector<32x768xf32>,
    %c17_i32_143 = arith.constant 17 : i32
    %134 = tpu.dynamic_rotate %129 by %c17_i32_143 dim 1 : vector<32x768xf32>, i32 -> vector<32x768xf32>
    %c64_144 = arith.constant 64 : index
    %c0_145 = arith.constant 0 : index
    %135 = vector.load %arg10[%c64_144, %c0_145] : memref<288x768xf32, #tpu.memory_space<vmem>>, vector<32x768xf32>
    tpu.vector_store %arg10[%c64_144, %c0_145], %134 {strides = array<i32>} : memref<288x768xf32, #tpu.memory_space<vmem>>, vector<32x768xf32>,
    %c1_i32_146 = arith.constant 1 : i32
    %136 = tpu.dynamic_rotate %129 by %c1_i32_146 dim 1 : vector<32x768xf32>, i32 -> vector<32x768xf32>
    %c96_147 = arith.constant 96 : index
    %c0_148 = arith.constant 0 : index
    %137 = vector.load %arg10[%c96_147, %c0_148] : memref<288x768xf32, #tpu.memory_space<vmem>>, vector<32x768xf32>
    tpu.vector_store %arg10[%c96_147, %c0_148], %136 {strides = array<i32>} : memref<288x768xf32, #tpu.memory_space<vmem>>, vector<32x768xf32>,
    %c128_149 = arith.constant 128 : index
    %c0_150 = arith.constant 0 : index
    %138 = vector.load %arg10[%c128_149, %c0_150] : memref<288x768xf32, #tpu.memory_space<vmem>>, vector<32x768xf32>
    tpu.vector_store %arg10[%c128_149, %c0_150], %129 {strides = array<i32>} : memref<288x768xf32, #tpu.memory_space<vmem>>, vector<32x768xf32>,
    %c767_i32_151 = arith.constant 767 : i32
    %139 = tpu.dynamic_rotate %129 by %c767_i32_151 dim 1 : vector<32x768xf32>, i32 -> vector<32x768xf32>
    %c160_152 = arith.constant 160 : index
    %c0_153 = arith.constant 0 : index
    %140 = vector.load %arg10[%c160_152, %c0_153] : memref<288x768xf32, #tpu.memory_space<vmem>>, vector<32x768xf32>
    tpu.vector_store %arg10[%c160_152, %c0_153], %139 {strides = array<i32>} : memref<288x768xf32, #tpu.memory_space<vmem>>, vector<32x768xf32>,
    %c751_i32_154 = arith.constant 751 : i32
    %141 = tpu.dynamic_rotate %129 by %c751_i32_154 dim 1 : vector<32x768xf32>, i32 -> vector<32x768xf32>
    %c192_155 = arith.constant 192 : index
    %c0_156 = arith.constant 0 : index
    %142 = vector.load %arg10[%c192_155, %c0_156] : memref<288x768xf32, #tpu.memory_space<vmem>>, vector<32x768xf32>
    tpu.vector_store %arg10[%c192_155, %c0_156], %141 {strides = array<i32>} : memref<288x768xf32, #tpu.memory_space<vmem>>, vector<32x768xf32>,
    %c750_i32_157 = arith.constant 750 : i32
    %143 = tpu.dynamic_rotate %129 by %c750_i32_157 dim 1 : vector<32x768xf32>, i32 -> vector<32x768xf32>
    %c224_158 = arith.constant 224 : index
    %c0_159 = arith.constant 0 : index
    %144 = vector.load %arg10[%c224_158, %c0_159] : memref<288x768xf32, #tpu.memory_space<vmem>>, vector<32x768xf32>
    tpu.vector_store %arg10[%c224_158, %c0_159], %143 {strides = array<i32>} : memref<288x768xf32, #tpu.memory_space<vmem>>, vector<32x768xf32>,
    %c749_i32_160 = arith.constant 749 : i32
    %145 = tpu.dynamic_rotate %129 by %c749_i32_160 dim 1 : vector<32x768xf32>, i32 -> vector<32x768xf32>
    %c256_161 = arith.constant 256 : index
    %c0_162 = arith.constant 0 : index
    %146 = vector.load %arg10[%c256_161, %c0_162] : memref<288x768xf32, #tpu.memory_space<vmem>>, vector<32x768xf32>
    tpu.vector_store %arg10[%c256_161, %c0_162], %145 {strides = array<i32>} : memref<288x768xf32, #tpu.memory_space<vmem>>, vector<32x768xf32>,
    %c0_163 = arith.constant 0 : index
    %c0_164 = arith.constant 0 : index
    %147 = vector.load %arg4[%c0_163, %c0_164] : memref<8x288xf32, #tpu.memory_space<vmem>>, vector<8x288xf32>
    %c0_165 = arith.constant 0 : index
    %c0_166 = arith.constant 0 : index
    %148 = vector.load %arg6[%c0_165, %c0_166] : memref<8x1xf32, #tpu.memory_space<vmem>>, vector<8x1xf32>
    %c0_167 = arith.constant 0 : index
    %c0_168 = arith.constant 0 : index
    %149 = vector.load %arg10[%c0_167, %c0_168] : memref<288x768xf32, #tpu.memory_space<vmem>>, vector<288x768xf32>
    %cst_169 = arith.constant dense<0.000000e+00> : vector<8x768xf32>
    %150 = tpu.matmul %147, %149, %cst_169 {dimension_numbers = #tpu.dot_dimension_numbers<[1], [0], [0], [1], [0, 0, 1, 1], [], []>} : vector<8x288xf32>, vector<288x768xf32>, vector<8x768xf32> -> vector<8x768xf32>
    %151 = vector.broadcast %148 : vector<8x1xf32> to vector<8x768xf32>
    %152 = arith.addf %150, %151 : vector<8x768xf32>
    %cst_170 = arith.constant 0.00999999977 : f32
    %153 = vector.broadcast %cst_170 : f32 to vector<8x768xf32>
    %154 = arith.mulf %153, %152 : vector<8x768xf32>
    %155 = arith.maximumf %152, %154 : vector<8x768xf32>
    %c0_171 = arith.constant 0 : index
    %c0_172 = arith.constant 0 : index
    %c0_173 = arith.constant 0 : index
    %156 = vector.load %arg8[%c0_171, %c0_172, %c0_173] : memref<1x8x768xf32, #tpu.memory_space<vmem>>, vector<1x8x768xf32>
    %157 = vector.shape_cast %156 : vector<1x8x768xf32> to vector<8x768xf32>
    %158 = vector.shape_cast %155 : vector<8x768xf32> to vector<1x8x768xf32>
    tpu.vector_store %arg8[%c0_171, %c0_172, %c0_173], %158 {strides = array<i32>} : memref<1x8x768xf32, #tpu.memory_space<vmem>>, vector<1x8x768xf32>,
    return
  }
  func.func @transform_0(%arg0: i32) -> (i32, i32, i32) {
    %c0_i32 = arith.constant 0 : i32
    %c0_i32_0 = arith.constant 0 : i32
    %c0_i32_1 = arith.constant 0 : i32
    return %arg0, %c0_i32, %c0_i32_0 : i32, i32, i32
  }
  func.func @transform_1(%arg0: i32) -> (i32, i32) {
    %c0_i32 = arith.constant 0 : i32
    %c0_i32_0 = arith.constant 0 : i32
    %c0_i32_1 = arith.constant 0 : i32
    return %c0_i32, %c0_i32_0 : i32, i32
  }
  func.func @transform_2(%arg0: i32) -> (i32, i32, i32) {
    %c0_i32 = arith.constant 0 : i32
    %c0_i32_0 = arith.constant 0 : i32
    %c0_i32_1 = arith.constant 0 : i32
    %c0_i32_2 = arith.constant 0 : i32
    return %c0_i32, %c0_i32_0, %c0_i32_1 : i32, i32, i32
  }
  func.func @transform_3(%arg0: i32) -> (i32, i32) {
    %c0_i32 = arith.constant 0 : i32
    %c0_i32_0 = arith.constant 0 : i32
    %c0_i32_1 = arith.constant 0 : i32
    return %c0_i32, %c0_i32_0 : i32, i32
  }
  func.func @transform_4(%arg0: i32) -> (i32, i32, i32) {
    %c0_i32 = arith.constant 0 : i32
    %c0_i32_0 = arith.constant 0 : i32
    %c0_i32_1 = arith.constant 0 : i32
    %c0_i32_2 = arith.constant 0 : i32
    return %c0_i32, %c0_i32_0, %c0_i32_1 : i32, i32, i32
  }
  func.func @transform_5(%arg0: i32) -> (i32, i32) {
    %c0_i32 = arith.constant 0 : i32
    %c0_i32_0 = arith.constant 0 : i32
    %c0_i32_1 = arith.constant 0 : i32
    return %c0_i32, %c0_i32_0 : i32, i32
  }
  func.func @transform_6(%arg0: i32) -> (i32, i32) {
    %c0_i32 = arith.constant 0 : i32
    %c0_i32_0 = arith.constant 0 : i32
    %c0_i32_1 = arith.constant 0 : i32
    return %c0_i32, %c0_i32_0 : i32, i32
  }
  func.func @transform_7(%arg0: i32) -> (i32, i32, i32) {
    %c0_i32 = arith.constant 0 : i32
    %c0_i32_0 = arith.constant 0 : i32
    %c0_i32_1 = arith.constant 0 : i32
    return %arg0, %c0_i32, %c0_i32_0 : i32, i32, i32
  }
}

</mosaic_0001>

<bundles_post_ra>
// kernel: fcn_forward_pallas.1
= control target key start
LH: loop header
LB: loop body
LE: loop exit
PB: predicated region body
PF: predicated region fallthrough
CT: control target
= control target key end

     0   :  { %s10515_s9 = smov 19   ;;  %s10516_s10 = smov 18   ;;  %v17223_v8 = vmov 0.0   ;;  %v10524_v11 = vmov 0   ;;  %v45_v16 = vlaneseq  ;;  %vm323_vm8 = vcmask 588800   ;;  %s17213_s0 = inlined_call_operand.vmem [shape: f32[1,8,768], index: 0, kind: input, shape index: {}]   ;;  %s17214_s4 = inlined_call_operand.vmem [shape: f32[4,32,1], index: 4, kind: input, shape index: {}]   ;;  %s17215_s1 = inlined_call_operand.vmem [shape: f32[32,72], index: 1, kind: input, shape index: {}]   ;;  %s17216_s6 = inlined_call_operand.vmem [shape: f32[1,768], index: 6, kind: input, shape index: {}]   ;;  %s17217_s2 = inlined_call_operand.vmem [shape: f32[3,32,288], index: 2, kind: input, shape index: {}]   ;;  %s17218_s3 = inlined_call_operand.vmem [shape: f32[8,288], index: 3, kind: input, shape index: {}]   ;;  %s17219_s5 = inlined_call_operand.vmem [shape: f32[8,1], index: 5, kind: input, shape index: {}]   ;;  %s17220_s7 = inlined_call_operand.vmem [shape: f32[1,8,768], index: 7, kind: output, shape index: {}]  }
   0x1   :  { %v10568_v0 = vld [vmem:[%s17213_s0 + $0x20] sm:$0xff]  ;;  %v10573_v1 = vld [vmem:[%s17213_s0 + $0x28] sm:$0xff]  ;;  %s10517_s11 = smov 1   ;;  %s10518_s12 = smov 17   ;;  %v10598_v6 = vld [vmem:[%s17213_s0 + $0x10] sm:$0xff]  ;;  %400 = vmatprep.mubr.f32.mxu0 %v17223_v8  ;;  %489 = vmatprep.mubr.f32.mxu1 %v17223_v8  ;;  %vm1799_vm9 = vcmask 261120  }
   0x2   :  { %v10578_v2 = vld [vmem:[%s17213_s0] sm:$0xff]  ;;  %v8533_v3 = vpack.i.bf16 %v10568_v0, %v10573_v1  ;;  %v10585_v4 = vld [vmem:[%s17213_s0 + $0x8] sm:$0xff]  ;;  %s10519_s15 = smov 127   ;;  %s10520_s16 = smov 110   ;;  %v10624_v9 = vld [vmem:[%s17213_s0 + $0x18] sm:$0xff]  ;;  %8593 = vset.pattern.permute.xlu0 %v10524_v11  ;;  %8594 = vset.pattern.permute.xlu1 %v10524_v11  ;;  %v10676_v19 = vand.u32 127, %v45_v16 }
   0x3   :  { %v8523_v5 = vpack.i.bf16 %v10585_v4, %v10578_v2  ;;  %v8553_v7 = vpack.i.bf16 %v10598_v6, %v10585_v4  ;;  %s10521_s17 = smov 111   ;;  %s10523_s18 = smov 109   ;;  %v8568_v10 = vpack.i.bf16 %v10624_v9, %v10568_v0  ;;  %v245_v12 = vld [vmem:[%s17214_s4] sm:$0xff]  ;;  %v246_v13 = vld [vmem:[%s17214_s4 + $0x8] sm:$0xff]  ;;  %v247_v14 = vld [vmem:[%s17214_s4 + $0x10] sm:$0xff] }
   0x4   :  { %8534 = vrot.lane.b32.xlu1 %v8533_v3, %s10515_s9  ;;  %v248_v15 = vld [vmem:[%s17214_s4 + $0x18] sm:$0xff]  ;;  %vm47_vm0 = vcmp.lt.s32.totalorder %v10676_v19, 19  ;;  %vm72_vm1 = vcmp.lt.s32.totalorder %v10676_v19, 18  ;;  %vm122_vm2 = vcmp.lt.s32.totalorder %v10676_v19, 1  ;;  %vm97_vm3 = vcmp.lt.s32.totalorder %v10676_v19, 17 }
   0x5   :  { %8524 = vrot.lane.b32.xlu0 %v8523_v5, %s10515_s9  ;;  %vm153_vm4 = vcmp.lt.s32.totalorder %v10676_v19, 127  ;;  %vm203_vm5 = vcmp.lt.s32.totalorder %v10676_v19, 110  ;;  %vm178_vm6 = vcmp.lt.s32.totalorder %v10676_v19, 111  ;;  %vm228_vm7 = vcmp.lt.s32.totalorder %v10676_v19, 109 }
   0x8   :  { %8539 = vrot.lane.b32.xlu1 %v8533_v3, %s10516_s10 }
   0x9   :  { %8529 = vrot.lane.b32.xlu0 %v8523_v5, %s10516_s10 }
   0xc   :  { %8549 = vrot.lane.b32.xlu1 %v8523_v5, %s10517_s11 }
   0xd   :  { %8544 = vrot.lane.b32.xlu0 %v8523_v5, %s10518_s12 }
  0x10   :  { %120 = vrot.lane.b32.xlu1 %v10573_v1, %s10517_s11 }
  0x11   :  { %95 = vrot.lane.b32.xlu0 %v10573_v1, %s10518_s12 }
  0x14   :  { %141 = vrot.lane.b32.xlu1 %v10578_v2, %s10519_s15 }
  0x15   :  { %8554 = vrot.lane.b32.xlu0 %v8553_v7, %s10519_s15 }
  0x18   :  { %8564 = vrot.lane.b32.xlu1 %v8553_v7, %s10520_s16 }
  0x19   :  { %8559 = vrot.lane.b32.xlu0 %v8553_v7, %s10521_s17 }
  0x1c   :  { %191 = vrot.lane.b32.xlu1 %v10578_v2, %s10520_s16 }
  0x1d   :  { %166 = vrot.lane.b32.xlu0 %v10578_v2, %s10521_s17 }
  0x20   :  { %220 = vrot.lane.b32.xlu1 %v10598_v6, %s10523_s18 }
  0x21   :  { %218 = vrot.lane.b32.xlu0 %v10585_v4, %s10523_s18 }
  0x24   :  { %66 = vrot.lane.b32.xlu1 %v10624_v9, %s10516_s10 }
  0x25   :  { %39 = vrot.lane.b32.xlu0 %v10624_v9, %s10515_s9 }
  0x28   :  { %8569 = vrot.lane.b32.xlu1 %v8568_v10, %s10518_s12 }
  0x29   :  { %216 = vrot.lane.b32.xlu0 %v10578_v2, %s10523_s18 }
  0x2c   :  { %8579 = vrot.lane.b32.xlu1 %v8533_v3, %s10519_s15 }
  0x2d   :  { %8574 = vrot.lane.b32.xlu0 %v8568_v10, %s10517_s11 }
  0x30   :  { %8589 = vrot.lane.b32.xlu1 %v8533_v3, %s10520_s16 }
  0x31   :  { %8584 = vrot.lane.b32.xlu0 %v8533_v3, %s10521_s17 }
  0x34   :  { %224 = vrot.lane.b32.xlu1 %v10568_v0, %s10523_s18 }
  0x35   :  { %226 = vrot.lane.b32.xlu0 %v10573_v1, %s10523_s18 }
  0x38   :  { %64 = vrot.lane.b32.xlu1 %v10598_v6, %s10516_s10 }
  0x39   :  { %37 = vrot.lane.b32.xlu0 %v10598_v6, %s10515_s9 }
  0x3c   :  { %114 = vrot.lane.b32.xlu1 %v10598_v6, %s10517_s11 }
  0x3d   :  { %89 = vrot.lane.b32.xlu0 %v10598_v6, %s10518_s12 }
  0x40   :  { %172 = vrot.lane.b32.xlu1 %v10624_v9, %s10521_s17 }
  0x41   :  { %147 = vrot.lane.b32.xlu0 %v10624_v9, %s10519_s15 }
  0x44   :  { %222 = vrot.lane.b32.xlu1 %v10624_v9, %s10523_s18 }
  0x45   :  { %197 = vrot.lane.b32.xlu0 %v10624_v9, %s10520_s16 }
  0x48   :  { %310 = vperm.xlu1 %8594, %v246_v13  }
  0x49   :  { %305 = vperm.xlu0 %8593, %v245_v12  }
  0x4c   :  { %315 = vperm.xlu1 %8594, %v247_v14  }
  0x4d   :  { %320 = vperm.xlu0 %8593, %v248_v15  }
  0x76   :  { %v10671_v17 = vpop.permute.xlu1 %8534 }
  0x77   :  { %v10673_v18 = vpop.permute.xlu0 %8524  ;;  %v8536_v20 = vunpack.i.l.bf16 %v10671_v17  ;;  %v8537_v14 = vunpack.i.h.bf16 %v10671_v17  ;;  %v10811_v17 = vld [vmem:[%s17215_s1] sm:$0xff] }
  0x78   :  { %v8527_v21 = vunpack.i.h.bf16 %v10673_v18  ;;  %v8526_v22 = vunpack.i.l.bf16 %v10673_v18 }
  0x7a   :  { %v10681_v23 = vpop.permute.xlu1 %8539  ;;  %v52_v29 = vsel %vm47_vm0, %v8526_v22, %v8527_v21  ;;  %v53_v31 = vsel %vm47_vm0, %v8536_v20, %v8526_v22 }
  0x7b   :  { %v8541_v24 = vunpack.i.l.bf16 %v10681_v23  ;;  %v10684_v25 = vpop.permute.xlu0 %8529  ;;  %v8542_v15 = vunpack.i.h.bf16 %v10681_v23 }
  0x7c   :  { %v8532_v26 = vunpack.i.h.bf16 %v10684_v25  ;;  %v8531_v27 = vunpack.i.l.bf16 %v10684_v25 }
  0x7e   :  { %v10692_v28 = vpop.permute.xlu1 %8549  ;;  %v77_v30 = vsel %vm72_vm1, %v8531_v27, %v8532_v26  ;;  %v78_v32 = vsel %vm72_vm1, %v8541_v24, %v8531_v27 }
  0x7f   :  { %v8552_v33 = vunpack.i.h.bf16 %v10692_v28  ;;  %v8551_v34 = vunpack.i.l.bf16 %v10692_v28  ;;  %v10712_v35 = vpop.permute.xlu0 %8544  ;;  %v7445_v36 = vpack.c.bf16 %v77_v30, %v52_v29  ;;  %v7447_v37 = vpack.c.bf16 %v78_v32, %v53_v31 }
  0x80   :  { %v8547_v38 = vunpack.i.h.bf16 %v10712_v35  ;;  %v8546_v39 = vunpack.i.l.bf16 %v10712_v35  ;;  %v48_v29 = vsel %vm47_vm0, %v8537_v14, %v8536_v20  ;;  %v73_v30 = vsel %vm72_vm1, %v8542_v15, %v8541_v24 }
  0x81   :  { %7446 = vmatprep.subr.bf16.mxu0 %v7445_v36  ;;  %v127_v40 = vsel %vm122_vm2, %v8551_v34, %v8552_v33  ;;  %v7477_v24 = vpack.c.bf16 %v73_v30, %v48_v29 }
  0x82   :  { %7448 = vmatpush1.bf16.msra.mxu0 %v7447_v37  ;;  %v10720_v41 = vpop.permute.xlu1 %120  ;;  %v102_v42 = vsel %vm97_vm3, %v8546_v39, %v8547_v38 }
  0x83   :  { %v128_v43 = vsel %vm122_vm2, %v10720_v41, %v8551_v34  ;;  %v10729_v44 = vpop.permute.xlu0 %95  ;;  %v7449_v45 = vpack.c.bf16 %v127_v40, %v102_v42 }
  0x84   :  { %v103_v46 = vsel %vm97_vm3, %v10729_v44, %v8546_v39 }
  0x85   :  { %7450 = vmatprep.subr.bf16.mxu0 %v7449_v45  ;;  %v7451_v47 = vpack.c.bf16 %v128_v43, %v103_v46  ;;  %v10827_v45 = vld [vmem:[%s17215_s1 + $0x8] sm:$0xff] }
  0x86   :  { %v10734_v48 = vpop.permute.xlu1 %141 }
  0x87   :  { %v10736_v49 = vpop.permute.xlu0 %8554  ;;  %7452 = vmatpush1.bf16.msra.mxu0 %v7451_v47 }
  0x88   :  { %v8557_v50 = vunpack.i.h.bf16 %v10736_v49  ;;  %v8556_v51 = vunpack.i.l.bf16 %v10736_v49 }
  0x8a   :  { %v10741_v52 = vpop.permute.xlu1 %8564  ;;  %v157_v53 = vsel %vm153_vm4, %v8556_v51, %v8557_v50  ;;  %v158_v54 = vsel %vm153_vm4, %v10734_v48, %v8556_v51 }
  0x8b   :  { %v8567_v55 = vunpack.i.h.bf16 %v10741_v52  ;;  %v8566_v56 = vunpack.i.l.bf16 %v10741_v52  ;;  %v10754_v57 = vpop.permute.xlu0 %8559  ;;  %v7453_v58 = vpack.c.bf16 %v157_v53, %v10585_v4  ;;  %v7455_v59 = vpack.c.bf16 %v158_v54, %v10578_v2 }
  0x8c   :  { %v8562_v60 = vunpack.i.h.bf16 %v10754_v57  ;;  %v8561_v61 = vunpack.i.l.bf16 %v10754_v57 }
  0x8d   :  { %7454 = vmatprep.subr.bf16.mxu0 %v7453_v58  ;;  %v207_v62 = vsel %vm203_vm5, %v8566_v56, %v8567_v55 }
  0x8e   :  { %7456 = vmatpush1.bf16.msra.mxu0 %v7455_v59  ;;  %v10764_v63 = vpop.permute.xlu1 %191  ;;  %v182_v3 = vsel %vm178_vm6, %v8561_v61, %v8562_v60 }
  0x8f   :  { %v208_v2 = vsel %vm203_vm5, %v10764_v63, %v8566_v56  ;;  %v10773_v4 = vpop.permute.xlu0 %166  ;;  %v7457_v5 = vpack.c.bf16 %v207_v62, %v182_v3 }
  0x90   :  { %v183_v7 = vsel %vm178_vm6, %v10773_v4, %v8561_v61 }
  0x91   :  { %7458 = vmatprep.subr.bf16.mxu0 %v7457_v5  ;;  %v7459_v10 = vpack.c.bf16 %v208_v2, %v183_v7  ;;  %v10853_v2 = vld [vmem:[%s17215_s1 + $0x10] sm:$0xff] }
  0x92   :  { %v10779_v11 = vpop.permute.xlu1 %220 }
  0x93   :  { %v219_v12 = vpop.permute.xlu0 %218  ;;  %7460 = vmatpush1.bf16.msra.mxu0 %v7459_v10 }
  0x94   :  { %v232_v13 = vsel %vm228_vm7, %v219_v12, %v10779_v11 }
  0x95   :  { %352 = vmatprep.subr.mxu0 %v232_v13 }
  0x96   :  { %v10786_v22 = vpop.permute.xlu1 %66 }
  0x97   :  { %v10788_v27 = vpop.permute.xlu0 %39  ;;  %v74_v31 = vsel %vm72_vm1, %v10786_v22, %v8542_v15  ;;  %v10874_v15 = vld [vmem:[%s17215_s1 + $0x18] sm:$0xff] }
  0x98   :  { %v49_v32 = vsel %vm47_vm0, %v10788_v27, %v8537_v14 }
  0x99   :  { %v7479_v37 = vpack.c.bf16 %v74_v31, %v49_v32 }
  0x9a   :  { %v10804_v34 = vpop.permute.xlu1 %8569 }
  0x9b   :  { %v10806_v36 = vpop.permute.xlu0 %216  ;;  %v8572_v20 = vunpack.i.h.bf16 %v10804_v34  ;;  %v8571_v39 = vunpack.i.l.bf16 %v10804_v34 }
  0x9c   :  { %v233_v23 = vsel %vm228_vm7, %v10806_v36, %v219_v12 }
  0x9d   :  { %353 = vmatpush1.msra.mxu0 %v233_v23  ;;  %v99_v46 = vsel %vm97_vm3, %v8572_v20, %v8571_v39  ;;  %v98_v58 = vsel %vm97_vm3, %v8571_v39, %v10729_v44 }
  0x9e   :  { %7358 = vmatmul.mubr.msk.f32.vlgmr.msra.gmra.mrb[0].mxu0 %vm323_vm8, %v10811_v17  ;;  %7478 = vmatprep.subr.bf16.mxu0 %v7477_v24  ;;  %v10820_v40 = vpop.permute.xlu1 %8579 }
  0x9f   :  { %v8581_v42 = vunpack.i.l.bf16 %v10820_v40  ;;  %v8575_v43 = vpop.permute.xlu0 %8574  ;;  %7480 = vmatpush1.bf16.msra.mxu0 %v7479_v37  ;;  %406 = vmatprep.mubr.f32.mxu0 %v17223_v8  ;;  %v8582_v47 = vunpack.i.h.bf16 %v10820_v40 }
  0xa0   :  { %v8577_v51 = vunpack.i.h.bf16 %v8575_v43  ;;  %v8576_v53 = vunpack.i.l.bf16 %v8575_v43 }
  0xa1   :  { %v159_v44 = vsel %vm153_vm4, %v8581_v42, %v10734_v48 }
  0xa2   :  { %v124_v54 = vsel %vm122_vm2, %v8577_v51, %v8576_v53  ;;  %7359 = vmatmul.mubr.msk.f32.gmra.mrb[2].mxu0 %vm323_vm8, %v10827_v45  ;;  %v10838_v56 = vpop.permute.xlu1 %8589  ;;  %v123_v59 = vsel %vm122_vm2, %v8576_v53, %v10720_v41  ;;  %v154_v41 = vsel %vm153_vm4, %v8582_v47, %v8581_v42  ;;  %v7485_v14 = vpack.c.bf16 %v159_v44, %v10573_v1 }
  0xa3   :  { %v8591_v61 = vunpack.i.l.bf16 %v10838_v56  ;;  %v10847_v62 = vpop.permute.xlu0 %8584  ;;  %412 = vmatprep.mubr.f32.mxu0 %v17223_v8  ;;  %v7481_v3 = vpack.c.bf16 %v123_v59, %v98_v58  ;;  %v7483_v5 = vpack.c.bf16 %v124_v54, %v99_v46  ;;  %v8592_v7 = vunpack.i.h.bf16 %v10838_v56 }
  0xa4   :  { %v8587_v10 = vunpack.i.h.bf16 %v10847_v62  ;;  %v8586_v12 = vunpack.i.l.bf16 %v10847_v62  ;;  %v7487_v29 = vpack.c.bf16 %v154_v41, %v10568_v0 }
  0xa5   :  { %7482 = vmatprep.subr.bf16.mxu0 %v7481_v3  ;;  %v209_v31 = vsel %vm203_vm5, %v8591_v61, %v10764_v63  ;;  %v204_v1 = vsel %vm203_vm5, %v8592_v7, %v8591_v61 }
  0xa6   :  { %7360 = vmatmul.mubr.msk.f32.gmra.mrb[4].mxu0 %vm323_vm8, %v10853_v2  ;;  %v10867_v13 = vpop.permute.xlu1 %224  ;;  %v184_v30 = vsel %vm178_vm6, %v8586_v12, %v10773_v4  ;;  %v179_v32 = vsel %vm178_vm6, %v8587_v10, %v8586_v12 }
  0xa7   :  { %7484 = vmatpush1.bf16.msra.mxu0 %v7483_v5  ;;  %v227_v48 = vpop.permute.xlu0 %226  ;;  %418 = vmatprep.mubr.f32.mxu0 %v17223_v8  ;;  %v7489_v0 = vpack.c.bf16 %v209_v31, %v184_v30  ;;  %v7491_v37 = vpack.c.bf16 %v204_v1, %v179_v32 }
  0xa8   :  { %7486 = vmatprep.subr.bf16.mxu0 %v7485_v14  ;;  %v234_v18 = vsel %vm228_vm7, %v227_v48, %v10806_v36  ;;  %v229_v28 = vsel %vm228_vm7, %v10867_v13, %v227_v48 }
  0xaa   :  { %7361 = vmatmul.mubr.msk.f32.gmra.mrb[6].mxu0 %vm323_vm8, %v10874_v15  ;;  %v65_v23 = vpop.permute.xlu1 %64 }
  0xab   :  { %7488 = vmatpush1.bf16.msra.mxu0 %v7487_v29  ;;  %v38_v24 = vpop.permute.xlu0 %37  ;;  %v75_v4 = vsel %vm72_vm1, %v65_v23, %v10786_v22  ;;  %v76_v63 = vsel %vm72_vm1, %v8532_v26, %v65_v23  ;;  %578 = vmatprep.mubr.f32.mxu0 %v17223_v8 }
  0xac   :  { %7490 = vmatprep.subr.bf16.mxu0 %v7489_v0  ;;  %v50_v39 = vsel %vm47_vm0, %v38_v24, %v10788_v27  ;;  %v51_v42 = vsel %vm47_vm0, %v8527_v21, %v38_v24 }
  0xad   :  { %v7461_v43 = vpack.c.bf16 %v75_v4, %v50_v39  ;;  %v7463_v46 = vpack.c.bf16 %v76_v63, %v51_v42 }
  0xae   :  { %v115_v22 = vpop.permute.xlu1 %114 }
  0xaf   :  { %7492 = vmatpush1.bf16.msra.mxu0 %v7491_v37  ;;  %v125_v25 = vsel %vm122_vm2, %v115_v22, %v8577_v51  ;;  %v126_v26 = vsel %vm122_vm2, %v8552_v33, %v115_v22  ;;  %7462 = vmatprep.subr.bf16.mxu1 %v7461_v43  ;;  %v90_v53 = vpop.permute.xlu0 %89 }
  0xb0   :  { %v100_v21 = vsel %vm97_vm3, %v90_v53, %v8572_v20  ;;  %v101_v27 = vsel %vm97_vm3, %v8547_v38, %v90_v53  ;;  %530 = vmatprep.subr.mxu0 %v234_v18  ;;  %7464 = vmatpush1.bf16.msra.mxu1 %v7463_v46 }
  0xb1   :  { %v7465_v33 = vpack.c.bf16 %v125_v25, %v100_v21  ;;  %v7467_v51 = vpack.c.bf16 %v126_v26, %v101_v27 }
  0xb2   :  { %v173_v36 = vpop.permute.xlu1 %172 }
  0xb3   :  { %531 = vmatpush1.msra.mxu0 %v229_v28  ;;  %v148_v54 = vpop.permute.xlu0 %147  ;;  %7466 = vmatprep.subr.bf16.mxu1 %v7465_v33  ;;  %v180_v40 = vsel %vm178_vm6, %v173_v36, %v8587_v10  ;;  %v181_v49 = vsel %vm178_vm6, %v8562_v60, %v173_v36  ;;  %v10975_v60 = vshrl.u32 %v45_v16, 7 }
  0xb4   :  { %v155_v35 = vsel %vm153_vm4, %v148_v54, %v8582_v47  ;;  %v156_v38 = vsel %vm153_vm4, %v8557_v50, %v148_v54  ;;  %7366 = vmatmul.mubr.msk.f32.vlgmr.msra.gmra.mrb[8].mxu0 %vm323_vm8, %v10811_v17  ;;  %7468 = vmatpush1.bf16.msra.mxu1 %v7467_v51 }
  0xb5   :  { %584 = vmatprep.mubr.f32.mxu0 %v17223_v8  ;;  %v7469_v34 = vpack.c.bf16 %v155_v35, %v10624_v9  ;;  %v7471_v20 = vpack.c.bf16 %v156_v38, %v10598_v6  ;;  %v666_v58 = vsub.s32 3, %v10975_v60  ;;  %v654_v44 = vsub.s32 0, %v10975_v60 }
  0xb6   :  { %v223_v6 = vpop.permute.xlu1 %222  ;;  %v658_v10 = vsub.s32 1, %v10975_v60 }
  0xb7   :  { %v198_v56 = vpop.permute.xlu0 %197  ;;  %7470 = vmatprep.subr.bf16.mxu1 %v7469_v34  ;;  %v230_v52 = vsel %vm228_vm7, %v223_v6, %v10867_v13 }
  0xb8   :  { %v205_v50 = vsel %vm203_vm5, %v198_v56, %v8592_v7  ;;  %v206_v9 = vsel %vm203_vm5, %v8567_v55, %v198_v56  ;;  %7367 = vmatmul.mubr.msk.f32.gmra.mrb[10].mxu0 %vm323_vm8, %v10827_v45  ;;  %7472 = vmatpush1.bf16.msra.mxu1 %v7471_v20  ;;  %v231_v55 = vsel %vm228_vm7, %v10779_v11, %v223_v6  ;;  %v670_v11 = vsub.s32 4, %v10975_v60 }
  0xb9   :  { %590 = vmatprep.mubr.f32.mxu0 %v17223_v8  ;;  %v7473_v47 = vpack.c.bf16 %v205_v50, %v180_v40  ;;  %v7475_v57 = vpack.c.bf16 %v206_v9, %v181_v49 }
  0xbb   :  { %7474 = vmatprep.subr.bf16.mxu1 %v7473_v47 }
  0xbc   :  { %7368 = vmatmul.mubr.msk.f32.gmra.mrb[12].mxu0 %vm323_vm8, %v10853_v2  ;;  %7476 = vmatpush1.bf16.msra.mxu1 %v7475_v57 }
  0xbd   :  { %441 = vmatprep.subr.mxu1 %v230_v52  ;;  %596 = vmatprep.mubr.f32.mxu0 %v17223_v8 }
  0xc0   :  { %7369 = vmatmul.mubr.msk.f32.gmra.mrb[14].mxu0 %vm323_vm8, %v10874_v15  ;;  %442 = vmatpush1.msra.mxu1 %v231_v55 }
  0xc1   :  { %7362 = vmatmul.mubr.msk.f32.vlgmr.msra.gmra.mrb[0].mxu1 %vm323_vm8, %v10811_v17  ;;  %v10981_v17 = vld [vmem:[%s17216_s6] sm:$0x3f] }
  0xc2   :  { %495 = vmatprep.mubr.f32.mxu1 %v17223_v8  ;;  %v10988_v59 = vrot.slane %v10981_v17, %v666_v58  ;;  %v11004_v1 = vrot.slane %v10981_v17, %v658_v10 }
  0xc4   :  { %17615 = vst [vmem:[#allocation5_spill] sm:$0xff] %v10988_v59  ;;  %17617 = vst [vmem:[#allocation7_spill] sm:$0xff] %v11004_v1 }
  0xc5   :  { %7363 = vmatmul.mubr.msk.f32.gmra.mrb[2].mxu1 %vm323_vm8, %v10827_v45  ;;  %v10984_v45 = vrot.slane %v10981_v17, %v670_v11 }
  0xc6   :  { %501 = vmatprep.mubr.f32.mxu1 %v17223_v8 }
  0xc7   :  { %17614 = vst [vmem:[#allocation4_spill] sm:$0xff] %v10984_v45  ;;  %v10994_v5 = vpop.permute.xlu1 %310 }
  0xc8   :  { %v10990_v61 = vpop.permute.xlu0 %305 }
  0xc9   :  { %7364 = vmatmul.mubr.msk.f32.gmra.mrb[4].mxu1 %vm323_vm8, %v10853_v2 }
  0xca   :  { %507 = vmatprep.mubr.f32.mxu1 %v17223_v8 }
  0xcb   :  { %v11006_v23 = vpop.permute.xlu1 %315 }
  0xcc   :  { %v11022_v26 = vpop.permute.xlu0 %320 }
  0xcd   :  { %7365 = vmatmul.mubr.msk.f32.gmra.mrb[6].mxu1 %vm323_vm8, %v10874_v15  ;;  %v11001_v15 = vrot.slane %v10981_v17, %v654_v44 }
  0xcf   :  { %17616 = vst [vmem:[#allocation6_spill] sm:$0xff] %v11001_v15 }
 0x171   :  { %v402_v62 = vpop.f32.mrb[0].mxu0 }
 0x172   :  { %v403_v16 = vadd.f32 %v402_v62, %v10990_v61  ;;  %v404_v3 = vpop.f32.mrb[1].mxu0 }
 0x173   :  { %v405_v2 = vadd.f32 %v404_v3, %v10990_v61 }
 0x174   :  { %v603_v41 = vmul.f32 0.01, %v403_v16 }
 0x175   :  { %v604_v7 = vmul.f32 0.01, %v405_v2  ;;  %v408_v12 = vpop.f32.mrb[2].mxu0 }
 0x176   :  { %v409_v13 = vadd.f32 %v408_v12, %v10994_v5  ;;  %v410_v14 = vpop.f32.mrb[3].mxu0  ;;  %v627_v29 = vmax.f32 %v403_v16, %v603_v41 }
 0x177   :  { %v411_v48 = vadd.f32 %v410_v14, %v10994_v5  ;;  %v628_v31 = vmax.f32 %v405_v2, %v604_v7  ;;  %v674_v2 = vsub.s32 5, %v10975_v60 }
 0x178   :  { %v609_v30 = vmul.f32 0.01, %v409_v13  ;;  %v11011_v42 = vmul.f32 %v11001_v15, %v627_v29 }
 0x179   :  { %v610_v32 = vmul.f32 0.01, %v411_v48  ;;  %v414_v0 = vpop.f32.mrb[4].mxu0  ;;  %v11017_v22 = vmul.f32 %v11004_v1, %v628_v31  ;;  %v11084_v29 = vrot.slane %v10981_v17, %v674_v2 }
 0x17a   :  { %v633_v24 = vmax.f32 %v409_v13, %v609_v30  ;;  %v415_v37 = vadd.f32 %v414_v0, %v11006_v23  ;;  %v416_v4 = vpop.f32.mrb[5].mxu0 }
 0x17b   :  { %v634_v63 = vmax.f32 %v411_v48, %v610_v32  ;;  %v417_v39 = vadd.f32 %v416_v4, %v11006_v23  ;;  %17618 = vst [vmem:[#allocation8_spill] sm:$0xff] %v11084_v29  ;;  %v662_v32 = vsub.s32 2, %v10975_v60 }
 0x17c   :  { %v11014_v43 = vmul.f32 %v11001_v15, %v633_v24  ;;  %v615_v46 = vmul.f32 0.01, %v415_v37 }
 0x17d   :  { %v11020_v25 = vmul.f32 %v11004_v1, %v634_v63  ;;  %v616_v53 = vmul.f32 0.01, %v417_v39  ;;  %v420_v18 = vpop.f32.mrb[6].mxu0 }
 0x17e   :  { %v639_v21 = vmax.f32 %v415_v37, %v615_v46  ;;  %v421_v27 = vadd.f32 %v420_v18, %v11022_v26  ;;  %v422_v28 = vpop.f32.mrb[7].mxu0  ;;  %v11027_v33 = vpack.i.bf16 %v11014_v43, %v11011_v42 }
 0x17f   :  { %v423_v51 = vadd.f32 %v422_v28, %v11022_v26  ;;  %v11032_v36 = vpack.i.bf16 %v11020_v25, %v11017_v22  ;;  %v640_v54 = vmax.f32 %v417_v39, %v616_v53  ;;  %v11106_v28 = vrot.slane %v10981_v17, %v662_v32 }
 0x180   :  { %v621_v35 = vmul.f32 0.01, %v421_v27  ;;  %8596 = vrot.lane.b32.xlu1 %v11027_v33, %s10515_s9  ;;  %v11037_v38 = vmul.f32 %v11001_v15, %v639_v21 }
 0x181   :  { %v622_v34 = vmul.f32 0.01, %v423_v51  ;;  %8611 = vrot.lane.b32.xlu0 %v11032_v36, %s10515_s9  ;;  %v11049_v50 = vmul.f32 %v11004_v1, %v640_v54  ;;  %17619 = vst [vmem:[#allocation9_spill] sm:$0xff] %v11106_v28 }
 0x182   :  { %v645_v20 = vmax.f32 %v421_v27, %v621_v35 }
 0x183   :  { %v646_v40 = vmax.f32 %v423_v51, %v622_v34 }
 0x184   :  { %v11042_v56 = vmul.f32 %v11001_v15, %v645_v20  ;;  %8601 = vrot.lane.b32.xlu1 %v11027_v33, %s10516_s10 }
 0x185   :  { %v11052_v9 = vmul.f32 %v11004_v1, %v646_v40  ;;  %8616 = vrot.lane.b32.xlu0 %v11032_v36, %s10516_s10 }
 0x186   :  { %v11060_v47 = vpack.i.bf16 %v11042_v56, %v11037_v38 }
 0x187   :  { %v580_v57 = vpop.f32.mrb[8].mxu0  ;;  %v11064_v52 = vpack.i.bf16 %v11052_v9, %v11049_v50 }
 0x188   :  { %v581_v55 = vadd.f32 %v580_v57, %v10990_v61  ;;  %v582_v11 = vpop.f32.mrb[9].mxu0  ;;  %8606 = vrot.lane.b32.xlu1 %v11027_v33, %s10518_s12 }
 0x189   :  { %v583_v58 = vadd.f32 %v582_v11, %v10990_v61  ;;  %8621 = vrot.lane.b32.xlu0 %v11032_v36, %s10518_s12 }
 0x18a   :  { %v607_v62 = vmul.f32 0.01, %v581_v55 }
 0x18b   :  { %v608_v3 = vmul.f32 0.01, %v583_v58  ;;  %v586_v44 = vpop.f32.mrb[10].mxu0 }
 0x18c   :  { %v587_v7 = vadd.f32 %v586_v44, %v10994_v5  ;;  %v588_v10 = vpop.f32.mrb[11].mxu0  ;;  %8641 = vrot.lane.b32.xlu1 %v11064_v52, %s10515_s9  ;;  %v631_v13 = vmax.f32 %v581_v55, %v607_v62 }
 0x18d   :  { %v589_v12 = vadd.f32 %v588_v10, %v10994_v5  ;;  %8626 = vrot.lane.b32.xlu0 %v11060_v47, %s10515_s9  ;;  %v632_v48 = vmax.f32 %v583_v58, %v608_v3 }
 0x18e   :  { %v613_v14 = vmul.f32 0.01, %v587_v7  ;;  %v11094_v39 = vmul.f32 %v10984_v45, %v631_v13 }
 0x18f   :  { %v614_v30 = vmul.f32 0.01, %v589_v12  ;;  %v592_v31 = vpop.f32.mrb[12].mxu0  ;;  %v11100_v53 = vmul.f32 %v11084_v29, %v632_v48 }
 0x190   :  { %v637_v0 = vmax.f32 %v587_v7, %v613_v14  ;;  %v593_v24 = vadd.f32 %v592_v31, %v11006_v23  ;;  %v594_v37 = vpop.f32.mrb[13].mxu0  ;;  %8646 = vrot.lane.b32.xlu1 %v11064_v52, %s10516_s10 }
 0x191   :  { %v638_v4 = vmax.f32 %v589_v12, %v614_v30  ;;  %v595_v63 = vadd.f32 %v594_v37, %v11006_v23  ;;  %8631 = vrot.lane.b32.xlu0 %v11060_v47, %s10516_s10 }
 0x192   :  { %v11097_v46 = vmul.f32 %v10984_v45, %v637_v0  ;;  %v619_v60 = vmul.f32 0.01, %v593_v24 }
 0x193   :  { %v11103_v18 = vmul.f32 %v11084_v29, %v638_v4  ;;  %v620_v21 = vmul.f32 0.01, %v595_v63  ;;  %v598_v27 = vpop.f32.mrb[14].mxu0 }
 0x194   :  { %v643_v51 = vmax.f32 %v593_v24, %v619_v60  ;;  %v599_v54 = vadd.f32 %v598_v27, %v11022_v26  ;;  %v600_v35 = vpop.f32.mrb[15].mxu0  ;;  %v491_v34 = vpop.f32.mrb[0].mxu1  ;;  %v11111_v20 = vpack.i.bf16 %v11097_v46, %v11094_v39 }
 0x195   :  { %v644_v40 = vmax.f32 %v595_v63, %v620_v21  ;;  %v601_v57 = vadd.f32 %v600_v35, %v11022_v26  ;;  %v492_v55 = vadd.f32 %v491_v34, %v10990_v61  ;;  %v493_v11 = vpop.f32.mrb[1].mxu1  ;;  %8636 = vrot.lane.b32.xlu0 %v11060_v47, %s10518_s12  ;;  %v11119_v17 = vpack.i.bf16 %v11103_v18, %v11100_v53 }
 0x196   :  { %v11122_v58 = vmul.f32 %v10984_v45, %v643_v51  ;;  %v625_v62 = vmul.f32 0.01, %v599_v54  ;;  %v494_v3 = vadd.f32 %v493_v11, %v10990_v61 }
 0x197   :  { %v11126_v2 = vmul.f32 %v11084_v29, %v644_v40  ;;  %v626_v44 = vmul.f32 0.01, %v601_v57  ;;  %v605_v7 = vmul.f32 0.01, %v492_v55  ;;  %8651 = vrot.lane.b32.xlu1 %v11119_v17, %s10515_s9 }
 0x198   :  { %v649_v10 = vmax.f32 %v599_v54, %v625_v62  ;;  %v606_v12 = vmul.f32 0.01, %v494_v3  ;;  %v497_v13 = vpop.f32.mrb[2].mxu1 }
 0x199   :  { %v650_v14 = vmax.f32 %v601_v57, %v626_v44  ;;  %v629_v48 = vmax.f32 %v492_v55, %v605_v7  ;;  %v498_v30 = vadd.f32 %v497_v13, %v10994_v5  ;;  %v499_v31 = vpop.f32.mrb[3].mxu1 }
 0x19a   :  { %v11132_v32 = vmul.f32 %v10984_v45, %v649_v10  ;;  %v630_v61 = vmax.f32 %v494_v3, %v606_v12  ;;  %v500_v0 = vadd.f32 %v499_v31, %v10994_v5 }
 0x19b   :  { %v11136_v24 = vmul.f32 %v11084_v29, %v650_v14  ;;  %v11139_v37 = vmul.f32 %v11106_v28, %v629_v48  ;;  %v611_v4 = vmul.f32 0.01, %v498_v30  ;;  %8656 = vrot.lane.b32.xlu1 %v11064_v52, %s10518_s12 }
 0x19c   :  { %v11144_v63 = vmul.f32 %v10988_v59, %v630_v61  ;;  %v612_v60 = vmul.f32 0.01, %v500_v0  ;;  %v503_v21 = vpop.f32.mrb[4].mxu1  ;;  %v11148_v27 = vpack.i.bf16 %v11132_v32, %v11122_v58 }
 0x19d   :  { %17620 = vst [vmem:[#allocation10_spill] sm:$0xff] %v11139_v37  ;;  %v635_v5 = vmax.f32 %v498_v30, %v611_v4  ;;  %v504_v51 = vadd.f32 %v503_v21, %v11006_v23  ;;  %v505_v54 = vpop.f32.mrb[5].mxu1  ;;  %v11153_v35 = vpack.i.bf16 %v11136_v24, %v11126_v2 }
 0x19e   :  { %v636_v34 = vmax.f32 %v500_v0, %v612_v60  ;;  %v506_v40 = vadd.f32 %v505_v54, %v11006_v23 }
 0x19f   :  { %v11157_v57 = vmul.f32 %v11106_v28, %v635_v5  ;;  %v617_v55 = vmul.f32 0.01, %v504_v51  ;;  %8676 = vrot.lane.b32.xlu0 %v11153_v35, %s10515_s9  ;;  %8661 = vrot.lane.b32.xlu1 %v11119_v17, %s10516_s10 }
 0x1a0   :  { %v11164_v11 = vmul.f32 %v10988_v59, %v636_v34  ;;  %v618_v62 = vmul.f32 0.01, %v506_v40  ;;  %v509_v3 = vpop.f32.mrb[6].mxu1 }
 0x1a1   :  { %17621 = vst [vmem:[#allocation11_spill] sm:$0xff] %v11157_v57  ;;  %v641_v44 = vmax.f32 %v504_v51, %v617_v55  ;;  %v510_v7 = vadd.f32 %v509_v3, %v11022_v26  ;;  %v511_v10 = vpop.f32.mrb[7].mxu1  ;;  %v11169_v23 = vpack.i.bf16 %v11157_v57, %v11139_v37 }
 0x1a2   :  { %v642_v12 = vmax.f32 %v506_v40, %v618_v62  ;;  %v512_v13 = vadd.f32 %v511_v10, %v11022_v26  ;;  %v11181_v30 = vpack.i.bf16 %v11164_v11, %v11144_v63 }
 0x1a3   :  { %v11173_v14 = vmul.f32 %v11106_v28, %v641_v44  ;;  %v623_v48 = vmul.f32 0.01, %v510_v7  ;;  %8681 = vrot.lane.b32.xlu0 %v11032_v36, %s10517_s11  ;;  %8666 = vrot.lane.b32.xlu1 %v11027_v33, %s10517_s11 }
 0x1a4   :  { %v11184_v31 = vmul.f32 %v10988_v59, %v642_v12  ;;  %v624_v61 = vmul.f32 0.01, %v512_v13 }
 0x1a5   :  { %17622 = vst [vmem:[#allocation12_spill] sm:$0xff] %v11173_v14  ;;  %v647_v0 = vmax.f32 %v510_v7, %v623_v48  ;;  %v11263_v7 = vld [vmem:[%s17217_s2 + $0x8] sm:$0xff] }
 0x1a6   :  { %17623 = vst [vmem:[#allocation13_spill] sm:$0xff] %v11184_v31  ;;  %v648_v26 = vmax.f32 %v512_v13, %v624_v61  ;;  %1876 = vmatprep.mubr.f32.mxu1 %v11263_v7  ;;  %2054 = vmatprep.mubr.f32.mxu0 %v11263_v7 }
 0x1a7   :  { %v11187_v4 = vmul.f32 %v11106_v28, %v647_v0  ;;  %8691 = vrot.lane.b32.xlu0 %v11153_v35, %s10516_s10  ;;  %8671 = vrot.lane.b32.xlu1 %v11119_v17, %s10518_s12 }
 0x1a8   :  { %v11194_v60 = vmul.f32 %v10988_v59, %v648_v26 }
 0x1a9   :  { %17624 = vst [vmem:[#allocation14_spill] sm:$0xff] %v11187_v4  ;;  %v11198_v21 = vpack.i.bf16 %v11187_v4, %v11173_v14 }
 0x1aa   :  { %17625 = vst [vmem:[#allocation15_spill] sm:$0xff] %v11194_v60  ;;  %v11202_v5 = vpack.i.bf16 %v11194_v60, %v11184_v31 }
 0x1ab   :  { %8696 = vrot.lane.b32.xlu0 %v11060_v47, %s10517_s11  ;;  %8686 = vrot.lane.b32.xlu1 %v11119_v17, %s10517_s11 }
 0x1af   :  { %8711 = vrot.lane.b32.xlu0 %v11153_v35, %s10518_s12  ;;  %8701 = vrot.lane.b32.xlu1 %v11064_v52, %s10517_s11 }
 0x1b3   :  { %8716 = vrot.lane.b32.xlu0 %v11169_v23, %s10519_s15  ;;  %8706 = vrot.lane.b32.xlu1 %v11032_v36, %s10519_s15 }
 0x1b7   :  { %8726 = vrot.lane.b32.xlu0 %v11153_v35, %s10517_s11  ;;  %8721 = vrot.lane.b32.xlu1 %v11027_v33, %s10519_s15 }
 0x1bb   :  { %8731 = vrot.lane.b32.xlu0 %v11064_v52, %s10519_s15  ;;  %8736 = vrot.lane.b32.xlu1 %v11198_v21, %s10519_s15 }
 0x1bf   :  { %8741 = vrot.lane.b32.xlu0 %v11060_v47, %s10519_s15  ;;  %8746 = vrot.lane.b32.xlu1 %v11032_v36, %s10521_s17 }
 0x1c3   :  { %8751 = vrot.lane.b32.xlu0 %v11169_v23, %s10521_s17  ;;  %8756 = vrot.lane.b32.xlu1 %v11027_v33, %s10521_s17 }
 0x1c7   :  { %8761 = vrot.lane.b32.xlu0 %v11064_v52, %s10521_s17  ;;  %8766 = vrot.lane.b32.xlu1 %v11198_v21, %s10521_s17 }
 0x1cb   :  { %8771 = vrot.lane.b32.xlu0 %v11060_v47, %s10521_s17  ;;  %8776 = vrot.lane.b32.xlu1 %v11032_v36, %s10520_s16 }
 0x1cf   :  { %8781 = vrot.lane.b32.xlu0 %v11169_v23, %s10520_s16  ;;  %8786 = vrot.lane.b32.xlu1 %v11027_v33, %s10520_s16 }
 0x1d3   :  { %8791 = vrot.lane.b32.xlu0 %v11064_v52, %s10520_s16  ;;  %8796 = vrot.lane.b32.xlu1 %v11198_v21, %s10520_s16 }
 0x1d7   :  { %8801 = vrot.lane.b32.xlu0 %v11060_v47, %s10520_s16  ;;  %8806 = vrot.lane.b32.xlu1 %v11032_v36, %s10523_s18 }
 0x1db   :  { %8811 = vrot.lane.b32.xlu0 %v11169_v23, %s10523_s18  ;;  %8816 = vrot.lane.b32.xlu1 %v11027_v33, %s10523_s18 }
 0x1df   :  { %8821 = vrot.lane.b32.xlu0 %v11064_v52, %s10523_s18  ;;  %8826 = vrot.lane.b32.xlu1 %v11198_v21, %s10523_s18 }
 0x1e3   :  { %8831 = vrot.lane.b32.xlu0 %v11060_v47, %s10523_s18  ;;  %8836 = vrot.lane.b32.xlu1 %v11111_v20, %s10515_s9 }
 0x1e7   :  { %8841 = vrot.lane.b32.xlu0 %v11181_v30, %s10515_s9  ;;  %8846 = vrot.lane.b32.xlu1 %v11148_v27, %s10515_s9 }
 0x1eb   :  { %8851 = vrot.lane.b32.xlu0 %v11202_v5, %s10515_s9  ;;  %8856 = vrot.lane.b32.xlu1 %v11111_v20, %s10516_s10 }
 0x1ef   :  { %8861 = vrot.lane.b32.xlu0 %v11181_v30, %s10516_s10  ;;  %8866 = vrot.lane.b32.xlu1 %v11148_v27, %s10516_s10 }
 0x1f2   :  { %v8597_v33 = vpop.permute.xlu1 %8596 }
 0x1f3   :  { %8871 = vrot.lane.b32.xlu0 %v11202_v5, %s10516_s10  ;;  %8876 = vrot.lane.b32.xlu1 %v11111_v20, %s10518_s12  ;;  %v8599_v36 = vunpack.i.h.bf16 %v8597_v33  ;;  %v8598_v47 = vunpack.i.l.bf16 %v8597_v33  ;;  %v11303_v52 = vpop.permute.xlu0 %8611 }
 0x1f4   :  { %v17222_v10 = vunpack.i.h.bf16 %v11303_v52  ;;  %v17221_v12 = vunpack.i.l.bf16 %v11303_v52 }
 0x1f6   :  { %v11307_v13 = vpop.permute.xlu1 %8601  ;;  %v818_v48 = vsel %vm47_vm0, %v8598_v47, %v17221_v12  ;;  %v819_v61 = vsel %vm47_vm0, %v8599_v36, %v17222_v10 }
 0x1f7   :  { %8881 = vrot.lane.b32.xlu0 %v11181_v30, %s10518_s12  ;;  %8886 = vrot.lane.b32.xlu1 %v11148_v27, %s10518_s12  ;;  %v11321_v0 = vpop.permute.xlu0 %8616  ;;  %v7493_v26 = vpack.c.bf16 %v819_v61, %v818_v48  ;;  %v8603_v16 = vunpack.i.l.bf16 %v11307_v13 }
 0x1f8   :  { %v17626_v59 = vunpack.i.l.bf16 %v11321_v0  ;;  %v17627_v28 = vunpack.i.h.bf16 %v11321_v0 }
 0x1f9   :  { %7494 = vmatprep.subr.bf16.mxu1 %v7493_v26 }
 0x1fa   :  { %v11323_v33 = vpop.permute.xlu1 %8606 }
 0x1fb   :  { %8891 = vrot.lane.b32.xlu0 %v11202_v5, %s10518_s12  ;;  %8896 = vrot.lane.b32.xlu1 %v11111_v20, %s10517_s11  ;;  %v11329_v44 = vpop.permute.xlu0 %8621 }
 0x1fc   :  { %v17245_v29 = vunpack.i.h.bf16 %v11329_v44  ;;  %v17244_v45 = vunpack.i.l.bf16 %v11329_v44 }
 0x1fe   :  { %v11335_v3 = vpop.permute.xlu1 %8641 }
 0x1ff   :  { %8901 = vrot.lane.b32.xlu0 %v11181_v30, %s10517_s11  ;;  %8906 = vrot.lane.b32.xlu1 %v11148_v27, %s10517_s11  ;;  %v8627_v48 = vpop.permute.xlu0 %8626  ;;  %v17227_v62 = vunpack.i.h.bf16 %v11335_v3  ;;  %v17228_v55 = vunpack.i.l.bf16 %v11335_v3 }
 0x200   :  { %v8629_v40 = vunpack.i.h.bf16 %v8627_v48  ;;  %v8628_v34 = vunpack.i.l.bf16 %v8627_v48 }
 0x202   :  { %v11341_v61 = vpop.permute.xlu1 %8646  ;;  %v820_v8 = vsel %vm47_vm0, %v8628_v34, %v17228_v55  ;;  %v821_v41 = vsel %vm47_vm0, %v8629_v40, %v17227_v62 }
 0x203   :  { %8911 = vrot.lane.b32.xlu0 %v11202_v5, %s10517_s11  ;;  %8916 = vrot.lane.b32.xlu1 %v11169_v23, %s10515_s9  ;;  %v11343_v26 = vpop.permute.xlu0 %8631  ;;  %v7497_v62 = vpack.c.bf16 %v821_v41, %v820_v8 }
 0x207   :  { %8921 = vrot.lane.b32.xlu0 %v11119_v17, %s10519_s15  ;;  %8926 = vrot.lane.b32.xlu1 %v11111_v20, %s10519_s15 }
 0x209   :  { %v11351_v54 = vpop.permute.xlu1 %8651 }
 0x20a   :  { %v17226_v51 = vunpack.i.h.bf16 %v11351_v54  ;;  %v17225_v12 = vunpack.i.l.bf16 %v11351_v54 }
 0x20b   :  { %8931 = vrot.lane.b32.xlu0 %v11198_v21, %s10515_s9  ;;  %8941 = vrot.lane.b32.xlu1 %v11169_v23, %s10516_s10 }
 0x20c   :  { %v822_v10 = vsel %vm47_vm0, %v17225_v12, %v8598_v47  ;;  %v823_v48 = vsel %vm47_vm0, %v17226_v51, %v8599_v36  ;;  %v11377_v47 = vpop.permute.xlu0 %8636  ;;  %v8604_v36 = vunpack.i.h.bf16 %v11307_v13  ;;  %v8609_v13 = vunpack.i.h.bf16 %v11323_v33 }
 0x20d   :  { %v11379_v12 = vpop.permute.xlu1 %8656  ;;  %v7495_v49 = vpack.c.bf16 %v823_v48, %v822_v10  ;;  %v914_v10 = vsel %vm72_vm1, %v8603_v16, %v17626_v59  ;;  %v8634_v59 = vunpack.i.h.bf16 %v11343_v26  ;;  %v8633_v48 = vunpack.i.l.bf16 %v11343_v26 }
 0x20e   :  { %v915_v8 = vsel %vm72_vm1, %v8604_v36, %v17627_v28  ;;  %v17633_v60 = vunpack.i.l.bf16 %v11379_v12 }
 0x20f   :  { %8936 = vrot.lane.b32.xlu0 %v11148_v27, %s10519_s15  ;;  %8951 = vrot.lane.b32.xlu1 %v11111_v20, %s10521_s17 }
 0x210   :  { %7496 = vmatpush1.bf16.msra.mxu1 %v7495_v49 }
 0x211   :  { %7498 = vmatprep.subr.bf16.mxu1 %v7497_v62  ;;  %v11387_v55 = vpop.permute.xlu0 %8676  ;;  %v11389_v6 = vpop.permute.xlu1 %8661  ;;  %v8608_v62 = vunpack.i.l.bf16 %v11323_v33  ;;  %v7501_v33 = vpack.c.bf16 %v915_v8, %v914_v10  ;;  %v1011_v8 = vsel %vm97_vm3, %v8609_v13, %v17245_v29  ;;  %v8639_v29 = vunpack.i.h.bf16 %v11377_v47 }
 0x212   :  { %v17242_v51 = vunpack.i.l.bf16 %v11387_v55  ;;  %v17628_v49 = vunpack.i.h.bf16 %v11387_v55  ;;  %v17629_v14 = vunpack.i.l.bf16 %v11389_v6 }
 0x213   :  { %8946 = vrot.lane.b32.xlu0 %v11119_v17, %s10521_s17  ;;  %8966 = vrot.lane.b32.xlu1 %v11153_v35, %s10519_s15  ;;  %v1010_v10 = vsel %vm97_vm3, %v8608_v62, %v17244_v45 }
 0x214   :  { %v824_v28 = vsel %vm47_vm0, %v17242_v51, %v8628_v34  ;;  %v825_v41 = vsel %vm47_vm0, %v17628_v49, %v8629_v40  ;;  %v918_v34 = vsel %vm72_vm1, %v17629_v14, %v8603_v16  ;;  %v17630_v51 = vunpack.i.h.bf16 %v11389_v6 }
 0x215   :  { %v11423_v1 = vpop.permute.xlu0 %8681  ;;  %v11425_v15 = vpop.permute.xlu1 %8666  ;;  %v7499_v26 = vpack.c.bf16 %v825_v41, %v824_v28  ;;  %v17631_v49 = vunpack.i.l.bf16 %v11341_v61  ;;  %v17632_v16 = vunpack.i.h.bf16 %v11341_v61 }
 0x216   :  { %v919_v40 = vsel %vm72_vm1, %v17630_v51, %v8604_v36  ;;  %v17251_v31 = vunpack.i.h.bf16 %v11423_v1 }
 0x217   :  { %8956 = vrot.lane.b32.xlu0 %v11198_v21, %s10516_s10  ;;  %8971 = vrot.lane.b32.xlu1 %v11169_v23, %s10518_s12  ;;  %v916_v41 = vsel %vm72_vm1, %v8633_v48, %v17631_v49  ;;  %v917_v14 = vsel %vm72_vm1, %v8634_v59, %v17632_v16  ;;  %v7503_v16 = vpack.c.bf16 %v919_v40, %v918_v34 }
 0x218   :  { %7500 = vmatpush1.bf16.msra.mxu1 %v7499_v26  ;;  %v7505_v45 = vpack.c.bf16 %v917_v14, %v916_v41  ;;  %v8638_v26 = vunpack.i.l.bf16 %v11377_v47  ;;  %v7509_v14 = vpack.c.bf16 %v1011_v8, %v1010_v10  ;;  %v17250_v47 = vunpack.i.l.bf16 %v11423_v1 }
 0x219   :  { %7502 = vmatprep.subr.bf16.mxu1 %v7501_v33  ;;  %v11448_v36 = vpop.permute.xlu0 %8691  ;;  %v11450_v28 = vpop.permute.xlu1 %8671 }
 0x21a   :  { %v17249_v49 = vunpack.i.h.bf16 %v11448_v36  ;;  %v17248_v33 = vunpack.i.l.bf16 %v11448_v36  ;;  %v17635_v10 = vunpack.i.l.bf16 %v11450_v28 }
 0x21b   :  { %8961 = vrot.lane.b32.xlu0 %v11148_v27, %s10521_s17  ;;  %8981 = vrot.lane.b32.xlu1 %v11153_v35, %s10521_s17 }
 0x21c   :  { %v920_v34 = vsel %vm72_vm1, %v17248_v33, %v8633_v48  ;;  %v921_v40 = vsel %vm72_vm1, %v17249_v49, %v8634_v59  ;;  %7504 = vmatpush1.bf16.msra.mxu1 %v7503_v16  ;;  %v1012_v48 = vsel %vm97_vm3, %v8638_v26, %v17633_v60  ;;  %v17634_v33 = vunpack.i.h.bf16 %v11379_v12 }
 0x21d   :  { %7506 = vmatprep.subr.bf16.mxu1 %v7505_v45  ;;  %v8697_v51 = vpop.permute.xlu0 %8696  ;;  %v11479_v4 = vpop.permute.xlu1 %8686  ;;  %v7507_v41 = vpack.c.bf16 %v921_v40, %v920_v34  ;;  %v8669_v45 = vunpack.i.h.bf16 %v11425_v15  ;;  %v8668_v16 = vunpack.i.l.bf16 %v11425_v15  ;;  %v1014_v8 = vsel %vm97_vm3, %v17635_v10, %v8608_v62 }
 0x21e   :  { %v1013_v59 = vsel %vm97_vm3, %v8639_v29, %v17634_v33  ;;  %v17636_v34 = vunpack.i.h.bf16 %v11450_v28  ;;  %v8698_v37 = vunpack.i.l.bf16 %v8697_v51  ;;  %v17637_v57 = vunpack.i.l.bf16 %v11479_v4 }
 0x21f   :  { %8976 = vrot.lane.b32.xlu0 %v11119_v17, %s10520_s16  ;;  %8986 = vrot.lane.b32.xlu1 %v11111_v20, %s10520_s16  ;;  %v7513_v49 = vpack.c.bf16 %v1013_v59, %v1012_v48 }
 0x220   :  { %v1015_v40 = vsel %vm97_vm3, %v17636_v34, %v8609_v13  ;;  %7508 = vmatpush1.bf16.msra.mxu1 %v7507_v41  ;;  %v1106_v41 = vsel %vm122_vm2, %v8668_v16, %v17250_v47  ;;  %v8699_v34 = vunpack.i.h.bf16 %v8697_v51 }
 0x221   :  { %7510 = vmatprep.subr.bf16.mxu1 %v7509_v14  ;;  %v11505_v60 = vpop.permute.xlu0 %8711  ;;  %v11507_v15 = vpop.permute.xlu1 %8701  ;;  %v7511_v10 = vpack.c.bf16 %v1015_v40, %v1014_v8  ;;  %v1107_v14 = vsel %vm122_vm2, %v8669_v45, %v17251_v31 }
 0x222   :  { %v17291_v33 = vunpack.i.h.bf16 %v11505_v60  ;;  %v17254_v62 = vunpack.i.l.bf16 %v11505_v60  ;;  %v17257_v8 = vunpack.i.h.bf16 %v11507_v15  ;;  %v17258_v40 = vunpack.i.l.bf16 %v11507_v15 }
 0x223   :  { %8991 = vrot.lane.b32.xlu0 %v11198_v21, %s10518_s12  ;;  %9001 = vrot.lane.b32.xlu1 %v11153_v35, %s10520_s16 }
 0x224   :  { %v1016_v48 = vsel %vm97_vm3, %v17254_v62, %v8638_v26  ;;  %v1017_v59 = vsel %vm97_vm3, %v17291_v33, %v8639_v29  ;;  %7512 = vmatpush1.bf16.msra.mxu1 %v7511_v10  ;;  %v1110_v26 = vsel %vm122_vm2, %v17637_v57, %v8668_v16  ;;  %v17638_v62 = vunpack.i.h.bf16 %v11479_v4 }
 0x225   :  { %7514 = vmatprep.subr.bf16.mxu1 %v7513_v49  ;;  %v11535_v47 = vpop.permute.xlu0 %8716  ;;  %v8707_v13 = vpop.permute.xlu1 %8706  ;;  %v7515_v31 = vpack.c.bf16 %v1017_v59, %v1016_v48  ;;  %v7517_v49 = vpack.c.bf16 %v1107_v14, %v1106_v41  ;;  %v1108_v51 = vsel %vm122_vm2, %v8698_v37, %v17258_v40  ;;  %v1109_v57 = vsel %vm122_vm2, %v8699_v34, %v17257_v8 }
 0x226   :  { %v1111_v29 = vsel %vm122_vm2, %v17638_v62, %v8669_v45  ;;  %v7521_v10 = vpack.c.bf16 %v1109_v57, %v1108_v51 }
 0x227   :  { %8996 = vrot.lane.b32.xlu0 %v11148_v27, %s10520_s16  ;;  %9006 = vrot.lane.b32.xlu1 %v11169_v23, %s10517_s11 }
 0x228   :  { %7516 = vmatpush1.bf16.msra.mxu1 %v7515_v31  ;;  %v7519_v31 = vpack.c.bf16 %v1111_v29, %v1110_v26  ;;  %v17256_v26 = vunpack.i.h.bf16 %v11535_v47  ;;  %v8709_v29 = vunpack.i.h.bf16 %v8707_v13 }
 0x229   :  { %7518 = vmatprep.subr.bf16.mxu1 %v7517_v49  ;;  %v11557_v45 = vpop.permute.xlu0 %8726  ;;  %v11559_v16 = vpop.permute.xlu1 %8721  ;;  %v8708_v49 = vunpack.i.l.bf16 %v8707_v13 }
 0x22a   :  { %v17289_v62 = vunpack.i.h.bf16 %v11557_v45  ;;  %v17290_v23 = vunpack.i.l.bf16 %v11557_v45  ;;  %v17285_v57 = vunpack.i.h.bf16 %v11559_v16 }
 0x22b   :  { %9011 = vrot.lane.b32.xlu0 %v11198_v21, %s10517_s11  ;;  %9016 = vrot.lane.b32.xlu1 %v11119_v17, %s10523_s18  ;;  %v17255_v17 = vunpack.i.l.bf16 %v11535_v47 }
 0x22c   :  { %v1112_v41 = vsel %vm122_vm2, %v17290_v23, %v8698_v37  ;;  %v1113_v14 = vsel %vm122_vm2, %v17289_v62, %v8699_v34  ;;  %7520 = vmatpush1.bf16.msra.mxu1 %v7519_v31  ;;  %v17640_v37 = vpack.c.bf16 %v11020_v25, %v11017_v22  ;;  %v17288_v31 = vunpack.i.l.bf16 %v11559_v16  ;;  %v11851_v62 = vld [vmem:[%s17217_s2 + $0x50] sm:$0xff] }
 0x22d   :  { %7522 = vmatprep.subr.bf16.mxu1 %v7521_v10  ;;  %v8732_v48 = vpop.permute.xlu0 %8731  ;;  %v11575_v59 = vpop.permute.xlu1 %8736  ;;  %v7523_v21 = vpack.c.bf16 %v1113_v14, %v1112_v41  ;;  %v1223_v22 = vsel %vm153_vm4, %v8709_v29, %v17256_v26  ;;  %v17642_v41 = vpack.c.bf16 %v11052_v9, %v11049_v50  ;;  %17652 = vst [vmem:[#allocation23_spill] sm:$0xff] %v11851_v62 }
 0x22e   :  { %17639 = vst [vmem:[#allocation16_spill] sm:$0xff] %v11575_v59  ;;  %v8734_v25 = vunpack.i.h.bf16 %v8732_v48  ;;  %v17259_v13 = vunpack.i.h.bf16 %v11575_v59  ;;  %v17260_v10 = vunpack.i.l.bf16 %v11575_v59 }
 0x22f   :  { %9021 = vrot.lane.b32.xlu0 %v11111_v20, %s10523_s18  ;;  %9031 = vrot.lane.b32.xlu1 %v11153_v35, %s10523_s18  ;;  %v1222_v20 = vsel %vm153_vm4, %v8708_v49, %v17255_v17  ;;  %v8733_v35 = vunpack.i.l.bf16 %v8732_v48  ;;  %v1226_v48 = vsel %vm153_vm4, %v17288_v31, %v8708_v49 }
 0x230   :  { %7524 = vmatpush1.bf16.msra.mxu1 %v7523_v21  ;;  %v7533_v49 = vpack.c.bf16 %v1223_v22, %v1222_v20 }
 0x231   :  { %7526 = vmatprep.subr.bf16.mxu1 %v17640_v37  ;;  %v11586_v34 = vpop.permute.xlu0 %8741  ;;  %v8747_v51 = vpop.permute.xlu1 %8746  ;;  %v1227_v37 = vsel %vm153_vm4, %v17285_v57, %v8709_v29  ;;  %v1224_v29 = vsel %vm153_vm4, %v8733_v35, %v17260_v10  ;;  %v17651_v57 = vunpack.i.h.bf16 %v11351_v54 }
 0x232   :  { %v8749_v17 = vunpack.i.h.bf16 %v8747_v51  ;;  %v8748_v26 = vunpack.i.l.bf16 %v8747_v51  ;;  %v7535_v20 = vpack.c.bf16 %v1227_v37, %v1226_v48 }
 0x233   :  { %9026 = vrot.lane.b32.xlu0 %v11148_v27, %s10523_s18  ;;  %9036 = vrot.lane.b32.xlu1 %v11181_v30, %s10519_s15  ;;  %v17641_v27 = vpack.c.bf16 %v11014_v43, %v11011_v42  ;;  %v17263_v42 = vunpack.i.h.bf16 %v11586_v34  ;;  %v17270_v43 = vunpack.i.l.bf16 %v11586_v34 }
 0x235   :  { %7528 = vmatpush1.bf16.msra.mxu1 %v17641_v27  ;;  %v11610_v14 = vpop.permute.xlu0 %8751  ;;  %v11612_v21 = vpop.permute.xlu1 %8756  ;;  %v17644_v27 = vpack.c.bf16 %v11042_v56, %v11037_v38  ;;  %v1228_v38 = vsel %vm153_vm4, %v17270_v43, %v8733_v35  ;;  %v1229_v56 = vsel %vm153_vm4, %v17263_v42, %v8734_v25 }
 0x236   :  { %7530 = vmatprep.subr.bf16.mxu1 %v17642_v41  ;;  %17643 = vst [vmem:[#allocation17_spill] sm:$0xff] %v11610_v14  ;;  %v17262_v50 = vunpack.i.h.bf16 %v11610_v14  ;;  %v17261_v9 = vunpack.i.l.bf16 %v11610_v14  ;;  %v1225_v41 = vsel %vm153_vm4, %v8734_v25, %v17259_v13  ;;  %v17266_v22 = vunpack.i.h.bf16 %v11612_v21 }
 0x237   :  { %9041 = vrot.lane.b32.xlu0 %v11202_v5, %s10519_s15  ;;  %9046 = vrot.lane.b32.xlu1 %v11181_v30, %s10521_s17  ;;  %v7537_v51 = vpack.c.bf16 %v1225_v41, %v1224_v29  ;;  %v7539_v41 = vpack.c.bf16 %v1229_v56, %v1228_v38 }
 0x238   :  { %v1318_v35 = vsel %vm178_vm6, %v8748_v26, %v17261_v9  ;;  %v1319_v25 = vsel %vm178_vm6, %v8749_v17, %v17262_v50 }
 0x239   :  { %7532 = vmatpush1.bf16.msra.mxu1 %v17644_v27  ;;  %v8762_v8 = vpop.permute.xlu0 %8761  ;;  %v11641_v40 = vpop.permute.xlu1 %8766  ;;  %v17269_v27 = vunpack.i.l.bf16 %v11612_v21 }
 0x23a   :  { %7534 = vmatprep.subr.bf16.mxu1 %v7533_v49  ;;  %17645 = vst [vmem:[#allocation18_spill] sm:$0xff] %v11641_v40  ;;  %v8764_v48 = vunpack.i.h.bf16 %v8762_v8  ;;  %v8763_v37 = vunpack.i.l.bf16 %v8762_v8  ;;  %v17265_v49 = vunpack.i.h.bf16 %v11641_v40  ;;  %v17264_v13 = vunpack.i.l.bf16 %v11641_v40 }
 0x23b   :  { %9051 = vrot.lane.b32.xlu0 %v11202_v5, %s10521_s17  ;;  %9056 = vrot.lane.b32.xlu1 %v11181_v30, %s10520_s16  ;;  %v1322_v9 = vsel %vm178_vm6, %v17269_v27, %v8748_v26  ;;  %v1323_v8 = vsel %vm178_vm6, %v17266_v22, %v8749_v17  ;;  %v7370_v26 = vld [vmem:[%s17214_s4 + $0x20] sm:$0xff] }
 0x23c   :  { %v1320_v17 = vsel %vm178_vm6, %v8763_v37, %v17264_v13  ;;  %v1321_v38 = vsel %vm178_vm6, %v8764_v48, %v17265_v49 }
 0x23d   :  { %7536 = vmatpush1.bf16.msra.mxu1 %v7535_v20  ;;  %v11667_v10 = vpop.permute.xlu0 %8771  ;;  %v8777_v29 = vpop.permute.xlu1 %8776  ;;  %v7541_v20 = vpack.c.bf16 %v1319_v25, %v1318_v35  ;;  %v7543_v25 = vpack.c.bf16 %v1323_v8, %v1322_v9  ;;  %v7545_v9 = vpack.c.bf16 %v1321_v38, %v1320_v17 }
 0x23e   :  { %7538 = vmatprep.subr.bf16.mxu1 %v7537_v51  ;;  %v17267_v50 = vunpack.i.h.bf16 %v11667_v10  ;;  %v17268_v42 = vunpack.i.l.bf16 %v11667_v10  ;;  %v8779_v56 = vunpack.i.h.bf16 %v8777_v29  ;;  %v8778_v51 = vunpack.i.l.bf16 %v8777_v29 }
 0x23f   :  { %9061 = vrot.lane.b32.xlu0 %v11202_v5, %s10520_s16  ;;  %9066 = vrot.lane.b32.xlu1 %v11181_v30, %s10523_s18 }
 0x240   :  { %v1325_v13 = vsel %vm178_vm6, %v17267_v50, %v8764_v48  ;;  %v7372_v48 = vld [vmem:[%s17214_s4 + $0x30] sm:$0xff] }
 0x241   :  { %7540 = vmatpush1.bf16.msra.mxu1 %v7539_v41  ;;  %v11694_v30 = vpop.permute.xlu0 %8781  ;;  %v11696_v35 = vpop.permute.xlu1 %8786  ;;  %v1324_v41 = vsel %vm178_vm6, %v17268_v42, %v8763_v37  ;;  %v7371_v37 = vld [vmem:[%s17214_s4 + $0x28] sm:$0xff] }
 0x242   :  { %7542 = vmatprep.subr.bf16.mxu1 %v7541_v20  ;;  %17646 = vst [vmem:[#allocation19_spill] sm:$0xff] %v11694_v30  ;;  %v17274_v49 = vunpack.i.h.bf16 %v11694_v30  ;;  %v17271_v29 = vunpack.i.l.bf16 %v11694_v30  ;;  %v17279_v20 = vunpack.i.h.bf16 %v11696_v35  ;;  %v17280_v22 = vunpack.i.l.bf16 %v11696_v35 }
 0x243   :  { %9071 = vrot.lane.b32.xlu0 %v11202_v5, %s10523_s18  ;;  %1781 = vperm.xlu1 %8594, %v7370_v26   ;;  %v7547_v38 = vpack.c.bf16 %v1325_v13, %v1324_v41  ;;  %v7373_v13 = vld [vmem:[%s17214_s4 + $0x38] sm:$0xff] }
 0x244   :  { %v1414_v8 = vsel %vm203_vm5, %v8778_v51, %v17271_v29  ;;  %v1415_v5 = vsel %vm203_vm5, %v8779_v56, %v17274_v49  ;;  %v1418_v29 = vsel %vm203_vm5, %v17280_v22, %v8778_v51 }
 0x245   :  { %7544 = vmatpush1.bf16.msra.mxu1 %v7543_v25  ;;  %v8792_v26 = vpop.permute.xlu0 %8791  ;;  %v11726_v17 = vpop.permute.xlu1 %8796  ;;  %v7549_v25 = vpack.c.bf16 %v1415_v5, %v1414_v8 }
 0x246   :  { %7546 = vmatprep.subr.bf16.mxu1 %v7545_v9  ;;  %17647 = vst [vmem:[#allocation20_spill] sm:$0xff] %v11726_v17  ;;  %v8794_v50 = vunpack.i.h.bf16 %v8792_v26  ;;  %v8793_v42 = vunpack.i.l.bf16 %v8792_v26  ;;  %v17272_v27 = vunpack.i.h.bf16 %v11726_v17  ;;  %v17273_v43 = vunpack.i.l.bf16 %v11726_v17 }
 0x247   :  { %v1419_v9 = vsel %vm203_vm5, %v17279_v20, %v8779_v56  ;;  %1786 = vperm.xlu0 %8593, %v7371_v37   ;;  %1791 = vperm.xlu1 %8594, %v7372_v48  }
 0x248   :  { %v1416_v41 = vsel %vm203_vm5, %v8793_v42, %v17273_v43  ;;  %v1417_v51 = vsel %vm203_vm5, %v8794_v50, %v17272_v27  ;;  %v7551_v26 = vpack.c.bf16 %v1419_v9, %v1418_v29 }
 0x249   :  { %7548 = vmatpush1.bf16.msra.mxu1 %v7547_v38  ;;  %v11749_v8 = vpop.permute.xlu0 %8801  ;;  %v8807_v56 = vpop.permute.xlu1 %8806  ;;  %v7553_v37 = vpack.c.bf16 %v1417_v51, %v1416_v41 }
 0x24a   :  { %7550 = vmatprep.subr.bf16.mxu1 %v7549_v25  ;;  %v17277_v48 = vunpack.i.h.bf16 %v11749_v8  ;;  %v17278_v5 = vunpack.i.l.bf16 %v11749_v8  ;;  %v8809_v27 = vunpack.i.h.bf16 %v8807_v56  ;;  %v8808_v43 = vunpack.i.l.bf16 %v8807_v56 }
 0x24b   :  { %1796 = vperm.xlu0 %8593, %v7373_v13  }
 0x24c   :  { %v1420_v38 = vsel %vm203_vm5, %v17278_v5, %v8793_v42  ;;  %v1421_v25 = vsel %vm203_vm5, %v17277_v48, %v8794_v50  ;;  %v11795_v48 = vld [vmem:[%s17217_s2 + $0x20] sm:$0xff] }
 0x24d   :  { %7552 = vmatpush1.bf16.msra.mxu1 %v7551_v26  ;;  %v11761_v41 = vpop.permute.xlu0 %8811  ;;  %v11763_v51 = vpop.permute.xlu1 %8816  ;;  %v7555_v29 = vpack.c.bf16 %v1421_v25, %v1420_v38 }
 0x24e   :  { %7554 = vmatprep.subr.bf16.mxu1 %v7553_v37  ;;  %17648 = vst [vmem:[#allocation21_spill] sm:$0xff] %v11761_v41  ;;  %v17282_v9 = vunpack.i.h.bf16 %v11761_v41  ;;  %v17281_v13 = vunpack.i.l.bf16 %v11761_v41  ;;  %v17276_v42 = vunpack.i.h.bf16 %v11763_v51  ;;  %v17275_v49 = vunpack.i.l.bf16 %v11763_v51  ;;  %v11780_v37 = vld [vmem:[%s17217_s2] sm:$0xff] }
 0x24f   :  { %v17654_v41 = vmov 0.0  }
 0x250   :  { %v1514_v50 = vsel %vm228_vm7, %v17275_v49, %v8808_v43  ;;  %v1515_v56 = vsel %vm228_vm7, %v17276_v42, %v8809_v27  ;;  %v1510_v26 = vsel %vm228_vm7, %v8808_v43, %v17281_v13  ;;  %v1511_v38 = vsel %vm228_vm7, %v8809_v27, %v17282_v9  ;;  %v11804_v27 = vld [vmem:[%s17217_s2 + $0x18] sm:$0xff] }
 0x251   :  { %7556 = vmatpush1.bf16.msra.mxu1 %v7555_v29  ;;  %v8822_v25 = vpop.permute.xlu0 %8821  ;;  %v11790_v49 = vpop.permute.xlu1 %8826  ;;  %v7557_v42 = vpack.c.bf16 %v1511_v38, %v1510_v26  ;;  %v7559_v29 = vpack.c.bf16 %v1515_v56, %v1514_v50 }
 0x252   :  { %17649 = vst [vmem:[#allocation22_spill] sm:$0xff] %v11790_v49  ;;  %v8824_v5 = vunpack.i.h.bf16 %v8822_v25  ;;  %v8823_v20 = vunpack.i.l.bf16 %v8822_v25  ;;  %v17284_v22 = vunpack.i.h.bf16 %v11790_v49  ;;  %v17283_v43 = vunpack.i.l.bf16 %v11790_v49  ;;  %v11819_v25 = vld [vmem:[%s17217_s2 + $0x38] sm:$0xff] }
 0x253   :  { %7558 = vmatprep.subr.bf16.mxu1 %v7557_v42 }
 0x254   :  { %1877 = vmatmul.mubr.f32.vlgmr.msra.gmra.mrb[8].mxu1 %v11780_v37  ;;  %v1512_v50 = vsel %vm228_vm7, %v8823_v20, %v17283_v43  ;;  %v1513_v56 = vsel %vm228_vm7, %v8824_v5, %v17284_v22 }
 0x255   :  { %7560 = vmatpush1.bf16.msra.mxu1 %v7559_v29  ;;  %1882 = vmatprep.mubr.f32.mxu1 %v11795_v48  ;;  %v11814_v26 = vpop.permute.xlu0 %8831  ;;  %v8837_v42 = vpop.permute.xlu1 %8836  ;;  %v7561_v38 = vpack.c.bf16 %v1513_v56, %v1512_v50  ;;  %v11836_v56 = vld [vmem:[%s17217_s2 + $0x30] sm:$0xff] }
 0x256   :  { %v17287_v29 = vunpack.i.h.bf16 %v11814_v26  ;;  %v17286_v13 = vunpack.i.l.bf16 %v11814_v26  ;;  %v8839_v9 = vunpack.i.h.bf16 %v8837_v42  ;;  %v8838_v43 = vunpack.i.l.bf16 %v8837_v42 }
 0x257   :  { %7562 = vmatprep.subr.bf16.mxu1 %v7561_v38  ;;  %v17650_v42 = vunpack.i.l.bf16 %v11351_v54 }
 0x258   :  { %1883 = vmatmul.mubr.f32.gmra.mrb[10].mxu1 %v11804_v27  ;;  %v1516_v22 = vsel %vm228_vm7, %v17286_v13, %v8823_v20  ;;  %v1517_v50 = vsel %vm228_vm7, %v17287_v29, %v8824_v5  ;;  %v803_v20 = vsel %vm47_vm0, %v8839_v9, %v17651_v57  ;;  %v11860_v57 = vld [vmem:[%s17217_s2 + $0x48] sm:$0xff] }
 0x259   :  { %1888 = vmatprep.mubr.f32.mxu1 %v11819_v25  ;;  %v802_v38 = vsel %vm47_vm0, %v8838_v43, %v17650_v42  ;;  %v11846_v13 = vpop.permute.xlu0 %8841  ;;  %v8847_v5 = vpop.permute.xlu1 %8846  ;;  %v7563_v29 = vpack.c.bf16 %v1517_v50, %v1516_v22  ;;  %17653 = vst [vmem:[#allocation24_spill] sm:$0xff] %v11860_v57 }
 0x25a   :  { %v7637_v31 = vpack.c.bf16 %v803_v20, %v802_v38  ;;  %v17297_v23 = vunpack.i.h.bf16 %v11846_v13  ;;  %v17296_v33 = vunpack.i.l.bf16 %v11846_v13  ;;  %v8849_v54 = vunpack.i.h.bf16 %v8847_v5 }
 0x25b   :  { %v8848_v42 = vunpack.i.l.bf16 %v8847_v5  ;;  %7564 = vmatpush1.bf16.msra.mxu1 %v7563_v29 }
 0x25c   :  { %1889 = vmatmul.mubr.f32.gmra.mrb[12].mxu1 %v11836_v56  ;;  %7638 = vmatprep.subr.bf16.mxu1 %v7637_v31  ;;  %v806_v38 = vsel %vm47_vm0, %v17296_v33, %v8838_v43  ;;  %v807_v29 = vsel %vm47_vm0, %v17297_v23, %v8839_v9  ;;  %v11879_v43 = vld [vmem:[%s17217_s2 + $0x10] sm:$0xff]  ;;  %v17656_v33 = vunpack.i.l.bf16 %v11387_v55  ;;  %v17657_v23 = vunpack.i.h.bf16 %v11387_v55 }
 0x25d   :  { %1894 = vmatprep.mubr.f32.mxu1 %v11851_v62  ;;  %v11862_v22 = vpop.permute.xlu0 %8851  ;;  %v8857_v50 = vpop.permute.xlu1 %8856  ;;  %17655 = vst [vmem:[#allocation25_spill] sm:$0xff] %v11879_v43  ;;  %v7639_v17 = vpack.c.bf16 %v807_v29, %v806_v38 }
 0x25e   :  { %v8859_v31 = vunpack.i.h.bf16 %v8857_v50  ;;  %v8858_v49 = vunpack.i.l.bf16 %v8857_v50  ;;  %v804_v9 = vsel %vm47_vm0, %v8848_v42, %v17656_v33  ;;  %v805_v20 = vsel %vm47_vm0, %v8849_v54, %v17657_v23 }
 0x25f   :  { %v17658_v30 = vunpack.i.l.bf16 %v11862_v22  ;;  %v17659_v14 = vunpack.i.h.bf16 %v11862_v22  ;;  %v7641_v23 = vpack.c.bf16 %v805_v20, %v804_v9 }
 0x260   :  { %1895 = vmatmul.mubr.f32.gmra.mrb[14].mxu1 %v11860_v57 }
 0x261   :  { %1965 = vmatprep.mubr.f32.mxu1 %v17654_v41  ;;  %v11889_v5 = vpop.permute.xlu0 %8861  ;;  %v8867_v50 = vpop.permute.xlu1 %8866  ;;  %v808_v40 = vsel %vm47_vm0, %v17658_v30, %v8848_v42  ;;  %v809_v59 = vsel %vm47_vm0, %v17659_v14, %v8849_v54  ;;  %v11907_v30 = vld [vmem:[%s17217_s2 + $0x28] sm:$0xff]  ;;  %v17661_v14 = vunpack.i.l.bf16 %v11389_v6  ;;  %v17662_v42 = vunpack.i.h.bf16 %v11389_v6 }
 0x262   :  { %v17314_v33 = vunpack.i.h.bf16 %v11889_v5  ;;  %v17315_v55 = vunpack.i.l.bf16 %v11889_v5  ;;  %v8869_v57 = vunpack.i.h.bf16 %v8867_v50  ;;  %v8868_v38 = vunpack.i.l.bf16 %v8867_v50  ;;  %17660 = vst [vmem:[#allocation26_spill] sm:$0xff] %v11907_v30 }
 0x263   :  { %v898_v54 = vsel %vm72_vm1, %v8858_v49, %v17661_v14  ;;  %v899_v29 = vsel %vm72_vm1, %v8859_v31, %v17662_v42  ;;  %v7643_v14 = vpack.c.bf16 %v809_v59, %v808_v40  ;;  %v17664_v40 = vunpack.i.l.bf16 %v11448_v36 }
 0x264   :  { %7374 = vmatmul.mubr.msk.f32.vlgmr.msra.gmra.mrb[8].mxu1 %vm1799_vm9, %v11879_v43  ;;  %v903_v20 = vsel %vm72_vm1, %v17314_v33, %v8859_v31  ;;  %v11935_v31 = vld [vmem:[%s17217_s2 + $0x40] sm:$0xff] }
 0x265   :  { %7640 = vmatpush1.bf16.msra.mxu1 %v7639_v17  ;;  %1971 = vmatprep.mubr.f32.mxu1 %v17654_v41  ;;  %v902_v17 = vsel %vm72_vm1, %v17315_v55, %v8858_v49  ;;  %v11925_v9 = vpop.permute.xlu0 %8871  ;;  %v8877_v50 = vpop.permute.xlu1 %8876  ;;  %v7645_v49 = vpack.c.bf16 %v899_v29, %v898_v54  ;;  %17663 = vst [vmem:[#allocation27_spill] sm:$0xff] %v11935_v31 }
 0x266   :  { %7642 = vmatprep.subr.bf16.mxu1 %v7641_v23  ;;  %v17319_v6 = vunpack.i.h.bf16 %v11925_v9  ;;  %v17318_v43 = vunpack.i.l.bf16 %v11925_v9  ;;  %v8879_v42 = vunpack.i.h.bf16 %v8877_v50  ;;  %v8878_v62 = vunpack.i.l.bf16 %v8877_v50 }
 0x267   :  { %v900_v59 = vsel %vm72_vm1, %v8868_v38, %v17664_v40  ;;  %v17665_v23 = vunpack.i.h.bf16 %v11448_v36  ;;  %v7647_v40 = vpack.c.bf16 %v903_v20, %v902_v17  ;;  %v11971_v20 = vld [vmem:[%s17217_s2 + $0x58] sm:$0xff] }
 0x268   :  { %7375 = vmatmul.mubr.msk.f32.gmra.mrb[10].mxu1 %vm1799_vm9, %v11907_v30  ;;  %v904_v54 = vsel %vm72_vm1, %v17318_v43, %v8868_v38  ;;  %v905_v29 = vsel %vm72_vm1, %v17319_v6, %v8869_v57  ;;  %v17667_v38 = vunpack.i.h.bf16 %v11450_v28  ;;  %17668 = vst [vmem:[#allocation28_spill] sm:$0xff] %v11971_v20 }
 0x269   :  { %7644 = vmatpush1.bf16.msra.mxu1 %v7643_v14  ;;  %1977 = vmatprep.mubr.f32.mxu1 %v17654_v41  ;;  %v901_v50 = vsel %vm72_vm1, %v8869_v57, %v17665_v23  ;;  %v11953_v14 = vpop.permute.xlu0 %8881  ;;  %v8887_v33 = vpop.permute.xlu1 %8886  ;;  %v17666_v23 = vunpack.i.l.bf16 %v11450_v28  ;;  %v7651_v6 = vpack.c.bf16 %v905_v29, %v904_v54 }
 0x26a   :  { %7646 = vmatprep.subr.bf16.mxu1 %v7645_v49  ;;  %v17322_v36 = vunpack.i.h.bf16 %v11953_v14  ;;  %v17323_v55 = vunpack.i.l.bf16 %v11953_v14  ;;  %v995_v43 = vsel %vm97_vm3, %v8879_v42, %v17667_v38  ;;  %v8889_v57 = vunpack.i.h.bf16 %v8887_v33 }
 0x26b   :  { %v994_v30 = vsel %vm97_vm3, %v8878_v62, %v17666_v23  ;;  %v8888_v49 = vunpack.i.l.bf16 %v8887_v33  ;;  %v7649_v17 = vpack.c.bf16 %v901_v50, %v900_v59 }
 0x26c   :  { %7376 = vmatmul.mubr.msk.f32.gmra.mrb[12].mxu1 %vm1799_vm9, %v11935_v31  ;;  %v7653_v38 = vpack.c.bf16 %v995_v43, %v994_v30  ;;  %v998_v33 = vsel %vm97_vm3, %v17323_v55, %v8878_v62  ;;  %v999_v59 = vsel %vm97_vm3, %v17322_v36, %v8879_v42  ;;  %v17669_v43 = vunpack.i.l.bf16 %v11505_v60 }
 0x26d   :  { %7648 = vmatpush1.bf16.msra.mxu1 %v7647_v40  ;;  %1983 = vmatprep.mubr.f32.mxu1 %v17654_v41  ;;  %v11973_v23 = vpop.permute.xlu0 %8891  ;;  %v8897_v28 = vpop.permute.xlu1 %8896  ;;  %v17670_v62 = vunpack.i.h.bf16 %v11505_v60  ;;  %v17672_v55 = vunpack.i.h.bf16 %v11479_v4 }
 0x26e   :  { %7650 = vmatprep.subr.bf16.mxu1 %v7649_v17  ;;  %v17327_v50 = vunpack.i.h.bf16 %v11973_v23  ;;  %v17324_v40 = vunpack.i.l.bf16 %v11973_v23  ;;  %v8899_v17 = vunpack.i.h.bf16 %v8897_v28  ;;  %v8898_v31 = vunpack.i.l.bf16 %v8897_v28 }
 0x26f   :  { %v996_v30 = vsel %vm97_vm3, %v8888_v49, %v17669_v43  ;;  %v997_v54 = vsel %vm97_vm3, %v8889_v57, %v17670_v62  ;;  %v7655_v43 = vpack.c.bf16 %v999_v59, %v998_v33  ;;  %v17671_v62 = vunpack.i.l.bf16 %v11479_v4 }
 0x270   :  { %7377 = vmatmul.mubr.msk.f32.gmra.mrb[14].mxu1 %vm1799_vm9, %v11971_v20  ;;  %v1000_v28 = vsel %vm97_vm3, %v17324_v40, %v8888_v49  ;;  %v1001_v60 = vsel %vm97_vm3, %v17327_v50, %v8889_v57  ;;  %v7657_v36 = vpack.c.bf16 %v997_v54, %v996_v30  ;;  %v1091_v49 = vsel %vm122_vm2, %v8899_v17, %v17672_v55 }
 0x271   :  { %7652 = vmatpush1.bf16.msra.mxu1 %v7651_v6  ;;  %v11995_v42 = vpop.permute.xlu0 %8901  ;;  %v8907_v29 = vpop.permute.xlu1 %8906  ;;  %2232 = vmatprep.mubr.f32.mxu1 %v11263_v7  ;;  %v1090_v7 = vsel %vm122_vm2, %v8898_v31, %v17671_v62  ;;  %v7659_v54 = vpack.c.bf16 %v1001_v60, %v1000_v28  ;;  %v17674_v60 = vunpack.i.l.bf16 %v11303_v52 }
 0x272   :  { %7654 = vmatprep.subr.bf16.mxu1 %v7653_v38  ;;  %v17328_v6 = vunpack.i.h.bf16 %v11995_v42  ;;  %v17329_v38 = vunpack.i.l.bf16 %v11995_v42  ;;  %v8909_v40 = vunpack.i.h.bf16 %v8907_v29  ;;  %v8908_v20 = vunpack.i.l.bf16 %v8907_v29 }
 0x273   :  { %v7661_v50 = vpack.c.bf16 %v1091_v49, %v1090_v7  ;;  %v17673_v29 = vunpack.i.h.bf16 %v11303_v52  ;;  %v17676_v7 = vunpack.i.h.bf16 %v11557_v45  ;;  %v17677_v52 = vunpack.i.l.bf16 %v11846_v13 }
 0x274   :  { %v1094_v62 = vsel %vm122_vm2, %v17329_v38, %v8898_v31  ;;  %v1095_v4 = vsel %vm122_vm2, %v17328_v6, %v8899_v17  ;;  %v17675_v31 = vunpack.i.l.bf16 %v11557_v45 }
 0x275   :  { %7656 = vmatpush1.bf16.msra.mxu1 %v7655_v43  ;;  %v12016_v57 = vpop.permute.xlu0 %8911  ;;  %v8917_v33 = vpop.permute.xlu1 %8916  ;;  %v1093_v49 = vsel %vm122_vm2, %v8909_v40, %v17676_v7 }
 0x276   :  { %7658 = vmatprep.subr.bf16.mxu1 %v7657_v36  ;;  %v8919_v59 = vunpack.i.h.bf16 %v8917_v33  ;;  %v8918_v30 = vunpack.i.l.bf16 %v8917_v33  ;;  %v8914_v55 = vunpack.i.h.bf16 %v12016_v57  ;;  %v17331_v36 = vunpack.i.l.bf16 %v12016_v57 }
 0x277   :  { %v1092_v17 = vsel %vm122_vm2, %v8908_v20, %v17675_v31  ;;  %v7663_v31 = vpack.c.bf16 %v1095_v4, %v1094_v62 }
 0x278   :  { %v815_v28 = vsel %vm47_vm0, %v17673_v29, %v8919_v59  ;;  %v814_v43 = vsel %vm47_vm0, %v17674_v60, %v8918_v30  ;;  %v810_v29 = vsel %vm47_vm0, %v8918_v30, %v17677_v52  ;;  %v1096_v45 = vsel %vm122_vm2, %v17331_v36, %v8908_v20 }
 0x279   :  { %7660 = vmatpush1.bf16.msra.mxu1 %v7659_v54  ;;  %v8922_v33 = vpop.permute.xlu0 %8921  ;;  %v12044_v6 = vpop.permute.xlu1 %8926  ;;  %v17678_v54 = vunpack.i.h.bf16 %v11846_v13  ;;  %v7567_v38 = vpack.c.bf16 %v815_v28, %v814_v43  ;;  %v7665_v41 = vpack.c.bf16 %v1093_v49, %v1092_v17  ;;  %v17681_v49 = vpack.c.bf16 %v11103_v18, %v11100_v53 }
 0x27a   :  { %7662 = vmatprep.subr.bf16.mxu1 %v7661_v50  ;;  %v1097_v50 = vsel %vm122_vm2, %v8914_v55, %v8909_v40  ;;  %v8924_v43 = vunpack.i.h.bf16 %v8922_v33  ;;  %v8929_v20 = vunpack.i.h.bf16 %v12044_v6  ;;  %v8928_v36 = vunpack.i.l.bf16 %v12044_v6 }
 0x27b   :  { %v811_v60 = vsel %vm47_vm0, %v8919_v59, %v17678_v54  ;;  %v7667_v28 = vpack.c.bf16 %v1097_v50, %v1096_v45  ;;  %v8923_v54 = vunpack.i.l.bf16 %v8922_v33  ;;  %v17679_v40 = vunpack.i.l.bf16 %v11335_v3 }
 0x27c   :  { %v7565_v7 = vpack.c.bf16 %v811_v60, %v810_v29  ;;  %v17682_v60 = vunpack.i.l.bf16 %v11862_v22  ;;  %v17683_v45 = vunpack.i.h.bf16 %v11862_v22  ;;  %v1211_v18 = vsel %vm153_vm4, %v8929_v20, %v8924_v43 }
 0x27d   :  { %7664 = vmatpush1.bf16.msra.mxu1 %v7663_v31  ;;  %v8932_v13 = vpop.permute.xlu0 %8931  ;;  %v8942_v30 = vpop.permute.xlu1 %8941 }
 0x27e   :  { %7566 = vmatprep.subr.bf16.mxu0 %v7565_v7  ;;  %7666 = vmatprep.subr.bf16.mxu1 %v7665_v41  ;;  %v8934_v59 = vunpack.i.h.bf16 %v8932_v13  ;;  %v8933_v62 = vunpack.i.l.bf16 %v8932_v13  ;;  %v8943_v4 = vunpack.i.l.bf16 %v8942_v30  ;;  %v8944_v52 = vunpack.i.h.bf16 %v8942_v30 }
 0x27f   :  { %7568 = vmatpush1.bf16.msra.mxu0 %v7567_v38  ;;  %v17680_v41 = vunpack.i.h.bf16 %v11335_v3  ;;  %v17684_v7 = vunpack.i.l.bf16 %v11889_v5  ;;  %v17685_v30 = vunpack.i.h.bf16 %v11889_v5 }
 0x280   :  { %v816_v17 = vsel %vm47_vm0, %v17679_v40, %v8933_v62  ;;  %v812_v31 = vsel %vm47_vm0, %v8933_v62, %v17682_v60  ;;  %v813_v3 = vsel %vm47_vm0, %v8934_v59, %v17683_v45  ;;  %v17686_v62 = vunpack.i.h.bf16 %v11321_v0 }
 0x281   :  { %v817_v38 = vsel %vm47_vm0, %v17680_v41, %v8934_v59  ;;  %7668 = vmatpush1.bf16.msra.mxu1 %v7667_v28  ;;  %v12075_v29 = vpop.permute.xlu0 %8936  ;;  %v12077_v33 = vpop.permute.xlu1 %8951  ;;  %v906_v53 = vsel %vm72_vm1, %v8943_v4, %v17684_v7  ;;  %v7569_v13 = vpack.c.bf16 %v813_v3, %v812_v31  ;;  %v907_v22 = vsel %vm72_vm1, %v8944_v52, %v17685_v30 }
 0x282   :  { %7670 = vmatprep.subr.bf16.mxu1 %v17681_v49  ;;  %v7571_v50 = vpack.c.bf16 %v817_v38, %v816_v17  ;;  %v1210_v59 = vsel %vm153_vm4, %v8928_v36, %v8923_v54  ;;  %v911_v28 = vsel %vm72_vm1, %v17686_v62, %v8944_v52  ;;  %v17687_v40 = vpack.c.bf16 %v11097_v46, %v11094_v39 }
 0x283   :  { %v17688_v17 = vunpack.i.l.bf16 %v11559_v16  ;;  %v17689_v41 = vunpack.i.h.bf16 %v11559_v16  ;;  %v17690_v49 = vunpack.i.l.bf16 %v11321_v0  ;;  %v8939_v52 = vunpack.i.h.bf16 %v12075_v29  ;;  %7570 = vmatprep.subr.bf16.mxu0 %v7569_v13 }
 0x284   :  { %v8938_v39 = vunpack.i.l.bf16 %v12075_v29  ;;  %v17691_v46 = vpack.c.bf16 %v11136_v24, %v11126_v2  ;;  %v7573_v16 = vpack.c.bf16 %v907_v22, %v906_v53  ;;  %7572 = vmatpush1.bf16.msra.mxu0 %v7571_v50  ;;  %v8954_v7 = vunpack.i.h.bf16 %v12077_v33 }
 0x285   :  { %7672 = vmatpush1.bf16.msra.mxu1 %v17687_v40  ;;  %v1230_v5 = vsel %vm153_vm4, %v8923_v54, %v17688_v17  ;;  %v1231_v38 = vsel %vm153_vm4, %v8924_v43, %v17689_v41  ;;  %v910_v60 = vsel %vm72_vm1, %v17690_v49, %v8943_v4  ;;  %v8947_v54 = vpop.permute.xlu0 %8946  ;;  %v8967_v31 = vpop.permute.xlu1 %8966  ;;  %v8953_v30 = vunpack.i.l.bf16 %v12077_v33 }
 0x286   :  { %7674 = vmatprep.subr.bf16.mxu1 %v17691_v46  ;;  %v8949_v45 = vunpack.i.h.bf16 %v8947_v54  ;;  %v8948_v43 = vunpack.i.l.bf16 %v8947_v54  ;;  %v8969_v3 = vunpack.i.h.bf16 %v8967_v31  ;;  %v8968_v0 = vunpack.i.l.bf16 %v8967_v31  ;;  %7574 = vmatprep.subr.bf16.mxu0 %v7573_v16 }
 0x287   :  { %v7677_v4 = vpack.c.bf16 %v1231_v38, %v1230_v5  ;;  %v17692_v50 = vpack.c.bf16 %v11132_v32, %v11122_v58  ;;  %v7575_v53 = vpack.c.bf16 %v911_v28, %v910_v60  ;;  %v7679_v62 = vpack.c.bf16 %v1211_v18, %v1210_v59 }
 0x288   :  { %v1213_v2 = vsel %vm153_vm4, %v8939_v52, %v8969_v3  ;;  %v1212_v24 = vsel %vm153_vm4, %v8938_v39, %v8968_v0  ;;  %v17693_v40 = vunpack.i.l.bf16 %v11586_v34  ;;  %v17694_v5 = vunpack.i.h.bf16 %v11586_v34 }
 0x289   :  { %7676 = vmatpush1.bf16.msra.mxu1 %v17692_v50  ;;  %v8957_v13 = vpop.permute.xlu0 %8956  ;;  %v8972_v22 = vpop.permute.xlu1 %8971  ;;  %v1306_v58 = vsel %vm178_vm6, %v8953_v30, %v8948_v43  ;;  %v1307_v32 = vsel %vm178_vm6, %v8954_v7, %v8949_v45  ;;  %7576 = vmatpush1.bf16.msra.mxu0 %v7575_v53  ;;  %v7683_v34 = vpack.c.bf16 %v1213_v2, %v1212_v24  ;;  %v17695_v60 = vunpack.i.l.bf16 %v11341_v61 }
 0x28a   :  { %7678 = vmatprep.subr.bf16.mxu1 %v7677_v4  ;;  %v1232_v17 = vsel %vm153_vm4, %v8968_v0, %v17693_v40  ;;  %v1233_v41 = vsel %vm153_vm4, %v8969_v3, %v17694_v5  ;;  %v8959_v18 = vunpack.i.h.bf16 %v8957_v13  ;;  %v8958_v59 = vunpack.i.l.bf16 %v8957_v13 }
 0x28b   :  { %v8974_v28 = vunpack.i.h.bf16 %v8972_v22  ;;  %v8973_v38 = vunpack.i.l.bf16 %v8972_v22  ;;  %v7681_v49 = vpack.c.bf16 %v1233_v41, %v1232_v17  ;;  %v17696_v54 = vunpack.i.h.bf16 %v11341_v61 }
 0x28c   :  { %v912_v46 = vsel %vm72_vm1, %v17695_v60, %v8958_v59  ;;  %v17697_v16 = vunpack.i.l.bf16 %v11612_v21  ;;  %v17698_v0 = vunpack.i.h.bf16 %v11612_v21  ;;  %v17699_v61 = vunpack.i.l.bf16 %v11925_v9 }
 0x28d   :  { %v913_v31 = vsel %vm72_vm1, %v17696_v54, %v8959_v18  ;;  %7680 = vmatpush1.bf16.msra.mxu1 %v7679_v62  ;;  %v12172_v2 = vpop.permute.xlu0 %8961  ;;  %v8982_v24 = vpop.permute.xlu1 %8981  ;;  %v17700_v53 = vunpack.i.h.bf16 %v11925_v9  ;;  %v7687_v22 = vpack.c.bf16 %v1307_v32, %v1306_v58  ;;  %v17701_v41 = vunpack.i.l.bf16 %v11953_v14 }
 0x28e   :  { %v1326_v3 = vsel %vm178_vm6, %v8948_v43, %v17697_v16  ;;  %v1327_v4 = vsel %vm178_vm6, %v8949_v45, %v17698_v0  ;;  %7682 = vmatprep.subr.bf16.mxu1 %v7681_v49  ;;  %v908_v50 = vsel %vm72_vm1, %v8958_v59, %v17699_v61  ;;  %v7579_v43 = vpack.c.bf16 %v913_v31, %v912_v46 }
 0x28f   :  { %v909_v13 = vsel %vm72_vm1, %v8959_v18, %v17700_v53  ;;  %v8964_v21 = vunpack.i.h.bf16 %v12172_v2  ;;  %v8963_v45 = vunpack.i.l.bf16 %v12172_v2  ;;  %v8984_v62 = vunpack.i.h.bf16 %v8982_v24 }
 0x290   :  { %v8983_v40 = vunpack.i.l.bf16 %v8982_v24  ;;  %v7577_v17 = vpack.c.bf16 %v909_v13, %v908_v50  ;;  %v7685_v5 = vpack.c.bf16 %v1327_v4, %v1326_v3  ;;  %v1002_v59 = vsel %vm97_vm3, %v8973_v38, %v17701_v41 }
 0x291   :  { %v17702_v9 = vunpack.i.h.bf16 %v11953_v14  ;;  %v17703_v58 = vunpack.i.h.bf16 %v11329_v44  ;;  %v17704_v49 = vunpack.i.l.bf16 %v11329_v44  ;;  %v1309_v46 = vsel %vm178_vm6, %v8964_v21, %v8984_v62  ;;  %7684 = vmatpush1.bf16.msra.mxu1 %v7683_v34  ;;  %v8977_v44 = vpop.permute.xlu0 %8976 }
 0x292   :  { %v17705_v14 = vunpack.i.l.bf16 %v11667_v10  ;;  %7578 = vmatprep.subr.bf16.mxu0 %v7577_v17  ;;  %7686 = vmatprep.subr.bf16.mxu1 %v7685_v5  ;;  %v17706_v16 = vunpack.i.h.bf16 %v11667_v10  ;;  %v8979_v3 = vunpack.i.h.bf16 %v8977_v44  ;;  %v8978_v0 = vunpack.i.l.bf16 %v8977_v44 }
 0x293   :  { %v1003_v18 = vsel %vm97_vm3, %v8974_v28, %v17702_v9  ;;  %v1007_v32 = vsel %vm97_vm3, %v17703_v58, %v8974_v28  ;;  %v1006_v60 = vsel %vm97_vm3, %v17704_v49, %v8973_v38  ;;  %v1308_v28 = vsel %vm178_vm6, %v8963_v45, %v8983_v40  ;;  %v12212_v38 = vpop.permute.xlu1 %8986  ;;  %7580 = vmatpush1.bf16.msra.mxu0 %v7579_v43 }
 0x294   :  { %v1328_v54 = vsel %vm178_vm6, %v8983_v40, %v17705_v14  ;;  %v7581_v31 = vpack.c.bf16 %v1003_v18, %v1002_v59  ;;  %v1329_v34 = vsel %vm178_vm6, %v8984_v62, %v17706_v16  ;;  %v8989_v4 = vunpack.i.h.bf16 %v12212_v38 }
 0x295   :  { %v8988_v24 = vunpack.i.l.bf16 %v12212_v38  ;;  %v7689_v61 = vpack.c.bf16 %v1329_v34, %v1328_v54  ;;  %v7583_v50 = vpack.c.bf16 %v1007_v32, %v1006_v60  ;;  %7688 = vmatpush1.bf16.msra.mxu1 %v7687_v22  ;;  %v17707_v13 = vunpack.i.l.bf16 %v11696_v35  ;;  %v8992_v17 = vpop.permute.xlu0 %8991 }
 0x296   :  { %7582 = vmatprep.subr.bf16.mxu0 %v7581_v31  ;;  %v1403_v53 = vsel %vm203_vm5, %v8989_v4, %v8979_v3  ;;  %v17708_v62 = vunpack.i.h.bf16 %v11696_v35  ;;  %v7691_v41 = vpack.c.bf16 %v1309_v46, %v1308_v28  ;;  %v8994_v9 = vunpack.i.h.bf16 %v8992_v17 }
 0x297   :  { %v1402_v10 = vsel %vm203_vm5, %v8988_v24, %v8978_v0  ;;  %v1422_v43 = vsel %vm203_vm5, %v8978_v0, %v17707_v13  ;;  %7690 = vmatprep.subr.bf16.mxu1 %v7689_v61  ;;  %v9002_v5 = vpop.permute.xlu1 %9001  ;;  %7584 = vmatpush1.bf16.msra.mxu0 %v7583_v50  ;;  %v8993_v18 = vunpack.i.l.bf16 %v8992_v17  ;;  %v17709_v49 = vunpack.i.l.bf16 %v11379_v12 }
 0x298   :  { %v1423_v40 = vsel %vm203_vm5, %v8979_v3, %v17708_v62  ;;  %v9004_v58 = vunpack.i.h.bf16 %v9002_v5  ;;  %v9003_v22 = vunpack.i.l.bf16 %v9002_v5  ;;  %v7695_v32 = vpack.c.bf16 %v1403_v53, %v1402_v10 }
 0x299   :  { %v7693_v59 = vpack.c.bf16 %v1423_v40, %v1422_v43  ;;  %v1008_v60 = vsel %vm97_vm3, %v17709_v49, %v8993_v18  ;;  %v17710_v35 = vunpack.i.h.bf16 %v11379_v12  ;;  %7692 = vmatpush1.bf16.msra.mxu1 %v7691_v41  ;;  %v17711_v46 = vunpack.i.l.bf16 %v11973_v23  ;;  %v12252_v31 = vpop.permute.xlu0 %8996 }
 0x29a   :  { %v17712_v28 = vunpack.i.h.bf16 %v11973_v23  ;;  %v17713_v12 = vunpack.i.l.bf16 %v11749_v8  ;;  %v17714_v0 = vunpack.i.h.bf16 %v11749_v8  ;;  %v8999_v23 = vunpack.i.h.bf16 %v12252_v31 }
 0x29b   :  { %v1009_v14 = vsel %vm97_vm3, %v17710_v35, %v8994_v9  ;;  %v1004_v54 = vsel %vm97_vm3, %v8993_v18, %v17711_v46  ;;  %7694 = vmatprep.subr.bf16.mxu1 %v7693_v59  ;;  %v9007_v16 = vpop.permute.xlu1 %9006  ;;  %v8998_v53 = vunpack.i.l.bf16 %v12252_v31  ;;  %v17715_v40 = vunpack.i.h.bf16 %v11423_v1 }
 0x29c   :  { %v1005_v44 = vsel %vm97_vm3, %v8994_v9, %v17712_v28  ;;  %v1424_v3 = vsel %vm203_vm5, %v9003_v22, %v17713_v12  ;;  %v1425_v61 = vsel %vm203_vm5, %v9004_v58, %v17714_v0  ;;  %v7587_v50 = vpack.c.bf16 %v1009_v14, %v1008_v60 }
 0x29d   :  { %v7585_v34 = vpack.c.bf16 %v1005_v44, %v1004_v54  ;;  %v9009_v10 = vunpack.i.h.bf16 %v9007_v16  ;;  %v9008_v13 = vunpack.i.l.bf16 %v9007_v16  ;;  %v7697_v43 = vpack.c.bf16 %v1425_v61, %v1424_v3  ;;  %7696 = vmatpush1.bf16.msra.mxu1 %v7695_v32  ;;  %v9012_v59 = vpop.permute.xlu0 %9011 }
 0x29e   :  { %v1404_v62 = vsel %vm203_vm5, %v8998_v53, %v9003_v22  ;;  %v1405_v8 = vsel %vm203_vm5, %v8999_v23, %v9004_v58  ;;  %v17716_v5 = vunpack.i.l.bf16 %v11423_v1  ;;  %v17717_v18 = vunpack.i.l.bf16 %v11995_v42 }
 0x29f   :  { %7586 = vmatprep.subr.bf16.mxu0 %v7585_v34  ;;  %v1103_v17 = vsel %vm122_vm2, %v17715_v40, %v9009_v10  ;;  %7698 = vmatprep.subr.bf16.mxu1 %v7697_v43  ;;  %v9017_v9 = vpop.permute.xlu1 %9016  ;;  %v17718_v22 = vunpack.i.h.bf16 %v11995_v42  ;;  %v7699_v60 = vpack.c.bf16 %v1405_v8, %v1404_v62  ;;  %v9014_v1 = vunpack.i.h.bf16 %v9012_v59 }
 0x2a0   :  { %v1102_v41 = vsel %vm122_vm2, %v17716_v5, %v9008_v13  ;;  %7588 = vmatpush1.bf16.msra.mxu0 %v7587_v50  ;;  %v1098_v58 = vsel %vm122_vm2, %v9008_v13, %v17717_v18  ;;  %v9013_v35 = vunpack.i.l.bf16 %v9012_v59  ;;  %v9019_v14 = vunpack.i.h.bf16 %v9017_v9 }
 0x2a1   :  { %v1099_v49 = vsel %vm122_vm2, %v9009_v10, %v17718_v22  ;;  %v9018_v46 = vunpack.i.l.bf16 %v9017_v9  ;;  %v7591_v54 = vpack.c.bf16 %v1103_v17, %v1102_v41  ;;  %v17719_v28 = vunpack.i.l.bf16 %v11507_v15  ;;  %7700 = vmatpush1.bf16.msra.mxu1 %v7699_v60  ;;  %v12304_v0 = vpop.permute.xlu0 %9021 }
 0x2a2   :  { %v7589_v32 = vpack.c.bf16 %v1099_v49, %v1098_v58  ;;  %v17720_v16 = vunpack.i.h.bf16 %v11507_v15  ;;  %v17721_v34 = vunpack.i.l.bf16 %v12016_v57  ;;  %v1101_v3 = vsel %vm122_vm2, %v9014_v1, %v8914_v55 }
 0x2a3   :  { %v1104_v44 = vsel %vm122_vm2, %v17719_v28, %v9013_v35  ;;  %v9032_v61 = vpop.permute.xlu1 %9031  ;;  %v17722_v15 = vunpack.i.l.bf16 %v11763_v51  ;;  %v17723_v13 = vunpack.i.h.bf16 %v11763_v51  ;;  %v9024_v57 = vunpack.i.h.bf16 %v12304_v0 }
 0x2a4   :  { %v1105_v42 = vsel %vm122_vm2, %v17720_v16, %v9014_v1  ;;  %v1100_v12 = vsel %vm122_vm2, %v9013_v35, %v17721_v34  ;;  %7590 = vmatprep.subr.bf16.mxu0 %v7589_v32  ;;  %v9023_v55 = vunpack.i.l.bf16 %v12304_v0  ;;  %v9034_v8 = vunpack.i.h.bf16 %v9032_v61  ;;  %2233 = vmatmul.mubr.f32.vlgmr.msra.gmra.mrb[16].mxu1 %v11780_v37 }
 0x2a5   :  { %v7593_v50 = vpack.c.bf16 %v1101_v3, %v1100_v12  ;;  %v1518_v10 = vsel %vm228_vm7, %v9018_v46, %v17722_v15  ;;  %v1519_v43 = vsel %vm228_vm7, %v9019_v14, %v17723_v13  ;;  %v7595_v62 = vpack.c.bf16 %v1105_v42, %v1104_v44  ;;  %7592 = vmatpush1.bf16.msra.mxu0 %v7591_v54  ;;  %v12334_v58 = vpop.permute.xlu0 %9026  ;;  %v17731_v15 = vld [vmem:[#allocation13_spill] sm:$0xff] }
 0x2a6   :  { %v9033_v40 = vunpack.i.l.bf16 %v9032_v61  ;;  %v7701_v17 = vpack.c.bf16 %v1519_v43, %v1518_v10  ;;  %v1498_v51 = vsel %vm228_vm7, %v9023_v55, %v9018_v46  ;;  %v1499_v5 = vsel %vm228_vm7, %v9024_v57, %v9019_v14  ;;  %2238 = vmatprep.mubr.f32.mxu1 %v11795_v48 }
 0x2a7   :  { %7594 = vmatprep.subr.bf16.mxu0 %v7593_v50  ;;  %v17724_v41 = vunpack.i.l.bf16 %v11814_v26  ;;  %v17725_v9 = vunpack.i.h.bf16 %v11814_v26  ;;  %v9037_v22 = vpop.permute.xlu1 %9036  ;;  %v7703_v49 = vpack.c.bf16 %v1499_v5, %v1498_v51  ;;  %v9029_v1 = vunpack.i.h.bf16 %v12334_v58  ;;  %v17730_v50 = vld [vmem:[#allocation15_spill] sm:$0xff]  ;;  %v17737_v51 = vld [vmem:[#allocation12_spill] sm:$0xff] }
 0x2a8   :  { %7702 = vmatprep.subr.bf16.mxu1 %v7701_v17  ;;  %v9028_v35 = vunpack.i.l.bf16 %v12334_v58  ;;  %v9039_v14 = vunpack.i.h.bf16 %v9037_v22  ;;  %v9038_v46 = vunpack.i.l.bf16 %v9037_v22  ;;  %v17726_v32 = vpack.c.bf16 %v11164_v11, %v11144_v63  ;;  %2239 = vmatmul.mubr.f32.gmra.mrb[18].mxu1 %v11804_v27  ;;  %v17727_v63 = vld [vmem:[#allocation11_spill] sm:$0xff]  ;;  %v17728_v11 = vld [vmem:[#allocation10_spill] sm:$0xff] }
 0x2a9   :  { %v1520_v59 = vsel %vm228_vm7, %v9033_v40, %v17724_v41  ;;  %v1521_v18 = vsel %vm228_vm7, %v9034_v8, %v17725_v9  ;;  %7596 = vmatpush1.bf16.msra.mxu0 %v7595_v62  ;;  %v1501_v54 = vsel %vm228_vm7, %v9029_v1, %v9034_v8  ;;  %7704 = vmatpush1.bf16.msra.mxu1 %v7703_v49  ;;  %v9042_v28 = vpop.permute.xlu0 %9041  ;;  %v17733_v13 = vunpack.i.h.bf16 %v11535_v47  ;;  %v17736_v17 = vld [vmem:[#allocation14_spill] sm:$0xff]  ;;  %v17739_v9 = vld [vmem:[#allocation24_spill] sm:$0xff] }
 0x2aa   :  { %v7705_v60 = vpack.c.bf16 %v1521_v18, %v1520_v59  ;;  %7598 = vmatprep.subr.bf16.mxu0 %v17726_v32  ;;  %v1500_v26 = vsel %vm228_vm7, %v9028_v35, %v9033_v40  ;;  %2244 = vmatprep.mubr.f32.mxu1 %v11819_v25  ;;  %v17729_v16 = vpack.c.bf16 %v17727_v63, %v17728_v11  ;;  %v9044_v42 = vunpack.i.h.bf16 %v9042_v28  ;;  %v17741_v49 = vld [vmem:[#allocation16_spill] sm:$0xff]  ;;  %v17745_v11 = vld [vmem:[#allocation17_spill] sm:$0xff] }
 0x2ab   :  { %v7707_v44 = vpack.c.bf16 %v1501_v54, %v1500_v26  ;;  %v9043_v34 = vunpack.i.l.bf16 %v9042_v28  ;;  %v1214_v12 = vsel %vm153_vm4, %v9038_v46, %v8928_v36  ;;  %v1215_v3 = vsel %vm153_vm4, %v9039_v14, %v8929_v20  ;;  %v9047_v61 = vpop.permute.xlu1 %9046  ;;  %v17735_v20 = vld [vmem:[#allocation23_spill] sm:$0xff] }
 0x2ac   :  { %7706 = vmatprep.subr.bf16.mxu1 %v7705_v60  ;;  %v17732_v10 = vpack.c.bf16 %v17730_v50, %v17731_v15  ;;  %2245 = vmatmul.mubr.f32.gmra.mrb[20].mxu1 %v11836_v56  ;;  %v1219_v43 = vsel %vm153_vm4, %v17733_v13, %v9039_v14  ;;  %v17734_v36 = vunpack.i.l.bf16 %v11535_v47  ;;  %v7605_v62 = vpack.c.bf16 %v1215_v3, %v1214_v12  ;;  %v17748_v15 = vld [vmem:[#allocation26_spill] sm:$0xff] }
 0x2ad   :  { %7600 = vmatpush1.bf16.msra.mxu0 %v17729_v16  ;;  %7708 = vmatpush1.bf16.msra.mxu1 %v7707_v44  ;;  %v9049_v8 = vunpack.i.h.bf16 %v9047_v61  ;;  %v9048_v40 = vunpack.i.l.bf16 %v9047_v61  ;;  %v17738_v5 = vpack.c.bf16 %v17736_v17, %v17737_v51  ;;  %v1216_v41 = vsel %vm153_vm4, %v9043_v34, %v8938_v39  ;;  %v9052_v59 = vpop.permute.xlu0 %9051  ;;  %v17744_v44 = vld [vmem:[#allocation25_spill] sm:$0xff]  ;;  %v17749_v13 = vld [vmem:[#allocation18_spill] sm:$0xff]  ;;  %v17752_v51 = vld [vmem:[#allocation27_spill] sm:$0xff] }
 0x2ae   :  { %7602 = vmatprep.subr.bf16.mxu0 %v17732_v10  ;;  %v1218_v6 = vsel %vm153_vm4, %v17734_v36, %v9038_v46  ;;  %2250 = vmatprep.mubr.f32.mxu1 %v17735_v20  ;;  %v1217_v47 = vsel %vm153_vm4, %v9044_v42, %v8939_v52  ;;  %v17740_v22 = vmov 0.0   ;;  %v17742_v60 = vunpack.i.l.bf16 %v17741_v49 }
 0x2af   :  { %v7607_v18 = vpack.c.bf16 %v1219_v43, %v1218_v6  ;;  %v17743_v46 = vunpack.i.h.bf16 %v17741_v49  ;;  %v7609_v39 = vpack.c.bf16 %v1217_v47, %v1216_v41  ;;  %v9054_v32 = vunpack.i.h.bf16 %v9052_v59  ;;  %v9057_v28 = vpop.permute.xlu1 %9056  ;;  %v17753_v41 = vld [vmem:[#allocation19_spill] sm:$0xff] }
 0x2b0   :  { %2251 = vmatmul.mubr.f32.gmra.mrb[22].mxu1 %v17739_v9  ;;  %v1220_v14 = vsel %vm153_vm4, %v17742_v60, %v9043_v34  ;;  %v9053_v52 = vunpack.i.l.bf16 %v9052_v59  ;;  %v1310_v26 = vsel %vm178_vm6, %v9048_v40, %v8953_v30  ;;  %v1311_v54 = vsel %vm178_vm6, %v9049_v8, %v8954_v7 }
 0x2b1   :  { %7604 = vmatpush1.bf16.msra.mxu0 %v17738_v5  ;;  %2321 = vmatprep.mubr.f32.mxu1 %v17740_v22  ;;  %v1221_v29 = vsel %vm153_vm4, %v17743_v46, %v9044_v42  ;;  %v17746_v16 = vunpack.i.h.bf16 %v17745_v11  ;;  %v17747_v30 = vunpack.i.l.bf16 %v17745_v11  ;;  %v7613_v34 = vpack.c.bf16 %v1311_v54, %v1310_v26  ;;  %v9062_v50 = vpop.permute.xlu0 %9061 }
 0x2b2   :  { %7606 = vmatprep.subr.bf16.mxu0 %v7605_v62  ;;  %v7611_v63 = vpack.c.bf16 %v1221_v29, %v1220_v14  ;;  %v9059_v7 = vunpack.i.h.bf16 %v9057_v28  ;;  %v9058_v12 = vunpack.i.l.bf16 %v9057_v28  ;;  %v1312_v3 = vsel %vm178_vm6, %v9053_v52, %v8963_v45  ;;  %v17756_v29 = vld [vmem:[#allocation28_spill] sm:$0xff] }
 0x2b3   :  { %v1315_v42 = vsel %vm178_vm6, %v17746_v16, %v9049_v8  ;;  %v1314_v33 = vsel %vm178_vm6, %v17747_v30, %v9048_v40  ;;  %v1313_v61 = vsel %vm178_vm6, %v9054_v32, %v8964_v21  ;;  %v17750_v43 = vunpack.i.l.bf16 %v17749_v13  ;;  %v9067_v17 = vpop.permute.xlu1 %9066 }
 0x2b4   :  { %7382 = vmatmul.mubr.msk.f32.vlgmr.msra.gmra.mrb[16].mxu1 %vm1799_vm9, %v17744_v44  ;;  %v7615_v10 = vpack.c.bf16 %v1315_v42, %v1314_v33  ;;  %v17751_v45 = vunpack.i.h.bf16 %v17749_v13  ;;  %v7617_v6 = vpack.c.bf16 %v1313_v61, %v1312_v3  ;;  %v9064_v21 = vunpack.i.h.bf16 %v9062_v50  ;;  %v17760_v42 = vld [vmem:[#allocation21_spill] sm:$0xff]  ;;  %v17763_v3 = vld [vmem:[#allocation22_spill] sm:$0xff] }
 0x2b5   :  { %7608 = vmatpush1.bf16.msra.mxu0 %v7607_v18  ;;  %2327 = vmatprep.mubr.f32.mxu1 %v17740_v22  ;;  %v1316_v36 = vsel %vm178_vm6, %v17750_v43, %v9053_v52  ;;  %v9063_v62 = vunpack.i.l.bf16 %v9062_v50  ;;  %v1406_v8 = vsel %vm203_vm5, %v9058_v12, %v8988_v24  ;;  %v1407_v40 = vsel %vm203_vm5, %v9059_v7, %v8989_v4  ;;  %v9072_v46 = vpop.permute.xlu0 %9071 }
 0x2b6   :  { %7610 = vmatprep.subr.bf16.mxu0 %v7609_v39  ;;  %v1317_v2 = vsel %vm178_vm6, %v17751_v45, %v9054_v32  ;;  %v17754_v47 = vunpack.i.h.bf16 %v17753_v41  ;;  %v17755_v24 = vunpack.i.l.bf16 %v17753_v41  ;;  %v7621_v18 = vpack.c.bf16 %v1407_v40, %v1406_v8  ;;  %v17757_v32 = vld [vmem:[#allocation20_spill] sm:$0xff] }
 0x2b7   :  { %v7619_v5 = vpack.c.bf16 %v1317_v2, %v1316_v36  ;;  %v9069_v4 = vunpack.i.h.bf16 %v9067_v17  ;;  %v9068_v49 = vunpack.i.l.bf16 %v9067_v17  ;;  %v1408_v60 = vsel %vm203_vm5, %v9063_v62, %v8998_v53 }
 0x2b8   :  { %7383 = vmatmul.mubr.msk.f32.gmra.mrb[18].mxu1 %vm1799_vm9, %v17748_v15  ;;  %v1411_v59 = vsel %vm203_vm5, %v17754_v47, %v9059_v7  ;;  %v1410_v38 = vsel %vm203_vm5, %v17755_v24, %v9058_v12  ;;  %v1409_v14 = vsel %vm203_vm5, %v9064_v21, %v8999_v23  ;;  %v17758_v52 = vunpack.i.l.bf16 %v17757_v32  ;;  %v17766_v47 = vld [vmem:[#allocation6_spill] sm:$0xff] }
 0x2b9   :  { %7612 = vmatpush1.bf16.msra.mxu0 %v7611_v63  ;;  %2333 = vmatprep.mubr.f32.mxu1 %v17740_v22  ;;  %v7623_v39 = vpack.c.bf16 %v1411_v59, %v1410_v38  ;;  %v17759_v54 = vunpack.i.h.bf16 %v17757_v32  ;;  %v7625_v31 = vpack.c.bf16 %v1409_v14, %v1408_v60  ;;  %v9074_v28 = vunpack.i.h.bf16 %v9072_v46 }
 0x2ba   :  { %7614 = vmatprep.subr.bf16.mxu0 %v7613_v34  ;;  %v1412_v26 = vsel %vm203_vm5, %v17758_v52, %v9063_v62  ;;  %v9073_v63 = vunpack.i.l.bf16 %v9072_v46  ;;  %v1502_v23 = vsel %vm228_vm7, %v9068_v49, %v9023_v55  ;;  %v1503_v11 = vsel %vm228_vm7, %v9069_v4, %v9024_v57 }
 0x2bb   :  { %v1413_v53 = vsel %vm203_vm5, %v17759_v54, %v9064_v21  ;;  %v17761_v30 = vunpack.i.h.bf16 %v17760_v42  ;;  %v17762_v34 = vunpack.i.l.bf16 %v17760_v42  ;;  %v7629_v12 = vpack.c.bf16 %v1503_v11, %v1502_v23 }
 0x2bc   :  { %7384 = vmatmul.mubr.msk.f32.gmra.mrb[20].mxu1 %vm1799_vm9, %v17752_v51  ;;  %v7627_v16 = vpack.c.bf16 %v1413_v53, %v1412_v26  ;;  %v1504_v0 = vsel %vm228_vm7, %v9073_v63, %v9028_v35  ;;  %v1505_v57 = vsel %vm228_vm7, %v9074_v28, %v9029_v1  ;;  %v17764_v61 = vunpack.i.l.bf16 %v17763_v3 }
 0x2bd   :  { %7616 = vmatpush1.bf16.msra.mxu0 %v7615_v10  ;;  %2339 = vmatprep.mubr.f32.mxu1 %v17740_v22  ;;  %v1507_v33 = vsel %vm228_vm7, %v17761_v30, %v9069_v4  ;;  %v1506_v7 = vsel %vm228_vm7, %v17762_v34, %v9068_v49  ;;  %v17765_v10 = vunpack.i.h.bf16 %v17763_v3  ;;  %v7633_v35 = vpack.c.bf16 %v1505_v57, %v1504_v0  ;;  %v17767_v4 = vld [vmem:[#allocation7_spill] sm:$0xff] }
 0x2be   :  { %7618 = vmatprep.subr.bf16.mxu0 %v7617_v6  ;;  %v7631_v55 = vpack.c.bf16 %v1507_v33, %v1506_v7  ;;  %v1508_v50 = vsel %vm228_vm7, %v17764_v61, %v9073_v63 }
 0x2bf   :  { %v1509_v13 = vsel %vm228_vm7, %v17765_v10, %v9074_v28 }
 0x2c0   :  { %7385 = vmatmul.mubr.msk.f32.gmra.mrb[22].mxu1 %vm1799_vm9, %v17756_v29  ;;  %v7635_v58 = vpack.c.bf16 %v1509_v13, %v1508_v50 }
 0x2c1   :  { %7620 = vmatpush1.bf16.msra.mxu0 %v7619_v5 }
 0x2c2   :  { %7622 = vmatprep.subr.bf16.mxu0 %v7621_v18 }
 0x2c5   :  { %7624 = vmatpush1.bf16.msra.mxu0 %v7623_v39 }
 0x2c6   :  { %7626 = vmatprep.subr.bf16.mxu0 %v7625_v31 }
 0x2c9   :  { %7628 = vmatpush1.bf16.msra.mxu0 %v7627_v16 }
 0x2ca   :  { %7630 = vmatprep.subr.bf16.mxu0 %v7629_v12 }
 0x2cc   :  { %2055 = vmatmul.mubr.f32.vlgmr.msra.gmra.mrb[16].mxu0 %v11780_v37 }
 0x2cd   :  { %7632 = vmatpush1.bf16.msra.mxu0 %v7631_v55  ;;  %2060 = vmatprep.mubr.f32.mxu0 %v11795_v48  ;;  %v12522_v48 = vpop.permute.xlu1 %1781 }
 0x2ce   :  { %7634 = vmatprep.subr.bf16.mxu0 %v7633_v35 }
 0x2d0   :  { %2061 = vmatmul.mubr.f32.gmra.mrb[18].mxu0 %v11804_v27 }
 0x2d1   :  { %7636 = vmatpush1.bf16.msra.mxu0 %v7635_v58  ;;  %2066 = vmatprep.mubr.f32.mxu0 %v11819_v25  ;;  %v12530_v6 = vpop.permute.xlu1 %1791 }
 0x2d4   :  { %2067 = vmatmul.mubr.f32.gmra.mrb[20].mxu0 %v11836_v56 }
 0x2d5   :  { %2072 = vmatprep.mubr.f32.mxu0 %v17735_v20  ;;  %v12526_v20 = vpop.permute.xlu0 %1786 }
 0x2d8   :  { %2073 = vmatmul.mubr.f32.gmra.mrb[22].mxu0 %v17739_v9 }
 0x2d9   :  { %2143 = vmatprep.mubr.f32.mxu0 %v17740_v22  ;;  %v12540_v18 = vpop.permute.xlu0 %1796 }
 0x2dc   :  { %7378 = vmatmul.mubr.msk.f32.vlgmr.msra.gmra.mrb[16].mxu0 %vm1799_vm9, %v17744_v44 }
 0x2dd   :  { %2149 = vmatprep.mubr.f32.mxu0 %v17740_v22 }
 0x2e0   :  { %7379 = vmatmul.mubr.msk.f32.gmra.mrb[18].mxu0 %vm1799_vm9, %v17748_v15 }
 0x2e1   :  { %2155 = vmatprep.mubr.f32.mxu0 %v17740_v22 }
 0x2e4   :  { %7380 = vmatmul.mubr.msk.f32.gmra.mrb[20].mxu0 %vm1799_vm9, %v17752_v51 }
 0x2e5   :  { %2161 = vmatprep.mubr.f32.mxu0 %v17740_v22 }
 0x2e8   :  { %7381 = vmatmul.mubr.msk.f32.gmra.mrb[22].mxu0 %vm1799_vm9, %v17756_v29 }
 0x337   :  { %v1967_v37 = vpop.f32.mrb[8].mxu1 }
 0x338   :  { %v8357_v27 = vadd.f32 %v1967_v37, %v12522_v48  ;;  %v1969_v25 = vpop.f32.mrb[9].mxu1 }
 0x339   :  { %v8358_v56 = vadd.f32 %v1969_v25, %v12522_v48 }
 0x33a   :  { %v2346_v1 = vmul.f32 0.01, %v8357_v27 }
 0x33b   :  { %v2347_v9 = vmul.f32 0.01, %v8358_v56  ;;  %v1973_v44 = vpop.f32.mrb[10].mxu1 }
 0x33c   :  { %v8359_v15 = vadd.f32 %v1973_v44, %v12526_v20  ;;  %v1975_v43 = vpop.f32.mrb[11].mxu1  ;;  %v2370_v45 = vmax.f32 %v8357_v27, %v2346_v1 }
 0x33d   :  { %v8360_v36 = vadd.f32 %v1975_v43, %v12526_v20  ;;  %v2371_v21 = vmax.f32 %v8358_v56, %v2347_v9 }
 0x33e   :  { %v2352_v2 = vmul.f32 0.01, %v8359_v15  ;;  %v12535_v59 = vmul.f32 %v2370_v45, %v17766_v47 }
 0x33f   :  { %v2353_v62 = vmul.f32 0.01, %v8360_v36  ;;  %v1979_v8 = vpop.f32.mrb[12].mxu1  ;;  %v12543_v49 = vmul.f32 %v2371_v21, %v17767_v4  ;;  %v17768_v21 = vld [vmem:[#allocation4_spill] sm:$0xff] }
 0x340   :  { %v2376_v40 = vmax.f32 %v8359_v15, %v2352_v2  ;;  %v8361_v17 = vadd.f32 %v1979_v8, %v12530_v6  ;;  %v1981_v51 = vpop.f32.mrb[13].mxu1 }
 0x341   :  { %v2377_v5 = vmax.f32 %v8360_v36, %v2353_v62  ;;  %v8362_v41 = vadd.f32 %v1981_v51, %v12530_v6 }
 0x342   :  { %v12538_v24 = vmul.f32 %v2376_v40, %v17766_v47  ;;  %v2358_v38 = vmul.f32 0.01, %v8361_v17 }
 0x343   :  { %v12546_v60 = vmul.f32 %v2377_v5, %v17767_v4  ;;  %v2359_v14 = vmul.f32 0.01, %v8362_v41  ;;  %v1985_v46 = vpop.f32.mrb[14].mxu1 }
 0x344   :  { %v2382_v29 = vmax.f32 %v8361_v17, %v2358_v38  ;;  %v8363_v39 = vadd.f32 %v1985_v46, %v12540_v18  ;;  %v1987_v32 = vpop.f32.mrb[15].mxu1  ;;  %v12551_v52 = vpack.i.bf16 %v12538_v24, %v12535_v59  ;;  %v17769_v17 = vld [vmem:[#allocation8_spill] sm:$0xff] }
 0x345   :  { %v8364_v26 = vadd.f32 %v1987_v32, %v12540_v18  ;;  %v12556_v54 = vpack.i.bf16 %v12546_v60, %v12543_v49  ;;  %v2383_v53 = vmax.f32 %v8362_v41, %v2359_v14 }
 0x346   :  { %v2364_v31 = vmul.f32 0.01, %v8363_v39  ;;  %9076 = vrot.lane.b32.xlu1 %v12551_v52, %s10515_s9  ;;  %v12561_v28 = vmul.f32 %v2382_v29, %v17766_v47 }
 0x347   :  { %v2365_v63 = vmul.f32 0.01, %v8364_v26  ;;  %9091 = vrot.lane.b32.xlu0 %v12556_v54, %s10515_s9  ;;  %v12573_v30 = vmul.f32 %v2383_v53, %v17767_v4 }
 0x348   :  { %v2388_v23 = vmax.f32 %v8363_v39, %v2364_v31 }
 0x349   :  { %v2389_v11 = vmax.f32 %v8364_v26, %v2365_v63 }
 0x34a   :  { %v12566_v16 = vmul.f32 %v2388_v23, %v17766_v47  ;;  %9081 = vrot.lane.b32.xlu1 %v12551_v52, %s10516_s10 }
 0x34b   :  { %v12576_v33 = vmul.f32 %v2389_v11, %v17767_v4  ;;  %9096 = vrot.lane.b32.xlu0 %v12556_v54, %s10516_s10 }
 0x34c   :  { %v12584_v7 = vpack.i.bf16 %v12566_v16, %v12561_v28 }
 0x34d   :  { %v12588_v12 = vpack.i.bf16 %v12576_v33, %v12573_v30 }
 0x34e   :  { %9086 = vrot.lane.b32.xlu1 %v12551_v52, %s10518_s12 }
 0x34f   :  { %9101 = vrot.lane.b32.xlu0 %v12556_v54, %s10518_s12 }
 0x352   :  { %9121 = vrot.lane.b32.xlu1 %v12588_v12, %s10515_s9 }
 0x353   :  { %9106 = vrot.lane.b32.xlu0 %v12584_v7, %s10515_s9 }
 0x356   :  { %9126 = vrot.lane.b32.xlu1 %v12588_v12, %s10516_s10 }
 0x357   :  { %9111 = vrot.lane.b32.xlu0 %v12584_v7, %s10516_s10 }
 0x35b   :  { %9116 = vrot.lane.b32.xlu0 %v12584_v7, %s10518_s12 }
 0x387   :  { %v2323_v55 = vpop.f32.mrb[16].mxu1 }
 0x388   :  { %v8373_v3 = vadd.f32 %v2323_v55, %v12522_v48  ;;  %v2325_v61 = vpop.f32.mrb[17].mxu1 }
 0x389   :  { %v8374_v50 = vadd.f32 %v2325_v61, %v12522_v48 }
 0x38a   :  { %v2350_v10 = vmul.f32 0.01, %v8373_v3 }
 0x38b   :  { %v2351_v13 = vmul.f32 0.01, %v8374_v50  ;;  %v2329_v35 = vpop.f32.mrb[18].mxu1 }
 0x38c   :  { %v8375_v58 = vadd.f32 %v2329_v35, %v12526_v20  ;;  %v2331_v37 = vpop.f32.mrb[19].mxu1  ;;  %v2374_v25 = vmax.f32 %v8373_v3, %v2350_v10 }
 0x38d   :  { %v8376_v27 = vadd.f32 %v2331_v37, %v12526_v20  ;;  %v2375_v1 = vmax.f32 %v8374_v50, %v2351_v13 }
 0x38e   :  { %v2356_v56 = vmul.f32 0.01, %v8375_v58  ;;  %v12615_v62 = vmul.f32 %v2374_v25, %v17768_v21 }
 0x38f   :  { %v2357_v9 = vmul.f32 0.01, %v8376_v27  ;;  %v2335_v44 = vpop.f32.mrb[20].mxu1  ;;  %v12621_v51 = vmul.f32 %v2375_v1, %v17769_v17 }
 0x390   :  { %v2380_v15 = vmax.f32 %v8375_v58, %v2356_v56  ;;  %v8377_v43 = vadd.f32 %v2335_v44, %v12530_v6  ;;  %v2337_v36 = vpop.f32.mrb[21].mxu1 }
 0x391   :  { %v2381_v45 = vmax.f32 %v8376_v27, %v2357_v9  ;;  %v8378_v2 = vadd.f32 %v2337_v36, %v12530_v6 }
 0x392   :  { %v12618_v8 = vmul.f32 %v2380_v15, %v17768_v21  ;;  %v2362_v40 = vmul.f32 0.01, %v8377_v43 }
 0x393   :  { %v12624_v5 = vmul.f32 %v2381_v45, %v17769_v17  ;;  %v2363_v41 = vmul.f32 0.01, %v8378_v2  ;;  %v2341_v38 = vpop.f32.mrb[22].mxu1 }
 0x394   :  { %v2386_v14 = vmax.f32 %v8377_v43, %v2362_v40  ;;  %v8379_v46 = vadd.f32 %v2341_v38, %v12540_v18  ;;  %v2343_v29 = vpop.f32.mrb[23].mxu1  ;;  %v12629_v39 = vpack.i.bf16 %v12618_v8, %v12615_v62 }
 0x395   :  { %v8380_v32 = vadd.f32 %v2343_v29, %v12540_v18  ;;  %v12634_v26 = vpack.i.bf16 %v12624_v5, %v12621_v51  ;;  %v2387_v53 = vmax.f32 %v8378_v2, %v2363_v41 }
 0x396   :  { %v2368_v31 = vmul.f32 0.01, %v8379_v46  ;;  %v12637_v63 = vmul.f32 %v2386_v14, %v17768_v21 }
 0x397   :  { %v2369_v23 = vmul.f32 0.01, %v8380_v32  ;;  %9131 = vrot.lane.b32.xlu1 %v12634_v26, %s10515_s9  ;;  %v12647_v50 = vmul.f32 %v2387_v53, %v17769_v17 }
 0x398   :  { %v2392_v11 = vmax.f32 %v8379_v46, %v2368_v31 }
 0x399   :  { %v2393_v55 = vmax.f32 %v8380_v32, %v2369_v23 }
 0x39a   :  { %v12642_v3 = vmul.f32 %v2392_v11, %v17768_v21 }
 0x39b   :  { %v12650_v10 = vmul.f32 %v2393_v55, %v17769_v17  ;;  %9136 = vrot.lane.b32.xlu1 %v12588_v12, %s10518_s12 }
 0x39c   :  { %v12658_v35 = vpack.i.bf16 %v12642_v3, %v12637_v63 }
 0x39d   :  { %v12662_v58 = vpack.i.bf16 %v12650_v10, %v12647_v50 }
 0x39f   :  { %9156 = vrot.lane.b32.xlu0 %v12662_v58, %s10515_s9  ;;  %9141 = vrot.lane.b32.xlu1 %v12634_v26, %s10516_s10 }
 0x3a3   :  { %9161 = vrot.lane.b32.xlu0 %v12556_v54, %s10517_s11  ;;  %9146 = vrot.lane.b32.xlu1 %v12551_v52, %s10517_s11 }
 0x3a7   :  { %9171 = vrot.lane.b32.xlu0 %v12662_v58, %s10516_s10  ;;  %9151 = vrot.lane.b32.xlu1 %v12634_v26, %s10518_s12 }
 0x3ab   :  { %9176 = vrot.lane.b32.xlu0 %v12584_v7, %s10517_s11  ;;  %9166 = vrot.lane.b32.xlu1 %v12634_v26, %s10517_s11 }
 0x3af   :  { %v2145_v25 = vpop.f32.mrb[16].mxu0  ;;  %9191 = vrot.lane.b32.xlu0 %v12662_v58, %s10518_s12  ;;  %9181 = vrot.lane.b32.xlu1 %v12588_v12, %s10517_s11 }
 0x3b0   :  { %v8365_v56 = vadd.f32 %v2145_v25, %v12522_v48  ;;  %v2147_v1 = vpop.f32.mrb[17].mxu0 }
 0x3b1   :  { %v8366_v9 = vadd.f32 %v2147_v1, %v12522_v48 }
 0x3b2   :  { %v2348_v44 = vmul.f32 0.01, %v8365_v56 }
 0x3b3   :  { %v2151_v15 = vpop.f32.mrb[18].mxu0  ;;  %9186 = vrot.lane.b32.xlu1 %v12556_v54, %s10519_s15  ;;  %v2349_v2 = vmul.f32 0.01, %v8366_v9 }
 0x3b4   :  { %v8367_v43 = vadd.f32 %v2151_v15, %v12526_v20  ;;  %v2153_v36 = vpop.f32.mrb[19].mxu0  ;;  %v2372_v41 = vmax.f32 %v8365_v56, %v2348_v44 }
 0x3b5   :  { %v8368_v45 = vadd.f32 %v2153_v36, %v12526_v20  ;;  %v2373_v31 = vmax.f32 %v8366_v9, %v2349_v2  ;;  %v17770_v20 = vld [vmem:[#allocation9_spill] sm:$0xff] }
 0x3b6   :  { %v2354_v40 = vmul.f32 0.01, %v8367_v43  ;;  %v12704_v25 = vmul.f32 %v2372_v41, %v17770_v20 }
 0x3b7   :  { %v2355_v38 = vmul.f32 0.01, %v8368_v45  ;;  %v2157_v14 = vpop.f32.mrb[20].mxu0  ;;  %9201 = vrot.lane.b32.xlu1 %v12551_v52, %s10519_s15 }
 0x3b8   :  { %v2378_v46 = vmax.f32 %v8367_v43, %v2354_v40  ;;  %v8369_v29 = vadd.f32 %v2157_v14, %v12530_v6  ;;  %v2159_v32 = vpop.f32.mrb[21].mxu0  ;;  %v12701_v55 = vpop.permute.xlu1 %9076  ;;  %17771 = vst [vmem:[#allocation11_spill] sm:$0xff] %v12704_v25  ;;  %v17772_v40 = vld [vmem:[#allocation5_spill] sm:$0xff] }
 0x3b9   :  { %v2379_v48 = vmax.f32 %v8368_v45, %v2355_v38  ;;  %v8370_v53 = vadd.f32 %v2159_v32, %v12530_v6  ;;  %v9079_v44 = vunpack.i.h.bf16 %v12701_v55  ;;  %v9078_v15 = vunpack.i.l.bf16 %v12701_v55  ;;  %v12708_v6 = vpop.permute.xlu0 %9091 }
 0x3ba   :  { %v12699_v23 = vmul.f32 %v2378_v46, %v17770_v20  ;;  %v2360_v11 = vmul.f32 0.01, %v8369_v29  ;;  %v17333_v45 = vunpack.i.h.bf16 %v12708_v6  ;;  %v17332_v2 = vunpack.i.l.bf16 %v12708_v6 }
 0x3bb   :  { %v2361_v56 = vmul.f32 0.01, %v8370_v53  ;;  %v2163_v1 = vpop.f32.mrb[22].mxu0  ;;  %v12714_v38 = vmul.f32 %v2379_v48, %v17772_v40 }
 0x3bc   :  { %v2384_v43 = vmax.f32 %v8369_v29, %v2360_v11  ;;  %v8371_v9 = vadd.f32 %v2163_v1, %v12540_v18  ;;  %v2165_v36 = vpop.f32.mrb[23].mxu0  ;;  %v12719_v14 = vpack.i.bf16 %v12699_v23, %v12704_v25  ;;  %v2530_v29 = vsel %vm47_vm0, %v9078_v15, %v17332_v2 }
 0x3bd   :  { %v8372_v41 = vadd.f32 %v2165_v36, %v12540_v18  ;;  %v2531_v32 = vsel %vm47_vm0, %v9079_v44, %v17333_v45  ;;  %v12734_v18 = vmul.f32 %v2373_v31, %v17772_v40  ;;  %v2385_v48 = vmax.f32 %v8370_v53, %v2361_v56 }
 0x3be   :  { %v2366_v46 = vmul.f32 0.01, %v8371_v9  ;;  %9196 = vrot.lane.b32.xlu0 %v12719_v14, %s10519_s15  ;;  %v12739_v1 = vmul.f32 %v2384_v43, %v17770_v20  ;;  %v7709_v27 = vpack.c.bf16 %v2531_v32, %v2530_v29 }
 0x3bf   :  { %v2367_v11 = vmul.f32 0.01, %v8372_v41  ;;  %v12743_v13 = vpack.i.bf16 %v12714_v38, %v12734_v18  ;;  %v12749_v53 = vmul.f32 %v2385_v48, %v17772_v40 }
 0x3c0   :  { %17773 = vst [vmem:[#allocation10_spill] sm:$0xff] %v12739_v1  ;;  %v2390_v36 = vmax.f32 %v8371_v9, %v2366_v46  ;;  %7710 = vmatprep.subr.bf16.mxu0 %v7709_v27  ;;  %v12799_v46 = vld [vmem:[%s17217_s2 + $0x68] sm:$0xff] }
 0x3c1   :  { %v2391_v37 = vmax.f32 %v8372_v41, %v2367_v11  ;;  %17775 = vst [vmem:[#allocation13_spill] sm:$0xff] %v12749_v53  ;;  %3588 = vmatprep.mubr.f32.mxu0 %v12799_v46  ;;  %3766 = vmatprep.mubr.f32.mxu1 %v12799_v46 }
 0x3c2   :  { %v12746_v61 = vmul.f32 %v2390_v36, %v17770_v20  ;;  %9206 = vrot.lane.b32.xlu0 %v12662_v58, %s10517_s11 }
 0x3c3   :  { %v12752_v31 = vmul.f32 %v2391_v37, %v17772_v40 }
 0x3c4   :  { %17774 = vst [vmem:[#allocation15_spill] sm:$0xff] %v12746_v61  ;;  %v12758_v56 = vpack.i.bf16 %v12746_v61, %v12739_v1 }
 0x3c5   :  { %17776 = vst [vmem:[#allocation23_spill] sm:$0xff] %v12752_v31  ;;  %v12762_v43 = vpack.i.bf16 %v12752_v31, %v12749_v53 }
 0x3c6   :  { %9216 = vrot.lane.b32.xlu1 %v12758_v56, %s10519_s15  ;;  %9211 = vrot.lane.b32.xlu0 %v12588_v12, %s10519_s15 }
 0x3ca   :  { %9226 = vrot.lane.b32.xlu1 %v12556_v54, %s10521_s17  ;;  %9221 = vrot.lane.b32.xlu0 %v12584_v7, %s10519_s15 }
 0x3ce   :  { %9236 = vrot.lane.b32.xlu1 %v12551_v52, %s10521_s17  ;;  %9231 = vrot.lane.b32.xlu0 %v12719_v14, %s10521_s17 }
 0x3d2   :  { %9246 = vrot.lane.b32.xlu1 %v12758_v56, %s10521_s17  ;;  %9241 = vrot.lane.b32.xlu0 %v12588_v12, %s10521_s17 }
 0x3d6   :  { %9256 = vrot.lane.b32.xlu1 %v12556_v54, %s10520_s16  ;;  %9251 = vrot.lane.b32.xlu0 %v12584_v7, %s10521_s17 }
 0x3da   :  { %9266 = vrot.lane.b32.xlu1 %v12551_v52, %s10520_s16  ;;  %9261 = vrot.lane.b32.xlu0 %v12719_v14, %s10520_s16 }
 0x3de   :  { %9276 = vrot.lane.b32.xlu1 %v12758_v56, %s10520_s16  ;;  %9271 = vrot.lane.b32.xlu0 %v12588_v12, %s10520_s16 }
 0x3e2   :  { %9286 = vrot.lane.b32.xlu1 %v12556_v54, %s10523_s18  ;;  %9281 = vrot.lane.b32.xlu0 %v12584_v7, %s10520_s16  ;;  %v12831_v54 = vpop.permute.xlu0 %9096 }
 0x3e3   :  { %v17777_v17 = vunpack.i.h.bf16 %v12831_v54 }
 0x3e6   :  { %9296 = vrot.lane.b32.xlu1 %v12551_v52, %s10523_s18  ;;  %9291 = vrot.lane.b32.xlu0 %v12719_v14, %s10523_s18  ;;  %v12827_v52 = vpop.permute.xlu1 %9081 }
 0x3e7   :  { %v9083_v55 = vunpack.i.l.bf16 %v12827_v52 }
 0x3ea   :  { %9306 = vrot.lane.b32.xlu1 %v12758_v56, %s10523_s18  ;;  %9301 = vrot.lane.b32.xlu0 %v12588_v12, %s10523_s18  ;;  %v12841_v12 = vpop.permute.xlu0 %9101 }
 0x3ee   :  { %9316 = vrot.lane.b32.xlu1 %v12629_v39, %s10515_s9  ;;  %9311 = vrot.lane.b32.xlu0 %v12584_v7, %s10523_s18  ;;  %v12837_v7 = vpop.permute.xlu1 %9086  ;;  %v9107_v32 = vpop.permute.xlu0 %9106 }
 0x3ef   :  { %v9109_v41 = vunpack.i.h.bf16 %v9107_v32  ;;  %v9108_v9 = vunpack.i.l.bf16 %v9107_v32 }
 0x3f2   :  { %9326 = vrot.lane.b32.xlu1 %v12658_v35, %s10515_s9  ;;  %9321 = vrot.lane.b32.xlu0 %v12743_v13, %s10515_s9  ;;  %v12847_v29 = vpop.permute.xlu1 %9121  ;;  %v12861_v27 = vpop.permute.xlu0 %9111 }
 0x3f3   :  { %v17335_v11 = vunpack.i.h.bf16 %v12847_v29  ;;  %v17334_v36 = vunpack.i.l.bf16 %v12847_v29 }
 0x3f5   :  { %v2532_v57 = vsel %vm47_vm0, %v9108_v9, %v17334_v36  ;;  %v2533_v32 = vsel %vm47_vm0, %v9109_v41, %v17335_v11 }
 0x3f6   :  { %9336 = vrot.lane.b32.xlu1 %v12629_v39, %s10516_s10  ;;  %9331 = vrot.lane.b32.xlu0 %v12762_v43, %s10515_s9  ;;  %v12855_v48 = vpop.permute.xlu1 %9126  ;;  %v12893_v36 = vpop.permute.xlu0 %9116  ;;  %v7713_v40 = vpack.c.bf16 %v2533_v32, %v2532_v57 }
 0x3f7   :  { %v9119_v53 = vunpack.i.h.bf16 %v12893_v36  ;;  %v9118_v31 = vunpack.i.l.bf16 %v12893_v36 }
 0x3fa   :  { %9346 = vrot.lane.b32.xlu1 %v12658_v35, %s10516_s10  ;;  %9341 = vrot.lane.b32.xlu0 %v12743_v13, %s10516_s10 }
 0x3fe   :  { %9356 = vrot.lane.b32.xlu1 %v12629_v39, %s10518_s12  ;;  %9351 = vrot.lane.b32.xlu0 %v12762_v43, %s10516_s10 }
 0x402   :  { %9366 = vrot.lane.b32.xlu1 %v12658_v35, %s10518_s12  ;;  %9361 = vrot.lane.b32.xlu0 %v12743_v13, %s10518_s12 }
 0x406   :  { %9376 = vrot.lane.b32.xlu1 %v12629_v39, %s10517_s11  ;;  %9371 = vrot.lane.b32.xlu0 %v12762_v43, %s10518_s12 }
 0x409   :  { %v12867_v37 = vpop.permute.xlu1 %9131 }
 0x40a   :  { %9386 = vrot.lane.b32.xlu1 %v12658_v35, %s10517_s11  ;;  %9381 = vrot.lane.b32.xlu0 %v12743_v13, %s10517_s11  ;;  %v17338_v2 = vunpack.i.h.bf16 %v12867_v37  ;;  %v17337_v45 = vunpack.i.l.bf16 %v12867_v37 }
 0x40c   :  { %v2534_v0 = vsel %vm47_vm0, %v17337_v45, %v9078_v15  ;;  %v2535_v34 = vsel %vm47_vm0, %v17338_v2, %v9079_v44  ;;  %v9084_v15 = vunpack.i.h.bf16 %v12827_v52  ;;  %v17342_v44 = vunpack.i.l.bf16 %v12831_v54 }
 0x40d   :  { %v12897_v11 = vpop.permute.xlu1 %9136  ;;  %v7711_v42 = vpack.c.bf16 %v2535_v34, %v2534_v0  ;;  %v9088_v2 = vunpack.i.l.bf16 %v12837_v7  ;;  %v9114_v52 = vunpack.i.h.bf16 %v12861_v27 }
 0x40e   :  { %9396 = vrot.lane.b32.xlu1 %v12719_v14, %s10515_s9  ;;  %9391 = vrot.lane.b32.xlu0 %v12762_v43, %s10517_s11  ;;  %v2626_v20 = vsel %vm72_vm1, %v9083_v55, %v17342_v44  ;;  %v2627_v57 = vsel %vm72_vm1, %v9084_v15, %v17777_v17  ;;  %v9089_v44 = vunpack.i.h.bf16 %v12837_v7  ;;  %v17782_v17 = vunpack.i.l.bf16 %v12855_v48 }
 0x40f   :  { %7712 = vmatpush1.bf16.msra.mxu0 %v7711_v42  ;;  %v9113_v42 = vunpack.i.l.bf16 %v12861_v27  ;;  %v7717_v47 = vpack.c.bf16 %v2627_v57, %v2626_v20 }
 0x410   :  { %7714 = vmatprep.subr.bf16.mxu0 %v7713_v40 }
 0x411   :  { %v12909_v34 = vpop.permute.xlu0 %9156  ;;  %v12911_v0 = vpop.permute.xlu1 %9141 }
 0x412   :  { %9406 = vrot.lane.b32.xlu1 %v12629_v39, %s10519_s15  ;;  %9401 = vrot.lane.b32.xlu0 %v12634_v26, %s10519_s15  ;;  %v17778_v32 = vunpack.i.l.bf16 %v12909_v34  ;;  %v17779_v45 = vunpack.i.h.bf16 %v12909_v34 }
 0x414   :  { %v2536_v40 = vsel %vm47_vm0, %v17778_v32, %v9108_v9  ;;  %v2537_v21 = vsel %vm47_vm0, %v17779_v45, %v9109_v41  ;;  %v17780_v32 = vunpack.i.l.bf16 %v12911_v0  ;;  %v17781_v41 = vunpack.i.h.bf16 %v12911_v0 }
 0x415   :  { %v12943_v27 = vpop.permute.xlu0 %9161  ;;  %v12945_v4 = vpop.permute.xlu1 %9146  ;;  %v7715_v9 = vpack.c.bf16 %v2537_v21, %v2536_v40  ;;  %v2628_v21 = vsel %vm72_vm1, %v9113_v42, %v17782_v17  ;;  %v17783_v40 = vunpack.i.h.bf16 %v12855_v48 }
 0x416   :  { %9421 = vrot.lane.b32.xlu1 %v12719_v14, %s10516_s10  ;;  %9411 = vrot.lane.b32.xlu0 %v12758_v56, %s10515_s9  ;;  %v2630_v45 = vsel %vm72_vm1, %v17780_v32, %v9083_v55  ;;  %v2631_v7 = vsel %vm72_vm1, %v17781_v41, %v9084_v15  ;;  %v17784_v32 = vunpack.i.l.bf16 %v12841_v12  ;;  %v17785_v41 = vunpack.i.h.bf16 %v12841_v12 }
 0x417   :  { %7716 = vmatpush1.bf16.msra.mxu0 %v7715_v9  ;;  %v2629_v55 = vsel %vm72_vm1, %v9114_v52, %v17783_v40  ;;  %v7719_v9 = vpack.c.bf16 %v2631_v7, %v2630_v45 }
 0x418   :  { %7718 = vmatprep.subr.bf16.mxu0 %v7717_v47  ;;  %v2722_v20 = vsel %vm97_vm3, %v9088_v2, %v17784_v32  ;;  %v2723_v40 = vsel %vm97_vm3, %v9089_v44, %v17785_v41  ;;  %v7721_v61 = vpack.c.bf16 %v2629_v55, %v2628_v21  ;;  %v17786_v41 = vunpack.i.l.bf16 %v12897_v11 }
 0x419   :  { %v12973_v47 = vpop.permute.xlu0 %9171  ;;  %v12975_v17 = vpop.permute.xlu1 %9151 }
 0x41a   :  { %9431 = vrot.lane.b32.xlu1 %v12629_v39, %s10521_s17  ;;  %9416 = vrot.lane.b32.xlu0 %v12658_v35, %s10519_s15  ;;  %v17349_v1 = vunpack.i.h.bf16 %v12973_v47  ;;  %v17352_v32 = vunpack.i.l.bf16 %v12973_v47  ;;  %v17350_v15 = vunpack.i.h.bf16 %v12975_v17  ;;  %v17351_v57 = vunpack.i.l.bf16 %v12975_v17 }
 0x41b   :  { %7720 = vmatpush1.bf16.msra.mxu0 %v7719_v9  ;;  %v7725_v9 = vpack.c.bf16 %v2723_v40, %v2722_v20 }
 0x41c   :  { %v2632_v45 = vsel %vm72_vm1, %v17352_v32, %v9113_v42  ;;  %v2633_v7 = vsel %vm72_vm1, %v17349_v1, %v9114_v52  ;;  %7722 = vmatprep.subr.bf16.mxu0 %v7721_v61  ;;  %v2726_v42 = vsel %vm97_vm3, %v17351_v57, %v9088_v2  ;;  %v2727_v52 = vsel %vm97_vm3, %v17350_v15, %v9089_v44 }
 0x41d   :  { %v12999_v21 = vpop.permute.xlu0 %9176  ;;  %v13001_v36 = vpop.permute.xlu1 %9166  ;;  %v7723_v55 = vpack.c.bf16 %v2633_v7, %v2632_v45  ;;  %v2724_v61 = vsel %vm97_vm3, %v9118_v31, %v17786_v41  ;;  %v17787_v1 = vunpack.i.h.bf16 %v12897_v11  ;;  %v17354_v45 = vunpack.i.l.bf16 %v12943_v27 }
 0x41e   :  { %9446 = vrot.lane.b32.xlu1 %v12662_v58, %s10519_s15  ;;  %9426 = vrot.lane.b32.xlu0 %v12634_v26, %s10521_s17  ;;  %v9149_v2 = vunpack.i.h.bf16 %v12945_v4  ;;  %v9148_v7 = vunpack.i.l.bf16 %v12945_v4  ;;  %v17386_v57 = vunpack.i.h.bf16 %v13001_v36  ;;  %v17391_v32 = vunpack.i.l.bf16 %v13001_v36 }
 0x41f   :  { %v2725_v20 = vsel %vm97_vm3, %v9119_v53, %v17787_v1  ;;  %7724 = vmatpush1.bf16.msra.mxu0 %v7723_v55  ;;  %v7727_v1 = vpack.c.bf16 %v2727_v52, %v2726_v42  ;;  %v17788_v42 = vunpack.i.h.bf16 %v12943_v27 }
 0x420   :  { %7726 = vmatprep.subr.bf16.mxu0 %v7725_v9  ;;  %v7729_v15 = vpack.c.bf16 %v2725_v20, %v2724_v61  ;;  %v2818_v25 = vsel %vm122_vm2, %v9148_v7, %v17354_v45  ;;  %v9178_v45 = vunpack.i.l.bf16 %v12999_v21 }
 0x421   :  { %v13027_v44 = vpop.permute.xlu0 %9191  ;;  %v13029_v41 = vpop.permute.xlu1 %9181  ;;  %v2819_v52 = vsel %vm122_vm2, %v9149_v2, %v17788_v42 }
 0x422   :  { %9451 = vrot.lane.b32.xlu1 %v12719_v14, %s10518_s12  ;;  %9436 = vrot.lane.b32.xlu0 %v12758_v56, %s10516_s10  ;;  %v17355_v4 = vunpack.i.h.bf16 %v13027_v44  ;;  %v17392_v55 = vunpack.i.l.bf16 %v13027_v44  ;;  %v17356_v40 = vunpack.i.h.bf16 %v13029_v41  ;;  %v17357_v9 = vunpack.i.l.bf16 %v13029_v41 }
 0x423   :  { %7728 = vmatpush1.bf16.msra.mxu0 %v7727_v1  ;;  %v9179_v1 = vunpack.i.h.bf16 %v12999_v21 }
 0x424   :  { %v2728_v61 = vsel %vm97_vm3, %v17392_v55, %v9118_v31  ;;  %v2729_v20 = vsel %vm97_vm3, %v17355_v4, %v9119_v53  ;;  %7730 = vmatprep.subr.bf16.mxu0 %v7729_v15  ;;  %v2822_v31 = vsel %vm122_vm2, %v17391_v32, %v9148_v7  ;;  %v2823_v53 = vsel %vm122_vm2, %v17386_v57, %v9149_v2 }
 0x425   :  { %v7731_v42 = vpack.c.bf16 %v2729_v20, %v2728_v61  ;;  %v7733_v4 = vpack.c.bf16 %v2819_v52, %v2818_v25  ;;  %v2820_v15 = vsel %vm122_vm2, %v9178_v45, %v17357_v9  ;;  %v2821_v21 = vsel %vm122_vm2, %v9179_v1, %v17356_v40  ;;  %v9187_v7 = vpop.permute.xlu1 %9186 }
 0x426   :  { %9461 = vrot.lane.b32.xlu1 %v12662_v58, %s10521_s17  ;;  %9441 = vrot.lane.b32.xlu0 %v12658_v35, %s10521_s17  ;;  %v7735_v2 = vpack.c.bf16 %v2823_v53, %v2822_v31  ;;  %v7737_v25 = vpack.c.bf16 %v2821_v21, %v2820_v15 }
 0x427   :  { %7732 = vmatpush1.bf16.msra.mxu0 %v7731_v42 }
 0x428   :  { %7734 = vmatprep.subr.bf16.mxu0 %v7733_v4 }
 0x429   :  { %v13089_v4 = vpop.permute.xlu1 %9201 }
 0x42a   :  { %9466 = vrot.lane.b32.xlu1 %v12629_v39, %s10520_s16  ;;  %9456 = vrot.lane.b32.xlu0 %v12634_v26, %s10520_s16 }
 0x42b   :  { %7736 = vmatpush1.bf16.msra.mxu0 %v7735_v2  ;;  %v9188_v2 = vunpack.i.l.bf16 %v9187_v7 }
 0x42c   :  { %7738 = vmatprep.subr.bf16.mxu0 %v7737_v25  ;;  %v17364_v25 = vunpack.i.h.bf16 %v13089_v4 }
 0x42e   :  { %9481 = vrot.lane.b32.xlu1 %v12662_v58, %s10520_s16  ;;  %9471 = vrot.lane.b32.xlu0 %v12758_v56, %s10518_s12 }
 0x430   :  { %v13083_v52 = vpop.permute.xlu0 %9196 }
 0x431   :  { %17789 = vst [vmem:[#allocation14_spill] sm:$0xff] %v13083_v52 }
 0x432   :  { %9486 = vrot.lane.b32.xlu1 %v12719_v14, %s10517_s11  ;;  %9476 = vrot.lane.b32.xlu0 %v12658_v35, %s10520_s16 }
 0x434   :  { %v13091_v61 = vpop.permute.xlu0 %9206 }
 0x435   :  { %v17358_v20 = vunpack.i.h.bf16 %v13091_v61  ;;  %v17359_v42 = vunpack.i.l.bf16 %v13091_v61 }
 0x436   :  { %9496 = vrot.lane.b32.xlu1 %v12634_v26, %s10523_s18  ;;  %9491 = vrot.lane.b32.xlu0 %v12758_v56, %s10517_s11  ;;  %v17363_v26 = vunpack.i.h.bf16 %v13083_v52  ;;  %v17360_v56 = vunpack.i.l.bf16 %v13083_v52 }
 0x437   :  { %v2824_v14 = vsel %vm122_vm2, %v17359_v42, %v9178_v45  ;;  %v2825_v31 = vsel %vm122_vm2, %v17358_v20, %v9179_v1  ;;  %v9189_v45 = vunpack.i.h.bf16 %v9187_v7  ;;  %v17376_v1 = vunpack.i.l.bf16 %v13089_v4 }
 0x438   :  { %v13107_v53 = vpop.permute.xlu1 %9216  ;;  %v9212_v15 = vpop.permute.xlu0 %9211  ;;  %v7739_v21 = vpack.c.bf16 %v2825_v31, %v2824_v14  ;;  %v17791_v14 = vpack.c.bf16 %v12546_v60, %v12543_v49  ;;  %v2934_v49 = vsel %vm153_vm4, %v9188_v2, %v17360_v56 }
 0x439   :  { %17790 = vst [vmem:[#allocation12_spill] sm:$0xff] %v13107_v53  ;;  %v9213_v40 = vunpack.i.l.bf16 %v9212_v15  ;;  %v17362_v9 = vunpack.i.h.bf16 %v13107_v53  ;;  %v17361_v20 = vunpack.i.l.bf16 %v13107_v53  ;;  %v2935_v60 = vsel %vm153_vm4, %v9189_v45, %v17363_v26 }
 0x43a   :  { %9511 = vrot.lane.b32.xlu1 %v12662_v58, %s10523_s18  ;;  %9501 = vrot.lane.b32.xlu0 %v12629_v39, %s10523_s18  ;;  %v9214_v58 = vunpack.i.h.bf16 %v9212_v15  ;;  %v17792_v39 = vpack.c.bf16 %v12538_v24, %v12535_v59  ;;  %v2938_v24 = vsel %vm153_vm4, %v17376_v1, %v9188_v2 }
 0x43b   :  { %7740 = vmatpush1.bf16.msra.mxu0 %v7739_v21  ;;  %v2939_v21 = vsel %vm153_vm4, %v17364_v25, %v9189_v45  ;;  %v7749_v45 = vpack.c.bf16 %v2935_v60, %v2934_v49 }
 0x43c   :  { %7742 = vmatprep.subr.bf16.mxu0 %v17791_v14  ;;  %v9227_v31 = vpop.permute.xlu1 %9226  ;;  %v13122_v42 = vpop.permute.xlu0 %9221 }
 0x43d   :  { %v17367_v7 = vunpack.i.h.bf16 %v13122_v42  ;;  %v17368_v15 = vunpack.i.l.bf16 %v13122_v42  ;;  %v9228_v56 = vunpack.i.l.bf16 %v9227_v31 }
 0x43e   :  { %9516 = vrot.lane.b32.xlu1 %v12743_v13, %s10519_s15  ;;  %9506 = vrot.lane.b32.xlu0 %v12658_v35, %s10523_s18  ;;  %v17793_v35 = vpack.c.bf16 %v12576_v33, %v12573_v30  ;;  %v2936_v30 = vsel %vm153_vm4, %v9213_v40, %v17361_v20  ;;  %v2937_v33 = vsel %vm153_vm4, %v9214_v58, %v17362_v9 }
 0x43f   :  { %7744 = vmatpush1.bf16.msra.mxu0 %v17792_v39  ;;  %v17795_v20 = vpack.c.bf16 %v12566_v16, %v12561_v28  ;;  %v2940_v9 = vsel %vm153_vm4, %v17368_v15, %v9213_v40  ;;  %v2941_v26 = vsel %vm153_vm4, %v17367_v7, %v9214_v58  ;;  %v7753_v60 = vpack.c.bf16 %v2937_v33, %v2936_v30 }
 0x440   :  { %7746 = vmatprep.subr.bf16.mxu0 %v17793_v35  ;;  %v13144_v59 = vpop.permute.xlu1 %9236  ;;  %v13154_v14 = vpop.permute.xlu0 %9231  ;;  %v9229_v35 = vunpack.i.h.bf16 %v9227_v31  ;;  %v7751_v31 = vpack.c.bf16 %v2939_v21, %v2938_v24 }
 0x441   :  { %17794 = vst [vmem:[#allocation24_spill] sm:$0xff] %v13154_v14  ;;  %v17366_v39 = vunpack.i.h.bf16 %v13154_v14  ;;  %v17365_v2 = vunpack.i.l.bf16 %v13154_v14  ;;  %v17371_v25 = vunpack.i.h.bf16 %v13144_v59  ;;  %v17375_v28 = vunpack.i.l.bf16 %v13144_v59 }
 0x442   :  { %9526 = vrot.lane.b32.xlu1 %v12743_v13, %s10521_s17  ;;  %9521 = vrot.lane.b32.xlu0 %v12762_v43, %s10519_s15 }
 0x443   :  { %7748 = vmatpush1.bf16.msra.mxu0 %v17795_v20  ;;  %v3030_v40 = vsel %vm178_vm6, %v9228_v56, %v17365_v2  ;;  %v3031_v20 = vsel %vm178_vm6, %v9229_v35, %v17366_v39  ;;  %v3034_v33 = vsel %vm178_vm6, %v17375_v28, %v9228_v56  ;;  %v7755_v39 = vpack.c.bf16 %v2941_v26, %v2940_v9  ;;  %v7398_v9 = vld [vmem:[%s17214_s4 + $0x40] sm:$0xff] }
 0x444   :  { %7750 = vmatprep.subr.bf16.mxu0 %v7749_v45  ;;  %v13181_v49 = vpop.permute.xlu1 %9246  ;;  %v9242_v16 = vpop.permute.xlu0 %9241  ;;  %v7757_v7 = vpack.c.bf16 %v3031_v20, %v3030_v40 }
 0x445   :  { %17796 = vst [vmem:[#allocation16_spill] sm:$0xff] %v13181_v49  ;;  %v9244_v58 = vunpack.i.h.bf16 %v9242_v16  ;;  %v9243_v45 = vunpack.i.l.bf16 %v9242_v16  ;;  %v17369_v24 = vunpack.i.h.bf16 %v13181_v49  ;;  %v17370_v21 = vunpack.i.l.bf16 %v13181_v49 }
 0x446   :  { %9536 = vrot.lane.b32.xlu1 %v12743_v13, %s10520_s16  ;;  %9531 = vrot.lane.b32.xlu0 %v12762_v43, %s10521_s17  ;;  %v3035_v16 = vsel %vm178_vm6, %v17371_v25, %v9229_v35  ;;  %v17809_v49 = vunpack.i.h.bf16 %v12911_v0 }
 0x447   :  { %7752 = vmatpush1.bf16.msra.mxu0 %v7751_v31  ;;  %v3032_v56 = vsel %vm178_vm6, %v9243_v45, %v17370_v21  ;;  %v3033_v35 = vsel %vm178_vm6, %v9244_v58, %v17369_v24 }
 0x448   :  { %7754 = vmatprep.subr.bf16.mxu0 %v7753_v60  ;;  %v9257_v30 = vpop.permute.xlu1 %9256  ;;  %v13207_v2 = vpop.permute.xlu0 %9251  ;;  %v7759_v60 = vpack.c.bf16 %v3035_v16, %v3034_v33  ;;  %v7761_v21 = vpack.c.bf16 %v3033_v35, %v3032_v56 }
 0x449   :  { %v17372_v15 = vunpack.i.h.bf16 %v13207_v2  ;;  %v17373_v31 = vunpack.i.l.bf16 %v13207_v2  ;;  %v9259_v26 = vunpack.i.h.bf16 %v9257_v30 }
 0x44a   :  { %9546 = vrot.lane.b32.xlu1 %v12743_v13, %s10523_s18  ;;  %9541 = vrot.lane.b32.xlu0 %v12762_v43, %s10520_s16 }
 0x44b   :  { %7756 = vmatpush1.bf16.msra.mxu0 %v7755_v39  ;;  %v3036_v40 = vsel %vm178_vm6, %v17373_v31, %v9243_v45  ;;  %v3037_v20 = vsel %vm178_vm6, %v17372_v15, %v9244_v58  ;;  %v9258_v39 = vunpack.i.l.bf16 %v9257_v30  ;;  %v7400_v58 = vld [vmem:[%s17214_s4 + $0x50] sm:$0xff]  ;;  %v7399_v30 = vld [vmem:[%s17214_s4 + $0x48] sm:$0xff] }
 0x44c   :  { %7758 = vmatprep.subr.bf16.mxu0 %v7757_v7  ;;  %v13226_v13 = vpop.permute.xlu1 %9266  ;;  %v13236_v24 = vpop.permute.xlu0 %9261 }
 0x44d   :  { %17797 = vst [vmem:[#allocation25_spill] sm:$0xff] %v13236_v24  ;;  %v17377_v25 = vunpack.i.h.bf16 %v13236_v24  ;;  %v17374_v7 = vunpack.i.l.bf16 %v13236_v24  ;;  %v17384_v33 = vunpack.i.h.bf16 %v13226_v13  ;;  %v17385_v16 = vunpack.i.l.bf16 %v13226_v13 }
 0x44e   :  { %3494 = vperm.xlu1 %8594, %v7398_v9   ;;  %9551 = vrot.lane.b32.xlu0 %v12762_v43, %s10523_s18 }
 0x44f   :  { %7760 = vmatpush1.bf16.msra.mxu0 %v7759_v60  ;;  %v3126_v56 = vsel %vm203_vm5, %v9258_v39, %v17374_v7  ;;  %v3127_v43 = vsel %vm203_vm5, %v9259_v26, %v17377_v25  ;;  %v7763_v60 = vpack.c.bf16 %v3037_v20, %v3036_v40  ;;  %v3130_v31 = vsel %vm203_vm5, %v17385_v16, %v9258_v39  ;;  %v7401_v40 = vld [vmem:[%s17214_s4 + $0x58] sm:$0xff] }
 0x450   :  { %7762 = vmatprep.subr.bf16.mxu0 %v7761_v21  ;;  %v13247_v45 = vpop.permute.xlu1 %9276  ;;  %v9272_v35 = vpop.permute.xlu0 %9271  ;;  %v7765_v15 = vpack.c.bf16 %v3127_v43, %v3126_v56  ;;  %v3131_v7 = vsel %vm203_vm5, %v17384_v33, %v9259_v26 }
 0x451   :  { %17798 = vst [vmem:[#allocation17_spill] sm:$0xff] %v13247_v45  ;;  %v17378_v9 = vunpack.i.h.bf16 %v13247_v45  ;;  %v17379_v21 = vunpack.i.l.bf16 %v13247_v45  ;;  %v9274_v28 = vunpack.i.h.bf16 %v9272_v35  ;;  %v9273_v1 = vunpack.i.l.bf16 %v9272_v35 }
 0x452   :  { %3504 = vperm.xlu1 %8594, %v7400_v58   ;;  %3499 = vperm.xlu0 %8593, %v7399_v30   ;;  %v7767_v58 = vpack.c.bf16 %v3131_v7, %v3130_v31 }
 0x453   :  { %7764 = vmatpush1.bf16.msra.mxu0 %v7763_v60  ;;  %v3128_v20 = vsel %vm203_vm5, %v9273_v1, %v17379_v21  ;;  %v3129_v26 = vsel %vm203_vm5, %v9274_v28, %v17378_v9 }
 0x454   :  { %7766 = vmatprep.subr.bf16.mxu0 %v7765_v15  ;;  %v9287_v25 = vpop.permute.xlu1 %9286  ;;  %v13281_v39 = vpop.permute.xlu0 %9281  ;;  %v7769_v30 = vpack.c.bf16 %v3129_v26, %v3128_v20 }
 0x455   :  { %v17382_v15 = vunpack.i.h.bf16 %v13281_v39  ;;  %v17383_v56 = vunpack.i.l.bf16 %v13281_v39  ;;  %v9289_v60 = vunpack.i.h.bf16 %v9287_v25  ;;  %v9288_v7 = vunpack.i.l.bf16 %v9287_v25 }
 0x456   :  { %3509 = vperm.xlu0 %8593, %v7401_v40  }
 0x457   :  { %7768 = vmatpush1.bf16.msra.mxu0 %v7767_v58  ;;  %v3132_v43 = vsel %vm203_vm5, %v17383_v56, %v9273_v1  ;;  %v3133_v35 = vsel %vm203_vm5, %v17382_v15, %v9274_v28 }
 0x458   :  { %7770 = vmatprep.subr.bf16.mxu0 %v7769_v30  ;;  %v13293_v31 = vpop.permute.xlu1 %9296  ;;  %v13295_v20 = vpop.permute.xlu0 %9291  ;;  %v7771_v58 = vpack.c.bf16 %v3133_v35, %v3132_v43  ;;  %v13312_v30 = vld [vmem:[%s17217_s2 + $0x60] sm:$0xff] }
 0x459   :  { %17799 = vst [vmem:[#allocation26_spill] sm:$0xff] %v13295_v20  ;;  %v17381_v40 = vunpack.i.h.bf16 %v13293_v31  ;;  %v17380_v26 = vunpack.i.l.bf16 %v13293_v31  ;;  %v17388_v9 = vunpack.i.h.bf16 %v13295_v20  ;;  %v17387_v1 = vunpack.i.l.bf16 %v13295_v20 }
 0x45b   :  { %v3226_v28 = vsel %vm228_vm7, %v17380_v26, %v9288_v7  ;;  %v3227_v25 = vsel %vm228_vm7, %v17381_v40, %v9289_v60  ;;  %7772 = vmatpush1.bf16.msra.mxu0 %v7771_v58  ;;  %v3222_v35 = vsel %vm228_vm7, %v9288_v7, %v17387_v1  ;;  %v3223_v21 = vsel %vm228_vm7, %v9289_v60, %v17388_v9  ;;  %v13327_v58 = vld [vmem:[%s17217_s2 + $0x80] sm:$0xff]  ;;  %v13336_v60 = vld [vmem:[%s17217_s2 + $0x78] sm:$0xff] }
 0x45c   :  { %v13314_v43 = vpop.permute.xlu1 %9306  ;;  %v7775_v26 = vpack.c.bf16 %v3227_v25, %v3226_v28  ;;  %v9302_v40 = vpop.permute.xlu0 %9301  ;;  %v7773_v33 = vpack.c.bf16 %v3223_v21, %v3222_v35 }
 0x45d   :  { %17800 = vst [vmem:[#allocation18_spill] sm:$0xff] %v13314_v43  ;;  %v17389_v15 = vunpack.i.h.bf16 %v13314_v43  ;;  %v17390_v56 = vunpack.i.l.bf16 %v13314_v43  ;;  %v9304_v16 = vunpack.i.h.bf16 %v9302_v40  ;;  %v9303_v57 = vunpack.i.l.bf16 %v9302_v40 }
 0x45e   :  { %3589 = vmatmul.mubr.f32.vlgmr.msra.gmra.mrb[24].mxu0 %v13312_v30  ;;  %7774 = vmatprep.subr.bf16.mxu0 %v7773_v33  ;;  %v13349_v33 = vld [vmem:[%s17217_s2 + $0x98] sm:$0xff] }
 0x45f   :  { %3594 = vmatprep.mubr.f32.mxu0 %v13327_v58  ;;  %7776 = vmatpush1.bf16.msra.mxu0 %v7775_v26  ;;  %v3224_v28 = vsel %vm228_vm7, %v9303_v57, %v17390_v56  ;;  %v3225_v21 = vsel %vm228_vm7, %v9304_v16, %v17389_v15  ;;  %v13360_v15 = vld [vmem:[%s17217_s2 + $0x90] sm:$0xff]  ;;  %v17801_v56 = vunpack.i.l.bf16 %v12867_v37 }
 0x460   :  { %v9317_v7 = vpop.permute.xlu1 %9316  ;;  %v13351_v40 = vpop.permute.xlu0 %9311  ;;  %v7777_v35 = vpack.c.bf16 %v3225_v21, %v3224_v28  ;;  %v17802_v28 = vunpack.i.h.bf16 %v12867_v37 }
 0x461   :  { %v9319_v25 = vunpack.i.h.bf16 %v9317_v7  ;;  %v9318_v26 = vunpack.i.l.bf16 %v9317_v7  ;;  %v17401_v1 = vunpack.i.h.bf16 %v13351_v40  ;;  %v17402_v9 = vunpack.i.l.bf16 %v13351_v40 }
 0x462   :  { %3595 = vmatmul.mubr.f32.gmra.mrb[26].mxu0 %v13336_v60  ;;  %7778 = vmatprep.subr.bf16.mxu0 %v7777_v35 }
 0x463   :  { %3600 = vmatprep.mubr.f32.mxu0 %v13349_v33  ;;  %v2514_v7 = vsel %vm47_vm0, %v9318_v26, %v17801_v56  ;;  %v2515_v21 = vsel %vm47_vm0, %v9319_v25, %v17802_v28  ;;  %v3228_v35 = vsel %vm228_vm7, %v17402_v9, %v9303_v57  ;;  %v3229_v32 = vsel %vm228_vm7, %v17401_v1, %v9304_v16  ;;  %v13381_v56 = vld [vmem:[%s17217_s2 + $0xb0] sm:$0xff]  ;;  %v13392_v16 = vld [vmem:[%s17217_s2 + $0xa8] sm:$0xff] }
 0x464   :  { %v9327_v55 = vpop.permute.xlu1 %9326  ;;  %v7853_v43 = vpack.c.bf16 %v2515_v21, %v2514_v7  ;;  %17803 = vst [vmem:[#allocation27_spill] sm:$0xff] %v13381_v56  ;;  %v13383_v37 = vpop.permute.xlu0 %9321  ;;  %v7779_v45 = vpack.c.bf16 %v3229_v32, %v3228_v35  ;;  %17804 = vst [vmem:[#allocation19_spill] sm:$0xff] %v13392_v16  ;;  %v17805_v35 = vunpack.i.l.bf16 %v12909_v34 }
 0x465   :  { %v9329_v28 = vunpack.i.h.bf16 %v9327_v55  ;;  %v9328_v20 = vunpack.i.l.bf16 %v9327_v55  ;;  %v17408_v24 = vunpack.i.h.bf16 %v13383_v37  ;;  %v17407_v57 = vunpack.i.l.bf16 %v13383_v37 }
 0x466   :  { %3601 = vmatmul.mubr.f32.gmra.mrb[28].mxu0 %v13360_v15 }
 0x467   :  { %7780 = vmatpush1.bf16.msra.mxu0 %v7779_v45  ;;  %3606 = vmatprep.mubr.f32.mxu0 %v13381_v56  ;;  %v2516_v1 = vsel %vm47_vm0, %v9328_v20, %v17805_v35  ;;  %v17806_v45 = vunpack.i.h.bf16 %v12909_v34  ;;  %v13419_v34 = vld [vmem:[%s17217_s2 + $0x70] sm:$0xff] }
 0x468   :  { %7854 = vmatprep.subr.bf16.mxu0 %v7853_v43  ;;  %v9337_v7 = vpop.permute.xlu1 %9336  ;;  %v13394_v21 = vpop.permute.xlu0 %9331  ;;  %v2518_v43 = vsel %vm47_vm0, %v17407_v57, %v9318_v26  ;;  %17807 = vst [vmem:[#allocation28_spill] sm:$0xff] %v13419_v34 }
 0x469   :  { %v9339_v55 = vunpack.i.h.bf16 %v9337_v7  ;;  %v9338_v32 = vunpack.i.l.bf16 %v9337_v7  ;;  %v2517_v9 = vsel %vm47_vm0, %v9329_v28, %v17806_v45  ;;  %v2519_v7 = vsel %vm47_vm0, %v17408_v24, %v9319_v25 }
 0x46a   :  { %3607 = vmatmul.mubr.f32.gmra.mrb[30].mxu0 %v13392_v16  ;;  %v7855_v45 = vpack.c.bf16 %v2519_v7, %v2518_v43  ;;  %v7857_v57 = vpack.c.bf16 %v2517_v9, %v2516_v1  ;;  %v17808_v25 = vunpack.i.l.bf16 %v12911_v0  ;;  %v17810_v53 = vunpack.i.l.bf16 %v13394_v21 }
 0x46b   :  { %3677 = vmatprep.mubr.f32.mxu0 %v17740_v22  ;;  %v2611_v14 = vsel %vm72_vm1, %v9339_v55, %v17809_v49  ;;  %v17811_v56 = vunpack.i.h.bf16 %v13394_v21 }
 0x46c   :  { %v9347_v35 = vpop.permute.xlu1 %9346  ;;  %v13421_v26 = vpop.permute.xlu0 %9341  ;;  %v2610_v24 = vsel %vm72_vm1, %v9338_v32, %v17808_v25  ;;  %v2520_v16 = vsel %vm47_vm0, %v17810_v53, %v9328_v20  ;;  %v13447_v53 = vld [vmem:[%s17217_s2 + $0x88] sm:$0xff] }
 0x46d   :  { %v2521_v9 = vsel %vm47_vm0, %v17811_v56, %v9329_v28  ;;  %v17417_v1 = vunpack.i.h.bf16 %v13421_v26  ;;  %v17418_v43 = vunpack.i.l.bf16 %v13421_v26  ;;  %v9349_v0 = vunpack.i.h.bf16 %v9347_v35  ;;  %17812 = vst [vmem:[#allocation20_spill] sm:$0xff] %v13447_v53 }
 0x46e   :  { %7402 = vmatmul.mubr.msk.f32.vlgmr.msra.gmra.mrb[24].mxu0 %vm1799_vm9, %v13419_v34  ;;  %v9348_v7 = vunpack.i.l.bf16 %v9347_v35  ;;  %v7859_v56 = vpack.c.bf16 %v2521_v9, %v2520_v16  ;;  %v7861_v28 = vpack.c.bf16 %v2611_v14, %v2610_v24  ;;  %v13467_v14 = vld [vmem:[%s17217_s2 + $0xa0] sm:$0xff]  ;;  %v17814_v24 = vunpack.i.l.bf16 %v12973_v47 }
 0x46f   :  { %7856 = vmatpush1.bf16.msra.mxu0 %v7855_v45  ;;  %3683 = vmatprep.mubr.f32.mxu0 %v17740_v22  ;;  %v2614_v25 = vsel %vm72_vm1, %v17418_v43, %v9338_v32  ;;  %v2615_v35 = vsel %vm72_vm1, %v17417_v1, %v9339_v55  ;;  %17813 = vst [vmem:[#allocation21_spill] sm:$0xff] %v13467_v14  ;;  %v17815_v32 = vunpack.i.h.bf16 %v12973_v47 }
 0x470   :  { %7858 = vmatprep.subr.bf16.mxu0 %v7857_v57  ;;  %v9357_v49 = vpop.permute.xlu1 %9356  ;;  %v13449_v20 = vpop.permute.xlu0 %9351  ;;  %v2612_v55 = vsel %vm72_vm1, %v9348_v7, %v17814_v24  ;;  %v7863_v24 = vpack.c.bf16 %v2615_v35, %v2614_v25  ;;  %v17818_v35 = vunpack.i.h.bf16 %v12975_v17 }
 0x471   :  { %v17423_v45 = vunpack.i.h.bf16 %v13449_v20  ;;  %v17424_v34 = vunpack.i.l.bf16 %v13449_v20  ;;  %v9359_v57 = vunpack.i.h.bf16 %v9357_v49  ;;  %v9358_v16 = vunpack.i.l.bf16 %v9357_v49 }
 0x472   :  { %7403 = vmatmul.mubr.msk.f32.gmra.mrb[26].mxu0 %vm1799_vm9, %v13447_v53  ;;  %v2613_v9 = vsel %vm72_vm1, %v9349_v0, %v17815_v32 }
 0x473   :  { %7860 = vmatpush1.bf16.msra.mxu0 %v7859_v56  ;;  %3689 = vmatprep.mubr.f32.mxu0 %v17740_v22  ;;  %v2616_v56 = vsel %vm72_vm1, %v17424_v34, %v9348_v7  ;;  %v2617_v1 = vsel %vm72_vm1, %v17423_v45, %v9349_v0  ;;  %v13495_v0 = vld [vmem:[%s17217_s2 + $0xb8] sm:$0xff]  ;;  %v17817_v7 = vunpack.i.l.bf16 %v12975_v17 }
 0x474   :  { %7862 = vmatprep.subr.bf16.mxu0 %v7861_v28  ;;  %v9367_v49 = vpop.permute.xlu1 %9366  ;;  %v13485_v43 = vpop.permute.xlu0 %9361  ;;  %v7865_v28 = vpack.c.bf16 %v2613_v9, %v2612_v55  ;;  %17816 = vst [vmem:[#allocation22_spill] sm:$0xff] %v13495_v0  ;;  %v2707_v55 = vsel %vm97_vm3, %v9359_v57, %v17818_v35 }
 0x475   :  { %v17427_v47 = vunpack.i.h.bf16 %v13485_v43  ;;  %v17428_v53 = vunpack.i.l.bf16 %v13485_v43  ;;  %v9369_v32 = vunpack.i.h.bf16 %v9367_v49  ;;  %v9368_v52 = vunpack.i.l.bf16 %v9367_v49 }
 0x476   :  { %7404 = vmatmul.mubr.msk.f32.gmra.mrb[28].mxu0 %vm1799_vm9, %v13467_v14  ;;  %v2706_v25 = vsel %vm97_vm3, %v9358_v16, %v17817_v7  ;;  %v7867_v49 = vpack.c.bf16 %v2617_v1, %v2616_v56 }
 0x477   :  { %7864 = vmatpush1.bf16.msra.mxu0 %v7863_v24  ;;  %3695 = vmatprep.mubr.f32.mxu0 %v17740_v22  ;;  %v2710_v24 = vsel %vm97_vm3, %v17428_v53, %v9358_v16  ;;  %v2711_v45 = vsel %vm97_vm3, %v17427_v47, %v9359_v57  ;;  %v7869_v1 = vpack.c.bf16 %v2707_v55, %v2706_v25  ;;  %v17819_v16 = vunpack.i.l.bf16 %v13027_v44 }
 0x478   :  { %7866 = vmatprep.subr.bf16.mxu0 %v7865_v28  ;;  %v9377_v9 = vpop.permute.xlu1 %9376  ;;  %v13513_v34 = vpop.permute.xlu0 %9371  ;;  %v17820_v57 = vunpack.i.h.bf16 %v13027_v44  ;;  %v7871_v47 = vpack.c.bf16 %v2711_v45, %v2710_v24  ;;  %v17821_v53 = vunpack.i.l.bf16 %v13001_v36  ;;  %v17822_v55 = vunpack.i.h.bf16 %v13001_v36 }
 0x479   :  { %v9379_v7 = vunpack.i.h.bf16 %v9377_v9  ;;  %v9378_v17 = vunpack.i.l.bf16 %v9377_v9  ;;  %v17433_v14 = vunpack.i.h.bf16 %v13513_v34  ;;  %v17431_v28 = vunpack.i.l.bf16 %v13513_v34 }
 0x47a   :  { %7405 = vmatmul.mubr.msk.f32.gmra.mrb[30].mxu0 %vm1799_vm9, %v13495_v0  ;;  %v2708_v56 = vsel %vm97_vm3, %v9368_v52, %v17819_v16  ;;  %v2709_v35 = vsel %vm97_vm3, %v9369_v32, %v17820_v57 }
 0x47b   :  { %7868 = vmatpush1.bf16.msra.mxu0 %v7867_v49  ;;  %3944 = vmatprep.mubr.f32.mxu0 %v12799_v46  ;;  %v2802_v25 = vsel %vm122_vm2, %v9378_v17, %v17821_v53  ;;  %v2803_v49 = vsel %vm122_vm2, %v9379_v7, %v17822_v55  ;;  %v2712_v44 = vsel %vm97_vm3, %v17431_v28, %v9368_v52 }
 0x47c   :  { %7870 = vmatprep.subr.bf16.mxu0 %v7869_v1  ;;  %v9387_v9 = vpop.permute.xlu1 %9386  ;;  %v2713_v46 = vsel %vm97_vm3, %v17433_v14, %v9369_v32  ;;  %v13544_v45 = vpop.permute.xlu0 %9381  ;;  %v7873_v16 = vpack.c.bf16 %v2709_v35, %v2708_v56  ;;  %v7877_v0 = vpack.c.bf16 %v2803_v49, %v2802_v25  ;;  %v17823_v32 = vunpack.i.l.bf16 %v13091_v61 }
 0x47d   :  { %v9389_v24 = vunpack.i.h.bf16 %v9387_v9  ;;  %v9388_v1 = vunpack.i.l.bf16 %v9387_v9  ;;  %v9383_v36 = vunpack.i.l.bf16 %v13544_v45  ;;  %v7875_v55 = vpack.c.bf16 %v2713_v46, %v2712_v44 }
 0x47e   :  { %v17824_v9 = vunpack.i.h.bf16 %v13091_v61  ;;  %v17825_v56 = vunpack.i.h.bf16 %v13544_v45  ;;  %v17826_v44 = vunpack.i.h.bf16 %v12708_v6  ;;  %v17827_v46 = vunpack.i.l.bf16 %v12708_v6 }
 0x47f   :  { %7872 = vmatpush1.bf16.msra.mxu0 %v7871_v47  ;;  %v2804_v14 = vsel %vm122_vm2, %v9388_v1, %v17823_v32  ;;  %v2806_v47 = vsel %vm122_vm2, %v9383_v36, %v9378_v17  ;;  %v17828_v17 = vunpack.i.l.bf16 %v13383_v37 }
 0x480   :  { %7874 = vmatprep.subr.bf16.mxu0 %v7873_v16  ;;  %v9397_v57 = vpop.permute.xlu1 %9396  ;;  %v13548_v52 = vpop.permute.xlu0 %9391  ;;  %v2805_v53 = vsel %vm122_vm2, %v9389_v24, %v17824_v9  ;;  %v2807_v35 = vsel %vm122_vm2, %v17825_v56, %v9379_v7 }
 0x481   :  { %v9399_v28 = vunpack.i.h.bf16 %v9397_v57  ;;  %v9398_v22 = vunpack.i.l.bf16 %v9397_v57  ;;  %v9394_v25 = vunpack.i.h.bf16 %v13548_v52  ;;  %v17434_v49 = vunpack.i.l.bf16 %v13548_v52 }
 0x482   :  { %v17829_v57 = vunpack.i.h.bf16 %v13383_v37  ;;  %v7879_v37 = vpack.c.bf16 %v2807_v35, %v2806_v47  ;;  %v17830_v47 = vunpack.i.l.bf16 %v13421_v26 }
 0x483   :  { %v2527_v61 = vsel %vm47_vm0, %v17826_v44, %v9399_v28  ;;  %v2526_v16 = vsel %vm47_vm0, %v17827_v46, %v9398_v22  ;;  %7876 = vmatpush1.bf16.msra.mxu0 %v7875_v55  ;;  %v2522_v7 = vsel %vm47_vm0, %v9398_v22, %v17828_v17  ;;  %v2808_v6 = vsel %vm122_vm2, %v17434_v49, %v9388_v1 }
 0x484   :  { %v2523_v32 = vsel %vm47_vm0, %v9399_v28, %v17829_v57  ;;  %7878 = vmatprep.subr.bf16.mxu0 %v7877_v0  ;;  %v13584_v9 = vpop.permute.xlu1 %9406  ;;  %v7783_v44 = vpack.c.bf16 %v2527_v61, %v2526_v16  ;;  %v2809_v22 = vsel %vm122_vm2, %v9394_v25, %v9389_v24  ;;  %v9402_v55 = vpop.permute.xlu0 %9401  ;;  %v7881_v46 = vpack.c.bf16 %v2805_v53, %v2804_v14 }
 0x485   :  { %v7781_v56 = vpack.c.bf16 %v2523_v32, %v2522_v7  ;;  %v7883_v28 = vpack.c.bf16 %v2809_v22, %v2808_v6  ;;  %v9404_v61 = vunpack.i.h.bf16 %v9402_v55  ;;  %v9403_v16 = vunpack.i.l.bf16 %v9402_v55 }
 0x486   :  { %v9409_v49 = vunpack.i.h.bf16 %v13584_v9  ;;  %v9408_v24 = vunpack.i.l.bf16 %v13584_v9  ;;  %v17831_v53 = vunpack.i.h.bf16 %v13421_v26  ;;  %v17833_v6 = vunpack.i.h.bf16 %v12847_v29 }
 0x487   :  { %7782 = vmatprep.subr.bf16.mxu1 %v7781_v56  ;;  %7880 = vmatpush1.bf16.msra.mxu0 %v7879_v37  ;;  %v17832_v56 = vunpack.i.l.bf16 %v12847_v29  ;;  %v17834_v55 = vpack.c.bf16 %v12624_v5, %v12621_v51  ;;  %v17835_v26 = vunpack.i.l.bf16 %v13394_v21  ;;  %v17838_v5 = vunpack.i.h.bf16 %v13089_v4 }
 0x488   :  { %7784 = vmatpush1.bf16.msra.mxu1 %v7783_v44  ;;  %7882 = vmatprep.subr.bf16.mxu0 %v7881_v46  ;;  %v9422_v0 = vpop.permute.xlu1 %9421  ;;  %v9412_v17 = vpop.permute.xlu0 %9411 }
 0x489   :  { %v9424_v7 = vunpack.i.h.bf16 %v9422_v0  ;;  %v9423_v57 = vunpack.i.l.bf16 %v9422_v0  ;;  %v9414_v1 = vunpack.i.h.bf16 %v9412_v17  ;;  %v9413_v32 = vunpack.i.l.bf16 %v9412_v17 }
 0x48a   :  { %v17836_v0 = vunpack.i.h.bf16 %v13394_v21 }
 0x48b   :  { %7884 = vmatpush1.bf16.msra.mxu0 %v7883_v28  ;;  %v2618_v14 = vsel %vm72_vm1, %v9423_v57, %v17830_v47  ;;  %v2619_v35 = vsel %vm72_vm1, %v9424_v7, %v17831_v53  ;;  %v2528_v44 = vsel %vm47_vm0, %v17832_v56, %v9413_v32  ;;  %v2529_v22 = vsel %vm47_vm0, %v17833_v6, %v9414_v1 }
 0x48c   :  { %7886 = vmatprep.subr.bf16.mxu0 %v17834_v55  ;;  %v13615_v37 = vpop.permute.xlu1 %9431  ;;  %v2524_v46 = vsel %vm47_vm0, %v9413_v32, %v17835_v26  ;;  %v2525_v28 = vsel %vm47_vm0, %v9414_v1, %v17836_v0  ;;  %v13625_v29 = vpop.permute.xlu0 %9416  ;;  %v7787_v47 = vpack.c.bf16 %v2529_v22, %v2528_v44  ;;  %v17837_v53 = vunpack.i.l.bf16 %v13089_v4 }
 0x48d   :  { %v7785_v17 = vpack.c.bf16 %v2525_v28, %v2524_v46  ;;  %v2943_v56 = vsel %vm153_vm4, %v9404_v61, %v17838_v5  ;;  %v17839_v32 = vunpack.i.h.bf16 %v12831_v54  ;;  %v17840_v1 = vunpack.i.l.bf16 %v12831_v54 }
 0x48e   :  { %v2942_v51 = vsel %vm153_vm4, %v9403_v16, %v17837_v53  ;;  %v17841_v6 = vpack.c.bf16 %v12618_v8, %v12615_v62  ;;  %v7789_v22 = vpack.c.bf16 %v2619_v35, %v2618_v14  ;;  %v2923_v4 = vsel %vm153_vm4, %v9409_v49, %v9404_v61 }
 0x48f   :  { %v2623_v21 = vsel %vm72_vm1, %v17839_v32, %v9424_v7  ;;  %v2622_v44 = vsel %vm72_vm1, %v17840_v1, %v9423_v57  ;;  %7786 = vmatprep.subr.bf16.mxu1 %v7785_v17  ;;  %v2922_v7 = vsel %vm153_vm4, %v9408_v24, %v9403_v16  ;;  %v9434_v54 = vunpack.i.h.bf16 %v13615_v37 }
 0x490   :  { %7888 = vmatpush1.bf16.msra.mxu0 %v17841_v6  ;;  %v17842_v57 = vpack.c.bf16 %v12650_v10, %v12647_v50  ;;  %7788 = vmatpush1.bf16.msra.mxu1 %v7787_v47  ;;  %v9447_v62 = vpop.permute.xlu1 %9446  ;;  %v7893_v8 = vpack.c.bf16 %v2943_v56, %v2942_v51  ;;  %v9419_v14 = vunpack.i.h.bf16 %v13625_v29  ;;  %v9418_v35 = vunpack.i.l.bf16 %v13625_v29  ;;  %v9427_v55 = vpop.permute.xlu0 %9426 }
 0x491   :  { %v9449_v61 = vunpack.i.h.bf16 %v9447_v62  ;;  %v9448_v26 = vunpack.i.l.bf16 %v9447_v62  ;;  %7790 = vmatprep.subr.bf16.mxu1 %v7789_v22  ;;  %v9433_v46 = vunpack.i.l.bf16 %v13615_v37  ;;  %v9429_v16 = vunpack.i.h.bf16 %v9427_v55 }
 0x492   :  { %7890 = vmatprep.subr.bf16.mxu0 %v17842_v57  ;;  %v9428_v0 = vunpack.i.l.bf16 %v9427_v55  ;;  %v7791_v28 = vpack.c.bf16 %v2623_v21, %v2622_v44  ;;  %v17843_v17 = vpack.c.bf16 %v12642_v3, %v12637_v63  ;;  %v17844_v47 = vunpack.i.l.bf16 %v13122_v42 }
 0x493   :  { %v2925_v50 = vsel %vm153_vm4, %v9419_v14, %v9449_v61  ;;  %v2924_v10 = vsel %vm153_vm4, %v9418_v35, %v9448_v26  ;;  %v17845_v51 = vunpack.i.h.bf16 %v13122_v42  ;;  %v7895_v32 = vpack.c.bf16 %v2923_v4, %v2922_v7 }
 0x494   :  { %7892 = vmatpush1.bf16.msra.mxu0 %v17843_v17  ;;  %v2944_v53 = vsel %vm153_vm4, %v9448_v26, %v17844_v47  ;;  %7792 = vmatpush1.bf16.msra.mxu1 %v7791_v28  ;;  %v9452_v56 = vpop.permute.xlu1 %9451  ;;  %v3018_v63 = vsel %vm178_vm6, %v9433_v46, %v9428_v0  ;;  %v3019_v3 = vsel %vm178_vm6, %v9434_v54, %v9429_v16  ;;  %v9437_v1 = vpop.permute.xlu0 %9436  ;;  %v17846_v62 = vunpack.i.l.bf16 %v13144_v59 }
 0x495   :  { %v2945_v5 = vsel %vm153_vm4, %v9449_v61, %v17845_v51  ;;  %7894 = vmatprep.subr.bf16.mxu0 %v7893_v8  ;;  %v9454_v42 = vunpack.i.h.bf16 %v9452_v56  ;;  %v9453_v44 = vunpack.i.l.bf16 %v9452_v56  ;;  %v9439_v6 = vunpack.i.h.bf16 %v9437_v1 }
 0x496   :  { %v7897_v21 = vpack.c.bf16 %v2945_v5, %v2944_v53  ;;  %v9438_v22 = vunpack.i.l.bf16 %v9437_v1  ;;  %v7899_v57 = vpack.c.bf16 %v2925_v50, %v2924_v10  ;;  %v3038_v4 = vsel %vm178_vm6, %v9428_v0, %v17846_v62 }
 0x497   :  { %v17847_v7 = vunpack.i.h.bf16 %v12841_v12  ;;  %v17848_v55 = vunpack.i.l.bf16 %v12841_v12  ;;  %v17849_v26 = vunpack.i.h.bf16 %v13144_v59  ;;  %v17850_v50 = vunpack.i.l.bf16 %v13485_v43 }
 0x498   :  { %7896 = vmatpush1.bf16.msra.mxu0 %v7895_v32  ;;  %v17851_v10 = vunpack.i.l.bf16 %v12855_v48  ;;  %v17852_v12 = vunpack.i.h.bf16 %v12855_v48  ;;  %v9462_v59 = vpop.permute.xlu1 %9461  ;;  %v17853_v53 = vunpack.i.l.bf16 %v13449_v20  ;;  %v17854_v51 = vunpack.i.h.bf16 %v13449_v20  ;;  %v13724_v56 = vpop.permute.xlu0 %9441 }
 0x499   :  { %v2719_v8 = vsel %vm97_vm3, %v17847_v7, %v9454_v42  ;;  %v2718_v61 = vsel %vm97_vm3, %v17848_v55, %v9453_v44  ;;  %v3039_v28 = vsel %vm178_vm6, %v9429_v16, %v17849_v26  ;;  %v2714_v0 = vsel %vm97_vm3, %v9453_v44, %v17850_v50  ;;  %7898 = vmatprep.subr.bf16.mxu0 %v7897_v21 }
 0x49a   :  { %v2624_v17 = vsel %vm72_vm1, %v17851_v10, %v9438_v22  ;;  %v2625_v47 = vsel %vm72_vm1, %v17852_v12, %v9439_v6  ;;  %v2620_v16 = vsel %vm72_vm1, %v9438_v22, %v17853_v53  ;;  %v2621_v5 = vsel %vm72_vm1, %v9439_v6, %v17854_v51 }
 0x49b   :  { %v9464_v32 = vunpack.i.h.bf16 %v9462_v59  ;;  %v9463_v1 = vunpack.i.l.bf16 %v9462_v59  ;;  %v7793_v48 = vpack.c.bf16 %v2621_v5, %v2620_v16  ;;  %v7795_v44 = vpack.c.bf16 %v2625_v47, %v2624_v17 }
 0x49c   :  { %v9444_v62 = vunpack.i.h.bf16 %v13724_v56  ;;  %v9443_v21 = vunpack.i.l.bf16 %v13724_v56  ;;  %v7901_v7 = vpack.c.bf16 %v3039_v28, %v3038_v4  ;;  %v17855_v55 = vunpack.i.h.bf16 %v13485_v43  ;;  %7900 = vmatpush1.bf16.msra.mxu0 %v7899_v57  ;;  %v13740_v4 = vpop.permute.xlu1 %9466  ;;  %v9457_v28 = vpop.permute.xlu0 %9456 }
 0x49d   :  { %7794 = vmatprep.subr.bf16.mxu1 %v7793_v48  ;;  %v17856_v6 = vunpack.i.l.bf16 %v13207_v2  ;;  %v17857_v50 = vunpack.i.h.bf16 %v13207_v2  ;;  %v9468_v57 = vunpack.i.l.bf16 %v13740_v4  ;;  %v7799_v17 = vpack.c.bf16 %v2719_v8, %v2718_v61 }
 0x49e   :  { %v2715_v22 = vsel %vm97_vm3, %v9454_v42, %v17855_v55  ;;  %7902 = vmatprep.subr.bf16.mxu0 %v7901_v7  ;;  %7796 = vmatpush1.bf16.msra.mxu1 %v7795_v44  ;;  %v9469_v42 = vunpack.i.h.bf16 %v13740_v4  ;;  %v3021_v2 = vsel %vm178_vm6, %v9444_v62, %v9464_v32  ;;  %v3020_v12 = vsel %vm178_vm6, %v9443_v21, %v9463_v1 }
 0x49f   :  { %v7797_v20 = vpack.c.bf16 %v2715_v22, %v2714_v0  ;;  %v3040_v26 = vsel %vm178_vm6, %v9463_v1, %v17856_v6  ;;  %v3041_v10 = vsel %vm178_vm6, %v9464_v32, %v17857_v50  ;;  %v7903_v0 = vpack.c.bf16 %v3019_v3, %v3018_v63 }
 0x4a0   :  { %v7905_v43 = vpack.c.bf16 %v3041_v10, %v3040_v26  ;;  %v9459_v47 = vunpack.i.h.bf16 %v9457_v28  ;;  %v9458_v59 = vunpack.i.l.bf16 %v9457_v28  ;;  %v9482_v3 = vpop.permute.xlu1 %9481  ;;  %v17858_v8 = vunpack.i.l.bf16 %v13226_v13  ;;  %v9472_v16 = vpop.permute.xlu0 %9471 }
 0x4a1   :  { %7798 = vmatprep.subr.bf16.mxu1 %v7797_v20  ;;  %7904 = vmatpush1.bf16.msra.mxu0 %v7903_v0  ;;  %v9484_v51 = vunpack.i.h.bf16 %v9482_v3  ;;  %v9483_v5 = vunpack.i.l.bf16 %v9482_v3  ;;  %v7907_v32 = vpack.c.bf16 %v3021_v2, %v3020_v12  ;;  %v17859_v1 = vunpack.i.h.bf16 %v13226_v13 }
 0x4a2   :  { %v3115_v53 = vsel %vm203_vm5, %v9469_v42, %v9459_v47  ;;  %v3114_v63 = vsel %vm203_vm5, %v9468_v57, %v9458_v59  ;;  %7906 = vmatprep.subr.bf16.mxu0 %v7905_v43  ;;  %7800 = vmatpush1.bf16.msra.mxu1 %v7799_v17  ;;  %v3134_v61 = vsel %vm203_vm5, %v9458_v59, %v17858_v8  ;;  %v9474_v44 = vunpack.i.h.bf16 %v9472_v16 }
 0x4a3   :  { %v3135_v48 = vsel %vm203_vm5, %v9459_v47, %v17859_v1  ;;  %v9473_v7 = vunpack.i.l.bf16 %v9472_v16  ;;  %v7911_v22 = vpack.c.bf16 %v3115_v53, %v3114_v63  ;;  %v17860_v20 = vunpack.i.l.bf16 %v13281_v39 }
 0x4a4   :  { %v7909_v55 = vpack.c.bf16 %v3135_v48, %v3134_v61  ;;  %v17861_v26 = vunpack.i.h.bf16 %v13281_v39  ;;  %v17862_v13 = vunpack.i.l.bf16 %v12897_v11  ;;  %v17863_v43 = vunpack.i.h.bf16 %v12897_v11  ;;  %v9487_v0 = vpop.permute.xlu1 %9486  ;;  %v13792_v47 = vpop.permute.xlu0 %9476 }
 0x4a5   :  { %7908 = vmatpush1.bf16.msra.mxu0 %v7907_v32  ;;  %v3136_v6 = vsel %vm203_vm5, %v9483_v5, %v17860_v20  ;;  %v17864_v17 = vunpack.i.l.bf16 %v13513_v34  ;;  %v17865_v2 = vunpack.i.h.bf16 %v13513_v34  ;;  %v9489_v59 = vunpack.i.h.bf16 %v9487_v0 }
 0x4a6   :  { %v3137_v50 = vsel %vm203_vm5, %v9484_v51, %v17861_v26  ;;  %v2720_v10 = vsel %vm97_vm3, %v17862_v13, %v9473_v7  ;;  %v2721_v28 = vsel %vm97_vm3, %v17863_v43, %v9474_v44  ;;  %7910 = vmatprep.subr.bf16.mxu0 %v7909_v55  ;;  %v9488_v53 = vunpack.i.l.bf16 %v9487_v0 }
 0x4a7   :  { %v2716_v39 = vsel %vm97_vm3, %v9473_v7, %v17864_v17  ;;  %v2717_v12 = vsel %vm97_vm3, %v9474_v44, %v17865_v2  ;;  %v7913_v63 = vpack.c.bf16 %v3137_v50, %v3136_v6  ;;  %v9479_v3 = vunpack.i.h.bf16 %v13792_v47 }
 0x4a8   :  { %v7801_v11 = vpack.c.bf16 %v2717_v12, %v2716_v39  ;;  %v9478_v8 = vunpack.i.l.bf16 %v13792_v47  ;;  %v7803_v61 = vpack.c.bf16 %v2721_v28, %v2720_v10  ;;  %v17866_v16 = vunpack.i.h.bf16 %v12943_v27  ;;  %v9497_v7 = vpop.permute.xlu1 %9496  ;;  %v9492_v20 = vpop.permute.xlu0 %9491 }
 0x4a9   :  { %v17867_v34 = vunpack.i.l.bf16 %v12943_v27  ;;  %7912 = vmatpush1.bf16.msra.mxu0 %v7911_v22  ;;  %v2810_v48 = vsel %vm122_vm2, %v9488_v53, %v9383_v36  ;;  %v3117_v27 = vsel %vm203_vm5, %v9479_v3, %v9484_v51  ;;  %v17868_v55 = vunpack.i.h.bf16 %v13544_v45 }
 0x4aa   :  { %v2815_v32 = vsel %vm122_vm2, %v17866_v16, %v9489_v59  ;;  %7802 = vmatprep.subr.bf16.mxu1 %v7801_v11  ;;  %v3116_v44 = vsel %vm203_vm5, %v9478_v8, %v9483_v5  ;;  %7914 = vmatprep.subr.bf16.mxu0 %v7913_v63  ;;  %v9499_v36 = vunpack.i.h.bf16 %v9497_v7  ;;  %v9498_v6 = vunpack.i.l.bf16 %v9497_v7 }
 0x4ab   :  { %v2814_v1 = vsel %vm122_vm2, %v17867_v34, %v9488_v53  ;;  %7804 = vmatpush1.bf16.msra.mxu1 %v7803_v61  ;;  %v2811_v22 = vsel %vm122_vm2, %v9489_v59, %v17868_v55  ;;  %v7915_v50 = vpack.c.bf16 %v3117_v27, %v3116_v44  ;;  %v9494_v13 = vunpack.i.h.bf16 %v9492_v20 }
 0x4ac   :  { %v7805_v26 = vpack.c.bf16 %v2811_v22, %v2810_v48  ;;  %v9493_v5 = vunpack.i.l.bf16 %v9492_v20  ;;  %v7807_v10 = vpack.c.bf16 %v2815_v32, %v2814_v1  ;;  %v17869_v51 = vunpack.i.l.bf16 %v13293_v31  ;;  %v9512_v12 = vpop.permute.xlu1 %9511  ;;  %v13844_v11 = vpop.permute.xlu0 %9501 }
 0x4ad   :  { %7916 = vmatpush1.bf16.msra.mxu0 %v7915_v50  ;;  %v17870_v45 = vunpack.i.h.bf16 %v13293_v31  ;;  %v17871_v0 = vunpack.i.l.bf16 %v13029_v41  ;;  %v17872_v39 = vunpack.i.h.bf16 %v13029_v41  ;;  %v17873_v59 = vunpack.i.l.bf16 %v13548_v52 }
 0x4ae   :  { %7806 = vmatprep.subr.bf16.mxu1 %v7805_v26  ;;  %v3230_v43 = vsel %vm228_vm7, %v9498_v6, %v17869_v51  ;;  %v2813_v53 = vsel %vm122_vm2, %v9494_v13, %v9394_v25  ;;  %v9514_v63 = vunpack.i.h.bf16 %v9512_v12  ;;  %v9513_v61 = vunpack.i.l.bf16 %v9512_v12 }
 0x4af   :  { %v3231_v28 = vsel %vm228_vm7, %v9499_v36, %v17870_v45  ;;  %v2816_v17 = vsel %vm122_vm2, %v17871_v0, %v9493_v5  ;;  %v2817_v2 = vsel %vm122_vm2, %v17872_v39, %v9494_v13  ;;  %7808 = vmatpush1.bf16.msra.mxu1 %v7807_v10  ;;  %v2812_v31 = vsel %vm122_vm2, %v9493_v5, %v17873_v59  ;;  %v17877_v10 = vld [vmem:[#allocation11_spill] sm:$0xff]  ;;  %v17880_v0 = vld [vmem:[#allocation13_spill] sm:$0xff]  ;;  %v17882_v59 = vld [vmem:[#allocation14_spill] sm:$0xff] }
 0x4b0   :  { %v7809_v41 = vpack.c.bf16 %v2813_v53, %v2812_v31  ;;  %v7917_v16 = vpack.c.bf16 %v3231_v28, %v3230_v43  ;;  %v9504_v32 = vunpack.i.h.bf16 %v13844_v11  ;;  %v9503_v34 = vunpack.i.l.bf16 %v13844_v11  ;;  %3945 = vmatmul.mubr.f32.vlgmr.msra.gmra.mrb[32].mxu0 %v13312_v30  ;;  %v9517_v55 = vpop.permute.xlu1 %9516  ;;  %v13866_v20 = vpop.permute.xlu0 %9506  ;;  %v17879_v28 = vld [vmem:[#allocation23_spill] sm:$0xff] }
 0x4b1   :  { %v7811_v1 = vpack.c.bf16 %v2817_v2, %v2816_v17  ;;  %v17874_v52 = vunpack.i.l.bf16 %v13351_v40  ;;  %v17875_v48 = vunpack.i.h.bf16 %v13351_v40  ;;  %3950 = vmatprep.mubr.f32.mxu0 %v13327_v58  ;;  %v9519_v40 = vunpack.i.h.bf16 %v9517_v55 }
 0x4b2   :  { %7810 = vmatprep.subr.bf16.mxu1 %v7809_v41  ;;  %7918 = vmatprep.subr.bf16.mxu0 %v7917_v16  ;;  %v3210_v27 = vsel %vm228_vm7, %v9503_v34, %v9498_v6  ;;  %v3211_v7 = vsel %vm228_vm7, %v9504_v32, %v9499_v36  ;;  %v9518_v26 = vunpack.i.l.bf16 %v9517_v55  ;;  %v17876_v50 = vpack.c.bf16 %v12714_v38, %v12734_v18  ;;  %v17886_v16 = vld [vmem:[#allocation15_spill] sm:$0xff]  ;;  %v17890_v55 = vld [vmem:[#allocation12_spill] sm:$0xff] }
 0x4b3   :  { %v3232_v25 = vsel %vm228_vm7, %v9513_v61, %v17874_v52  ;;  %v3233_v44 = vsel %vm228_vm7, %v9514_v63, %v17875_v48  ;;  %7812 = vmatpush1.bf16.msra.mxu1 %v7811_v1  ;;  %v7919_v13 = vpack.c.bf16 %v3211_v7, %v3210_v27  ;;  %v9509_v6 = vunpack.i.h.bf16 %v13866_v20  ;;  %v17887_v1 = vld [vmem:[#allocation10_spill] sm:$0xff]  ;;  %v17889_v27 = vld [vmem:[#allocation19_spill] sm:$0xff] }
 0x4b4   :  { %v7921_v22 = vpack.c.bf16 %v3233_v44, %v3232_v25  ;;  %7814 = vmatprep.subr.bf16.mxu1 %v17876_v50  ;;  %v9508_v5 = vunpack.i.l.bf16 %v13866_v20  ;;  %3951 = vmatmul.mubr.f32.gmra.mrb[34].mxu0 %v13336_v60  ;;  %v2926_v36 = vsel %vm153_vm4, %v9518_v26, %v9408_v24  ;;  %v17878_v51 = vpack.c.bf16 %v12699_v23, %v17877_v10  ;;  %v9522_v43 = vpop.permute.xlu0 %9521  ;;  %v9527_v45 = vpop.permute.xlu1 %9526  ;;  %v17894_v10 = vld [vmem:[#allocation28_spill] sm:$0xff] }
 0x4b5   :  { %7920 = vmatpush1.bf16.msra.mxu0 %v7919_v13  ;;  %3956 = vmatprep.mubr.f32.mxu0 %v13349_v33  ;;  %v3213_v18 = vsel %vm228_vm7, %v9509_v6, %v9514_v63  ;;  %v2927_v24 = vsel %vm153_vm4, %v9519_v40, %v9409_v49  ;;  %v17881_v17 = vpack.c.bf16 %v17879_v28, %v17880_v0  ;;  %v9524_v2 = vunpack.i.h.bf16 %v9522_v43  ;;  %v17885_v63 = vld [vmem:[#allocation27_spill] sm:$0xff] }
 0x4b6   :  { %v3212_v38 = vsel %vm228_vm7, %v9508_v5, %v9513_v61  ;;  %7922 = vmatprep.subr.bf16.mxu0 %v7921_v22  ;;  %v9523_v12 = vunpack.i.l.bf16 %v9522_v43  ;;  %v17883_v23 = vunpack.i.h.bf16 %v17882_v59  ;;  %v17884_v9 = vunpack.i.l.bf16 %v17882_v59 }
 0x4b7   :  { %7816 = vmatpush1.bf16.msra.mxu1 %v17878_v51  ;;  %v7923_v39 = vpack.c.bf16 %v3213_v18, %v3212_v38  ;;  %v7821_v53 = vpack.c.bf16 %v2927_v24, %v2926_v36  ;;  %v9529_v61 = vunpack.i.h.bf16 %v9527_v45  ;;  %v9528_v41 = vunpack.i.l.bf16 %v9527_v45  ;;  %v17895_v24 = vld [vmem:[#allocation24_spill] sm:$0xff] }
 0x4b8   :  { %7818 = vmatprep.subr.bf16.mxu1 %v17881_v17  ;;  %3957 = vmatmul.mubr.f32.gmra.mrb[36].mxu0 %v13360_v15  ;;  %v2931_v31 = vsel %vm153_vm4, %v17883_v23, %v9519_v40  ;;  %v2930_v49 = vsel %vm153_vm4, %v17884_v9, %v9518_v26  ;;  %v17888_v52 = vpack.c.bf16 %v17886_v16, %v17887_v1  ;;  %v9532_v44 = vpop.permute.xlu0 %9531  ;;  %v17891_v22 = vunpack.i.l.bf16 %v17890_v55  ;;  %v9537_v18 = vpop.permute.xlu1 %9536  ;;  %v17899_v23 = vld [vmem:[#allocation16_spill] sm:$0xff]  ;;  %v17902_v1 = vld [vmem:[#allocation21_spill] sm:$0xff] }
 0x4b9   :  { %7924 = vmatpush1.bf16.msra.mxu0 %v7923_v39  ;;  %3962 = vmatprep.mubr.f32.mxu0 %v17885_v63  ;;  %v2928_v25 = vsel %vm153_vm4, %v9523_v12, %v9418_v35  ;;  %v2929_v48 = vsel %vm153_vm4, %v9524_v2, %v9419_v14  ;;  %v7823_v7 = vpack.c.bf16 %v2931_v31, %v2930_v49  ;;  %v17892_v26 = vunpack.i.h.bf16 %v17890_v55 }
 0x4ba   :  { %v2932_v40 = vsel %vm153_vm4, %v17891_v22, %v9523_v12  ;;  %v7825_v50 = vpack.c.bf16 %v2929_v48, %v2928_v25  ;;  %v17893_v29 = vmov 0.0   ;;  %v9534_v13 = vunpack.i.h.bf16 %v9532_v44  ;;  %v17898_v12 = vld [vmem:[#allocation20_spill] sm:$0xff]  ;;  %v17903_v25 = vld [vmem:[#allocation25_spill] sm:$0xff] }
 0x4bb   :  { %7820 = vmatpush1.bf16.msra.mxu1 %v17888_v52  ;;  %v2933_v35 = vsel %vm153_vm4, %v17892_v26, %v9524_v2  ;;  %v9533_v14 = vunpack.i.l.bf16 %v9532_v44  ;;  %v3022_v36 = vsel %vm178_vm6, %v9528_v41, %v9433_v46  ;;  %v3023_v38 = vsel %vm178_vm6, %v9529_v61, %v9434_v54 }
 0x4bc   :  { %7822 = vmatprep.subr.bf16.mxu1 %v7821_v53  ;;  %3963 = vmatmul.mubr.f32.gmra.mrb[38].mxu0 %v17889_v27  ;;  %v7827_v51 = vpack.c.bf16 %v2933_v35, %v2932_v40  ;;  %v17896_v43 = vunpack.i.h.bf16 %v17895_v24  ;;  %v17897_v28 = vunpack.i.l.bf16 %v17895_v24  ;;  %v7829_v37 = vpack.c.bf16 %v3023_v38, %v3022_v36  ;;  %v9542_v2 = vpop.permute.xlu0 %9541  ;;  %v9547_v16 = vpop.permute.xlu1 %9546  ;;  %v17906_v35 = vld [vmem:[#allocation22_spill] sm:$0xff] }
 0x4bd   :  { %4033 = vmatprep.mubr.f32.mxu0 %v17893_v29  ;;  %v9539_v54 = vunpack.i.h.bf16 %v9537_v18  ;;  %v9538_v0 = vunpack.i.l.bf16 %v9537_v18  ;;  %v3024_v17 = vsel %vm178_vm6, %v9533_v14, %v9443_v21  ;;  %v3025_v39 = vsel %vm178_vm6, %v9534_v13, %v9444_v62 }
 0x4be   :  { %v3027_v45 = vsel %vm178_vm6, %v17896_v43, %v9529_v61  ;;  %v3026_v46 = vsel %vm178_vm6, %v17897_v28, %v9528_v41  ;;  %v17900_v31 = vunpack.i.l.bf16 %v17899_v23  ;;  %v17901_v49 = vunpack.i.h.bf16 %v17899_v23 }
 0x4bf   :  { %7824 = vmatpush1.bf16.msra.mxu1 %v7823_v7  ;;  %v7831_v59 = vpack.c.bf16 %v3027_v45, %v3026_v46  ;;  %v7833_v56 = vpack.c.bf16 %v3025_v39, %v3024_v17  ;;  %v9544_v62 = vunpack.i.h.bf16 %v9542_v2  ;;  %v9543_v53 = vunpack.i.l.bf16 %v9542_v2  ;;  %v17910_v45 = vld [vmem:[#allocation26_spill] sm:$0xff] }
 0x4c0   :  { %7826 = vmatprep.subr.bf16.mxu1 %v7825_v50  ;;  %7410 = vmatmul.mubr.msk.f32.vlgmr.msra.gmra.mrb[32].mxu0 %vm1799_vm9, %v17894_v10  ;;  %v3028_v9 = vsel %vm178_vm6, %v17900_v31, %v9533_v14  ;;  %v3029_v21 = vsel %vm178_vm6, %v17901_v49, %v9534_v13  ;;  %v3118_v61 = vsel %vm203_vm5, %v9538_v0, %v9468_v57  ;;  %v17904_v48 = vunpack.i.h.bf16 %v17903_v25  ;;  %v9552_v26 = vpop.permute.xlu0 %9551  ;;  %v17907_v13 = vld [vmem:[#allocation17_spill] sm:$0xff]  ;;  %v17913_v17 = vld [vmem:[#allocation18_spill] sm:$0xff] }
 0x4c1   :  { %4039 = vmatprep.mubr.f32.mxu0 %v17893_v29  ;;  %v3119_v41 = vsel %vm203_vm5, %v9539_v54, %v9469_v42  ;;  %v7835_v52 = vpack.c.bf16 %v3029_v21, %v3028_v9  ;;  %v17905_v7 = vunpack.i.l.bf16 %v17903_v25  ;;  %v9549_v42 = vunpack.i.h.bf16 %v9547_v16 }
 0x4c2   :  { %v3123_v44 = vsel %vm203_vm5, %v17904_v48, %v9539_v54  ;;  %v7837_v4 = vpack.c.bf16 %v3119_v41, %v3118_v61  ;;  %v9548_v55 = vunpack.i.l.bf16 %v9547_v16  ;;  %v3120_v22 = vsel %vm203_vm5, %v9543_v53, %v9478_v8  ;;  %v17916_v48 = vld [vmem:[#allocation6_spill] sm:$0xff] }
 0x4c3   :  { %7828 = vmatpush1.bf16.msra.mxu1 %v7827_v51  ;;  %v3122_v57 = vsel %vm203_vm5, %v17905_v7, %v9538_v0  ;;  %v3121_v40 = vsel %vm203_vm5, %v9544_v62, %v9479_v3  ;;  %v17908_v14 = vunpack.i.l.bf16 %v17907_v13  ;;  %v17909_v38 = vunpack.i.h.bf16 %v17907_v13 }
 0x4c4   :  { %7830 = vmatprep.subr.bf16.mxu1 %v7829_v37  ;;  %7411 = vmatmul.mubr.msk.f32.gmra.mrb[34].mxu0 %vm1799_vm9, %v17898_v12  ;;  %v7839_v50 = vpack.c.bf16 %v3123_v44, %v3122_v57  ;;  %v7841_v47 = vpack.c.bf16 %v3121_v40, %v3120_v22  ;;  %v9554_v18 = vunpack.i.h.bf16 %v9552_v26  ;;  %v9553_v51 = vunpack.i.l.bf16 %v9552_v26 }
 0x4c5   :  { %4045 = vmatprep.mubr.f32.mxu0 %v17893_v29  ;;  %v3124_v36 = vsel %vm203_vm5, %v17908_v14, %v9543_v53  ;;  %v3125_v8 = vsel %vm203_vm5, %v17909_v38, %v9544_v62  ;;  %v3214_v3 = vsel %vm228_vm7, %v9548_v55, %v9503_v34  ;;  %v3215_v24 = vsel %vm228_vm7, %v9549_v42, %v9504_v32 }
 0x4c6   :  { %v7843_v43 = vpack.c.bf16 %v3125_v8, %v3124_v36  ;;  %v17911_v28 = vunpack.i.h.bf16 %v17910_v45  ;;  %v17912_v37 = vunpack.i.l.bf16 %v17910_v45  ;;  %v7845_v0 = vpack.c.bf16 %v3215_v24, %v3214_v3 }
 0x4c7   :  { %7832 = vmatpush1.bf16.msra.mxu1 %v7831_v59  ;;  %v3216_v11 = vsel %vm228_vm7, %v9553_v51, %v9508_v5  ;;  %v3217_v32 = vsel %vm228_vm7, %v9554_v18, %v9509_v6  ;;  %v17914_v39 = vunpack.i.l.bf16 %v17913_v17  ;;  %v17915_v59 = vunpack.i.h.bf16 %v17913_v17 }
 0x4c8   :  { %7834 = vmatprep.subr.bf16.mxu1 %v7833_v56  ;;  %7412 = vmatmul.mubr.msk.f32.gmra.mrb[36].mxu0 %vm1799_vm9, %v17902_v1  ;;  %v3219_v46 = vsel %vm228_vm7, %v17911_v28, %v9549_v42  ;;  %v3218_v54 = vsel %vm228_vm7, %v17912_v37, %v9548_v55  ;;  %v7849_v5 = vpack.c.bf16 %v3217_v32, %v3216_v11  ;;  %v17917_v42 = vld [vmem:[#allocation7_spill] sm:$0xff] }
 0x4c9   :  { %4051 = vmatprep.mubr.f32.mxu0 %v17893_v29  ;;  %v7847_v34 = vpack.c.bf16 %v3219_v46, %v3218_v54  ;;  %v3220_v2 = vsel %vm228_vm7, %v17914_v39, %v9553_v51  ;;  %v3221_v23 = vsel %vm228_vm7, %v17915_v59, %v9554_v18 }
 0x4ca   :  { %v7851_v20 = vpack.c.bf16 %v3221_v23, %v3220_v2 }
 0x4cb   :  { %7836 = vmatpush1.bf16.msra.mxu1 %v7835_v52 }
 0x4cc   :  { %7838 = vmatprep.subr.bf16.mxu1 %v7837_v4  ;;  %7413 = vmatmul.mubr.msk.f32.gmra.mrb[38].mxu0 %vm1799_vm9, %v17906_v35 }
 0x4cf   :  { %7840 = vmatpush1.bf16.msra.mxu1 %v7839_v50 }
 0x4d0   :  { %7842 = vmatprep.subr.bf16.mxu1 %v7841_v47 }
 0x4d3   :  { %7844 = vmatpush1.bf16.msra.mxu1 %v7843_v43 }
 0x4d4   :  { %7846 = vmatprep.subr.bf16.mxu1 %v7845_v0 }
 0x4d6   :  { %3767 = vmatmul.mubr.f32.vlgmr.msra.gmra.mrb[24].mxu1 %v13312_v30 }
 0x4d7   :  { %7848 = vmatpush1.bf16.msra.mxu1 %v7847_v34  ;;  %3772 = vmatprep.mubr.f32.mxu1 %v13327_v58 }
 0x4d8   :  { %7850 = vmatprep.subr.bf16.mxu1 %v7849_v5 }
 0x4da   :  { %3773 = vmatmul.mubr.f32.gmra.mrb[26].mxu1 %v13336_v60 }
 0x4db   :  { %7852 = vmatpush1.bf16.msra.mxu1 %v7851_v20  ;;  %3778 = vmatprep.mubr.f32.mxu1 %v13349_v33 }
 0x4de   :  { %3779 = vmatmul.mubr.f32.gmra.mrb[28].mxu1 %v13360_v15  ;;  %v14054_v15 = vpop.permute.xlu1 %3494 }
 0x4df   :  { %3784 = vmatprep.mubr.f32.mxu1 %v17885_v63  ;;  %v14058_v63 = vpop.permute.xlu0 %3499 }
 0x4e2   :  { %3785 = vmatmul.mubr.f32.gmra.mrb[30].mxu1 %v17889_v27  ;;  %v14062_v56 = vpop.permute.xlu1 %3504 }
 0x4e3   :  { %3855 = vmatprep.mubr.f32.mxu1 %v17893_v29  ;;  %v14072_v4 = vpop.permute.xlu0 %3509 }
 0x4e6   :  { %7406 = vmatmul.mubr.msk.f32.vlgmr.msra.gmra.mrb[24].mxu1 %vm1799_vm9, %v17894_v10 }
 0x4e7   :  { %3861 = vmatprep.mubr.f32.mxu1 %v17893_v29 }
 0x4ea   :  { %7407 = vmatmul.mubr.msk.f32.gmra.mrb[26].mxu1 %vm1799_vm9, %v17898_v12 }
 0x4eb   :  { %3867 = vmatprep.mubr.f32.mxu1 %v17893_v29 }
 0x4ee   :  { %7408 = vmatmul.mubr.msk.f32.gmra.mrb[28].mxu1 %vm1799_vm9, %v17902_v1 }
 0x4ef   :  { %3873 = vmatprep.mubr.f32.mxu1 %v17893_v29 }
 0x4f2   :  { %7409 = vmatmul.mubr.msk.f32.gmra.mrb[30].mxu1 %vm1799_vm9, %v17906_v35 }
 0x541   :  { %v3679_v30 = vpop.f32.mrb[24].mxu0 }
 0x542   :  { %v8381_v58 = vadd.f32 %v3679_v30, %v14054_v15  ;;  %v3681_v60 = vpop.f32.mrb[25].mxu0 }
 0x543   :  { %v8382_v33 = vadd.f32 %v3681_v60, %v14054_v15 }
 0x544   :  { %v4058_v6 = vmul.f32 0.01, %v8381_v58 }
 0x545   :  { %v4059_v27 = vmul.f32 0.01, %v8382_v33  ;;  %v3685_v10 = vpop.f32.mrb[26].mxu0 }
 0x546   :  { %v8383_v12 = vadd.f32 %v3685_v10, %v14058_v63  ;;  %v3687_v31 = vpop.f32.mrb[27].mxu0  ;;  %v4082_v49 = vmax.f32 %v8381_v58, %v4058_v6 }
 0x547   :  { %v8384_v9 = vadd.f32 %v3687_v31, %v14058_v63  ;;  %v4083_v62 = vmax.f32 %v8382_v33, %v4059_v27 }
 0x548   :  { %v4064_v21 = vmul.f32 0.01, %v8383_v12  ;;  %v14067_v44 = vmul.f32 %v4082_v49, %v17916_v48 }
 0x549   :  { %v4065_v53 = vmul.f32 0.01, %v8384_v9  ;;  %v3691_v61 = vpop.f32.mrb[28].mxu0  ;;  %v14075_v55 = vmul.f32 %v4083_v62, %v17917_v42  ;;  %v17918_v62 = vld [vmem:[#allocation4_spill] sm:$0xff] }
 0x54a   :  { %v4088_v41 = vmax.f32 %v8383_v12, %v4064_v21  ;;  %v8385_v16 = vadd.f32 %v3691_v61, %v14062_v56  ;;  %v3693_v1 = vpop.f32.mrb[29].mxu0 }
 0x54b   :  { %v4089_v52 = vmax.f32 %v8384_v9, %v4065_v53  ;;  %v8386_v25 = vadd.f32 %v3693_v1, %v14062_v56 }
 0x54c   :  { %v14070_v7 = vmul.f32 %v4088_v41, %v17916_v48  ;;  %v4070_v57 = vmul.f32 0.01, %v8385_v16 }
 0x54d   :  { %v14078_v22 = vmul.f32 %v4089_v52, %v17917_v42  ;;  %v4071_v40 = vmul.f32 0.01, %v8386_v25  ;;  %v3697_v26 = vpop.f32.mrb[30].mxu0 }
 0x54e   :  { %v4094_v35 = vmax.f32 %v8385_v16, %v4070_v57  ;;  %v8387_v50 = vadd.f32 %v3697_v26, %v14072_v4  ;;  %v3699_v13 = vpop.f32.mrb[31].mxu0  ;;  %v14083_v14 = vpack.i.bf16 %v14070_v7, %v14067_v44  ;;  %v17919_v16 = vld [vmem:[#allocation8_spill] sm:$0xff] }
 0x54f   :  { %v8388_v36 = vadd.f32 %v3699_v13, %v14072_v4  ;;  %v14088_v38 = vpack.i.bf16 %v14078_v22, %v14075_v55  ;;  %v4095_v8 = vmax.f32 %v8386_v25, %v4071_v40 }
 0x550   :  { %v4076_v47 = vmul.f32 0.01, %v8387_v50  ;;  %9556 = vrot.lane.b32.xlu1 %v14083_v14, %s10515_s9  ;;  %v14093_v18 = vmul.f32 %v4094_v35, %v17916_v48 }
 0x551   :  { %v4077_v51 = vmul.f32 0.01, %v8388_v36  ;;  %9571 = vrot.lane.b32.xlu0 %v14088_v38, %s10515_s9  ;;  %v14105_v28 = vmul.f32 %v4095_v8, %v17917_v42 }
 0x552   :  { %v4100_v3 = vmax.f32 %v8387_v50, %v4076_v47 }
 0x553   :  { %v4101_v24 = vmax.f32 %v8388_v36, %v4077_v51 }
 0x554   :  { %v14098_v43 = vmul.f32 %v4100_v3, %v17916_v48  ;;  %9561 = vrot.lane.b32.xlu1 %v14083_v14, %s10516_s10 }
 0x555   :  { %v14108_v46 = vmul.f32 %v4101_v24, %v17917_v42  ;;  %9576 = vrot.lane.b32.xlu0 %v14088_v38, %s10516_s10 }
 0x556   :  { %v14116_v54 = vpack.i.bf16 %v14098_v43, %v14093_v18 }
 0x557   :  { %v14120_v0 = vpack.i.bf16 %v14108_v46, %v14105_v28 }
 0x558   :  { %9566 = vrot.lane.b32.xlu1 %v14083_v14, %s10518_s12 }
 0x559   :  { %9581 = vrot.lane.b32.xlu0 %v14088_v38, %s10518_s12 }
 0x55c   :  { %9601 = vrot.lane.b32.xlu1 %v14120_v0, %s10515_s9 }
 0x55d   :  { %9586 = vrot.lane.b32.xlu0 %v14116_v54, %s10515_s9 }
 0x560   :  { %9606 = vrot.lane.b32.xlu1 %v14120_v0, %s10516_s10 }
 0x561   :  { %9591 = vrot.lane.b32.xlu0 %v14116_v54, %s10516_s10 }
 0x565   :  { %9596 = vrot.lane.b32.xlu0 %v14116_v54, %s10518_s12 }
 0x593   :  { %v4035_v34 = vpop.f32.mrb[32].mxu0 }
 0x594   :  { %v8397_v17 = vadd.f32 %v4035_v34, %v14054_v15  ;;  %v4037_v39 = vpop.f32.mrb[33].mxu0 }
 0x595   :  { %v8398_v2 = vadd.f32 %v4037_v39, %v14054_v15 }
 0x596   :  { %v4062_v59 = vmul.f32 0.01, %v8397_v17 }
 0x597   :  { %v4063_v23 = vmul.f32 0.01, %v8398_v2  ;;  %v4041_v5 = vpop.f32.mrb[34].mxu0 }
 0x598   :  { %v8399_v20 = vadd.f32 %v4041_v5, %v14058_v63  ;;  %v4043_v30 = vpop.f32.mrb[35].mxu0  ;;  %v4086_v60 = vmax.f32 %v8397_v17, %v4062_v59 }
 0x599   :  { %v8400_v58 = vadd.f32 %v4043_v30, %v14058_v63  ;;  %v4087_v6 = vmax.f32 %v8398_v2, %v4063_v23 }
 0x59a   :  { %v4068_v33 = vmul.f32 0.01, %v8399_v20  ;;  %v14147_v53 = vmul.f32 %v4086_v60, %v17918_v62 }
 0x59b   :  { %v4069_v27 = vmul.f32 0.01, %v8400_v58  ;;  %v4047_v10 = vpop.f32.mrb[36].mxu0  ;;  %v14153_v1 = vmul.f32 %v4087_v6, %v17919_v16 }
 0x59c   :  { %v4092_v12 = vmax.f32 %v8399_v20, %v4068_v33  ;;  %v8401_v31 = vadd.f32 %v4047_v10, %v14062_v56  ;;  %v4049_v9 = vpop.f32.mrb[37].mxu0 }
 0x59d   :  { %v4093_v49 = vmax.f32 %v8400_v58, %v4069_v27  ;;  %v8402_v21 = vadd.f32 %v4049_v9, %v14062_v56 }
 0x59e   :  { %v14150_v61 = vmul.f32 %v4092_v12, %v17918_v62  ;;  %v4074_v41 = vmul.f32 0.01, %v8401_v31 }
 0x59f   :  { %v14156_v52 = vmul.f32 %v4093_v49, %v17919_v16  ;;  %v4075_v25 = vmul.f32 0.01, %v8402_v21  ;;  %v4053_v57 = vpop.f32.mrb[38].mxu0 }
 0x5a0   :  { %v4098_v40 = vmax.f32 %v8401_v31, %v4074_v41  ;;  %v8403_v26 = vadd.f32 %v4053_v57, %v14072_v4  ;;  %v4055_v35 = vpop.f32.mrb[39].mxu0  ;;  %v14161_v50 = vpack.i.bf16 %v14150_v61, %v14147_v53 }
 0x5a1   :  { %v8404_v13 = vadd.f32 %v4055_v35, %v14072_v4  ;;  %v14166_v36 = vpack.i.bf16 %v14156_v52, %v14153_v1  ;;  %v4099_v8 = vmax.f32 %v8402_v21, %v4075_v25 }
 0x5a2   :  { %v4080_v47 = vmul.f32 0.01, %v8403_v26  ;;  %v14169_v51 = vmul.f32 %v4098_v40, %v17918_v62 }
 0x5a3   :  { %v4081_v3 = vmul.f32 0.01, %v8404_v13  ;;  %9611 = vrot.lane.b32.xlu1 %v14166_v36, %s10515_s9  ;;  %v14179_v2 = vmul.f32 %v4099_v8, %v17919_v16  ;;  %v17920_v8 = vld [vmem:[#allocation9_spill] sm:$0xff] }
 0x5a4   :  { %v4104_v24 = vmax.f32 %v8403_v26, %v4080_v47 }
 0x5a5   :  { %v4105_v34 = vmax.f32 %v8404_v13, %v4081_v3 }
 0x5a6   :  { %v14174_v17 = vmul.f32 %v4104_v24, %v17918_v62 }
 0x5a7   :  { %v14182_v59 = vmul.f32 %v4105_v34, %v17919_v16  ;;  %9616 = vrot.lane.b32.xlu1 %v14120_v0, %s10518_s12 }
 0x5a8   :  { %v14190_v5 = vpack.i.bf16 %v14174_v17, %v14169_v51 }
 0x5a9   :  { %v14194_v20 = vpack.i.bf16 %v14182_v59, %v14179_v2 }
 0x5ab   :  { %9636 = vrot.lane.b32.xlu0 %v14194_v20, %s10515_s9  ;;  %9621 = vrot.lane.b32.xlu1 %v14166_v36, %s10516_s10 }
 0x5af   :  { %9641 = vrot.lane.b32.xlu0 %v14088_v38, %s10517_s11  ;;  %9626 = vrot.lane.b32.xlu1 %v14083_v14, %s10517_s11 }
 0x5b3   :  { %9651 = vrot.lane.b32.xlu0 %v14194_v20, %s10516_s10  ;;  %9631 = vrot.lane.b32.xlu1 %v14166_v36, %s10518_s12 }
 0x5b7   :  { %9656 = vrot.lane.b32.xlu0 %v14116_v54, %s10517_s11  ;;  %9646 = vrot.lane.b32.xlu1 %v14166_v36, %s10517_s11 }
 0x5b9   :  { %v3857_v60 = vpop.f32.mrb[24].mxu1 }
 0x5ba   :  { %v8389_v33 = vadd.f32 %v3857_v60, %v14054_v15  ;;  %v3859_v6 = vpop.f32.mrb[25].mxu1 }
 0x5bb   :  { %9671 = vrot.lane.b32.xlu0 %v14194_v20, %s10518_s12  ;;  %9661 = vrot.lane.b32.xlu1 %v14120_v0, %s10517_s11  ;;  %v8390_v10 = vadd.f32 %v3859_v6, %v14054_v15 }
 0x5bc   :  { %v4060_v27 = vmul.f32 0.01, %v8389_v33 }
 0x5bd   :  { %v3863_v12 = vpop.f32.mrb[26].mxu1  ;;  %v4061_v25 = vmul.f32 0.01, %v8390_v10 }
 0x5be   :  { %v8391_v31 = vadd.f32 %v3863_v12, %v14058_v63  ;;  %v3865_v9 = vpop.f32.mrb[27].mxu1  ;;  %v4084_v41 = vmax.f32 %v8389_v33, %v4060_v27 }
 0x5bf   :  { %v8392_v49 = vadd.f32 %v3865_v9, %v14058_v63  ;;  %9666 = vrot.lane.b32.xlu1 %v14088_v38, %s10519_s15  ;;  %v4085_v34 = vmax.f32 %v8390_v10, %v4061_v25  ;;  %v17921_v25 = vld [vmem:[#allocation5_spill] sm:$0xff] }
 0x5c0   :  { %v4066_v21 = vmul.f32 0.01, %v8391_v31  ;;  %v14234_v63 = vmul.f32 %v4084_v41, %v17920_v8 }
 0x5c1   :  { %v4067_v57 = vmul.f32 0.01, %v8392_v49  ;;  %v3869_v40 = vpop.f32.mrb[28].mxu1 }
 0x5c2   :  { %v4090_v26 = vmax.f32 %v8391_v31, %v4066_v21  ;;  %v8393_v35 = vadd.f32 %v3869_v40, %v14062_v56  ;;  %v3871_v13 = vpop.f32.mrb[29].mxu1  ;;  %v14236_v33 = vpop.permute.xlu1 %9556 }
 0x5c3   :  { %v8394_v15 = vadd.f32 %v3871_v13, %v14062_v56  ;;  %v4091_v3 = vmax.f32 %v8392_v49, %v4067_v57  ;;  %9681 = vrot.lane.b32.xlu1 %v14083_v14, %s10519_s15  ;;  %v9559_v56 = vunpack.i.h.bf16 %v14236_v33  ;;  %v9558_v12 = vunpack.i.l.bf16 %v14236_v33  ;;  %v14241_v9 = vpop.permute.xlu0 %9571 }
 0x5c4   :  { %v14229_v47 = vmul.f32 %v4090_v26, %v17920_v8  ;;  %v4072_v24 = vmul.f32 0.01, %v8393_v35  ;;  %v17436_v41 = vunpack.i.h.bf16 %v14241_v9  ;;  %v17435_v10 = vunpack.i.l.bf16 %v14241_v9 }
 0x5c5   :  { %v3875_v60 = vpop.f32.mrb[30].mxu1  ;;  %v4073_v6 = vmul.f32 0.01, %v8394_v15  ;;  %v14247_v57 = vmul.f32 %v4091_v3, %v17921_v25  ;;  %v14266_v3 = vmul.f32 %v4085_v34, %v17921_v25 }
 0x5c6   :  { %v8395_v27 = vadd.f32 %v3875_v60, %v14072_v4  ;;  %v3877_v31 = vpop.f32.mrb[31].mxu1  ;;  %v4096_v49 = vmax.f32 %v8393_v35, %v4072_v24  ;;  %v14251_v26 = vpack.i.bf16 %v14229_v47, %v14234_v63  ;;  %v4243_v35 = vsel %vm47_vm0, %v9559_v56, %v17436_v41 }
 0x5c7   :  { %v8396_v21 = vadd.f32 %v3877_v31, %v14072_v4  ;;  %v4242_v4 = vsel %vm47_vm0, %v9558_v12, %v17435_v10  ;;  %v4097_v24 = vmax.f32 %v8394_v15, %v4073_v6  ;;  %v14278_v39 = vpack.i.bf16 %v14247_v57, %v14266_v3 }
 0x5c8   :  { %v4078_v40 = vmul.f32 0.01, %v8395_v27  ;;  %9676 = vrot.lane.b32.xlu0 %v14251_v26, %s10519_s15  ;;  %v7925_v31 = vpack.c.bf16 %v4243_v35, %v4242_v4  ;;  %v14271_v58 = vmul.f32 %v4096_v49, %v17920_v8 }
 0x5c9   :  { %v4079_v13 = vmul.f32 0.01, %v8396_v21  ;;  %v14284_v15 = vmul.f32 %v4097_v24, %v17921_v25 }
 0x5ca   :  { %v4102_v60 = vmax.f32 %v8395_v27, %v4078_v40  ;;  %17922 = vst [vmem:[#allocation11_spill] sm:$0xff] %v14271_v58  ;;  %7926 = vmatprep.subr.bf16.mxu1 %v7925_v31 }
 0x5cb   :  { %v4103_v30 = vmax.f32 %v8396_v21, %v4079_v13  ;;  %17925 = vst [vmem:[#allocation14_spill] sm:$0xff] %v14284_v15  ;;  %v14331_v13 = vld [vmem:[%s17217_s2 + $0xc8] sm:$0xff] }
 0x5cc   :  { %v14274_v23 = vmul.f32 %v4102_v60, %v17920_v8  ;;  %9686 = vrot.lane.b32.xlu0 %v14194_v20, %s10517_s11  ;;  %5300 = vmatprep.mubr.f32.mxu1 %v14331_v13 }
 0x5cd   :  { %v14281_v34 = vmul.f32 %v4103_v30, %v17921_v25  ;;  %5478 = vmatprep.mubr.f32.mxu0 %v14331_v13 }
 0x5ce   :  { %17923 = vst [vmem:[#allocation23_spill] sm:$0xff] %v14274_v23  ;;  %v14290_v6 = vpack.i.bf16 %v14274_v23, %v14271_v58 }
 0x5cf   :  { %17924 = vst [vmem:[#allocation13_spill] sm:$0xff] %v14281_v34  ;;  %v14296_v27 = vpack.i.bf16 %v14281_v34, %v14284_v15 }
 0x5d0   :  { %9696 = vrot.lane.b32.xlu1 %v14290_v6, %s10519_s15  ;;  %9691 = vrot.lane.b32.xlu0 %v14120_v0, %s10519_s15 }
 0x5d4   :  { %9706 = vrot.lane.b32.xlu1 %v14088_v38, %s10521_s17  ;;  %9701 = vrot.lane.b32.xlu0 %v14116_v54, %s10519_s15 }
 0x5d8   :  { %9716 = vrot.lane.b32.xlu1 %v14083_v14, %s10521_s17  ;;  %9711 = vrot.lane.b32.xlu0 %v14251_v26, %s10521_s17 }
 0x5dc   :  { %9726 = vrot.lane.b32.xlu1 %v14290_v6, %s10521_s17  ;;  %9721 = vrot.lane.b32.xlu0 %v14120_v0, %s10521_s17 }
 0x5e0   :  { %9736 = vrot.lane.b32.xlu1 %v14088_v38, %s10520_s16  ;;  %9731 = vrot.lane.b32.xlu0 %v14116_v54, %s10521_s17 }
 0x5e4   :  { %9746 = vrot.lane.b32.xlu1 %v14083_v14, %s10520_s16  ;;  %9741 = vrot.lane.b32.xlu0 %v14251_v26, %s10520_s16 }
 0x5e8   :  { %9756 = vrot.lane.b32.xlu1 %v14290_v6, %s10520_s16  ;;  %9751 = vrot.lane.b32.xlu0 %v14120_v0, %s10520_s16 }
 0x5ec   :  { %9766 = vrot.lane.b32.xlu1 %v14088_v38, %s10523_s18  ;;  %9761 = vrot.lane.b32.xlu0 %v14116_v54, %s10520_s16  ;;  %v14363_v38 = vpop.permute.xlu0 %9576 }
 0x5ed   :  { %v17927_v33 = vunpack.i.l.bf16 %v14363_v38 }
 0x5f0   :  { %9776 = vrot.lane.b32.xlu1 %v14083_v14, %s10523_s18  ;;  %9771 = vrot.lane.b32.xlu0 %v14251_v26, %s10523_s18  ;;  %v14359_v14 = vpop.permute.xlu1 %9561 }
 0x5f1   :  { %v9564_v32 = vunpack.i.h.bf16 %v14359_v14  ;;  %v9563_v11 = vunpack.i.l.bf16 %v14359_v14 }
 0x5f4   :  { %9786 = vrot.lane.b32.xlu1 %v14290_v6, %s10523_s18  ;;  %9781 = vrot.lane.b32.xlu0 %v14120_v0, %s10523_s18  ;;  %v14373_v0 = vpop.permute.xlu0 %9581 }
 0x5f8   :  { %9796 = vrot.lane.b32.xlu1 %v14161_v50, %s10515_s9  ;;  %9791 = vrot.lane.b32.xlu0 %v14116_v54, %s10523_s18  ;;  %v14369_v54 = vpop.permute.xlu1 %9566  ;;  %v9587_v35 = vpop.permute.xlu0 %9586 }
 0x5f9   :  { %v9589_v40 = vunpack.i.h.bf16 %v9587_v35  ;;  %v9588_v21 = vunpack.i.l.bf16 %v9587_v35  ;;  %v9568_v16 = vunpack.i.l.bf16 %v14369_v54 }
 0x5fc   :  { %9806 = vrot.lane.b32.xlu1 %v14190_v5, %s10515_s9  ;;  %9801 = vrot.lane.b32.xlu0 %v14278_v39, %s10515_s9  ;;  %v14379_v4 = vpop.permute.xlu1 %9601  ;;  %v14393_v49 = vpop.permute.xlu0 %9591 }
 0x5fd   :  { %v17440_v60 = vunpack.i.h.bf16 %v14379_v4  ;;  %v17437_v31 = vunpack.i.l.bf16 %v14379_v4 }
 0x5ff   :  { %v4244_v35 = vsel %vm47_vm0, %v9588_v21, %v17437_v31  ;;  %v4245_v37 = vsel %vm47_vm0, %v9589_v40, %v17440_v60 }
 0x600   :  { %9816 = vrot.lane.b32.xlu1 %v14161_v50, %s10516_s10  ;;  %9811 = vrot.lane.b32.xlu0 %v14296_v27, %s10515_s9  ;;  %v14387_v24 = vpop.permute.xlu1 %9606  ;;  %v14429_v8 = vpop.permute.xlu0 %9596  ;;  %v7929_v10 = vpack.c.bf16 %v4245_v37, %v4244_v35  ;;  %v9594_v37 = vunpack.i.h.bf16 %v14393_v49  ;;  %v9593_v35 = vunpack.i.l.bf16 %v14393_v49 }
 0x601   :  { %v17933_v23 = vunpack.i.h.bf16 %v14387_v24 }
 0x604   :  { %9826 = vrot.lane.b32.xlu1 %v14190_v5, %s10516_s10  ;;  %9821 = vrot.lane.b32.xlu0 %v14278_v39, %s10516_s10 }
 0x608   :  { %9836 = vrot.lane.b32.xlu1 %v14161_v50, %s10518_s12  ;;  %9831 = vrot.lane.b32.xlu0 %v14296_v27, %s10516_s10 }
 0x60c   :  { %9846 = vrot.lane.b32.xlu1 %v14190_v5, %s10518_s12  ;;  %9841 = vrot.lane.b32.xlu0 %v14278_v39, %s10518_s12 }
 0x610   :  { %9856 = vrot.lane.b32.xlu1 %v14161_v50, %s10517_s11  ;;  %9851 = vrot.lane.b32.xlu0 %v14296_v27, %s10518_s12 }
 0x614   :  { %9866 = vrot.lane.b32.xlu1 %v14190_v5, %s10517_s11  ;;  %9861 = vrot.lane.b32.xlu0 %v14278_v39, %s10517_s11 }
 0x615   :  { %v14399_v30 = vpop.permute.xlu1 %9611 }
 0x616   :  { %v17441_v41 = vunpack.i.l.bf16 %v14399_v30  ;;  %v17926_v31 = vunpack.i.h.bf16 %v14399_v30 }
 0x618   :  { %9876 = vrot.lane.b32.xlu1 %v14251_v26, %s10515_s9  ;;  %v4246_v14 = vsel %vm47_vm0, %v17441_v41, %v9558_v12  ;;  %v4247_v25 = vsel %vm47_vm0, %v17926_v31, %v9559_v56  ;;  %9871 = vrot.lane.b32.xlu0 %v14296_v27, %s10517_s11  ;;  %v4338_v12 = vsel %vm72_vm1, %v9563_v11, %v17927_v33  ;;  %v17928_v56 = vunpack.i.h.bf16 %v14363_v38 }
 0x619   :  { %v14433_v60 = vpop.permute.xlu1 %9616  ;;  %v7927_v45 = vpack.c.bf16 %v4247_v25, %v4246_v14  ;;  %v9569_v25 = vunpack.i.h.bf16 %v14369_v54 }
 0x61a   :  { %v4339_v31 = vsel %vm72_vm1, %v9564_v32, %v17928_v56 }
 0x61b   :  { %7928 = vmatpush1.bf16.msra.mxu1 %v7927_v45  ;;  %v7933_v48 = vpack.c.bf16 %v4339_v31, %v4338_v12  ;;  %v9599_v31 = vunpack.i.h.bf16 %v14429_v8 }
 0x61c   :  { %9886 = vrot.lane.b32.xlu1 %v14161_v50, %s10519_s15  ;;  %7930 = vmatprep.subr.bf16.mxu1 %v7929_v10 }
 0x61d   :  { %9881 = vrot.lane.b32.xlu0 %v14166_v36, %s10519_s15  ;;  %v14451_v45 = vpop.permute.xlu0 %9636  ;;  %v14453_v10 = vpop.permute.xlu1 %9621 }
 0x61e   :  { %v17447_v33 = vunpack.i.l.bf16 %v14451_v45  ;;  %v17929_v56 = vunpack.i.h.bf16 %v14451_v45  ;;  %v17930_v62 = vunpack.i.l.bf16 %v14453_v10 }
 0x620   :  { %9901 = vrot.lane.b32.xlu1 %v14251_v26, %s10516_s10  ;;  %v4248_v14 = vsel %vm47_vm0, %v17447_v33, %v9588_v21  ;;  %v4249_v41 = vsel %vm47_vm0, %v17929_v56, %v9589_v40  ;;  %v4342_v58 = vsel %vm72_vm1, %v17930_v62, %v9563_v11  ;;  %v17931_v21 = vunpack.i.h.bf16 %v14453_v10 }
 0x621   :  { %9891 = vrot.lane.b32.xlu0 %v14290_v6, %s10515_s9  ;;  %v14475_v54 = vpop.permute.xlu0 %9641  ;;  %v14477_v42 = vpop.permute.xlu1 %9626  ;;  %v7931_v49 = vpack.c.bf16 %v4249_v41, %v4248_v14  ;;  %v17932_v40 = vunpack.i.l.bf16 %v14387_v24  ;;  %v4341_v41 = vsel %vm72_vm1, %v9594_v37, %v17933_v23  ;;  %v17934_v11 = vunpack.i.l.bf16 %v14373_v0 }
 0x622   :  { %v4343_v33 = vsel %vm72_vm1, %v17931_v21, %v9564_v32  ;;  %v17935_v62 = vunpack.i.h.bf16 %v14373_v0  ;;  %v9598_v14 = vunpack.i.l.bf16 %v14429_v8  ;;  %v17938_v34 = vunpack.i.l.bf16 %v14475_v54 }
 0x623   :  { %v4340_v56 = vsel %vm72_vm1, %v9593_v35, %v17932_v40  ;;  %7932 = vmatpush1.bf16.msra.mxu1 %v7931_v49  ;;  %v4434_v32 = vsel %vm97_vm3, %v9568_v16, %v17934_v11  ;;  %v7935_v49 = vpack.c.bf16 %v4343_v33, %v4342_v58 }
 0x624   :  { %9911 = vrot.lane.b32.xlu1 %v14161_v50, %s10521_s17  ;;  %7934 = vmatprep.subr.bf16.mxu1 %v7933_v48  ;;  %v4435_v12 = vsel %vm97_vm3, %v9569_v25, %v17935_v62  ;;  %v7937_v21 = vpack.c.bf16 %v4341_v41, %v4340_v56 }
 0x625   :  { %9896 = vrot.lane.b32.xlu0 %v14190_v5, %s10519_s15  ;;  %v14509_v23 = vpop.permute.xlu0 %9651  ;;  %v14511_v48 = vpop.permute.xlu1 %9631  ;;  %v7941_v8 = vpack.c.bf16 %v4435_v12, %v4434_v32 }
 0x626   :  { %v17450_v40 = vunpack.i.h.bf16 %v14509_v23  ;;  %v17451_v11 = vunpack.i.l.bf16 %v14509_v23  ;;  %v17452_v15 = vunpack.i.h.bf16 %v14511_v48  ;;  %v17453_v62 = vunpack.i.l.bf16 %v14511_v48 }
 0x627   :  { %7936 = vmatpush1.bf16.msra.mxu1 %v7935_v49 }
 0x628   :  { %9926 = vrot.lane.b32.xlu1 %v14194_v20, %s10519_s15  ;;  %v4344_v58 = vsel %vm72_vm1, %v17451_v11, %v9593_v35  ;;  %v4345_v33 = vsel %vm72_vm1, %v17450_v40, %v9594_v37  ;;  %7938 = vmatprep.subr.bf16.mxu1 %v7937_v21  ;;  %v4438_v35 = vsel %vm97_vm3, %v17453_v62, %v9568_v16  ;;  %v17936_v21 = vunpack.i.l.bf16 %v14433_v60 }
 0x629   :  { %9906 = vrot.lane.b32.xlu0 %v14166_v36, %s10521_s17  ;;  %v14531_v56 = vpop.permute.xlu0 %9656  ;;  %v14533_v41 = vpop.permute.xlu1 %9646  ;;  %v7939_v49 = vpack.c.bf16 %v4345_v33, %v4344_v58  ;;  %v4439_v37 = vsel %vm97_vm3, %v17452_v15, %v9569_v25  ;;  %v17937_v11 = vunpack.i.h.bf16 %v14433_v60  ;;  %v9629_v16 = vunpack.i.h.bf16 %v14477_v42 }
 0x62a   :  { %v4436_v40 = vsel %vm97_vm3, %v9598_v14, %v17936_v21  ;;  %v9628_v33 = vunpack.i.l.bf16 %v14477_v42  ;;  %v17457_v62 = vunpack.i.h.bf16 %v14533_v41  ;;  %v17458_v12 = vunpack.i.l.bf16 %v14533_v41 }
 0x62b   :  { %v4437_v32 = vsel %vm97_vm3, %v9599_v31, %v17937_v11  ;;  %7940 = vmatpush1.bf16.msra.mxu1 %v7939_v49  ;;  %v7943_v11 = vpack.c.bf16 %v4439_v37, %v4438_v35  ;;  %v17939_v35 = vunpack.i.h.bf16 %v14475_v54  ;;  %v9659_v49 = vunpack.i.h.bf16 %v14531_v56 }
 0x62c   :  { %9931 = vrot.lane.b32.xlu1 %v14251_v26, %s10518_s12  ;;  %7942 = vmatprep.subr.bf16.mxu1 %v7941_v8  ;;  %v7945_v15 = vpack.c.bf16 %v4437_v32, %v4436_v40  ;;  %v4530_v40 = vsel %vm122_vm2, %v9628_v33, %v17938_v34  ;;  %v9658_v34 = vunpack.i.l.bf16 %v14531_v56 }
 0x62d   :  { %9916 = vrot.lane.b32.xlu0 %v14290_v6, %s10516_s10  ;;  %v14559_v25 = vpop.permute.xlu0 %9671  ;;  %v14561_v21 = vpop.permute.xlu1 %9661  ;;  %v4531_v37 = vsel %vm122_vm2, %v9629_v16, %v17939_v35  ;;  %v4534_v35 = vsel %vm122_vm2, %v17458_v12, %v9628_v33 }
 0x62e   :  { %v17476_v42 = vunpack.i.h.bf16 %v14559_v25  ;;  %v17490_v58 = vunpack.i.l.bf16 %v14559_v25 }
 0x62f   :  { %7944 = vmatpush1.bf16.msra.mxu1 %v7943_v11 }
 0x630   :  { %9941 = vrot.lane.b32.xlu1 %v14194_v20, %s10521_s17  ;;  %v4440_v32 = vsel %vm97_vm3, %v17490_v58, %v9598_v14  ;;  %v4441_v11 = vsel %vm97_vm3, %v17476_v42, %v9599_v31  ;;  %7946 = vmatprep.subr.bf16.mxu1 %v7945_v15  ;;  %v4535_v14 = vsel %vm122_vm2, %v17457_v62, %v9629_v16  ;;  %v17940_v15 = vunpack.i.l.bf16 %v14561_v21 }
 0x631   :  { %9921 = vrot.lane.b32.xlu0 %v14190_v5, %s10521_s17  ;;  %v7947_v8 = vpack.c.bf16 %v4441_v11, %v4440_v32  ;;  %v7949_v31 = vpack.c.bf16 %v4531_v37, %v4530_v40  ;;  %v17941_v32 = vunpack.i.h.bf16 %v14561_v21  ;;  %v7951_v16 = vpack.c.bf16 %v4535_v14, %v4534_v35  ;;  %v9667_v37 = vpop.permute.xlu1 %9666 }
 0x632   :  { %v4532_v56 = vsel %vm122_vm2, %v9658_v34, %v17940_v15 }
 0x633   :  { %7948 = vmatpush1.bf16.msra.mxu1 %v7947_v8  ;;  %v4533_v33 = vsel %vm122_vm2, %v9659_v49, %v17941_v32 }
 0x634   :  { %9946 = vrot.lane.b32.xlu1 %v14161_v50, %s10520_s16  ;;  %7950 = vmatprep.subr.bf16.mxu1 %v7949_v31  ;;  %v7953_v40 = vpack.c.bf16 %v4533_v33, %v4532_v56 }
 0x635   :  { %9936 = vrot.lane.b32.xlu0 %v14166_v36, %s10520_s16  ;;  %v14619_v11 = vpop.permute.xlu1 %9681 }
 0x637   :  { %7952 = vmatpush1.bf16.msra.mxu1 %v7951_v16 }
 0x638   :  { %9961 = vrot.lane.b32.xlu1 %v14194_v20, %s10520_s16  ;;  %7954 = vmatprep.subr.bf16.mxu1 %v7953_v40  ;;  %v9668_v40 = vunpack.i.l.bf16 %v9667_v37 }
 0x639   :  { %9951 = vrot.lane.b32.xlu0 %v14290_v6, %s10518_s12 }
 0x63a   :  { %v14615_v8 = vpop.permute.xlu0 %9676 }
 0x63b   :  { %17942 = vst [vmem:[#allocation27_spill] sm:$0xff] %v14615_v8  ;;  %v17460_v33 = vunpack.i.h.bf16 %v14615_v8 }
 0x63c   :  { %9966 = vrot.lane.b32.xlu1 %v14251_v26, %s10517_s11 }
 0x63d   :  { %9956 = vrot.lane.b32.xlu0 %v14190_v5, %s10520_s16 }
 0x63e   :  { %v14623_v35 = vpop.permute.xlu0 %9686 }
 0x63f   :  { %v17456_v14 = vunpack.i.h.bf16 %v14623_v35  ;;  %v17455_v31 = vunpack.i.l.bf16 %v14623_v35 }
 0x640   :  { %9976 = vrot.lane.b32.xlu1 %v14166_v36, %s10523_s18 }
 0x641   :  { %9971 = vrot.lane.b32.xlu0 %v14290_v6, %s10517_s11  ;;  %v4536_v26 = vsel %vm122_vm2, %v17455_v31, %v9658_v34  ;;  %v4537_v56 = vsel %vm122_vm2, %v17456_v14, %v9659_v49  ;;  %v17459_v6 = vunpack.i.l.bf16 %v14615_v8  ;;  %v9669_v34 = vunpack.i.h.bf16 %v9667_v37 }
 0x642   :  { %v14631_v15 = vpop.permute.xlu1 %9696  ;;  %v9692_v36 = vpop.permute.xlu0 %9691  ;;  %v7955_v32 = vpack.c.bf16 %v4537_v56, %v4536_v26  ;;  %v17463_v31 = vunpack.i.h.bf16 %v14619_v11  ;;  %v17464_v49 = vunpack.i.l.bf16 %v14619_v11  ;;  %v17944_v14 = vpack.c.bf16 %v14078_v22, %v14075_v55 }
 0x643   :  { %17943 = vst [vmem:[#allocation15_spill] sm:$0xff] %v14631_v15  ;;  %v9693_v26 = vunpack.i.l.bf16 %v9692_v36  ;;  %v17462_v56 = vunpack.i.h.bf16 %v14631_v15  ;;  %v17461_v62 = vunpack.i.l.bf16 %v14631_v15  ;;  %v4646_v22 = vsel %vm153_vm4, %v9668_v40, %v17459_v6 }
 0x644   :  { %9991 = vrot.lane.b32.xlu1 %v14194_v20, %s10523_s18  ;;  %7956 = vmatpush1.bf16.msra.mxu1 %v7955_v32  ;;  %v9694_v20 = vunpack.i.h.bf16 %v9692_v36  ;;  %v4647_v37 = vsel %vm153_vm4, %v9669_v34, %v17460_v33  ;;  %v17946_v36 = vpack.c.bf16 %v14108_v46, %v14105_v28  ;;  %v17948_v6 = vpack.c.bf16 %v14098_v43, %v14093_v18 }
 0x645   :  { %9981 = vrot.lane.b32.xlu0 %v14161_v50, %s10523_s18  ;;  %7958 = vmatprep.subr.bf16.mxu1 %v17944_v14  ;;  %v17945_v50 = vpack.c.bf16 %v14070_v7, %v14067_v44  ;;  %v4651_v44 = vsel %vm153_vm4, %v17463_v31, %v9669_v34  ;;  %v7965_v46 = vpack.c.bf16 %v4647_v37, %v4646_v22 }
 0x646   :  { %v9707_v16 = vpop.permute.xlu1 %9706  ;;  %v14654_v12 = vpop.permute.xlu0 %9701  ;;  %v4649_v34 = vsel %vm153_vm4, %v9694_v20, %v17462_v56 }
 0x647   :  { %v17473_v7 = vunpack.i.h.bf16 %v14654_v12  ;;  %v17475_v14 = vunpack.i.l.bf16 %v14654_v12  ;;  %v9708_v37 = vunpack.i.l.bf16 %v9707_v16 }
 0x648   :  { %9996 = vrot.lane.b32.xlu1 %v14278_v39, %s10519_s15  ;;  %7960 = vmatpush1.bf16.msra.mxu1 %v17945_v50 }
 0x649   :  { %9986 = vrot.lane.b32.xlu0 %v14190_v5, %s10523_s18  ;;  %v4650_v5 = vsel %vm153_vm4, %v17464_v49, %v9668_v40  ;;  %7962 = vmatprep.subr.bf16.mxu1 %v17946_v36  ;;  %v4648_v40 = vsel %vm153_vm4, %v9693_v26, %v17461_v62  ;;  %v9709_v36 = vunpack.i.h.bf16 %v9707_v16  ;;  %v4652_v56 = vsel %vm153_vm4, %v17475_v14, %v9693_v26 }
 0x64a   :  { %v14663_v55 = vpop.permute.xlu1 %9716  ;;  %v14686_v32 = vpop.permute.xlu0 %9711  ;;  %v7967_v62 = vpack.c.bf16 %v4651_v44, %v4650_v5  ;;  %v4653_v22 = vsel %vm153_vm4, %v17473_v7, %v9694_v20  ;;  %v7969_v31 = vpack.c.bf16 %v4649_v34, %v4648_v40 }
 0x64b   :  { %17947 = vst [vmem:[#allocation10_spill] sm:$0xff] %v14686_v32  ;;  %v17466_v50 = vunpack.i.h.bf16 %v14686_v32  ;;  %v17465_v28 = vunpack.i.l.bf16 %v14686_v32  ;;  %v17469_v49 = vunpack.i.h.bf16 %v14663_v55  ;;  %v17470_v18 = vunpack.i.l.bf16 %v14663_v55 }
 0x64c   :  { %10006 = vrot.lane.b32.xlu1 %v14278_v39, %s10521_s17  ;;  %7964 = vmatpush1.bf16.msra.mxu1 %v17948_v6 }
 0x64d   :  { %10001 = vrot.lane.b32.xlu0 %v14296_v27, %s10519_s15  ;;  %7966 = vmatprep.subr.bf16.mxu1 %v7965_v46  ;;  %v4742_v16 = vsel %vm178_vm6, %v9708_v37, %v17465_v28  ;;  %v4743_v20 = vsel %vm178_vm6, %v9709_v36, %v17466_v50  ;;  %v4746_v34 = vsel %vm178_vm6, %v17470_v18, %v9708_v37  ;;  %v7426_v37 = vld [vmem:[%s17214_s4 + $0x60] sm:$0xff] }
 0x64e   :  { %v14705_v33 = vpop.permute.xlu1 %9726  ;;  %v9722_v43 = vpop.permute.xlu0 %9721  ;;  %v4747_v46 = vsel %vm178_vm6, %v17469_v49, %v9709_v36  ;;  %v7971_v28 = vpack.c.bf16 %v4653_v22, %v4652_v56  ;;  %v7973_v50 = vpack.c.bf16 %v4743_v20, %v4742_v16 }
 0x64f   :  { %17949 = vst [vmem:[#allocation19_spill] sm:$0xff] %v14705_v33  ;;  %v17468_v6 = vunpack.i.h.bf16 %v14705_v33  ;;  %v17467_v5 = vunpack.i.l.bf16 %v14705_v33  ;;  %v9724_v26 = vunpack.i.h.bf16 %v9722_v43  ;;  %v9723_v44 = vunpack.i.l.bf16 %v9722_v43 }
 0x650   :  { %10016 = vrot.lane.b32.xlu1 %v14278_v39, %s10520_s16  ;;  %7968 = vmatpush1.bf16.msra.mxu1 %v7967_v62  ;;  %v7975_v16 = vpack.c.bf16 %v4747_v46, %v4746_v34 }
 0x651   :  { %10011 = vrot.lane.b32.xlu0 %v14296_v27, %s10521_s17  ;;  %7970 = vmatprep.subr.bf16.mxu1 %v7969_v31  ;;  %v4744_v36 = vsel %vm178_vm6, %v9723_v44, %v17467_v5 }
 0x652   :  { %v9737_v40 = vpop.permute.xlu1 %9736  ;;  %v14739_v43 = vpop.permute.xlu0 %9731 }
 0x653   :  { %v17471_v62 = vunpack.i.h.bf16 %v14739_v43  ;;  %v17472_v31 = vunpack.i.l.bf16 %v14739_v43  ;;  %v9739_v22 = vunpack.i.h.bf16 %v9737_v40 }
 0x654   :  { %10026 = vrot.lane.b32.xlu1 %v14278_v39, %s10523_s18  ;;  %v4745_v39 = vsel %vm178_vm6, %v9724_v26, %v17468_v6  ;;  %7972 = vmatpush1.bf16.msra.mxu1 %v7971_v28  ;;  %v9738_v6 = vunpack.i.l.bf16 %v9737_v40 }
 0x655   :  { %10021 = vrot.lane.b32.xlu0 %v14296_v27, %s10520_s16  ;;  %7974 = vmatprep.subr.bf16.mxu1 %v7973_v50  ;;  %v4748_v20 = vsel %vm178_vm6, %v17472_v31, %v9723_v44  ;;  %v4749_v5 = vsel %vm178_vm6, %v17471_v62, %v9724_v26  ;;  %v7977_v28 = vpack.c.bf16 %v4745_v39, %v4744_v36  ;;  %v7428_v44 = vld [vmem:[%s17214_s4 + $0x70] sm:$0xff]  ;;  %v7427_v36 = vld [vmem:[%s17214_s4 + $0x68] sm:$0xff] }
 0x656   :  { %v14758_v56 = vpop.permute.xlu1 %9746  ;;  %v14768_v49 = vpop.permute.xlu0 %9741 }
 0x657   :  { %17950 = vst [vmem:[#allocation12_spill] sm:$0xff] %v14768_v49  ;;  %v17479_v18 = vunpack.i.h.bf16 %v14768_v49  ;;  %v17474_v50 = vunpack.i.l.bf16 %v14768_v49  ;;  %v17484_v34 = vunpack.i.h.bf16 %v14758_v56  ;;  %v17488_v46 = vunpack.i.l.bf16 %v14758_v56 }
 0x658   :  { %5206 = vperm.xlu1 %8594, %v7426_v37   ;;  %7976 = vmatpush1.bf16.msra.mxu1 %v7975_v16 }
 0x659   :  { %10031 = vrot.lane.b32.xlu0 %v14296_v27, %s10523_s18  ;;  %7978 = vmatprep.subr.bf16.mxu1 %v7977_v28  ;;  %v4838_v39 = vsel %vm203_vm5, %v9738_v6, %v17474_v50  ;;  %v4839_v27 = vsel %vm203_vm5, %v9739_v22, %v17479_v18  ;;  %v7979_v28 = vpack.c.bf16 %v4749_v5, %v4748_v20  ;;  %v7429_v5 = vld [vmem:[%s17214_s4 + $0x78] sm:$0xff] }
 0x65a   :  { %v14779_v26 = vpop.permute.xlu1 %9756  ;;  %v9752_v16 = vpop.permute.xlu0 %9751  ;;  %v7981_v62 = vpack.c.bf16 %v4839_v27, %v4838_v39  ;;  %v4842_v31 = vsel %vm203_vm5, %v17488_v46, %v9738_v6  ;;  %v4843_v7 = vsel %vm203_vm5, %v17484_v34, %v9739_v22 }
 0x65b   :  { %17951 = vst [vmem:[#allocation28_spill] sm:$0xff] %v14779_v26  ;;  %v17478_v40 = vunpack.i.h.bf16 %v14779_v26  ;;  %v17477_v37 = vunpack.i.l.bf16 %v14779_v26  ;;  %v9754_v50 = vunpack.i.h.bf16 %v9752_v16  ;;  %v9753_v14 = vunpack.i.l.bf16 %v9752_v16 }
 0x65c   :  { %5216 = vperm.xlu1 %8594, %v7428_v44   ;;  %7980 = vmatpush1.bf16.msra.mxu1 %v7979_v28  ;;  %v7983_v44 = vpack.c.bf16 %v4843_v7, %v4842_v31 }
 0x65d   :  { %5211 = vperm.xlu0 %8593, %v7427_v36   ;;  %7982 = vmatprep.subr.bf16.mxu1 %v7981_v62  ;;  %v4840_v6 = vsel %vm203_vm5, %v9753_v14, %v17477_v37  ;;  %v4841_v22 = vsel %vm203_vm5, %v9754_v50, %v17478_v40 }
 0x65e   :  { %v9767_v42 = vpop.permute.xlu1 %9766  ;;  %v14813_v20 = vpop.permute.xlu0 %9761  ;;  %v7985_v36 = vpack.c.bf16 %v4841_v22, %v4840_v6 }
 0x65f   :  { %v17482_v62 = vunpack.i.h.bf16 %v14813_v20  ;;  %v17483_v39 = vunpack.i.l.bf16 %v14813_v20  ;;  %v9769_v27 = vunpack.i.h.bf16 %v9767_v42  ;;  %v9768_v16 = vunpack.i.l.bf16 %v9767_v42 }
 0x660   :  { %7984 = vmatpush1.bf16.msra.mxu1 %v7983_v44 }
 0x661   :  { %5221 = vperm.xlu0 %8593, %v7429_v5   ;;  %v4844_v37 = vsel %vm203_vm5, %v17483_v39, %v9753_v14  ;;  %v4845_v7 = vsel %vm203_vm5, %v17482_v62, %v9754_v50  ;;  %7986 = vmatprep.subr.bf16.mxu1 %v7985_v36 }
 0x662   :  { %v14817_v28 = vpop.permute.xlu1 %9776  ;;  %v14829_v42 = vpop.permute.xlu0 %9771  ;;  %v7987_v5 = vpack.c.bf16 %v4845_v7, %v4844_v37  ;;  %v14846_v37 = vld [vmem:[%s17217_s2 + $0xc0] sm:$0xff] }
 0x663   :  { %v17481_v31 = vunpack.i.h.bf16 %v14817_v28  ;;  %v17480_v6 = vunpack.i.l.bf16 %v14817_v28  ;;  %17952 = vst [vmem:[#allocation24_spill] sm:$0xff] %v14829_v42  ;;  %v17486_v22 = vunpack.i.h.bf16 %v14829_v42  ;;  %v17485_v44 = vunpack.i.l.bf16 %v14829_v42 }
 0x664   :  { %7988 = vmatpush1.bf16.msra.mxu1 %v7987_v5 }
 0x665   :  { %v4938_v14 = vsel %vm228_vm7, %v17480_v6, %v9768_v16  ;;  %v4939_v50 = vsel %vm228_vm7, %v17481_v31, %v9769_v27  ;;  %v4934_v6 = vsel %vm228_vm7, %v9768_v16, %v17485_v44  ;;  %v4935_v5 = vsel %vm228_vm7, %v9769_v27, %v17486_v22  ;;  %v14861_v31 = vld [vmem:[%s17217_s2 + $0xe0] sm:$0xff]  ;;  %v14868_v16 = vld [vmem:[%s17217_s2 + $0xd8] sm:$0xff] }
 0x666   :  { %v14841_v36 = vpop.permute.xlu1 %9786  ;;  %v7991_v7 = vpack.c.bf16 %v4939_v50, %v4938_v14  ;;  %v9782_v14 = vpop.permute.xlu0 %9781  ;;  %v7989_v50 = vpack.c.bf16 %v4935_v5, %v4934_v6 }
 0x667   :  { %17953 = vst [vmem:[#allocation20_spill] sm:$0xff] %v14841_v36  ;;  %v17489_v40 = vunpack.i.h.bf16 %v14841_v36  ;;  %v17487_v18 = vunpack.i.l.bf16 %v14841_v36  ;;  %v9784_v62 = vunpack.i.h.bf16 %v9782_v14  ;;  %v9783_v39 = vunpack.i.l.bf16 %v9782_v14  ;;  %5301 = vmatmul.mubr.f32.vlgmr.msra.gmra.mrb[32].mxu1 %v14846_v37  ;;  %v14881_v14 = vld [vmem:[%s17217_s2 + $0xf8] sm:$0xff] }
 0x668   :  { %7990 = vmatprep.subr.bf16.mxu1 %v7989_v50  ;;  %5306 = vmatprep.mubr.f32.mxu1 %v14861_v31 }
 0x669   :  { %7992 = vmatpush1.bf16.msra.mxu1 %v7991_v7  ;;  %v4936_v6 = vsel %vm228_vm7, %v9783_v39, %v17487_v18  ;;  %v4937_v5 = vsel %vm228_vm7, %v9784_v62, %v17489_v40  ;;  %v17954_v18 = vunpack.i.l.bf16 %v14399_v30  ;;  %v17955_v40 = vunpack.i.h.bf16 %v14399_v30 }
 0x66a   :  { %v9797_v34 = vpop.permute.xlu1 %9796  ;;  %v14883_v50 = vpop.permute.xlu0 %9791  ;;  %v7993_v7 = vpack.c.bf16 %v4937_v5, %v4936_v6  ;;  %v14900_v6 = vld [vmem:[%s17217_s2 + $0xf0] sm:$0xff] }
 0x66b   :  { %v9799_v27 = vunpack.i.h.bf16 %v9797_v34  ;;  %v9798_v44 = vunpack.i.l.bf16 %v9797_v34  ;;  %v17502_v34 = vunpack.i.h.bf16 %v14883_v50  ;;  %v17501_v22 = vunpack.i.l.bf16 %v14883_v50  ;;  %5307 = vmatmul.mubr.f32.gmra.mrb[34].mxu1 %v14868_v16  ;;  %17956 = vst [vmem:[#allocation16_spill] sm:$0xff] %v14900_v6 }
 0x66c   :  { %7994 = vmatprep.subr.bf16.mxu1 %v7993_v7  ;;  %5312 = vmatprep.mubr.f32.mxu1 %v14881_v14 }
 0x66d   :  { %v4226_v46 = vsel %vm47_vm0, %v9798_v44, %v17954_v18  ;;  %v4227_v58 = vsel %vm47_vm0, %v9799_v27, %v17955_v40  ;;  %v4940_v5 = vsel %vm228_vm7, %v17501_v22, %v9783_v39  ;;  %v4941_v30 = vsel %vm228_vm7, %v17502_v34, %v9784_v62  ;;  %v14913_v40 = vld [vmem:[%s17217_s2 + $0x110] sm:$0xff] }
 0x66e   :  { %v9807_v36 = vpop.permute.xlu1 %9806  ;;  %v8069_v18 = vpack.c.bf16 %v4227_v58, %v4226_v46  ;;  %17957 = vst [vmem:[#allocation21_spill] sm:$0xff] %v14913_v40  ;;  %v14915_v7 = vpop.permute.xlu0 %9801  ;;  %v7995_v49 = vpack.c.bf16 %v4941_v30, %v4940_v5  ;;  %v14924_v58 = vld [vmem:[%s17217_s2 + $0x108] sm:$0xff]  ;;  %v17959_v62 = vunpack.i.l.bf16 %v14451_v45  ;;  %v17960_v5 = vunpack.i.h.bf16 %v14451_v45 }
 0x66f   :  { %v9809_v42 = vunpack.i.h.bf16 %v9807_v36  ;;  %v9808_v26 = vunpack.i.l.bf16 %v9807_v36  ;;  %v17508_v33 = vunpack.i.h.bf16 %v14915_v7  ;;  %v17507_v39 = vunpack.i.l.bf16 %v14915_v7  ;;  %5313 = vmatmul.mubr.f32.gmra.mrb[36].mxu1 %v14900_v6  ;;  %17958 = vst [vmem:[#allocation25_spill] sm:$0xff] %v14924_v58 }
 0x670   :  { %7996 = vmatpush1.bf16.msra.mxu1 %v7995_v49  ;;  %5318 = vmatprep.mubr.f32.mxu1 %v14913_v40 }
 0x671   :  { %8070 = vmatprep.subr.bf16.mxu1 %v8069_v18  ;;  %v4228_v36 = vsel %vm47_vm0, %v9808_v26, %v17959_v62  ;;  %v4229_v49 = vsel %vm47_vm0, %v9809_v42, %v17960_v5  ;;  %v4230_v30 = vsel %vm47_vm0, %v17507_v39, %v9798_v44  ;;  %v4231_v18 = vsel %vm47_vm0, %v17508_v33, %v9799_v27  ;;  %v14951_v44 = vld [vmem:[%s17217_s2 + $0xd0] sm:$0xff] }
 0x672   :  { %v9817_v22 = vpop.permute.xlu1 %9816  ;;  %v14926_v46 = vpop.permute.xlu0 %9811  ;;  %17961 = vst [vmem:[#allocation22_spill] sm:$0xff] %v14951_v44  ;;  %v8071_v39 = vpack.c.bf16 %v4231_v18, %v4230_v30  ;;  %v8073_v27 = vpack.c.bf16 %v4229_v49, %v4228_v36  ;;  %v17964_v18 = vunpack.i.h.bf16 %v14453_v10 }
 0x673   :  { %v17515_v34 = vunpack.i.h.bf16 %v14926_v46  ;;  %v17516_v32 = vunpack.i.l.bf16 %v14926_v46  ;;  %5319 = vmatmul.mubr.f32.gmra.mrb[38].mxu1 %v14924_v58  ;;  %v9819_v45 = vunpack.i.h.bf16 %v9817_v22  ;;  %v9818_v62 = vunpack.i.l.bf16 %v9817_v22 }
 0x674   :  { %5389 = vmatprep.mubr.f32.mxu1 %v17893_v29 }
 0x675   :  { %v4232_v33 = vsel %vm47_vm0, %v17516_v32, %v9808_v26  ;;  %v4233_v22 = vsel %vm47_vm0, %v17515_v34, %v9809_v42  ;;  %v14971_v26 = vld [vmem:[%s17217_s2 + $0xe8] sm:$0xff]  ;;  %v17963_v42 = vunpack.i.l.bf16 %v14453_v10  ;;  %v4323_v34 = vsel %vm72_vm1, %v9819_v45, %v17964_v18 }
 0x676   :  { %v9827_v15 = vpop.permute.xlu1 %9826  ;;  %v14953_v5 = vpop.permute.xlu0 %9821  ;;  %17962 = vst [vmem:[#allocation17_spill] sm:$0xff] %v14971_v26 }
 0x677   :  { %v17521_v58 = vunpack.i.h.bf16 %v14953_v5  ;;  %v17522_v8 = vunpack.i.l.bf16 %v14953_v5  ;;  %7430 = vmatmul.mubr.msk.f32.vlgmr.msra.gmra.mrb[32].mxu1 %vm1799_vm9, %v14951_v44  ;;  %v9829_v40 = vunpack.i.h.bf16 %v9827_v15  ;;  %v9828_v30 = vunpack.i.l.bf16 %v9827_v15 }
 0x678   :  { %8072 = vmatpush1.bf16.msra.mxu1 %v8071_v39  ;;  %5395 = vmatprep.mubr.f32.mxu1 %v17893_v29  ;;  %v4322_v49 = vsel %vm72_vm1, %v9818_v62, %v17963_v42  ;;  %v8075_v42 = vpack.c.bf16 %v4233_v22, %v4232_v33  ;;  %v17967_v22 = vunpack.i.h.bf16 %v14509_v23 }
 0x679   :  { %8074 = vmatprep.subr.bf16.mxu1 %v8073_v27  ;;  %v4326_v32 = vsel %vm72_vm1, %v17522_v8, %v9818_v62  ;;  %v4327_v44 = vsel %vm72_vm1, %v17521_v58, %v9819_v45  ;;  %v8077_v27 = vpack.c.bf16 %v4323_v34, %v4322_v49  ;;  %v14999_v62 = vld [vmem:[%s17217_s2 + $0x100] sm:$0xff]  ;;  %v17966_v45 = vunpack.i.l.bf16 %v14509_v23 }
 0x67a   :  { %v9837_v36 = vpop.permute.xlu1 %9836  ;;  %v14989_v6 = vpop.permute.xlu0 %9831  ;;  %17965 = vst [vmem:[#allocation26_spill] sm:$0xff] %v14999_v62  ;;  %v4325_v58 = vsel %vm72_vm1, %v9829_v40, %v17967_v22  ;;  %v8079_v34 = vpack.c.bf16 %v4327_v44, %v4326_v32  ;;  %v17968_v49 = vunpack.i.l.bf16 %v14511_v48  ;;  %v17969_v8 = vunpack.i.h.bf16 %v14511_v48 }
 0x67b   :  { %v9839_v15 = vunpack.i.h.bf16 %v9837_v36  ;;  %v9838_v39 = vunpack.i.l.bf16 %v9837_v36  ;;  %v17525_v18 = vunpack.i.l.bf16 %v14989_v6  ;;  %7431 = vmatmul.mubr.msk.f32.gmra.mrb[34].mxu1 %vm1799_vm9, %v14971_v26  ;;  %v4324_v33 = vsel %vm72_vm1, %v9828_v30, %v17966_v45 }
 0x67c   :  { %8076 = vmatpush1.bf16.msra.mxu1 %v8075_v42  ;;  %5401 = vmatprep.mubr.f32.mxu1 %v17893_v29  ;;  %v17970_v45 = vunpack.i.h.bf16 %v14989_v6  ;;  %v17971_v48 = vunpack.i.l.bf16 %v14559_v25 }
 0x67d   :  { %8078 = vmatprep.subr.bf16.mxu1 %v8077_v27  ;;  %v4418_v42 = vsel %vm97_vm3, %v9838_v39, %v17968_v49  ;;  %v4419_v10 = vsel %vm97_vm3, %v9839_v15, %v17969_v8  ;;  %v4328_v23 = vsel %vm72_vm1, %v17525_v18, %v9828_v30  ;;  %v8081_v8 = vpack.c.bf16 %v4325_v58, %v4324_v33 }
 0x67e   :  { %v9847_v36 = vpop.permute.xlu1 %9846  ;;  %v4329_v32 = vsel %vm72_vm1, %v17970_v45, %v9829_v40  ;;  %v15025_v44 = vpop.permute.xlu0 %9841  ;;  %v15035_v40 = vld [vmem:[%s17217_s2 + $0x118] sm:$0xff]  ;;  %v17972_v33 = vunpack.i.h.bf16 %v14559_v25 }
 0x67f   :  { %v9849_v27 = vunpack.i.h.bf16 %v9847_v36  ;;  %v9848_v22 = vunpack.i.l.bf16 %v9847_v36  ;;  %7432 = vmatmul.mubr.msk.f32.gmra.mrb[36].mxu1 %vm1799_vm9, %v14999_v62  ;;  %v8083_v30 = vpack.c.bf16 %v4329_v32, %v4328_v23  ;;  %v8085_v36 = vpack.c.bf16 %v4419_v10, %v4418_v42 }
 0x680   :  { %8080 = vmatpush1.bf16.msra.mxu1 %v8079_v34  ;;  %5407 = vmatprep.mubr.f32.mxu1 %v17893_v29  ;;  %v17973_v62 = vunpack.i.l.bf16 %v15025_v44  ;;  %v17974_v10 = vunpack.i.h.bf16 %v15025_v44 }
 0x681   :  { %8082 = vmatprep.subr.bf16.mxu1 %v8081_v8  ;;  %v4420_v58 = vsel %vm97_vm3, %v9848_v22, %v17971_v48  ;;  %v4421_v34 = vsel %vm97_vm3, %v9849_v27, %v17972_v33  ;;  %v17975_v8 = vunpack.i.l.bf16 %v14533_v41  ;;  %v17976_v33 = vunpack.i.h.bf16 %v14533_v41 }
 0x682   :  { %v9857_v26 = vpop.permute.xlu1 %9856  ;;  %v15037_v45 = vpop.permute.xlu0 %9851  ;;  %v4422_v23 = vsel %vm97_vm3, %v17973_v62, %v9838_v39  ;;  %v8089_v62 = vpack.c.bf16 %v4421_v34, %v4420_v58 }
 0x683   :  { %v9859_v18 = vunpack.i.h.bf16 %v9857_v26  ;;  %v9858_v49 = vunpack.i.l.bf16 %v9857_v26  ;;  %v4423_v26 = vsel %vm97_vm3, %v17974_v10, %v9839_v15  ;;  %v17528_v42 = vunpack.i.h.bf16 %v15037_v45  ;;  %7433 = vmatmul.mubr.msk.f32.gmra.mrb[38].mxu1 %vm1799_vm9, %v15035_v40 }
 0x684   :  { %v17529_v32 = vunpack.i.l.bf16 %v15037_v45  ;;  %8084 = vmatpush1.bf16.msra.mxu1 %v8083_v30  ;;  %5656 = vmatprep.mubr.f32.mxu1 %v14331_v13  ;;  %v8087_v39 = vpack.c.bf16 %v4423_v26, %v4422_v23 }
 0x685   :  { %8086 = vmatprep.subr.bf16.mxu1 %v8085_v36  ;;  %v4514_v15 = vsel %vm122_vm2, %v9858_v49, %v17975_v8  ;;  %v4515_v10 = vsel %vm122_vm2, %v9859_v18, %v17976_v33  ;;  %v4425_v30 = vsel %vm97_vm3, %v17528_v42, %v9849_v27 }
 0x686   :  { %v9867_v25 = vpop.permute.xlu1 %9866  ;;  %v15060_v48 = vpop.permute.xlu0 %9861  ;;  %v4424_v13 = vsel %vm97_vm3, %v17529_v32, %v9848_v22  ;;  %v8093_v32 = vpack.c.bf16 %v4515_v10, %v4514_v15  ;;  %v17980_v10 = vunpack.i.h.bf16 %v14915_v7 }
 0x687   :  { %v17531_v36 = vunpack.i.h.bf16 %v15060_v48  ;;  %v17530_v58 = vunpack.i.l.bf16 %v15060_v48  ;;  %v9869_v34 = vunpack.i.h.bf16 %v9867_v25  ;;  %v9868_v23 = vunpack.i.l.bf16 %v9867_v25 }
 0x688   :  { %8088 = vmatpush1.bf16.msra.mxu1 %v8087_v39  ;;  %v8091_v42 = vpack.c.bf16 %v4425_v30, %v4424_v13  ;;  %v17979_v13 = vunpack.i.l.bf16 %v14915_v7 }
 0x689   :  { %8090 = vmatprep.subr.bf16.mxu1 %v8089_v62  ;;  %v4518_v22 = vsel %vm122_vm2, %v17530_v58, %v9858_v49  ;;  %v4519_v27 = vsel %vm122_vm2, %v17531_v36, %v9859_v18  ;;  %v17977_v62 = vunpack.i.h.bf16 %v14241_v9  ;;  %v17978_v49 = vunpack.i.l.bf16 %v14241_v9 }
 0x68a   :  { %v9877_v41 = vpop.permute.xlu1 %9876  ;;  %v15088_v33 = vpop.permute.xlu0 %9871  ;;  %v8095_v39 = vpack.c.bf16 %v4519_v27, %v4518_v22 }
 0x68b   :  { %v9879_v26 = vunpack.i.h.bf16 %v9877_v41  ;;  %v9878_v8 = vunpack.i.l.bf16 %v9877_v41  ;;  %v17983_v7 = vunpack.i.l.bf16 %v15088_v33 }
 0x68c   :  { %8092 = vmatpush1.bf16.msra.mxu1 %v8091_v42 }
 0x68d   :  { %v4239_v41 = vsel %vm47_vm0, %v17977_v62, %v9879_v26  ;;  %v4238_v58 = vsel %vm47_vm0, %v17978_v49, %v9878_v8  ;;  %v4234_v15 = vsel %vm47_vm0, %v9878_v8, %v17979_v13  ;;  %v4235_v30 = vsel %vm47_vm0, %v9879_v26, %v17980_v10  ;;  %8094 = vmatprep.subr.bf16.mxu1 %v8093_v32 }
 0x68e   :  { %v15100_v18 = vpop.permute.xlu1 %9886  ;;  %v17981_v62 = vunpack.i.l.bf16 %v14623_v35  ;;  %v17982_v49 = vunpack.i.h.bf16 %v14623_v35  ;;  %v7999_v36 = vpack.c.bf16 %v4239_v41, %v4238_v58  ;;  %v7997_v8 = vpack.c.bf16 %v4235_v30, %v4234_v15 }
 0x68f   :  { %v9882_v25 = vpop.permute.xlu0 %9881  ;;  %v4520_v26 = vsel %vm122_vm2, %v17983_v7, %v9868_v23  ;;  %v17984_v13 = vunpack.i.h.bf16 %v15088_v33 }
 0x690   :  { %v4516_v9 = vsel %vm122_vm2, %v9868_v23, %v17981_v62  ;;  %v4517_v42 = vsel %vm122_vm2, %v9869_v34, %v17982_v49  ;;  %8096 = vmatpush1.bf16.msra.mxu1 %v8095_v39  ;;  %7998 = vmatprep.subr.bf16.mxu0 %v7997_v8  ;;  %v9884_v30 = vunpack.i.h.bf16 %v9882_v25  ;;  %v9883_v49 = vunpack.i.l.bf16 %v9882_v25 }
 0x691   :  { %v4521_v10 = vsel %vm122_vm2, %v17984_v13, %v9869_v34  ;;  %v8097_v62 = vpack.c.bf16 %v4517_v42, %v4516_v9  ;;  %8000 = vmatpush1.bf16.msra.mxu0 %v7999_v36  ;;  %v9889_v23 = vunpack.i.h.bf16 %v15100_v18  ;;  %v9888_v34 = vunpack.i.l.bf16 %v15100_v18 }
 0x692   :  { %v9902_v35 = vpop.permute.xlu1 %9901  ;;  %v8099_v27 = vpack.c.bf16 %v4521_v10, %v4520_v26  ;;  %v17985_v39 = vunpack.i.l.bf16 %v14379_v4  ;;  %v17986_v9 = vunpack.i.h.bf16 %v14379_v4  ;;  %v17987_v25 = vpack.c.bf16 %v14156_v52, %v14153_v1 }
 0x693   :  { %8098 = vmatprep.subr.bf16.mxu1 %v8097_v62  ;;  %v9903_v32 = vunpack.i.l.bf16 %v9902_v35  ;;  %v9892_v58 = vpop.permute.xlu0 %9891  ;;  %v9904_v22 = vunpack.i.h.bf16 %v9902_v35  ;;  %v17988_v8 = vunpack.i.l.bf16 %v14953_v5  ;;  %v17989_v10 = vunpack.i.l.bf16 %v14926_v46 }
 0x694   :  { %v9894_v41 = vunpack.i.h.bf16 %v9892_v58  ;;  %v9893_v15 = vunpack.i.l.bf16 %v9892_v58  ;;  %8100 = vmatpush1.bf16.msra.mxu1 %v8099_v27  ;;  %v17990_v4 = vunpack.i.h.bf16 %v14926_v46  ;;  %v17991_v1 = vunpack.i.h.bf16 %v14953_v5 }
 0x695   :  { %8102 = vmatprep.subr.bf16.mxu1 %v17987_v25  ;;  %v4330_v26 = vsel %vm72_vm1, %v9903_v32, %v17988_v8  ;;  %v17993_v25 = vunpack.i.l.bf16 %v14363_v38  ;;  %v17995_v5 = vunpack.i.l.bf16 %v14619_v11 }
 0x696   :  { %v15127_v7 = vpop.permute.xlu1 %9911  ;;  %v4240_v36 = vsel %vm47_vm0, %v17985_v39, %v9893_v15  ;;  %v4241_v42 = vsel %vm47_vm0, %v17986_v9, %v9894_v41  ;;  %v4236_v62 = vsel %vm47_vm0, %v9893_v15, %v17989_v10  ;;  %v4237_v35 = vsel %vm47_vm0, %v9894_v41, %v17990_v4 }
 0x697   :  { %v15145_v13 = vpop.permute.xlu0 %9896  ;;  %v8003_v58 = vpack.c.bf16 %v4241_v42, %v4240_v36  ;;  %v4331_v52 = vsel %vm72_vm1, %v9904_v22, %v17991_v1  ;;  %v8001_v27 = vpack.c.bf16 %v4237_v35, %v4236_v62  ;;  %v17992_v39 = vunpack.i.h.bf16 %v14363_v38 }
 0x698   :  { %v4334_v46 = vsel %vm72_vm1, %v17993_v25, %v9903_v32  ;;  %v17994_v41 = vpack.c.bf16 %v14150_v61, %v14147_v53  ;;  %v4654_v36 = vsel %vm153_vm4, %v9883_v49, %v17995_v5  ;;  %v17996_v42 = vunpack.i.h.bf16 %v14619_v11 }
 0x699   :  { %v4335_v9 = vsel %vm72_vm1, %v17992_v39, %v9904_v22  ;;  %8002 = vmatprep.subr.bf16.mxu0 %v8001_v27  ;;  %v17997_v38 = vpack.c.bf16 %v14182_v59, %v14179_v2  ;;  %v8005_v53 = vpack.c.bf16 %v4331_v52, %v4330_v26  ;;  %v4635_v61 = vsel %vm153_vm4, %v9889_v23, %v9884_v30 }
 0x69a   :  { %8104 = vmatpush1.bf16.msra.mxu1 %v17994_v41  ;;  %v9927_v15 = vpop.permute.xlu1 %9926  ;;  %v4655_v22 = vsel %vm153_vm4, %v9884_v30, %v17996_v42  ;;  %v4634_v11 = vsel %vm153_vm4, %v9888_v34, %v9883_v49  ;;  %v9899_v10 = vunpack.i.h.bf16 %v15145_v13  ;;  %v9898_v62 = vunpack.i.l.bf16 %v15145_v13  ;;  %8004 = vmatpush1.bf16.msra.mxu0 %v8003_v58 }
 0x69b   :  { %8106 = vmatprep.subr.bf16.mxu1 %v17997_v38  ;;  %v9929_v32 = vunpack.i.h.bf16 %v9927_v15  ;;  %v9928_v8 = vunpack.i.l.bf16 %v9927_v15  ;;  %v9907_v2 = vpop.permute.xlu0 %9906  ;;  %8006 = vmatprep.subr.bf16.mxu0 %v8005_v53  ;;  %v8109_v26 = vpack.c.bf16 %v4655_v22, %v4654_v36  ;;  %v8007_v35 = vpack.c.bf16 %v4335_v9, %v4334_v46 }
 0x69c   :  { %v9909_v59 = vunpack.i.h.bf16 %v9907_v2  ;;  %v9908_v4 = vunpack.i.l.bf16 %v9907_v2  ;;  %v17998_v1 = vpack.c.bf16 %v14174_v17, %v14169_v51  ;;  %v17999_v52 = vunpack.i.l.bf16 %v14654_v12 }
 0x69d   :  { %v4637_v30 = vsel %vm153_vm4, %v9899_v10, %v9929_v32  ;;  %v4636_v49 = vsel %vm153_vm4, %v9898_v62, %v9928_v8  ;;  %v18000_v39 = vunpack.i.h.bf16 %v14654_v12  ;;  %v9914_v25 = vunpack.i.h.bf16 %v15127_v7 }
 0x69e   :  { %8108 = vmatpush1.bf16.msra.mxu1 %v17998_v1  ;;  %v9932_v58 = vpop.permute.xlu1 %9931  ;;  %v4656_v27 = vsel %vm153_vm4, %v9928_v8, %v17999_v52  ;;  %v9913_v46 = vunpack.i.l.bf16 %v15127_v7  ;;  %v8111_v15 = vpack.c.bf16 %v4635_v61, %v4634_v11  ;;  %8008 = vmatpush1.bf16.msra.mxu0 %v8007_v35  ;;  %v18001_v36 = vunpack.i.l.bf16 %v14663_v55 }
 0x69f   :  { %v4657_v9 = vsel %vm153_vm4, %v9929_v32, %v18000_v39  ;;  %8110 = vmatprep.subr.bf16.mxu1 %v8109_v26  ;;  %v9933_v41 = vunpack.i.l.bf16 %v9932_v58  ;;  %v9917_v51 = vpop.permute.xlu0 %9916  ;;  %v9934_v17 = vunpack.i.h.bf16 %v9932_v58  ;;  %v18002_v12 = vunpack.i.h.bf16 %v14663_v55 }
 0x6a0   :  { %v8113_v5 = vpack.c.bf16 %v4657_v9, %v4656_v27  ;;  %v4750_v42 = vsel %vm178_vm6, %v9908_v4, %v18001_v36  ;;  %v9919_v38 = vunpack.i.h.bf16 %v9917_v51  ;;  %v9918_v32 = vunpack.i.l.bf16 %v9917_v51 }
 0x6a1   :  { %v4751_v22 = vsel %vm178_vm6, %v9909_v59, %v18002_v12  ;;  %v8115_v8 = vpack.c.bf16 %v4637_v30, %v4636_v49  ;;  %v4730_v53 = vsel %vm178_vm6, %v9913_v46, %v9908_v4  ;;  %v4731_v61 = vsel %vm178_vm6, %v9914_v25, %v9909_v59 }
 0x6a2   :  { %8112 = vmatpush1.bf16.msra.mxu1 %v8111_v15  ;;  %v9942_v11 = vpop.permute.xlu1 %9941  ;;  %v8117_v2 = vpack.c.bf16 %v4751_v22, %v4750_v42  ;;  %v18003_v55 = vunpack.i.l.bf16 %v15025_v44  ;;  %v18004_v35 = vunpack.i.l.bf16 %v14387_v24  ;;  %v18005_v4 = vunpack.i.h.bf16 %v14387_v24 }
 0x6a3   :  { %8114 = vmatprep.subr.bf16.mxu1 %v8113_v5  ;;  %v9944_v59 = vunpack.i.h.bf16 %v9942_v11  ;;  %v9943_v1 = vunpack.i.l.bf16 %v9942_v11  ;;  %v15240_v58 = vpop.permute.xlu0 %9921  ;;  %v18006_v52 = vunpack.i.l.bf16 %v14989_v6  ;;  %v18007_v39 = vunpack.i.h.bf16 %v14989_v6 }
 0x6a4   :  { %v4426_v26 = vsel %vm97_vm3, %v9933_v41, %v18003_v55  ;;  %v4336_v30 = vsel %vm72_vm1, %v18004_v35, %v9918_v32  ;;  %v4337_v49 = vsel %vm72_vm1, %v18005_v4, %v9919_v38  ;;  %v18008_v24 = vunpack.i.h.bf16 %v15025_v44 }
 0x6a5   :  { %v4332_v27 = vsel %vm72_vm1, %v9918_v32, %v18006_v52  ;;  %v4333_v9 = vsel %vm72_vm1, %v9919_v38, %v18007_v39  ;;  %v8011_v15 = vpack.c.bf16 %v4337_v49, %v4336_v30  ;;  %v9924_v5 = vunpack.i.h.bf16 %v15240_v58 }
 0x6a6   :  { %v4427_v51 = vsel %vm97_vm3, %v9934_v17, %v18008_v24  ;;  %v9923_v36 = vunpack.i.l.bf16 %v15240_v58  ;;  %v8009_v42 = vpack.c.bf16 %v4333_v9, %v4332_v27  ;;  %v18009_v12 = vunpack.i.l.bf16 %v14739_v43  ;;  %8116 = vmatpush1.bf16.msra.mxu1 %v8115_v8  ;;  %v15264_v44 = vpop.permute.xlu1 %9946 }
 0x6a7   :  { %v18010_v6 = vunpack.i.h.bf16 %v14373_v0  ;;  %v18011_v32 = vunpack.i.h.bf16 %v14739_v43  ;;  %v18012_v55 = vunpack.i.l.bf16 %v14373_v0  ;;  %8118 = vmatprep.subr.bf16.mxu1 %v8117_v2  ;;  %v9949_v30 = vunpack.i.h.bf16 %v15264_v44  ;;  %v9937_v8 = vpop.permute.xlu0 %9936 }
 0x6a8   :  { %v4752_v22 = vsel %vm178_vm6, %v9943_v1, %v18009_v12  ;;  %8010 = vmatprep.subr.bf16.mxu0 %v8009_v42  ;;  %v9948_v4 = vunpack.i.l.bf16 %v15264_v44  ;;  %v8119_v49 = vpack.c.bf16 %v4731_v61, %v4730_v53  ;;  %v4733_v43 = vsel %vm178_vm6, %v9924_v5, %v9944_v59 }
 0x6a9   :  { %v4431_v38 = vsel %vm97_vm3, %v18010_v6, %v9934_v17  ;;  %v4753_v11 = vsel %vm178_vm6, %v9944_v59, %v18011_v32  ;;  %v4430_v35 = vsel %vm97_vm3, %v18012_v55, %v9933_v41  ;;  %v8013_v17 = vpack.c.bf16 %v4427_v51, %v4426_v26  ;;  %8012 = vmatpush1.bf16.msra.mxu0 %v8011_v15 }
 0x6aa   :  { %v8121_v52 = vpack.c.bf16 %v4753_v11, %v4752_v22  ;;  %v4732_v0 = vsel %vm178_vm6, %v9923_v36, %v9943_v1  ;;  %v9939_v41 = vunpack.i.h.bf16 %v9937_v8  ;;  %v9938_v2 = vunpack.i.l.bf16 %v9937_v8  ;;  %8120 = vmatpush1.bf16.msra.mxu1 %v8119_v49  ;;  %v9962_v26 = vpop.permute.xlu1 %9961 }
 0x6ab   :  { %8014 = vmatprep.subr.bf16.mxu0 %v8013_v17  ;;  %v8015_v27 = vpack.c.bf16 %v4431_v38, %v4430_v35  ;;  %v9964_v59 = vunpack.i.h.bf16 %v9962_v26  ;;  %v9963_v39 = vunpack.i.l.bf16 %v9962_v26  ;;  %v9952_v1 = vpop.permute.xlu0 %9951  ;;  %v8123_v9 = vpack.c.bf16 %v4733_v43, %v4732_v0 }
 0x6ac   :  { %v4827_v53 = vsel %vm203_vm5, %v9949_v30, %v9939_v41  ;;  %v4826_v61 = vsel %vm203_vm5, %v9948_v4, %v9938_v2  ;;  %8122 = vmatprep.subr.bf16.mxu1 %v8121_v52  ;;  %v18013_v15 = vunpack.i.l.bf16 %v14758_v56  ;;  %v18014_v51 = vunpack.i.h.bf16 %v14758_v56 }
 0x6ad   :  { %8016 = vmatpush1.bf16.msra.mxu0 %v8015_v27  ;;  %v9954_v12 = vunpack.i.h.bf16 %v9952_v1  ;;  %v9953_v22 = vunpack.i.l.bf16 %v9952_v1  ;;  %v18015_v38 = vunpack.i.l.bf16 %v14813_v20  ;;  %v8127_v55 = vpack.c.bf16 %v4827_v53, %v4826_v61 }
 0x6ae   :  { %v4846_v24 = vsel %vm203_vm5, %v9938_v2, %v18013_v15  ;;  %v4847_v42 = vsel %vm203_vm5, %v9939_v41, %v18014_v51  ;;  %8124 = vmatpush1.bf16.msra.mxu1 %v8123_v9  ;;  %v9967_v11 = vpop.permute.xlu1 %9966  ;;  %v18016_v35 = vunpack.i.h.bf16 %v14813_v20  ;;  %v18017_v56 = vunpack.i.l.bf16 %v14433_v60 }
 0x6af   :  { %v8125_v6 = vpack.c.bf16 %v4847_v42, %v4846_v24  ;;  %v4848_v32 = vsel %vm203_vm5, %v9963_v39, %v18015_v38  ;;  %v18018_v49 = vunpack.i.h.bf16 %v14433_v60  ;;  %v9969_v43 = vunpack.i.h.bf16 %v9967_v11  ;;  %v15316_v41 = vpop.permute.xlu0 %9956 }
 0x6b0   :  { %v4849_v17 = vsel %vm203_vm5, %v9964_v59, %v18016_v35  ;;  %v4432_v8 = vsel %vm97_vm3, %v18017_v56, %v9953_v22  ;;  %v9968_v0 = vunpack.i.l.bf16 %v9967_v11  ;;  %v18019_v20 = vunpack.i.l.bf16 %v15037_v45 }
 0x6b1   :  { %v4433_v52 = vsel %vm97_vm3, %v18018_v49, %v9954_v12  ;;  %8126 = vmatprep.subr.bf16.mxu1 %v8125_v6  ;;  %v18020_v27 = vunpack.i.h.bf16 %v15037_v45  ;;  %v8129_v53 = vpack.c.bf16 %v4849_v17, %v4848_v32  ;;  %v9959_v61 = vunpack.i.h.bf16 %v15316_v41 }
 0x6b2   :  { %v4428_v2 = vsel %vm97_vm3, %v9953_v22, %v18019_v20  ;;  %v8019_v60 = vpack.c.bf16 %v4433_v52, %v4432_v8  ;;  %v9958_v1 = vunpack.i.l.bf16 %v15316_v41  ;;  %v18021_v9 = vunpack.i.h.bf16 %v14475_v54  ;;  %8128 = vmatpush1.bf16.msra.mxu1 %v8127_v55  ;;  %v9977_v42 = vpop.permute.xlu1 %9976 }
 0x6b3   :  { %v4429_v26 = vsel %vm97_vm3, %v9954_v12, %v18020_v27  ;;  %v18022_v24 = vunpack.i.l.bf16 %v14475_v54  ;;  %v18023_v12 = vunpack.i.l.bf16 %v15060_v48  ;;  %v18024_v6 = vunpack.i.h.bf16 %v15060_v48  ;;  %8130 = vmatprep.subr.bf16.mxu1 %v8129_v53  ;;  %v9972_v35 = vpop.permute.xlu0 %9971 }
 0x6b4   :  { %v4527_v15 = vsel %vm122_vm2, %v18021_v9, %v9969_v43  ;;  %v8017_v45 = vpack.c.bf16 %v4429_v26, %v4428_v2  ;;  %v4828_v54 = vsel %vm203_vm5, %v9958_v1, %v9963_v39  ;;  %v4829_v32 = vsel %vm203_vm5, %v9959_v61, %v9964_v59 }
 0x6b5   :  { %v4526_v51 = vsel %vm122_vm2, %v18022_v24, %v9968_v0  ;;  %v4522_v22 = vsel %vm122_vm2, %v9968_v0, %v18023_v12  ;;  %v4523_v38 = vsel %vm122_vm2, %v9969_v43, %v18024_v6  ;;  %v9979_v11 = vunpack.i.h.bf16 %v9977_v42 }
 0x6b6   :  { %v9978_v55 = vunpack.i.l.bf16 %v9977_v42  ;;  %8018 = vmatprep.subr.bf16.mxu0 %v8017_v45  ;;  %v8021_v17 = vpack.c.bf16 %v4523_v38, %v4522_v22  ;;  %v8131_v48 = vpack.c.bf16 %v4829_v32, %v4828_v54  ;;  %v8023_v56 = vpack.c.bf16 %v4527_v15, %v4526_v51  ;;  %v9992_v0 = vpop.permute.xlu1 %9991 }
 0x6b7   :  { %8020 = vmatpush1.bf16.msra.mxu0 %v8019_v60  ;;  %v9974_v8 = vunpack.i.h.bf16 %v9972_v35  ;;  %v9973_v49 = vunpack.i.l.bf16 %v9972_v35  ;;  %v18025_v52 = vunpack.i.l.bf16 %v14817_v28  ;;  %v18026_v43 = vunpack.i.h.bf16 %v14817_v28  ;;  %v15368_v28 = vpop.permute.xlu0 %9981 }
 0x6b8   :  { %8022 = vmatprep.subr.bf16.mxu0 %v8021_v17  ;;  %8132 = vmatpush1.bf16.msra.mxu1 %v8131_v48  ;;  %v18027_v2 = vunpack.i.l.bf16 %v14561_v21  ;;  %v18028_v26 = vunpack.i.h.bf16 %v14561_v21  ;;  %v9994_v60 = vunpack.i.h.bf16 %v9992_v0  ;;  %v9993_v9 = vunpack.i.l.bf16 %v9992_v0 }
 0x6b9   :  { %v4942_v39 = vsel %vm228_vm7, %v9978_v55, %v18025_v52  ;;  %v4943_v59 = vsel %vm228_vm7, %v9979_v11, %v18026_v43  ;;  %v18029_v15 = vunpack.i.l.bf16 %v15088_v33  ;;  %v18030_v51 = vunpack.i.h.bf16 %v15088_v33 }
 0x6ba   :  { %v8133_v20 = vpack.c.bf16 %v4943_v59, %v4942_v39  ;;  %v4528_v27 = vsel %vm122_vm2, %v18027_v2, %v9973_v49  ;;  %v4529_v53 = vsel %vm122_vm2, %v18028_v26, %v9974_v8  ;;  %v9984_v21 = vunpack.i.h.bf16 %v15368_v28  ;;  %v9997_v54 = vpop.permute.xlu1 %9996  ;;  %v18035_v2 = vld [vmem:[#allocation16_spill] sm:$0xff] }
 0x6bb   :  { %v4524_v24 = vsel %vm122_vm2, %v9973_v49, %v18029_v15  ;;  %v4525_v45 = vsel %vm122_vm2, %v9974_v8, %v18030_v51  ;;  %v8027_v42 = vpack.c.bf16 %v4529_v53, %v4528_v27  ;;  %8024 = vmatpush1.bf16.msra.mxu0 %v8023_v56  ;;  %v9983_v12 = vunpack.i.l.bf16 %v15368_v28  ;;  %5657 = vmatmul.mubr.f32.vlgmr.msra.gmra.mrb[40].mxu1 %v14846_v37  ;;  %v15398_v48 = vpop.permute.xlu0 %9986 }
 0x6bc   :  { %8134 = vmatprep.subr.bf16.mxu1 %v8133_v20  ;;  %v8025_v22 = vpack.c.bf16 %v4525_v45, %v4524_v24  ;;  %v18031_v6 = vunpack.i.l.bf16 %v14883_v50  ;;  %5662 = vmatprep.mubr.f32.mxu1 %v14861_v31  ;;  %v18032_v33 = vunpack.i.h.bf16 %v14883_v50  ;;  %v4923_v17 = vsel %vm228_vm7, %v9984_v21, %v9979_v11 }
 0x6bd   :  { %v4922_v35 = vsel %vm228_vm7, %v9983_v12, %v9978_v55  ;;  %v9989_v50 = vunpack.i.h.bf16 %v15398_v48  ;;  %v9988_v49 = vunpack.i.l.bf16 %v15398_v48  ;;  %v9999_v52 = vunpack.i.h.bf16 %v9997_v54 }
 0x6be   :  { %v4944_v38 = vsel %vm228_vm7, %v9993_v9, %v18031_v6  ;;  %v4945_v32 = vsel %vm228_vm7, %v9994_v60, %v18032_v33  ;;  %8026 = vmatprep.subr.bf16.mxu0 %v8025_v22  ;;  %v8135_v56 = vpack.c.bf16 %v4923_v17, %v4922_v35  ;;  %v9998_v39 = vunpack.i.l.bf16 %v9997_v54  ;;  %v10007_v53 = vpop.permute.xlu1 %10006  ;;  %v18043_v22 = vld [vmem:[#allocation23_spill] sm:$0xff]  ;;  %v18046_v54 = vld [vmem:[#allocation25_spill] sm:$0xff] }
 0x6bf   :  { %v8137_v8 = vpack.c.bf16 %v4945_v32, %v4944_v38  ;;  %8028 = vmatpush1.bf16.msra.mxu0 %v8027_v42  ;;  %5663 = vmatmul.mubr.f32.gmra.mrb[42].mxu1 %v14868_v16  ;;  %v18033_v55 = vpack.c.bf16 %v14247_v57, %v14266_v3  ;;  %v4924_v11 = vsel %vm228_vm7, %v9988_v49, %v9993_v9  ;;  %v10002_v59 = vpop.permute.xlu0 %10001  ;;  %v18037_v9 = vld [vmem:[#allocation14_spill] sm:$0xff]  ;;  %v10008_v42 = vunpack.i.l.bf16 %v10007_v53  ;;  %v18044_v6 = vld [vmem:[#allocation11_spill] sm:$0xff] }
 0x6c0   :  { %8136 = vmatpush1.bf16.msra.mxu1 %v8135_v56  ;;  %v4925_v43 = vsel %vm228_vm7, %v9989_v50, %v9994_v60  ;;  %5668 = vmatprep.mubr.f32.mxu1 %v14881_v14  ;;  %v18034_v57 = vpack.c.bf16 %v14229_v47, %v14234_v63  ;;  %v10004_v3 = vunpack.i.h.bf16 %v10002_v59  ;;  %v10003_v20 = vunpack.i.l.bf16 %v10002_v59  ;;  %v18036_v60 = vld [vmem:[#allocation13_spill] sm:$0xff]  ;;  %v18040_v63 = vld [vmem:[#allocation27_spill] sm:$0xff] }
 0x6c1   :  { %8030 = vmatprep.subr.bf16.mxu0 %v18033_v55  ;;  %8138 = vmatprep.subr.bf16.mxu1 %v8137_v8  ;;  %v8139_v0 = vpack.c.bf16 %v4925_v43, %v4924_v11  ;;  %v4638_v27 = vsel %vm153_vm4, %v9998_v39, %v9888_v34  ;;  %v4639_v26 = vsel %vm153_vm4, %v9999_v52, %v9889_v23  ;;  %v18039_v47 = vld [vmem:[#allocation21_spill] sm:$0xff]  ;;  %v18041_v24 = vunpack.i.h.bf16 %v18040_v63  ;;  %v18047_v56 = vld [vmem:[#allocation15_spill] sm:$0xff] }
 0x6c2   :  { %v18038_v15 = vpack.c.bf16 %v18036_v60, %v18037_v9  ;;  %v18042_v34 = vunpack.i.l.bf16 %v18040_v63  ;;  %v8037_v45 = vpack.c.bf16 %v4639_v26, %v4638_v27  ;;  %v10009_v23 = vunpack.i.h.bf16 %v10007_v53 }
 0x6c3   :  { %8032 = vmatpush1.bf16.msra.mxu0 %v18034_v57  ;;  %5669 = vmatmul.mubr.f32.gmra.mrb[44].mxu1 %v18035_v2  ;;  %v4643_v51 = vsel %vm153_vm4, %v18041_v24, %v9999_v52  ;;  %v18045_v38 = vpack.c.bf16 %v18043_v22, %v18044_v6  ;;  %v4640_v33 = vsel %vm153_vm4, %v10003_v20, %v9898_v62  ;;  %v10012_v35 = vpop.permute.xlu0 %10011  ;;  %v18048_v8 = vunpack.i.l.bf16 %v18047_v56 }
 0x6c4   :  { %8034 = vmatprep.subr.bf16.mxu0 %v18038_v15  ;;  %8140 = vmatpush1.bf16.msra.mxu1 %v8139_v0  ;;  %v4642_v18 = vsel %vm153_vm4, %v18042_v34, %v9998_v39  ;;  %v4641_v32 = vsel %vm153_vm4, %v10004_v3, %v9899_v10  ;;  %v18049_v39 = vunpack.i.h.bf16 %v18047_v56  ;;  %v10014_v13 = vunpack.i.h.bf16 %v10012_v35  ;;  %v18050_v10 = vld [vmem:[#allocation22_spill] sm:$0xff]  ;;  %v10017_v0 = vpop.permute.xlu1 %10016 }
 0x6c5   :  { %5674 = vmatprep.mubr.f32.mxu1 %v18039_v47  ;;  %v8039_v17 = vpack.c.bf16 %v4643_v51, %v4642_v18  ;;  %v4644_v52 = vsel %vm153_vm4, %v18048_v8, %v10003_v20  ;;  %v8041_v55 = vpack.c.bf16 %v4641_v32, %v4640_v33  ;;  %v10013_v11 = vunpack.i.l.bf16 %v10012_v35  ;;  %v18055_v51 = vld [vmem:[#allocation19_spill] sm:$0xff]  ;;  %v18059_v32 = vld [vmem:[#allocation12_spill] sm:$0xff] }
 0x6c6   :  { %v4645_v62 = vsel %vm153_vm4, %v18049_v39, %v10004_v3  ;;  %v4734_v43 = vsel %vm178_vm6, %v10008_v42, %v9913_v46  ;;  %v4735_v59 = vsel %vm178_vm6, %v10009_v23, %v9914_v25  ;;  %v18051_v3 = vld [vmem:[#allocation10_spill] sm:$0xff]  ;;  %v10019_v7 = vunpack.i.h.bf16 %v10017_v0  ;;  %v18054_v25 = vld [vmem:[#allocation17_spill] sm:$0xff] }
 0x6c7   :  { %8036 = vmatpush1.bf16.msra.mxu0 %v18045_v38  ;;  %5675 = vmatmul.mubr.f32.gmra.mrb[46].mxu1 %v18046_v54  ;;  %v8043_v57 = vpack.c.bf16 %v4645_v62, %v4644_v52  ;;  %v18052_v20 = vunpack.i.h.bf16 %v18051_v3  ;;  %v18053_v26 = vunpack.i.l.bf16 %v18051_v3  ;;  %v8045_v53 = vpack.c.bf16 %v4735_v59, %v4734_v43  ;;  %v10022_v63 = vpop.permute.xlu0 %10021 }
 0x6c8   :  { %8038 = vmatprep.subr.bf16.mxu0 %v8037_v45  ;;  %5745 = vmatprep.mubr.f32.mxu1 %v17893_v29  ;;  %v10018_v60 = vunpack.i.l.bf16 %v10017_v0  ;;  %v4736_v9 = vsel %vm178_vm6, %v10013_v11, %v9923_v36  ;;  %v4737_v15 = vsel %vm178_vm6, %v10014_v13, %v9924_v5  ;;  %v18056_v34 = vunpack.i.l.bf16 %v18055_v51  ;;  %v18058_v5 = vld [vmem:[#allocation26_spill] sm:$0xff]  ;;  %v10027_v38 = vpop.permute.xlu1 %10026 }
 0x6c9   :  { %v4739_v27 = vsel %vm178_vm6, %v18052_v20, %v10009_v23  ;;  %v4738_v46 = vsel %vm178_vm6, %v18053_v26, %v10008_v42  ;;  %v18057_v45 = vunpack.i.h.bf16 %v18055_v51  ;;  %v8049_v23 = vpack.c.bf16 %v4737_v15, %v4736_v9  ;;  %v18068_v9 = vld [vmem:[#allocation20_spill] sm:$0xff] }
 0x6ca   :  { %v8047_v24 = vpack.c.bf16 %v4739_v27, %v4738_v46  ;;  %v4740_v18 = vsel %vm178_vm6, %v18056_v34, %v10013_v11  ;;  %v10024_v58 = vunpack.i.h.bf16 %v10022_v63  ;;  %v10023_v42 = vunpack.i.l.bf16 %v10022_v63  ;;  %v18065_v27 = vld [vmem:[#allocation24_spill] sm:$0xff] }
 0x6cb   :  { %8040 = vmatpush1.bf16.msra.mxu0 %v8039_v17  ;;  %7438 = vmatmul.mubr.msk.f32.vlgmr.msra.gmra.mrb[40].mxu1 %vm1799_vm9, %v18050_v10  ;;  %v4741_v36 = vsel %vm178_vm6, %v18057_v45, %v10014_v13  ;;  %v4830_v22 = vsel %vm203_vm5, %v10018_v60, %v9948_v4  ;;  %v4831_v6 = vsel %vm203_vm5, %v10019_v7, %v9949_v30  ;;  %v18060_v35 = vunpack.i.h.bf16 %v18059_v32  ;;  %v10032_v62 = vpop.permute.xlu0 %10031  ;;  %v18062_v13 = vld [vmem:[#allocation28_spill] sm:$0xff] }
 0x6cc   :  { %8042 = vmatprep.subr.bf16.mxu0 %v8041_v55  ;;  %5751 = vmatprep.mubr.f32.mxu1 %v17893_v29  ;;  %v8051_v33 = vpack.c.bf16 %v4741_v36, %v4740_v18  ;;  %v18061_v56 = vunpack.i.l.bf16 %v18059_v32  ;;  %v8053_v8 = vpack.c.bf16 %v4831_v6, %v4830_v22  ;;  %v10029_v44 = vunpack.i.h.bf16 %v10027_v38  ;;  %v18071_v32 = vld [vmem:[#allocation6_spill] sm:$0xff] }
 0x6cd   :  { %v4835_v17 = vsel %vm203_vm5, %v18060_v35, %v10019_v7  ;;  %v10028_v52 = vunpack.i.l.bf16 %v10027_v38  ;;  %v4832_v30 = vsel %vm203_vm5, %v10023_v42, %v9958_v1  ;;  %v4833_v39 = vsel %vm203_vm5, %v10024_v58, %v9959_v61 }
 0x6ce   :  { %v4834_v4 = vsel %vm203_vm5, %v18061_v56, %v10018_v60  ;;  %v18063_v11 = vunpack.i.l.bf16 %v18062_v13  ;;  %v18064_v59 = vunpack.i.h.bf16 %v18062_v13  ;;  %v10034_v1 = vunpack.i.h.bf16 %v10032_v62 }
 0x6cf   :  { %8044 = vmatpush1.bf16.msra.mxu0 %v8043_v57  ;;  %7439 = vmatmul.mubr.msk.f32.gmra.mrb[42].mxu1 %vm1799_vm9, %v18054_v25  ;;  %v8055_v55 = vpack.c.bf16 %v4835_v17, %v4834_v4  ;;  %v8057_v57 = vpack.c.bf16 %v4833_v39, %v4832_v30  ;;  %v10033_v3 = vunpack.i.l.bf16 %v10032_v62  ;;  %v4926_v41 = vsel %vm228_vm7, %v10028_v52, %v9983_v12 }
 0x6d0   :  { %8046 = vmatprep.subr.bf16.mxu0 %v8045_v53  ;;  %5757 = vmatprep.mubr.f32.mxu1 %v17893_v29  ;;  %v4836_v43 = vsel %vm203_vm5, %v18063_v11, %v10023_v42  ;;  %v4837_v0 = vsel %vm203_vm5, %v18064_v59, %v10024_v58  ;;  %v4927_v61 = vsel %vm228_vm7, %v10029_v44, %v9984_v21  ;;  %v18066_v26 = vunpack.i.h.bf16 %v18065_v27 }
 0x6d1   :  { %v8059_v20 = vpack.c.bf16 %v4837_v0, %v4836_v43  ;;  %v18067_v53 = vunpack.i.l.bf16 %v18065_v27  ;;  %v8061_v60 = vpack.c.bf16 %v4927_v61, %v4926_v41  ;;  %v4928_v28 = vsel %vm228_vm7, %v10033_v3, %v9988_v49 }
 0x6d2   :  { %v4931_v46 = vsel %vm228_vm7, %v18066_v26, %v10029_v44  ;;  %v4929_v21 = vsel %vm228_vm7, %v10034_v1, %v9989_v50  ;;  %v18069_v15 = vunpack.i.l.bf16 %v18068_v9 }
 0x6d3   :  { %8048 = vmatpush1.bf16.msra.mxu0 %v8047_v24  ;;  %7440 = vmatmul.mubr.msk.f32.gmra.mrb[44].mxu1 %vm1799_vm9, %v18058_v5  ;;  %v4930_v7 = vsel %vm228_vm7, %v18067_v53, %v10028_v52  ;;  %v18070_v24 = vunpack.i.h.bf16 %v18068_v9  ;;  %v8065_v49 = vpack.c.bf16 %v4929_v21, %v4928_v28 }
 0x6d4   :  { %8050 = vmatprep.subr.bf16.mxu0 %v8049_v23  ;;  %5763 = vmatprep.mubr.f32.mxu1 %v17893_v29  ;;  %v8063_v12 = vpack.c.bf16 %v4931_v46, %v4930_v7  ;;  %v4932_v63 = vsel %vm228_vm7, %v18069_v15, %v10033_v3 }
 0x6d5   :  { %v4933_v51 = vsel %vm228_vm7, %v18070_v24, %v10034_v1 }
 0x6d6   :  { %v8067_v48 = vpack.c.bf16 %v4933_v51, %v4932_v63 }
 0x6d7   :  { %8052 = vmatpush1.bf16.msra.mxu0 %v8051_v33  ;;  %7441 = vmatmul.mubr.msk.f32.gmra.mrb[46].mxu1 %vm1799_vm9, %v15035_v40 }
 0x6d8   :  { %8054 = vmatprep.subr.bf16.mxu0 %v8053_v8  ;;  %v18072_v8 = vld [vmem:[#allocation7_spill] sm:$0xff] }
 0x6db   :  { %8056 = vmatpush1.bf16.msra.mxu0 %v8055_v55 }
 0x6dc   :  { %8058 = vmatprep.subr.bf16.mxu0 %v8057_v57 }
 0x6df   :  { %8060 = vmatpush1.bf16.msra.mxu0 %v8059_v20 }
 0x6e0   :  { %8062 = vmatprep.subr.bf16.mxu0 %v8061_v60 }
 0x6e2   :  { %5479 = vmatmul.mubr.f32.vlgmr.msra.gmra.mrb[40].mxu0 %v14846_v37 }
 0x6e3   :  { %8064 = vmatpush1.bf16.msra.mxu0 %v8063_v12  ;;  %5484 = vmatprep.mubr.f32.mxu0 %v14861_v31  ;;  %v15586_v31 = vpop.permute.xlu1 %5206 }
 0x6e4   :  { %8066 = vmatprep.subr.bf16.mxu0 %v8065_v49 }
 0x6e6   :  { %5485 = vmatmul.mubr.f32.gmra.mrb[42].mxu0 %v14868_v16 }
 0x6e7   :  { %8068 = vmatpush1.bf16.msra.mxu0 %v8067_v48  ;;  %5490 = vmatprep.mubr.f32.mxu0 %v14881_v14  ;;  %v15594_v36 = vpop.permute.xlu1 %5216 }
 0x6ea   :  { %5491 = vmatmul.mubr.f32.gmra.mrb[44].mxu0 %v18035_v2 }
 0x6eb   :  { %5496 = vmatprep.mubr.f32.mxu0 %v18039_v47  ;;  %v15590_v47 = vpop.permute.xlu0 %5211 }
 0x6ee   :  { %5497 = vmatmul.mubr.f32.gmra.mrb[46].mxu0 %v18046_v54 }
 0x6ef   :  { %5567 = vmatprep.mubr.f32.mxu0 %v17893_v29  ;;  %v15604_v4 = vpop.permute.xlu0 %5221 }
 0x6f2   :  { %7434 = vmatmul.mubr.msk.f32.vlgmr.msra.gmra.mrb[40].mxu0 %vm1799_vm9, %v18050_v10 }
 0x6f3   :  { %5573 = vmatprep.mubr.f32.mxu0 %v17893_v29 }
 0x6f6   :  { %7435 = vmatmul.mubr.msk.f32.gmra.mrb[42].mxu0 %vm1799_vm9, %v18054_v25 }
 0x6f7   :  { %5579 = vmatprep.mubr.f32.mxu0 %v17893_v29 }
 0x6fa   :  { %7436 = vmatmul.mubr.msk.f32.gmra.mrb[44].mxu0 %vm1799_vm9, %v18058_v5 }
 0x6fb   :  { %5585 = vmatprep.mubr.f32.mxu0 %v17893_v29 }
 0x6fe   :  { %7437 = vmatmul.mubr.msk.f32.gmra.mrb[46].mxu0 %vm1799_vm9, %v15035_v40 }
 0x74a   :  { %v5391_v37 = vpop.f32.mrb[32].mxu1 }
 0x74b   :  { %v8405_v16 = vadd.f32 %v5391_v37, %v15586_v31  ;;  %v5393_v14 = vpop.f32.mrb[33].mxu1 }
 0x74c   :  { %v8406_v50 = vadd.f32 %v5393_v14, %v15586_v31 }
 0x74d   :  { %v5770_v2 = vmul.f32 0.01, %v8405_v16 }
 0x74e   :  { %v5771_v54 = vmul.f32 0.01, %v8406_v50  ;;  %v5397_v10 = vpop.f32.mrb[34].mxu1 }
 0x74f   :  { %v8407_v25 = vadd.f32 %v5397_v10, %v15590_v47  ;;  %v5399_v34 = vpop.f32.mrb[35].mxu1  ;;  %v5794_v45 = vmax.f32 %v8405_v16, %v5770_v2 }
 0x750   :  { %v8408_v18 = vadd.f32 %v5399_v34, %v15590_v47  ;;  %v5795_v23 = vmax.f32 %v8406_v50, %v5771_v54 }
 0x751   :  { %v5776_v40 = vmul.f32 0.01, %v8407_v25  ;;  %v15599_v35 = vmul.f32 %v5794_v45, %v18071_v32 }
 0x752   :  { %v5777_v58 = vmul.f32 0.01, %v8408_v18  ;;  %v5403_v42 = vpop.f32.mrb[36].mxu1  ;;  %v15607_v44 = vmul.f32 %v5795_v23, %v18072_v8  ;;  %v18073_v23 = vld [vmem:[#allocation4_spill] sm:$0xff] }
 0x753   :  { %v5800_v5 = vmax.f32 %v8407_v25, %v5776_v40  ;;  %v8409_v22 = vadd.f32 %v5403_v42, %v15594_v36  ;;  %v5405_v6 = vpop.f32.mrb[37].mxu1 }
 0x754   :  { %v5801_v38 = vmax.f32 %v8408_v18, %v5777_v58  ;;  %v8410_v33 = vadd.f32 %v5405_v6, %v15594_v36 }
 0x755   :  { %v15602_v17 = vmul.f32 %v5800_v5, %v18071_v32  ;;  %v5782_v56 = vmul.f32 0.01, %v8409_v22 }
 0x756   :  { %v15610_v52 = vmul.f32 %v5801_v38, %v18072_v8  ;;  %v5783_v30 = vmul.f32 0.01, %v8410_v33  ;;  %v5409_v39 = vpop.f32.mrb[38].mxu1 }
 0x757   :  { %v5806_v62 = vmax.f32 %v8409_v22, %v5782_v56  ;;  %v8411_v55 = vadd.f32 %v5409_v39, %v15604_v4  ;;  %v5411_v13 = vpop.f32.mrb[39].mxu1  ;;  %v15615_v11 = vpack.i.bf16 %v15602_v17, %v15599_v35  ;;  %v18076_v22 = vld [vmem:[#allocation8_spill] sm:$0xff] }
 0x758   :  { %v8412_v43 = vadd.f32 %v5411_v13, %v15604_v4  ;;  %v15620_v59 = vpack.i.bf16 %v15610_v52, %v15607_v44  ;;  %v5807_v0 = vmax.f32 %v8410_v33, %v5783_v30 }
 0x759   :  { %v5788_v57 = vmul.f32 0.01, %v8411_v55  ;;  %v15623_v1 = vmul.f32 %v5806_v62, %v18071_v32 }
 0x75a   :  { %v5789_v3 = vmul.f32 0.01, %v8412_v43  ;;  %v15631_v26 = vmul.f32 %v5807_v0, %v18072_v8 }
 0x75b   :  { %v5812_v41 = vmax.f32 %v8411_v55, %v5788_v57 }
 0x75c   :  { %v5813_v61 = vmax.f32 %v8412_v43, %v5789_v3 }
 0x75d   :  { %v15626_v20 = vmul.f32 %v5812_v41, %v18071_v32 }
 0x75e   :  { %v15634_v46 = vmul.f32 %v5813_v61, %v18072_v8 }
 0x75f   :  { %v15640_v7 = vpack.i.bf16 %v15626_v20, %v15623_v1 }
 0x760   :  { %v15644_v60 = vpack.i.bf16 %v15634_v46, %v15631_v26 }
 0x79e   :  { %v5747_v12 = vpop.f32.mrb[40].mxu1 }
 0x79f   :  { %v8421_v9 = vadd.f32 %v5747_v12, %v15586_v31  ;;  %v5749_v15 = vpop.f32.mrb[41].mxu1 }
 0x7a0   :  { %v8422_v63 = vadd.f32 %v5749_v15, %v15586_v31 }
 0x7a1   :  { %v5774_v24 = vmul.f32 0.01, %v8421_v9 }
 0x7a2   :  { %v5775_v51 = vmul.f32 0.01, %v8422_v63  ;;  %v5753_v49 = vpop.f32.mrb[42].mxu1 }
 0x7a3   :  { %v8423_v48 = vadd.f32 %v5753_v49, %v15590_v47  ;;  %v5755_v37 = vpop.f32.mrb[43].mxu1  ;;  %v5798_v14 = vmax.f32 %v8421_v9, %v5774_v24 }
 0x7a4   :  { %v8424_v16 = vadd.f32 %v5755_v37, %v15590_v47  ;;  %v5799_v2 = vmax.f32 %v8422_v63, %v5775_v51 }
 0x7a5   :  { %v5780_v50 = vmul.f32 0.01, %v8423_v48  ;;  %v15657_v58 = vmul.f32 %v5798_v14, %v18073_v23 }
 0x7a6   :  { %v5781_v54 = vmul.f32 0.01, %v8424_v16  ;;  %v5759_v10 = vpop.f32.mrb[44].mxu1  ;;  %v15663_v6 = vmul.f32 %v5799_v2, %v18076_v22 }
 0x7a7   :  { %v5804_v25 = vmax.f32 %v8423_v48, %v5780_v50  ;;  %v8425_v34 = vadd.f32 %v5759_v10, %v15594_v36  ;;  %v5761_v18 = vpop.f32.mrb[45].mxu1  ;;  %18074 = vst [vmem:[#allocation18_spill] sm:$0xff] %v15657_v58 }
 0x7a8   :  { %v5805_v45 = vmax.f32 %v8424_v16, %v5781_v54  ;;  %v8426_v40 = vadd.f32 %v5761_v18, %v15594_v36  ;;  %18077 = vst [vmem:[#allocation13_spill] sm:$0xff] %v15663_v6 }
 0x7a9   :  { %v15660_v42 = vmul.f32 %v5804_v25, %v18073_v23  ;;  %v5786_v5 = vmul.f32 0.01, %v8425_v34 }
 0x7aa   :  { %v15666_v38 = vmul.f32 %v5805_v45, %v18076_v22  ;;  %v5787_v33 = vmul.f32 0.01, %v8426_v40  ;;  %v5765_v32 = vpop.f32.mrb[46].mxu1 }
 0x7ab   :  { %18075 = vst [vmem:[#allocation16_spill] sm:$0xff] %v15660_v42  ;;  %v5810_v56 = vmax.f32 %v8425_v34, %v5786_v5  ;;  %v8427_v8 = vadd.f32 %v5765_v32, %v15604_v4  ;;  %v5767_v30 = vpop.f32.mrb[47].mxu1  ;;  %v15671_v39 = vpack.i.bf16 %v15660_v42, %v15657_v58 }
 0x7ac   :  { %18078 = vst [vmem:[#allocation14_spill] sm:$0xff] %v15666_v38  ;;  %v8428_v62 = vadd.f32 %v5767_v30, %v15604_v4  ;;  %v15676_v55 = vpack.i.bf16 %v15666_v38, %v15663_v6  ;;  %v5811_v13 = vmax.f32 %v8426_v40, %v5787_v33  ;;  %v18083_v30 = vld [vmem:[#allocation9_spill] sm:$0xff] }
 0x7ad   :  { %v5792_v43 = vmul.f32 0.01, %v8427_v8  ;;  %v15679_v0 = vmul.f32 %v5810_v56, %v18073_v23 }
 0x7ae   :  { %v5793_v57 = vmul.f32 0.01, %v8428_v62  ;;  %v15687_v9 = vmul.f32 %v5811_v13, %v18076_v22 }
 0x7af   :  { %18079 = vst [vmem:[#allocation21_spill] sm:$0xff] %v15679_v0  ;;  %v5816_v3 = vmax.f32 %v8427_v8, %v5792_v43 }
 0x7b0   :  { %v5817_v41 = vmax.f32 %v8428_v62, %v5793_v57  ;;  %18081 = vst [vmem:[#allocation23_spill] sm:$0xff] %v15687_v9 }
 0x7b1   :  { %v15682_v61 = vmul.f32 %v5816_v3, %v18073_v23 }
 0x7b2   :  { %v15690_v15 = vmul.f32 %v5817_v41, %v18076_v22 }
 0x7b3   :  { %18080 = vst [vmem:[#allocation27_spill] sm:$0xff] %v15682_v61  ;;  %v15696_v24 = vpack.i.bf16 %v15682_v61, %v15679_v0 }
 0x7b4   :  { %18082 = vst [vmem:[#allocation11_spill] sm:$0xff] %v15690_v15  ;;  %v15700_v51 = vpack.i.bf16 %v15690_v15, %v15687_v9 }
 0x7c5   :  { %v5569_v37 = vpop.f32.mrb[40].mxu0 }
 0x7c6   :  { %v8413_v16 = vadd.f32 %v5569_v37, %v15586_v31  ;;  %v5571_v14 = vpop.f32.mrb[41].mxu0 }
 0x7c7   :  { %v8414_v50 = vadd.f32 %v5571_v14, %v15586_v31 }
 0x7c8   :  { %v5772_v2 = vmul.f32 0.01, %v8413_v16 }
 0x7c9   :  { %v5773_v54 = vmul.f32 0.01, %v8414_v50  ;;  %v5575_v10 = vpop.f32.mrb[42].mxu0 }
 0x7ca   :  { %v8415_v25 = vadd.f32 %v5575_v10, %v15590_v47  ;;  %v5577_v34 = vpop.f32.mrb[43].mxu0  ;;  %v5796_v45 = vmax.f32 %v8413_v16, %v5772_v2 }
 0x7cb   :  { %v8416_v18 = vadd.f32 %v5577_v34, %v15590_v47  ;;  %v5797_v23 = vmax.f32 %v8414_v50, %v5773_v54  ;;  %v18086_v47 = vld [vmem:[#allocation5_spill] sm:$0xff] }
 0x7cc   :  { %v5778_v40 = vmul.f32 0.01, %v8415_v25  ;;  %v15713_v62 = vmul.f32 %v5796_v45, %v18083_v30 }
 0x7cd   :  { %v5779_v5 = vmul.f32 0.01, %v8416_v18  ;;  %v5581_v22 = vpop.f32.mrb[44].mxu0  ;;  %v15719_v57 = vmul.f32 %v5797_v23, %v18086_v47 }
 0x7ce   :  { %v5802_v33 = vmax.f32 %v8415_v25, %v5778_v40  ;;  %v8417_v32 = vadd.f32 %v5581_v22, %v15594_v36  ;;  %v5583_v56 = vpop.f32.mrb[45].mxu0  ;;  %18084 = vst [vmem:[#allocation25_spill] sm:$0xff] %v15713_v62 }
 0x7cf   :  { %v5803_v8 = vmax.f32 %v8416_v18, %v5779_v5  ;;  %v8418_v31 = vadd.f32 %v5583_v56, %v15594_v36  ;;  %18087 = vst [vmem:[#allocation22_spill] sm:$0xff] %v15719_v57 }
 0x7d0   :  { %v15716_v13 = vmul.f32 %v5802_v33, %v18083_v30  ;;  %v5784_v43 = vmul.f32 0.01, %v8417_v32 }
 0x7d1   :  { %v15722_v3 = vmul.f32 %v5803_v8, %v18086_v47  ;;  %v5785_v41 = vmul.f32 0.01, %v8418_v31  ;;  %v5587_v37 = vpop.f32.mrb[46].mxu0 }
 0x7d2   :  { %18085 = vst [vmem:[#allocation15_spill] sm:$0xff] %v15716_v13  ;;  %v5808_v16 = vmax.f32 %v8417_v32, %v5784_v43  ;;  %v8419_v14 = vadd.f32 %v5587_v37, %v15604_v4  ;;  %v5589_v50 = vpop.f32.mrb[47].mxu0  ;;  %v15727_v36 = vpack.i.bf16 %v15716_v13, %v15713_v62 }
 0x7d3   :  { %18088 = vst [vmem:[#allocation10_spill] sm:$0xff] %v15722_v3  ;;  %v8420_v2 = vadd.f32 %v5589_v50, %v15604_v4  ;;  %v5809_v54 = vmax.f32 %v8418_v31, %v5785_v41  ;;  %v15734_v25 = vpack.i.bf16 %v15722_v3, %v15719_v57 }
 0x7d4   :  { %v5790_v10 = vmul.f32 0.01, %v8419_v14  ;;  %10036 = vrot.lane.b32.xlu0 %v15727_v36, %s10519_s15  ;;  %v15737_v34 = vmul.f32 %v5808_v16, %v18083_v30 }
 0x7d5   :  { %v5791_v18 = vmul.f32 0.01, %v8420_v2  ;;  %v15747_v5 = vmul.f32 %v5809_v54, %v18086_v47 }
 0x7d6   :  { %18089 = vst [vmem:[#allocation17_spill] sm:$0xff] %v15737_v34  ;;  %v5814_v45 = vmax.f32 %v8419_v14, %v5790_v10 }
 0x7d7   :  { %v5815_v40 = vmax.f32 %v8420_v2, %v5791_v18  ;;  %18091 = vst [vmem:[#allocation26_spill] sm:$0xff] %v15747_v5 }
 0x7d8   :  { %v15740_v23 = vmul.f32 %v5814_v45, %v18083_v30  ;;  %10041 = vrot.lane.b32.xlu0 %v15727_v36, %s10521_s17 }
 0x7d9   :  { %v15750_v22 = vmul.f32 %v5815_v40, %v18086_v47 }
 0x7da   :  { %18090 = vst [vmem:[#allocation19_spill] sm:$0xff] %v15740_v23  ;;  %v15756_v32 = vpack.i.bf16 %v15740_v23, %v15737_v34 }
 0x7db   :  { %18092 = vst [vmem:[#allocation12_spill] sm:$0xff] %v15750_v22  ;;  %v15760_v56 = vpack.i.bf16 %v15750_v22, %v15747_v5 }
 0x7dc   :  { %10046 = vrot.lane.b32.xlu1 %v15756_v32, %s10519_s15  ;;  %10086 = vrot.lane.b32.xlu0 %v15620_v59, %s10515_s9 }
 0x7e0   :  { %10051 = vrot.lane.b32.xlu1 %v15756_v32, %s10521_s17  ;;  %10091 = vrot.lane.b32.xlu0 %v15620_v59, %s10516_s10 }
 0x7e4   :  { %10096 = vrot.lane.b32.xlu0 %v15620_v59, %s10518_s12  ;;  %10056 = vrot.lane.b32.xlu1 %v15615_v11, %s10515_s9 }
 0x7e8   :  { %10101 = vrot.lane.b32.xlu0 %v15620_v59, %s10517_s11  ;;  %10061 = vrot.lane.b32.xlu1 %v15615_v11, %s10516_s10 }
 0x7ec   :  { %10116 = vrot.lane.b32.xlu0 %v15640_v7, %s10515_s9  ;;  %10066 = vrot.lane.b32.xlu1 %v15615_v11, %s10518_s12 }
 0x7f0   :  { %10121 = vrot.lane.b32.xlu0 %v15640_v7, %s10516_s10  ;;  %10071 = vrot.lane.b32.xlu1 %v15615_v11, %s10517_s11 }
 0x7f4   :  { %10126 = vrot.lane.b32.xlu0 %v15640_v7, %s10518_s12  ;;  %10076 = vrot.lane.b32.xlu1 %v15615_v11, %s10519_s15 }
 0x7f8   :  { %10131 = vrot.lane.b32.xlu0 %v15640_v7, %s10517_s11  ;;  %10081 = vrot.lane.b32.xlu1 %v15615_v11, %s10521_s17 }
 0x7fc   :  { %10136 = vrot.lane.b32.xlu0 %v15640_v7, %s10519_s15  ;;  %10106 = vrot.lane.b32.xlu1 %v15620_v59, %s10519_s15 }
 0x800   :  { %10141 = vrot.lane.b32.xlu0 %v15640_v7, %s10521_s17  ;;  %10111 = vrot.lane.b32.xlu1 %v15620_v59, %s10521_s17 }
 0x804   :  { %10166 = vrot.lane.b32.xlu0 %v15644_v60, %s10519_s15  ;;  %10146 = vrot.lane.b32.xlu1 %v15644_v60, %s10515_s9 }
 0x808   :  { %10171 = vrot.lane.b32.xlu0 %v15644_v60, %s10521_s17  ;;  %10151 = vrot.lane.b32.xlu1 %v15644_v60, %s10516_s10 }
 0x80c   :  { %10201 = vrot.lane.b32.xlu0 %v15700_v51, %s10515_s9  ;;  %10156 = vrot.lane.b32.xlu1 %v15644_v60, %s10518_s12 }
 0x810   :  { %10206 = vrot.lane.b32.xlu0 %v15727_v36, %s10520_s16  ;;  %10161 = vrot.lane.b32.xlu1 %v15644_v60, %s10517_s11 }
 0x814   :  { %10216 = vrot.lane.b32.xlu0 %v15700_v51, %s10516_s10  ;;  %10176 = vrot.lane.b32.xlu1 %v15676_v55, %s10515_s9 }
 0x818   :  { %10221 = vrot.lane.b32.xlu0 %v15727_v36, %s10515_s9  ;;  %10181 = vrot.lane.b32.xlu1 %v15620_v59, %s10520_s16 }
 0x81c   :  { %10231 = vrot.lane.b32.xlu0 %v15700_v51, %s10518_s12  ;;  %10186 = vrot.lane.b32.xlu1 %v15676_v55, %s10516_s10 }
 0x820   :  { %10236 = vrot.lane.b32.xlu0 %v15644_v60, %s10520_s16  ;;  %10191 = vrot.lane.b32.xlu1 %v15676_v55, %s10518_s12 }
 0x824   :  { %10246 = vrot.lane.b32.xlu0 %v15700_v51, %s10517_s11  ;;  %10196 = vrot.lane.b32.xlu1 %v15676_v55, %s10517_s11 }
 0x828   :  { %10251 = vrot.lane.b32.xlu0 %v15640_v7, %s10520_s16  ;;  %10211 = vrot.lane.b32.xlu1 %v15615_v11, %s10520_s16 }
 0x82c   :  { %10261 = vrot.lane.b32.xlu0 %v15760_v56, %s10515_s9  ;;  %10226 = vrot.lane.b32.xlu1 %v15734_v25, %s10515_s9 }
 0x830   :  { %10271 = vrot.lane.b32.xlu0 %v15727_v36, %s10523_s18  ;;  %10241 = vrot.lane.b32.xlu1 %v15756_v32, %s10520_s16 }
 0x834   :  { %10281 = vrot.lane.b32.xlu0 %v15727_v36, %s10516_s10  ;;  %10256 = vrot.lane.b32.xlu1 %v15756_v32, %s10515_s9 }
 0x838   :  { %10291 = vrot.lane.b32.xlu0 %v15644_v60, %s10523_s18  ;;  %10266 = vrot.lane.b32.xlu1 %v15620_v59, %s10523_s18  ;;  %v15885_v59 = vld [vmem:[%s17218_s3 + $0x8] sm:$0xff] }
 0x839   :  { %18094 = vst [vmem:[#allocation24_spill] sm:$0xff] %v15885_v59  ;;  %6974 = vmatprep.mubr.f32.mxu0 %v15885_v59  ;;  %7116 = vmatprep.mubr.f32.mxu1 %v15885_v59 }
 0x83c   :  { %10301 = vrot.lane.b32.xlu0 %v15640_v7, %s10523_s18  ;;  %10276 = vrot.lane.b32.xlu1 %v15615_v11, %s10523_s18 }
 0x840   :  { %10311 = vrot.lane.b32.xlu0 %v15760_v56, %s10516_s10  ;;  %10286 = vrot.lane.b32.xlu1 %v15734_v25, %s10516_s10 }
 0x844   :  { %10321 = vrot.lane.b32.xlu0 %v15727_v36, %s10518_s12  ;;  %10296 = vrot.lane.b32.xlu1 %v15756_v32, %s10523_s18 }
 0x846   :  { %v15874_v60 = vpop.permute.xlu0 %10036 }
 0x848   :  { %10331 = vrot.lane.b32.xlu0 %v15696_v24, %s10515_s9  ;;  %10306 = vrot.lane.b32.xlu1 %v15756_v32, %s10516_s10 }
 0x84a   :  { %v15880_v11 = vpop.permute.xlu0 %10041 }
 0x84b   :  { %18093 = vst [vmem:[#allocation28_spill] sm:$0xff] %v15880_v11  ;;  %v17538_v4 = vunpack.i.h.bf16 %v15880_v11  ;;  %v17536_v21 = vunpack.i.l.bf16 %v15880_v11 }
 0x84c   :  { %10341 = vrot.lane.b32.xlu0 %v15760_v56, %s10518_s12  ;;  %10316 = vrot.lane.b32.xlu1 %v15671_v39, %s10515_s9 }
 0x84e   :  { %v15893_v7 = vpop.permute.xlu1 %10046  ;;  %v15895_v30 = vpop.permute.xlu0 %10086 }
 0x84f   :  { %v17532_v16 = vunpack.i.h.bf16 %v15895_v30  ;;  %v17533_v14 = vunpack.i.l.bf16 %v15895_v30 }
 0x850   :  { %10351 = vrot.lane.b32.xlu0 %v15727_v36, %s10517_s11  ;;  %10326 = vrot.lane.b32.xlu1 %v15734_v25, %s10518_s12 }
 0x852   :  { %v15901_v43 = vpop.permute.xlu1 %10051  ;;  %v15903_v47 = vpop.permute.xlu0 %10091 }
 0x853   :  { %v18101_v3 = vunpack.i.h.bf16 %v15903_v47 }
 0x854   :  { %10361 = vrot.lane.b32.xlu0 %v15696_v24, %s10516_s10  ;;  %10336 = vrot.lane.b32.xlu1 %v15756_v32, %s10518_s12 }
 0x856   :  { %v15909_v41 = vpop.permute.xlu0 %10096  ;;  %v15911_v37 = vpop.permute.xlu1 %10056 }
 0x857   :  { %v17534_v50 = vunpack.i.h.bf16 %v15911_v37  ;;  %v17535_v36 = vunpack.i.l.bf16 %v15911_v37  ;;  %v18097_v23 = vunpack.i.l.bf16 %v15911_v37 }
 0x858   :  { %10371 = vrot.lane.b32.xlu0 %v15760_v56, %s10517_s11  ;;  %10346 = vrot.lane.b32.xlu1 %v15671_v39, %s10516_s10 }
 0x859   :  { %v5954_v2 = vsel %vm47_vm0, %v17535_v36, %v17533_v14  ;;  %v5955_v54 = vsel %vm47_vm0, %v17534_v50, %v17532_v16 }
 0x85a   :  { %v15933_v10 = vpop.permute.xlu0 %10101  ;;  %v15935_v18 = vpop.permute.xlu1 %10061  ;;  %v8141_v45 = vpack.c.bf16 %v5955_v54, %v5954_v2 }
 0x85b   :  { %v10064_v15 = vunpack.i.h.bf16 %v15935_v18 }
 0x85c   :  { %10381 = vrot.lane.b32.xlu0 %v15696_v24, %s10518_s12  ;;  %10356 = vrot.lane.b32.xlu1 %v15734_v25, %s10517_s11 }
 0x85d   :  { %8142 = vmatprep.subr.bf16.mxu0 %v8141_v45 }
 0x85e   :  { %v15941_v40 = vpop.permute.xlu0 %10116  ;;  %v15943_v48 = vpop.permute.xlu1 %10066 }
 0x85f   :  { %v10119_v58 = vunpack.i.h.bf16 %v15941_v40  ;;  %v10118_v42 = vunpack.i.l.bf16 %v15941_v40 }
 0x860   :  { %10391 = vrot.lane.b32.xlu0 %v15734_v25, %s10519_s15  ;;  %10366 = vrot.lane.b32.xlu1 %v15756_v32, %s10517_s11 }
 0x862   :  { %v15949_v49 = vpop.permute.xlu0 %10121  ;;  %v15951_v2 = vpop.permute.xlu1 %10071 }
 0x864   :  { %10401 = vrot.lane.b32.xlu0 %v15696_v24, %s10517_s11  ;;  %10376 = vrot.lane.b32.xlu1 %v15671_v39, %s10518_s12 }
 0x866   :  { %v15957_v54 = vpop.permute.xlu0 %10126  ;;  %v15959_v45 = vpop.permute.xlu1 %10076 }
 0x868   :  { %10411 = vrot.lane.b32.xlu0 %v15696_v24, %s10519_s15  ;;  %10386 = vrot.lane.b32.xlu1 %v15671_v39, %s10517_s11 }
 0x86a   :  { %v15965_v32 = vpop.permute.xlu0 %10131  ;;  %v15967_v63 = vpop.permute.xlu1 %10081 }
 0x86c   :  { %10421 = vrot.lane.b32.xlu0 %v15671_v39, %s10521_s17  ;;  %10396 = vrot.lane.b32.xlu1 %v15671_v39, %s10519_s15 }
 0x86e   :  { %v15973_v12 = vpop.permute.xlu0 %10136  ;;  %v15975_v31 = vpop.permute.xlu1 %10106 }
 0x870   :  { %10431 = vrot.lane.b32.xlu0 %v15696_v24, %s10521_s17  ;;  %10406 = vrot.lane.b32.xlu1 %v15760_v56, %s10519_s15 }
 0x872   :  { %v15981_v8 = vpop.permute.xlu0 %10141  ;;  %v15983_v33 = vpop.permute.xlu1 %10111 }
 0x873   :  { %v17539_v28 = vunpack.i.h.bf16 %v15983_v33  ;;  %v17537_v53 = vunpack.i.l.bf16 %v15983_v33 }
 0x874   :  { %10441 = vrot.lane.b32.xlu0 %v15734_v25, %s10520_s16  ;;  %10416 = vrot.lane.b32.xlu1 %v15734_v25, %s10521_s17 }
 0x875   :  { %v15999_v27 = vsel %vm178_vm6, %v17537_v53, %v17536_v21  ;;  %v16007_v16 = vsel %vm178_vm6, %v17539_v28, %v17538_v4 }
 0x876   :  { %v16009_v14 = vpop.permute.xlu0 %10166  ;;  %v16011_v50 = vpop.permute.xlu1 %10146 }
 0x877   :  { %v18095_v40 = vunpack.i.l.bf16 %v16011_v50  ;;  %v18096_v9 = vunpack.i.h.bf16 %v16011_v50 }
 0x878   :  { %10456 = vrot.lane.b32.xlu0 %v15696_v24, %s10520_s16  ;;  %10426 = vrot.lane.b32.xlu1 %v15760_v56, %s10521_s17 }
 0x879   :  { %v5956_v61 = vsel %vm47_vm0, %v10118_v42, %v18095_v40  ;;  %v5957_v11 = vsel %vm47_vm0, %v10119_v58, %v18096_v9  ;;  %v18100_v9 = vunpack.i.l.bf16 %v15903_v47 }
 0x87a   :  { %v16019_v21 = vpop.permute.xlu0 %10171  ;;  %v16021_v53 = vpop.permute.xlu1 %10151 }
 0x87c   :  { %10466 = vrot.lane.b32.xlu0 %v15700_v51, %s10519_s15  ;;  %10436 = vrot.lane.b32.xlu1 %v15676_v55, %s10519_s15 }
 0x87e   :  { %v16027_v4 = vpop.permute.xlu0 %10201  ;;  %v16029_v28 = vpop.permute.xlu1 %10156 }
 0x880   :  { %10471 = vrot.lane.b32.xlu0 %v15734_v25, %s10523_s18  ;;  %10446 = vrot.lane.b32.xlu1 %v15671_v39, %s10520_s16  ;;  %v10063_v25 = vunpack.i.l.bf16 %v15935_v18  ;;  %v18098_v18 = vunpack.i.h.bf16 %v15911_v37 }
 0x882   :  { %v16035_v36 = vpop.permute.xlu0 %10206  ;;  %v16037_v0 = vpop.permute.xlu1 %10161  ;;  %v6050_v57 = vsel %vm72_vm1, %v10063_v25, %v18100_v9  ;;  %v18103_v9 = vunpack.i.h.bf16 %v16027_v4 }
 0x884   :  { %10486 = vrot.lane.b32.xlu0 %v15700_v51, %s10521_s17  ;;  %10451 = vrot.lane.b32.xlu1 %v15760_v56, %s10520_s16  ;;  %v5961_v29 = vsel %vm47_vm0, %v18103_v9, %v10119_v58  ;;  %v18105_v58 = vunpack.i.h.bf16 %v15895_v30  ;;  %v10124_v9 = vunpack.i.h.bf16 %v15949_v49 }
 0x886   :  { %v16049_v6 = vpop.permute.xlu0 %10216  ;;  %v16051_v38 = vpop.permute.xlu1 %10176 }
 0x887   :  { %v17558_v34 = vunpack.i.l.bf16 %v16051_v38  ;;  %v18099_v5 = vunpack.i.h.bf16 %v16051_v38 }
 0x888   :  { %10491 = vrot.lane.b32.xlu0 %v15696_v24, %s10523_s18  ;;  %10461 = vrot.lane.b32.xlu1 %v15676_v55, %s10521_s17 }
 0x889   :  { %v5958_v24 = vsel %vm47_vm0, %v17558_v34, %v18097_v23  ;;  %v5959_v22 = vsel %vm47_vm0, %v18099_v5, %v18098_v18  ;;  %v6051_v23 = vsel %vm72_vm1, %v10064_v15, %v18101_v3  ;;  %v8145_v5 = vpack.c.bf16 %v5957_v11, %v5956_v61 }
 0x88a   :  { %v8143_v40 = vpack.c.bf16 %v5959_v22, %v5958_v24  ;;  %v16083_v62 = vpop.permute.xlu0 %10221  ;;  %v16085_v13 = vpop.permute.xlu1 %10181  ;;  %v17563_v18 = vunpack.i.l.bf16 %v16021_v53  ;;  %v18102_v24 = vunpack.i.l.bf16 %v16027_v4  ;;  %v18104_v3 = vunpack.i.l.bf16 %v15895_v30 }
 0x88b   :  { %v17562_v37 = vunpack.i.h.bf16 %v16083_v62  ;;  %v17561_v34 = vunpack.i.l.bf16 %v16083_v62  ;;  %v10123_v61 = vunpack.i.l.bf16 %v15949_v49  ;;  %v10069_v30 = vunpack.i.h.bf16 %v15943_v48 }
 0x88c   :  { %v5960_v59 = vsel %vm47_vm0, %v18102_v24, %v10118_v42  ;;  %10501 = vrot.lane.b32.xlu0 %v15676_v55, %s10523_s18  ;;  %10476 = vrot.lane.b32.xlu1 %v15671_v39, %s10523_s18  ;;  %v8149_v39 = vpack.c.bf16 %v6051_v23, %v6050_v57  ;;  %v10068_v24 = vunpack.i.l.bf16 %v15943_v48 }
 0x88d   :  { %v16118_v42 = vsel %vm47_vm0, %v18104_v3, %v17561_v34  ;;  %v16126_v11 = vsel %vm47_vm0, %v18105_v58, %v17562_v37  ;;  %8144 = vmatpush1.bf16.msra.mxu0 %v8143_v40  ;;  %v8147_v58 = vpack.c.bf16 %v5961_v29, %v5960_v59  ;;  %v6052_v49 = vsel %vm72_vm1, %v10123_v61, %v17563_v18 }
 0x88e   :  { %8146 = vmatprep.subr.bf16.mxu0 %v8145_v5  ;;  %v16133_v34 = vpop.permute.xlu0 %10231  ;;  %v16135_v22 = vpop.permute.xlu1 %10186  ;;  %v18107_v29 = vunpack.i.h.bf16 %v16021_v53  ;;  %v17568_v59 = vunpack.i.h.bf16 %v16029_v28 }
 0x88f   :  { %18106 = vst [vmem:[#allocation20_spill] sm:$0xff] %v16135_v22  ;;  %v17567_v40 = vunpack.i.h.bf16 %v16135_v22  ;;  %v17564_v57 = vunpack.i.l.bf16 %v16135_v22  ;;  %v18109_v22 = vunpack.i.h.bf16 %v15909_v41 }
 0x890   :  { %10511 = vrot.lane.b32.xlu0 %v15700_v51, %s10523_s18  ;;  %10481 = vrot.lane.b32.xlu1 %v15760_v56, %s10523_s18  ;;  %v6053_v48 = vsel %vm72_vm1, %v10124_v9, %v18107_v29  ;;  %v18108_v29 = vunpack.i.l.bf16 %v15909_v41 }
 0x891   :  { %v6054_v5 = vsel %vm72_vm1, %v17564_v57, %v10063_v25  ;;  %v6055_v56 = vsel %vm72_vm1, %v17567_v40, %v10064_v15  ;;  %8148 = vmatpush1.bf16.msra.mxu0 %v8147_v58  ;;  %v17569_v25 = vunpack.i.l.bf16 %v16029_v28  ;;  %v8153_v57 = vpack.c.bf16 %v6053_v48, %v6052_v49 }
 0x892   :  { %v8151_v3 = vpack.c.bf16 %v6055_v56, %v6054_v5  ;;  %8150 = vmatprep.subr.bf16.mxu0 %v8149_v39  ;;  %v16163_v18 = vpop.permute.xlu0 %10236  ;;  %v16165_v23 = vpop.permute.xlu1 %10191  ;;  %v6146_v37 = vsel %vm97_vm3, %v10068_v24, %v18108_v29  ;;  %v6147_v15 = vsel %vm97_vm3, %v10069_v30, %v18109_v22  ;;  %v18110_v39 = vunpack.i.l.bf16 %v16049_v6 }
 0x893   :  { %v18111_v5 = vunpack.i.h.bf16 %v16049_v6  ;;  %v17570_v40 = vunpack.i.l.bf16 %v16165_v23  ;;  %v10129_v49 = vunpack.i.h.bf16 %v15957_v54  ;;  %v10128_v22 = vunpack.i.l.bf16 %v15957_v54 }
 0x894   :  { %v6056_v58 = vsel %vm72_vm1, %v18110_v39, %v10123_v61  ;;  %10496 = vrot.lane.b32.xlu1 %v15676_v55, %s10520_s16  ;;  %v10074_v48 = vunpack.i.h.bf16 %v15951_v2 }
 0x895   :  { %v6057_v56 = vsel %vm72_vm1, %v18111_v5, %v10124_v9  ;;  %8152 = vmatpush1.bf16.msra.mxu0 %v8151_v3  ;;  %v8157_v9 = vpack.c.bf16 %v6147_v15, %v6146_v37  ;;  %v10073_v5 = vunpack.i.l.bf16 %v15951_v2  ;;  %v6148_v55 = vsel %vm97_vm3, %v10128_v22, %v17569_v25 }
 0x896   :  { %8154 = vmatprep.subr.bf16.mxu0 %v8153_v57  ;;  %v16192_v61 = vpop.permute.xlu0 %10246  ;;  %v16194_v39 = vpop.permute.xlu1 %10196  ;;  %v8155_v29 = vpack.c.bf16 %v6057_v56, %v6056_v58  ;;  %v6149_v54 = vsel %vm97_vm3, %v10129_v49, %v17568_v59  ;;  %v17573_v57 = vunpack.i.l.bf16 %v16133_v34  ;;  %v6150_v2 = vsel %vm97_vm3, %v17570_v40, %v10068_v24  ;;  %v6685_v59 = vld [vmem:[%s17219_s5] sm:$0xff] }
 0x897   :  { %v18112_v37 = vunpack.i.h.bf16 %v16165_v23  ;;  %v17571_v58 = vunpack.i.h.bf16 %v15933_v10  ;;  %v17572_v56 = vunpack.i.l.bf16 %v15933_v10  ;;  %v8161_v3 = vpack.c.bf16 %v6149_v54, %v6148_v55 }
 0x898   :  { %10506 = vrot.lane.b32.xlu1 %v15700_v51, %s10520_s16 }
 0x899   :  { %v6151_v15 = vsel %vm97_vm3, %v18112_v37, %v10069_v30  ;;  %8156 = vmatpush1.bf16.msra.mxu0 %v8155_v29  ;;  %v6242_v51 = vsel %vm122_vm2, %v10073_v5, %v17572_v56  ;;  %v6243_v30 = vsel %vm122_vm2, %v10074_v48, %v17571_v58  ;;  %v6152_v29 = vsel %vm97_vm3, %v17573_v57, %v10128_v22 }
 0x89a   :  { %8158 = vmatprep.subr.bf16.mxu0 %v8157_v9  ;;  %v16222_v25 = vpop.permute.xlu0 %10251  ;;  %v16224_v24 = vpop.permute.xlu1 %10211  ;;  %v8159_v40 = vpack.c.bf16 %v6151_v15, %v6150_v2  ;;  %v18113_v9 = vunpack.i.h.bf16 %v16133_v34  ;;  %v17574_v2 = vunpack.i.l.bf16 %v16194_v39  ;;  %v10134_v58 = vunpack.i.h.bf16 %v15965_v32 }
 0x89b   :  { %v8165_v57 = vpack.c.bf16 %v6243_v30, %v6242_v51  ;;  %v17577_v37 = vunpack.i.h.bf16 %v16192_v61  ;;  %v17578_v15 = vunpack.i.l.bf16 %v16192_v61 }
 0x89c   :  { %v6153_v55 = vsel %vm97_vm3, %v18113_v9, %v10129_v49  ;;  %6904 = vperm.xlu1 %8594, %v6685_v59   ;;  %v10133_v49 = vunpack.i.l.bf16 %v15965_v32  ;;  %v18115_v32 = vunpack.i.l.bf16 %v16083_v62 }
 0x89d   :  { %8160 = vmatpush1.bf16.msra.mxu0 %v8159_v40  ;;  %v8163_v9 = vpack.c.bf16 %v6153_v55, %v6152_v29  ;;  %v6246_v40 = vsel %vm122_vm2, %v17574_v2, %v10073_v5  ;;  %v18116_v29 = vunpack.i.h.bf16 %v16083_v62  ;;  %v18117_v55 = vunpack.i.l.bf16 %v16037_v0 }
 0x89e   :  { %8162 = vmatprep.subr.bf16.mxu0 %v8161_v3  ;;  %v16247_v56 = vpop.permute.xlu0 %10261  ;;  %v16249_v22 = vpop.permute.xlu1 %10226  ;;  %v18114_v3 = vunpack.i.h.bf16 %v16194_v39 }
 0x89f   :  { %v17576_v54 = vunpack.i.h.bf16 %v16249_v22  ;;  %v17575_v59 = vunpack.i.l.bf16 %v16249_v22 }
 0x8a0   :  { %v6247_v51 = vsel %vm122_vm2, %v18114_v3, %v10074_v48  ;;  %v6244_v48 = vsel %vm122_vm2, %v10133_v49, %v18117_v55  ;;  %v6249_v55 = vsel %vm122_vm2, %v17577_v37, %v10134_v58  ;;  %v18120_v37 = vunpack.i.l.bf16 %v16011_v50 }
 0x8a1   :  { %8164 = vmatpush1.bf16.msra.mxu0 %v8163_v9  ;;  %v5946_v30 = vsel %vm47_vm0, %v18115_v32, %v17575_v59  ;;  %v5947_v5 = vsel %vm47_vm0, %v18116_v29, %v17576_v54  ;;  %v18118_v9 = vunpack.i.h.bf16 %v16037_v0  ;;  %v8167_v62 = vpack.c.bf16 %v6247_v51, %v6246_v40 }
 0x8a2   :  { %8166 = vmatprep.subr.bf16.mxu0 %v8165_v57  ;;  %v16284_v2 = vpop.permute.xlu0 %10271  ;;  %v16286_v32 = vpop.permute.xlu1 %10241  ;;  %v8213_v59 = vpack.c.bf16 %v5947_v5, %v5946_v30  ;;  %v6248_v29 = vsel %vm122_vm2, %v17578_v15, %v10133_v49  ;;  %v18119_v57 = vpack.c.bf16 %v16126_v11, %v16118_v42  ;;  %v17585_v40 = vunpack.i.l.bf16 %v15874_v60 }
 0x8a3   :  { %v6245_v3 = vsel %vm122_vm2, %v10134_v58, %v18118_v9  ;;  %v10108_v9 = vunpack.i.l.bf16 %v15975_v31  ;;  %v8171_v58 = vpack.c.bf16 %v6249_v55, %v6248_v29  ;;  %v10109_v42 = vunpack.i.h.bf16 %v15975_v31 }
 0x8a4   :  { %8214 = vmatprep.subr.bf16.mxu1 %v8213_v59  ;;  %v8169_v54 = vpack.c.bf16 %v6245_v3, %v6244_v48  ;;  %v17583_v3 = vunpack.i.l.bf16 %v15959_v45  ;;  %v17579_v11 = vunpack.i.h.bf16 %v16247_v56  ;;  %v18121_v29 = vunpack.i.h.bf16 %v16011_v50 }
 0x8a5   :  { %8168 = vmatpush1.bf16.msra.mxu0 %v8167_v62  ;;  %8216 = vmatpush1.bf16.msra.mxu1 %v18119_v57  ;;  %v17580_v62 = vunpack.i.l.bf16 %v16247_v56  ;;  %v10169_v57 = vunpack.i.h.bf16 %v16009_v14  ;;  %v18122_v51 = vpack.c.bf16 %v15610_v52, %v15607_v44  ;;  %v17595_v31 = vunpack.i.h.bf16 %v15901_v43 }
 0x8a6   :  { %8170 = vmatprep.subr.bf16.mxu0 %v8169_v54  ;;  %v16302_v49 = vpop.permute.xlu0 %10281  ;;  %v10257_v5 = vpop.permute.xlu1 %10256  ;;  %v10168_v54 = vunpack.i.l.bf16 %v16009_v14  ;;  %v6362_v44 = vsel %vm153_vm4, %v17583_v3, %v10108_v9  ;;  %v18126_v3 = vunpack.i.l.bf16 %v15893_v7 }
 0x8a7   :  { %v10259_v59 = vunpack.i.h.bf16 %v10257_v5  ;;  %v10258_v48 = vunpack.i.l.bf16 %v10257_v5  ;;  %v17582_v5 = vunpack.i.h.bf16 %v15959_v45 }
 0x8a9   :  { %v5952_v15 = vsel %vm47_vm0, %v18120_v37, %v10258_v48  ;;  %v5953_v55 = vsel %vm47_vm0, %v18121_v29, %v10259_v59  ;;  %8172 = vmatpush1.bf16.msra.mxu0 %v8171_v58  ;;  %v5948_v50 = vsel %vm47_vm0, %v10258_v48, %v17580_v62  ;;  %v5949_v37 = vsel %vm47_vm0, %v10259_v59, %v17579_v11 }
 0x8aa   :  { %8174 = vmatprep.subr.bf16.mxu0 %v18122_v51  ;;  %v16324_v14 = vpop.permute.xlu0 %10291  ;;  %v16326_v30 = vpop.permute.xlu1 %10266  ;;  %v17584_v58 = vunpack.i.h.bf16 %v15973_v12  ;;  %v17581_v29 = vunpack.i.l.bf16 %v15973_v12  ;;  %v8219_v52 = vpack.c.bf16 %v5953_v55, %v5952_v15  ;;  %v6363_v51 = vsel %vm153_vm4, %v17582_v5, %v10109_v42 }
 0x8ab   :  { %v8217_v48 = vpack.c.bf16 %v5949_v37, %v5948_v50  ;;  %v6358_v59 = vsel %vm153_vm4, %v10108_v9, %v17585_v40  ;;  %v18123_v11 = vunpack.i.h.bf16 %v15874_v60  ;;  %v17594_v15 = vunpack.i.l.bf16 %v15901_v43 }
 0x8ac   :  { %v16360_v55 = vsel %vm153_vm4, %v17581_v29, %v10168_v54  ;;  %v6365_v9 = vsel %vm153_vm4, %v17584_v58, %v10169_v57  ;;  %v18124_v50 = vpack.c.bf16 %v15602_v17, %v15599_v35  ;;  %v18125_v37 = vpack.c.bf16 %v15634_v46, %v15631_v26 }
 0x8ad   :  { %v6359_v62 = vsel %vm153_vm4, %v10109_v42, %v18123_v11  ;;  %v10174_v42 = vunpack.i.h.bf16 %v16019_v21  ;;  %v10173_v11 = vunpack.i.l.bf16 %v16019_v21  ;;  %8218 = vmatprep.subr.bf16.mxu1 %v8217_v48  ;;  %v6360_v58 = vsel %vm153_vm4, %v10168_v54, %v18126_v3 }
 0x8ae   :  { %8176 = vmatpush1.bf16.msra.mxu0 %v18124_v50  ;;  %v16374_v29 = vpop.permute.xlu0 %10301  ;;  %v16376_v5 = vpop.permute.xlu1 %10276  ;;  %v18127_v35 = vunpack.i.h.bf16 %v15893_v7  ;;  %v17588_v21 = vunpack.i.h.bf16 %v15967_v63  ;;  %v17589_v48 = vunpack.i.l.bf16 %v15967_v63  ;;  %v8183_v26 = vpack.c.bf16 %v6363_v51, %v6362_v44  ;;  %8220 = vmatpush1.bf16.msra.mxu1 %v8219_v52 }
 0x8af   :  { %8178 = vmatprep.subr.bf16.mxu0 %v18125_v37  ;;  %v8181_v46 = vpack.c.bf16 %v6359_v62, %v6358_v59  ;;  %v17586_v50 = vunpack.i.h.bf16 %v15981_v8  ;;  %v17587_v37 = vunpack.i.l.bf16 %v15981_v8  ;;  %v10284_v40 = vunpack.i.h.bf16 %v16302_v49 }
 0x8b0   :  { %v6361_v17 = vsel %vm153_vm4, %v10169_v57, %v18127_v35  ;;  %v10283_v3 = vunpack.i.l.bf16 %v16302_v49  ;;  %v18128_v54 = vunpack.i.l.bf16 %v15983_v33  ;;  %v18129_v44 = vunpack.i.h.bf16 %v15983_v33 }
 0x8b1   :  { %v8187_v52 = vpack.c.bf16 %v6365_v9, %v16360_v55  ;;  %v18130_v49 = vpack.c.bf16 %v15626_v20, %v15623_v1  ;;  %v8185_v51 = vpack.c.bf16 %v6361_v17, %v6360_v58  ;;  %v16416_v59 = vsel %vm178_vm6, %v17587_v37, %v10173_v11 }
 0x8b2   :  { %v16398_v57 = vsel %vm178_vm6, %v17589_v48, %v18128_v54  ;;  %v16406_v62 = vsel %vm178_vm6, %v17588_v21, %v18129_v44  ;;  %v16422_v33 = vsel %vm178_vm6, %v17586_v50, %v10174_v42  ;;  %v10184_v35 = vunpack.i.h.bf16 %v16085_v13  ;;  %v16426_v1 = vpop.permute.xlu0 %10311  ;;  %v16428_v20 = vpop.permute.xlu1 %10286 }
 0x8b3   :  { %8180 = vmatpush1.bf16.msra.mxu0 %v18130_v49  ;;  %v10183_v55 = vunpack.i.l.bf16 %v16085_v13  ;;  %v17592_v9 = vunpack.i.l.bf16 %v16222_v25  ;;  %v17597_v17 = vunpack.i.h.bf16 %v16428_v20  ;;  %v17590_v54 = vunpack.i.l.bf16 %v16428_v20 }
 0x8b4   :  { %8182 = vmatprep.subr.bf16.mxu0 %v8181_v46  ;;  %v18131_v50 = vunpack.i.l.bf16 %v15903_v47  ;;  %v18132_v46 = vunpack.i.h.bf16 %v15903_v47  ;;  %v17591_v21 = vunpack.i.h.bf16 %v16035_v36  ;;  %v17593_v48 = vunpack.i.l.bf16 %v16035_v36 }
 0x8b5   :  { %v6042_v44 = vsel %vm72_vm1, %v10283_v3, %v17590_v54  ;;  %v10239_v47 = vunpack.i.h.bf16 %v16163_v18  ;;  %v10238_v49 = vunpack.i.l.bf16 %v16163_v18 }
 0x8b6   :  { %v6046_v13 = vsel %vm72_vm1, %v18131_v50, %v10283_v3  ;;  %v6047_v37 = vsel %vm72_vm1, %v18132_v46, %v10284_v40  ;;  %v6043_v50 = vsel %vm72_vm1, %v10284_v40, %v17597_v17  ;;  %v16456_v46 = vpop.permute.xlu0 %10321  ;;  %v16458_v58 = vpop.permute.xlu1 %10296  ;;  %v6456_v3 = vsel %vm178_vm6, %v10173_v11, %v17594_v15 }
 0x8b7   :  { %8184 = vmatpush1.bf16.msra.mxu0 %v8183_v26  ;;  %v8221_v26 = vpack.c.bf16 %v6043_v50, %v6042_v44  ;;  %v8223_v54 = vpack.c.bf16 %v6047_v37, %v6046_v13  ;;  %v6457_v40 = vsel %vm178_vm6, %v10174_v42, %v17595_v31  ;;  %v6550_v18 = vsel %vm203_vm5, %v10183_v55, %v17593_v48 }
 0x8b8   :  { %8186 = vmatprep.subr.bf16.mxu0 %v8185_v51  ;;  %v6551_v51 = vsel %vm203_vm5, %v10184_v35, %v17591_v21  ;;  %v16480_v11 = vsel %vm203_vm5, %v17592_v9, %v10238_v49  ;;  %v18133_v37 = vunpack.i.h.bf16 %v16222_v25  ;;  %v18134_v44 = vunpack.i.l.bf16 %v16224_v24 }
 0x8b9   :  { %v18135_v50 = vunpack.i.h.bf16 %v16224_v24  ;;  %8222 = vmatprep.subr.bf16.mxu1 %v8221_v26  ;;  %v8191_v9 = vpack.c.bf16 %v16406_v62, %v16398_v57  ;;  %v17596_v48 = vunpack.i.l.bf16 %v16286_v32  ;;  %v8193_v26 = vpack.c.bf16 %v6457_v40, %v6456_v3 }
 0x8ba   :  { %v16486_v42 = vsel %vm203_vm5, %v18133_v37, %v10239_v47  ;;  %v16492_v13 = vsel %vm203_vm5, %v18134_v44, %v10183_v55  ;;  %8224 = vmatpush1.bf16.msra.mxu1 %v8223_v54  ;;  %v8195_v37 = vpack.c.bf16 %v16422_v33, %v16416_v59  ;;  %v17599_v55 = vunpack.i.h.bf16 %v16286_v32  ;;  %v16509_v15 = vpop.permute.xlu0 %10331 }
 0x8bb   :  { %v16498_v21 = vsel %vm203_vm5, %v18135_v50, %v10184_v35  ;;  %8188 = vmatpush1.bf16.msra.mxu0 %v8187_v52  ;;  %v18136_v44 = vpack.c.bf16 %v16007_v16, %v15999_v27  ;;  %v10307_v35 = vpop.permute.xlu1 %10306  ;;  %v8197_v50 = vpack.c.bf16 %v6551_v51, %v6550_v18  ;;  %v8203_v57 = vpack.c.bf16 %v16486_v42, %v16480_v11 }
 0x8bc   :  { %v8199_v62 = vpack.c.bf16 %v16498_v21, %v16492_v13  ;;  %v10309_v52 = vunpack.i.h.bf16 %v10307_v35  ;;  %v10308_v54 = vunpack.i.l.bf16 %v10307_v35  ;;  %v17600_v59 = vunpack.i.h.bf16 %v16426_v1 }
 0x8bd   :  { %8190 = vmatprep.subr.bf16.mxu0 %v18136_v44  ;;  %v17598_v33 = vunpack.i.l.bf16 %v16426_v1  ;;  %v17602_v27 = vunpack.i.h.bf16 %v16509_v15  ;;  %v17604_v16 = vunpack.i.l.bf16 %v16509_v15  ;;  %v17603_v44 = vunpack.i.h.bf16 %v16284_v2 }
 0x8be   :  { %v18137_v3 = vunpack.i.l.bf16 %v16021_v53  ;;  %v18138_v18 = vunpack.i.h.bf16 %v16021_v53  ;;  %v6552_v51 = vsel %vm203_vm5, %v10238_v49, %v17596_v48  ;;  %v10269_v13 = vunpack.i.h.bf16 %v16326_v30  ;;  %v16533_v35 = vpop.permute.xlu0 %10341 }
 0x8bf   :  { %8192 = vmatpush1.bf16.msra.mxu0 %v8191_v9  ;;  %v16535_v31 = vpop.permute.xlu1 %10316  ;;  %v6044_v53 = vsel %vm72_vm1, %v10308_v54, %v17598_v33  ;;  %v6045_v9 = vsel %vm72_vm1, %v10309_v52, %v17600_v59  ;;  %v6553_v49 = vsel %vm203_vm5, %v10239_v47, %v17599_v55  ;;  %v17601_v17 = vunpack.i.l.bf16 %v16284_v2 }
 0x8c0   :  { %v6048_v40 = vsel %vm72_vm1, %v18137_v3, %v10308_v54  ;;  %v6049_v21 = vsel %vm72_vm1, %v18138_v18, %v10309_v52  ;;  %8194 = vmatprep.subr.bf16.mxu0 %v8193_v26  ;;  %v10268_v26 = vunpack.i.l.bf16 %v16326_v30  ;;  %v17605_v18 = vunpack.i.h.bf16 %v16535_v31 }
 0x8c1   :  { %v8227_v3 = vpack.c.bf16 %v6049_v21, %v6048_v40  ;;  %v17606_v48 = vunpack.i.l.bf16 %v16535_v31  ;;  %v8225_v54 = vpack.c.bf16 %v6045_v9, %v6044_v53  ;;  %v18139_v33 = vunpack.i.l.bf16 %v16027_v4 }
 0x8c2   :  { %v18140_v47 = vunpack.i.h.bf16 %v16027_v4  ;;  %v10324_v40 = vunpack.i.h.bf16 %v16456_v46  ;;  %v10323_v21 = vunpack.i.l.bf16 %v16456_v46  ;;  %v18141_v53 = vunpack.i.l.bf16 %v16051_v38  ;;  %v16587_v46 = vpop.permute.xlu0 %10351 }
 0x8c3   :  { %v16559_v52 = vsel %vm47_vm0, %v17604_v16, %v18139_v33  ;;  %8196 = vmatpush1.bf16.msra.mxu0 %v8195_v37  ;;  %v18142_v4 = vunpack.i.h.bf16 %v16051_v38  ;;  %8226 = vmatprep.subr.bf16.mxu1 %v8225_v54  ;;  %v16589_v37 = vpop.permute.xlu1 %10326  ;;  %v17612_v54 = vunpack.i.l.bf16 %v16376_v5  ;;  %v10344_v42 = vunpack.i.h.bf16 %v16533_v35 }
 0x8c4   :  { %v16567_v30 = vsel %vm47_vm0, %v17602_v27, %v18140_v47  ;;  %v16577_v33 = vsel %vm47_vm0, %v17606_v48, %v18141_v53  ;;  %8198 = vmatprep.subr.bf16.mxu0 %v8197_v50  ;;  %v8201_v47 = vpack.c.bf16 %v6553_v49, %v6552_v51  ;;  %8228 = vmatpush1.bf16.msra.mxu1 %v8227_v3  ;;  %v17608_v38 = vunpack.i.h.bf16 %v16589_v37 }
 0x8c5   :  { %v16585_v9 = vsel %vm47_vm0, %v17605_v18, %v18142_v4  ;;  %v17607_v59 = vunpack.i.l.bf16 %v16589_v37  ;;  %v6646_v50 = vsel %vm228_vm7, %v10268_v26, %v17601_v17  ;;  %v6647_v51 = vsel %vm228_vm7, %v10269_v13, %v17603_v44 }
 0x8c6   :  { %v17611_v49 = vunpack.i.h.bf16 %v16376_v5  ;;  %v18143_v53 = vunpack.i.l.bf16 %v15909_v41  ;;  %v18144_v17 = vunpack.i.h.bf16 %v15909_v41  ;;  %v6139_v16 = vsel %vm97_vm3, %v10324_v40, %v17608_v38  ;;  %v16628_v48 = vpop.permute.xlu0 %10361 }
 0x8c7   :  { %8200 = vmatpush1.bf16.msra.mxu0 %v8199_v62  ;;  %v6138_v44 = vsel %vm97_vm3, %v10323_v21, %v17607_v59  ;;  %v10294_v18 = vunpack.i.h.bf16 %v16324_v14  ;;  %v17609_v41 = vunpack.i.l.bf16 %v16374_v29  ;;  %v17610_v3 = vunpack.i.h.bf16 %v16374_v29 }
 0x8c8   :  { %v6142_v55 = vsel %vm97_vm3, %v18143_v53, %v10323_v21  ;;  %v6143_v27 = vsel %vm97_vm3, %v18144_v17, %v10324_v40  ;;  %v10293_v53 = vunpack.i.l.bf16 %v16324_v14  ;;  %8202 = vmatprep.subr.bf16.mxu0 %v8201_v47  ;;  %v10337_v17 = vpop.permute.xlu1 %10336  ;;  %v8229_v62 = vpack.c.bf16 %v6139_v16, %v6138_v44 }
 0x8c9   :  { %v10339_v4 = vunpack.i.h.bf16 %v10337_v17  ;;  %v10338_v21 = vunpack.i.l.bf16 %v10337_v17  ;;  %v8205_v59 = vpack.c.bf16 %v6647_v51, %v6646_v50  ;;  %v6650_v40 = vsel %vm228_vm7, %v17612_v54, %v10268_v26 }
 0x8ca   :  { %v6651_v14 = vsel %vm228_vm7, %v17611_v49, %v10269_v13  ;;  %v8231_v47 = vpack.c.bf16 %v6143_v27, %v6142_v55  ;;  %v10343_v38 = vunpack.i.l.bf16 %v16533_v35  ;;  %8230 = vmatprep.subr.bf16.mxu1 %v8229_v62  ;;  %v18145_v16 = vunpack.i.l.bf16 %v16029_v28  ;;  %v16654_v55 = vld [vmem:[%s17218_s3] sm:$0xff] }
 0x8cb   :  { %v18146_v50 = vunpack.i.h.bf16 %v16029_v28  ;;  %8204 = vmatpush1.bf16.msra.mxu0 %v8203_v57  ;;  %v18147_v27 = vunpack.i.l.bf16 %v16458_v58  ;;  %v18148_v26 = vunpack.i.h.bf16 %v16458_v58  ;;  %v6652_v11 = vsel %vm228_vm7, %v17609_v41, %v10293_v53  ;;  %v16669_v57 = vpop.permute.xlu0 %10371 }
 0x8cc   :  { %v6144_v44 = vsel %vm97_vm3, %v18145_v16, %v10338_v21  ;;  %8206 = vmatprep.subr.bf16.mxu0 %v8205_v59  ;;  %8232 = vmatpush1.bf16.msra.mxu1 %v8231_v47  ;;  %v16671_v17 = vpop.permute.xlu1 %10346  ;;  %v6140_v62 = vsel %vm97_vm3, %v10338_v21, %v10343_v38  ;;  %v6653_v16 = vsel %vm228_vm7, %v17610_v3, %v10294_v18  ;;  %v10354_v21 = vunpack.i.h.bf16 %v16587_v46 }
 0x8cd   :  { %v6145_v51 = vsel %vm97_vm3, %v18146_v50, %v10339_v4  ;;  %v6648_v13 = vsel %vm228_vm7, %v10293_v53, %v18147_v27  ;;  %v6649_v28 = vsel %vm228_vm7, %v10294_v18, %v18148_v26  ;;  %v8207_v50 = vpack.c.bf16 %v6651_v14, %v6650_v40 }
 0x8ce   :  { %v10349_v53 = vunpack.i.h.bf16 %v16671_v17  ;;  %v10348_v59 = vunpack.i.l.bf16 %v16671_v17  ;;  %v8235_v47 = vpack.c.bf16 %v6145_v51, %v6144_v44  ;;  %6975 = vmatmul.mubr.f32.vlgmr.msra.gmra.mrb[48].mxu0 %v16654_v55  ;;  %v6141_v27 = vsel %vm97_vm3, %v10339_v4, %v10344_v42  ;;  %v18150_v51 = vld [vmem:[#allocation20_spill] sm:$0xff] }
 0x8cf   :  { %v8209_v26 = vpack.c.bf16 %v6649_v28, %v6648_v13  ;;  %v10353_v41 = vunpack.i.l.bf16 %v16587_v46  ;;  %8208 = vmatpush1.bf16.msra.mxu0 %v8207_v50  ;;  %v8233_v18 = vpack.c.bf16 %v6141_v27, %v6140_v62  ;;  %v18149_v40 = vmov 0.0   ;;  %v16691_v17 = vpop.permute.xlu0 %10381 }
 0x8d0   :  { %7045 = vmatprep.mubr.f32.mxu0 %v18149_v40  ;;  %v8211_v14 = vpack.c.bf16 %v6653_v16, %v6652_v11  ;;  %v16693_v44 = vpop.permute.xlu1 %10356  ;;  %v18151_v3 = vunpack.i.l.bf16 %v18150_v51  ;;  %v18152_v13 = vunpack.i.h.bf16 %v18150_v51  ;;  %v18153_v28 = vunpack.i.l.bf16 %v16535_v31 }
 0x8d1   :  { %8210 = vmatprep.subr.bf16.mxu0 %v8209_v26  ;;  %v18154_v62 = vunpack.i.l.bf16 %v16249_v22  ;;  %v18155_v16 = vunpack.i.h.bf16 %v16535_v31  ;;  %v18156_v50 = vunpack.i.h.bf16 %v16249_v22  ;;  %8234 = vmatprep.subr.bf16.mxu1 %v8233_v18  ;;  %v10358_v26 = vunpack.i.l.bf16 %v16693_v44  ;;  %v16728_v31 = vld [vmem:[%s17218_s3 + $0x10] sm:$0xff] }
 0x8d2   :  { %v6034_v4 = vsel %vm72_vm1, %v10348_v59, %v18151_v3  ;;  %v6035_v46 = vsel %vm72_vm1, %v10349_v53, %v18152_v13  ;;  %v17613_v3 = vunpack.i.h.bf16 %v16693_v44  ;;  %8236 = vmatpush1.bf16.msra.mxu1 %v8235_v47  ;;  %v18157_v13 = vunpack.i.l.bf16 %v15933_v10 }
 0x8d3   :  { %v5942_v11 = vsel %vm47_vm0, %v18154_v62, %v18153_v28  ;;  %v5943_v27 = vsel %vm47_vm0, %v18156_v50, %v18155_v16  ;;  %v8293_v51 = vpack.c.bf16 %v6035_v46, %v6034_v4  ;;  %v18158_v28 = vunpack.i.h.bf16 %v15933_v10  ;;  %8212 = vmatpush1.bf16.msra.mxu0 %v8211_v14 }
 0x8d4   :  { %v6238_v49 = vsel %vm122_vm2, %v18157_v13, %v10353_v41  ;;  %v6234_v47 = vsel %vm122_vm2, %v10353_v41, %v10358_v26  ;;  %v6235_v18 = vsel %vm122_vm2, %v10354_v21, %v17613_v3  ;;  %v18159_v10 = vunpack.i.l.bf16 %v16509_v15  ;;  %v10367_v13 = vpop.permute.xlu1 %10366 }
 0x8d5   :  { %v6239_v22 = vsel %vm122_vm2, %v18158_v28, %v10354_v21  ;;  %v18160_v4 = vunpack.i.l.bf16 %v16247_v56  ;;  %v18161_v46 = vunpack.i.h.bf16 %v16509_v15  ;;  %v18162_v62 = vunpack.i.h.bf16 %v16247_v56  ;;  %v16753_v21 = vpop.permute.xlu0 %10391 }
 0x8d6   :  { %v8287_v41 = vpack.c.bf16 %v5943_v27, %v5942_v11  ;;  %v18163_v50 = vpack.c.bf16 %v16585_v9, %v16577_v33  ;;  %v8237_v28 = vpack.c.bf16 %v6235_v18, %v6234_v47  ;;  %v10364_v54 = vunpack.i.h.bf16 %v16628_v48  ;;  %7442 = vmatmul.mubr.msk.f32.vlgmr.msra.gmra.mrb[48].mxu0 %vm1799_vm9, %v16728_v31 }
 0x8d7   :  { %v5944_v14 = vsel %vm47_vm0, %v18160_v4, %v18159_v10  ;;  %v5945_v16 = vsel %vm47_vm0, %v18162_v62, %v18161_v46  ;;  %v10363_v10 = vunpack.i.l.bf16 %v16628_v48  ;;  %v10369_v4 = vunpack.i.h.bf16 %v10367_v13 }
 0x8d8   :  { %8286 = vmatprep.subr.bf16.mxu0 %v18163_v50  ;;  %v10368_v15 = vunpack.i.l.bf16 %v10367_v13  ;;  %v8239_v3 = vpack.c.bf16 %v6239_v22, %v6238_v49  ;;  %8238 = vmatprep.subr.bf16.mxu1 %v8237_v28  ;;  %v10373_v56 = vunpack.i.l.bf16 %v16669_v57  ;;  %v8291_v33 = vpack.c.bf16 %v5945_v16, %v5944_v14  ;;  %v10377_v18 = vpop.permute.xlu1 %10376  ;;  %v18170_v16 = vld [vmem:[#allocation24_spill] sm:$0xff] }
 0x8d9   :  { %8288 = vmatpush1.bf16.msra.mxu0 %v8287_v41  ;;  %v10374_v9 = vunpack.i.h.bf16 %v16669_v57  ;;  %v18164_v11 = vunpack.i.l.bf16 %v16037_v0  ;;  %v18165_v48 = vunpack.i.h.bf16 %v16037_v0  ;;  %v18166_v22 = vpack.c.bf16 %v16567_v30, %v16559_v52  ;;  %v16772_v47 = vpop.permute.xlu0 %10401  ;;  %7258 = vmatprep.mubr.f32.mxu0 %v18170_v16 }
 0x8da   :  { %8240 = vmatpush1.bf16.msra.mxu1 %v8239_v3  ;;  %v18167_v14 = vunpack.i.l.bf16 %v16426_v1  ;;  %v18168_v62 = vunpack.i.h.bf16 %v16426_v1  ;;  %v6236_v3 = vsel %vm122_vm2, %v10368_v15, %v10373_v56  ;;  %v18169_v52 = vunpack.i.l.bf16 %v16049_v6 }
 0x8db   :  { %v6240_v27 = vsel %vm122_vm2, %v18164_v11, %v10368_v15  ;;  %v6241_v49 = vsel %vm122_vm2, %v18165_v48, %v10369_v4  ;;  %8290 = vmatprep.subr.bf16.mxu0 %v18166_v22  ;;  %v18171_v41 = vunpack.i.l.bf16 %v16428_v20  ;;  %v18172_v50 = vunpack.i.h.bf16 %v16428_v20 }
 0x8dc   :  { %v6040_v46 = vsel %vm72_vm1, %v18167_v14, %v10363_v10  ;;  %v6041_v0 = vsel %vm72_vm1, %v18168_v62, %v10364_v54  ;;  %v6036_v30 = vsel %vm72_vm1, %v10363_v10, %v18169_v52  ;;  %v6237_v28 = vsel %vm122_vm2, %v10369_v4, %v10374_v9  ;;  %v16811_v62 = vpop.permute.xlu1 %10386 }
 0x8dd   :  { %v6038_v1 = vsel %vm72_vm1, %v18171_v41, %v10348_v59  ;;  %v6039_v13 = vsel %vm72_vm1, %v18172_v50, %v10349_v53  ;;  %v18173_v15 = vunpack.i.h.bf16 %v16049_v6  ;;  %v10383_v11 = vunpack.i.l.bf16 %v16691_v17  ;;  %8292 = vmatpush1.bf16.msra.mxu0 %v8291_v33  ;;  %v16809_v53 = vpop.permute.xlu0 %10411 }
 0x8de   :  { %v8243_v48 = vpack.c.bf16 %v6241_v49, %v6240_v27  ;;  %v10379_v22 = vunpack.i.h.bf16 %v10377_v18  ;;  %v10378_v59 = vunpack.i.l.bf16 %v10377_v18  ;;  %v10384_v20 = vunpack.i.h.bf16 %v16691_v17  ;;  %8294 = vmatprep.subr.bf16.mxu0 %v8293_v51  ;;  %v18177_v18 = vld [vmem:[#allocation22_spill] sm:$0xff] }
 0x8df   :  { %v6037_v10 = vsel %vm72_vm1, %v10364_v54, %v18173_v15  ;;  %v8241_v14 = vpack.c.bf16 %v6237_v28, %v6236_v3  ;;  %v8295_v4 = vpack.c.bf16 %v6039_v13, %v6038_v1  ;;  %v8299_v52 = vpack.c.bf16 %v6041_v0, %v6040_v46 }
 0x8e0   :  { %v8297_v6 = vpack.c.bf16 %v6037_v10, %v6036_v30  ;;  %v16817_v54 = vsel %vm97_vm3, %v10343_v38, %v10383_v11  ;;  %v18174_v17 = vunpack.i.l.bf16 %v16165_v23  ;;  %v18175_v33 = vunpack.i.h.bf16 %v16165_v23  ;;  %v18176_v38 = vld [vmem:[#allocation10_spill] sm:$0xff]  ;;  %v16838_v3 = vpop.permute.xlu1 %10396 }
 0x8e1   :  { %8242 = vmatprep.subr.bf16.mxu1 %v8241_v14  ;;  %8296 = vmatpush1.bf16.msra.mxu0 %v8295_v4  ;;  %v16831_v49 = vsel %vm97_vm3, %v10344_v42, %v10384_v20  ;;  %v18178_v46 = vpack.c.bf16 %v18176_v38, %v18177_v18  ;;  %v16836_v0 = vpop.permute.xlu0 %10421  ;;  %v18179_v23 = vunpack.i.l.bf16 %v16133_v34  ;;  %v18180_v35 = vunpack.i.h.bf16 %v16133_v34  ;;  %v18186_v4 = vld [vmem:[#allocation12_spill] sm:$0xff] }
 0x8e2   :  { %8244 = vmatpush1.bf16.msra.mxu1 %v8243_v48  ;;  %v6130_v51 = vsel %vm97_vm3, %v10378_v59, %v18174_v17  ;;  %v6131_v27 = vsel %vm97_vm3, %v10379_v22, %v18175_v33  ;;  %8298 = vmatprep.subr.bf16.mxu0 %v8297_v6  ;;  %v10394_v16 = vunpack.i.h.bf16 %v16753_v21  ;;  %v10393_v41 = vunpack.i.l.bf16 %v16753_v21  ;;  %v18183_v21 = vld [vmem:[#allocation15_spill] sm:$0xff]  ;;  %v18187_v6 = vld [vmem:[#allocation26_spill] sm:$0xff] }
 0x8e3   :  { %8246 = vmatprep.subr.bf16.mxu1 %v18178_v46  ;;  %v6132_v30 = vsel %vm97_vm3, %v10383_v11, %v18179_v23  ;;  %v6133_v42 = vsel %vm97_vm3, %v10384_v20, %v18180_v35  ;;  %v10399_v1 = vunpack.i.h.bf16 %v16838_v3  ;;  %v10398_v50 = vunpack.i.l.bf16 %v16838_v3  ;;  %v18184_v20 = vld [vmem:[#allocation25_spill] sm:$0xff] }
 0x8e4   :  { %v18181_v13 = vunpack.i.l.bf16 %v16589_v37  ;;  %v18182_v15 = vunpack.i.h.bf16 %v16589_v37  ;;  %v8301_v10 = vpack.c.bf16 %v6131_v27, %v6130_v51  ;;  %v10389_v11 = vunpack.i.h.bf16 %v16811_v62  ;;  %v10407_v51 = vpop.permute.xlu1 %10406 }
 0x8e5   :  { %v10388_v48 = vunpack.i.l.bf16 %v16811_v62  ;;  %v18185_v14 = vpack.c.bf16 %v18183_v21, %v18184_v20  ;;  %8300 = vmatpush1.bf16.msra.mxu0 %v8299_v52  ;;  %v6351_v37 = vsel %vm153_vm4, %v10394_v16, %v10399_v1  ;;  %v10403_v62 = vunpack.i.l.bf16 %v16772_v47  ;;  %v16879_v52 = vpop.permute.xlu0 %10431 }
 0x8e6   :  { %v6134_v28 = vsel %vm97_vm3, %v18181_v13, %v10378_v59  ;;  %v6135_v34 = vsel %vm97_vm3, %v18182_v15, %v10379_v22  ;;  %v6350_v59 = vsel %vm153_vm4, %v10393_v41, %v10398_v50  ;;  %v8307_v22 = vpack.c.bf16 %v16831_v49, %v16817_v54  ;;  %8302 = vmatprep.subr.bf16.mxu0 %v8301_v10 }
 0x8e7   :  { %8248 = vmatpush1.bf16.msra.mxu1 %v18185_v14  ;;  %v18188_v17 = vpack.c.bf16 %v18186_v4, %v18187_v6  ;;  %v8253_v33 = vpack.c.bf16 %v6351_v37, %v6350_v59  ;;  %v8305_v27 = vpack.c.bf16 %v6133_v42, %v6132_v30  ;;  %v8303_v38 = vpack.c.bf16 %v6135_v34, %v6134_v28  ;;  %v18191_v30 = vld [vmem:[#allocation19_spill] sm:$0xff]  ;;  %v18192_v42 = vld [vmem:[#allocation17_spill] sm:$0xff] }
 0x8e8   :  { %v10413_v18 = vunpack.i.l.bf16 %v16809_v53  ;;  %v10409_v46 = vunpack.i.h.bf16 %v10407_v51  ;;  %v10408_v23 = vunpack.i.l.bf16 %v10407_v51  ;;  %v18189_v35 = vunpack.i.h.bf16 %v15874_v60  ;;  %v10417_v4 = vpop.permute.xlu1 %10416 }
 0x8e9   :  { %8250 = vmatprep.subr.bf16.mxu1 %v18188_v17  ;;  %v18190_v49 = vunpack.i.l.bf16 %v15874_v60  ;;  %v10404_v15 = vunpack.i.h.bf16 %v16772_v47  ;;  %v10414_v10 = vunpack.i.h.bf16 %v16809_v53  ;;  %v18193_v28 = vpack.c.bf16 %v18191_v30, %v18192_v42  ;;  %8304 = vmatpush1.bf16.msra.mxu0 %v8303_v38  ;;  %v16915_v37 = vpop.permute.xlu0 %10441  ;;  %v18201_v42 = vld [vmem:[#allocation28_spill] sm:$0xff]  ;;  %v18221_v53 = vld [vmem:[#allocation27_spill] sm:$0xff] }
 0x8ea   :  { %v6355_v54 = vsel %vm153_vm4, %v18189_v35, %v10394_v16  ;;  %v6352_v34 = vsel %vm153_vm4, %v10408_v23, %v10413_v18  ;;  %v18194_v16 = vunpack.i.l.bf16 %v16194_v39  ;;  %v18196_v21 = vunpack.i.h.bf16 %v15893_v7  ;;  %8306 = vmatprep.subr.bf16.mxu0 %v8305_v27 }
 0x8eb   :  { %v6354_v13 = vsel %vm153_vm4, %v18190_v49, %v10393_v41  ;;  %8252 = vmatpush1.bf16.msra.mxu1 %v18193_v28  ;;  %v18195_v41 = vunpack.i.h.bf16 %v16194_v39  ;;  %v18197_v14 = vunpack.i.l.bf16 %v15893_v7  ;;  %v6353_v39 = vsel %vm153_vm4, %v10409_v46, %v10414_v10 }
 0x8ec   :  { %v6226_v60 = vsel %vm122_vm2, %v10388_v48, %v18194_v16  ;;  %v6357_v20 = vsel %vm153_vm4, %v18196_v21, %v10409_v46  ;;  %8254 = vmatprep.subr.bf16.mxu1 %v8253_v33  ;;  %v8255_v6 = vpack.c.bf16 %v6355_v54, %v6354_v13  ;;  %v6232_v17 = vsel %vm122_vm2, %v10373_v56, %v10403_v62 }
 0x8ed   :  { %v6227_v47 = vsel %vm122_vm2, %v10389_v11, %v18195_v41  ;;  %v6356_v59 = vsel %vm153_vm4, %v18197_v14, %v10408_v23  ;;  %v10419_v7 = vunpack.i.h.bf16 %v10417_v4  ;;  %v10418_v51 = vunpack.i.l.bf16 %v10417_v4  ;;  %8308 = vmatpush1.bf16.msra.mxu0 %v8307_v22 }
 0x8ee   :  { %v10423_v38 = vunpack.i.l.bf16 %v16836_v0  ;;  %v8257_v33 = vpack.c.bf16 %v6353_v39, %v6352_v34  ;;  %v18198_v27 = vunpack.i.l.bf16 %v16192_v61  ;;  %v18199_v35 = vunpack.i.h.bf16 %v16192_v61 }
 0x8ef   :  { %v6230_v56 = vsel %vm122_vm2, %v10358_v26, %v10388_v48  ;;  %v18200_v54 = vunpack.i.h.bf16 %v16693_v44  ;;  %v8259_v13 = vpack.c.bf16 %v6357_v20, %v6356_v59  ;;  %8256 = vmatpush1.bf16.msra.mxu1 %v8255_v6  ;;  %v8309_v30 = vpack.c.bf16 %v6227_v47, %v6226_v60  ;;  %v16951_v44 = vpop.permute.xlu0 %10456 }
 0x8f0   :  { %v6228_v23 = vsel %vm122_vm2, %v10403_v62, %v18198_v27  ;;  %v6229_v46 = vsel %vm122_vm2, %v10404_v15, %v18199_v35  ;;  %v10424_v62 = vunpack.i.h.bf16 %v16836_v0  ;;  %v18202_v61 = vunpack.i.h.bf16 %v18201_v42  ;;  %8258 = vmatprep.subr.bf16.mxu1 %v8257_v33 }
 0x8f1   :  { %v6231_v49 = vsel %vm122_vm2, %v18200_v54, %v10389_v11  ;;  %v18203_v34 = vunpack.i.l.bf16 %v18201_v42  ;;  %v10427_v11 = vpop.permute.xlu1 %10426  ;;  %v6446_v48 = vsel %vm178_vm6, %v10418_v51, %v10423_v38  ;;  %v6233_v16 = vsel %vm122_vm2, %v10374_v9, %v10404_v15  ;;  %8310 = vmatprep.subr.bf16.mxu0 %v8309_v30 }
 0x8f2   :  { %v6451_v28 = vsel %vm178_vm6, %v18202_v61, %v10419_v7  ;;  %v10433_v60 = vunpack.i.l.bf16 %v16879_v52  ;;  %v10429_v41 = vunpack.i.h.bf16 %v10427_v11  ;;  %v10428_v47 = vunpack.i.l.bf16 %v10427_v11  ;;  %v18208_v61 = vld [vmem:[#allocation14_spill] sm:$0xff] }
 0x8f3   :  { %v6450_v26 = vsel %vm178_vm6, %v18203_v34, %v10418_v51  ;;  %v8311_v21 = vpack.c.bf16 %v6231_v49, %v6230_v56  ;;  %v10434_v22 = vunpack.i.h.bf16 %v16879_v52  ;;  %v6447_v20 = vsel %vm178_vm6, %v10419_v7, %v10424_v62  ;;  %8260 = vmatpush1.bf16.msra.mxu1 %v8259_v13  ;;  %v10467_v33 = vpop.permute.xlu0 %10466 }
 0x8f4   :  { %v8313_v14 = vpack.c.bf16 %v6229_v46, %v6228_v23  ;;  %v10444_v59 = vunpack.i.h.bf16 %v16915_v37  ;;  %v8263_v57 = vpack.c.bf16 %v6451_v28, %v6450_v26  ;;  %v8261_v4 = vpack.c.bf16 %v6447_v20, %v6446_v48  ;;  %v18209_v28 = vld [vmem:[#allocation13_spill] sm:$0xff] }
 0x8f5   :  { %v6448_v9 = vsel %vm178_vm6, %v10428_v47, %v10433_v60  ;;  %v10443_v15 = vunpack.i.l.bf16 %v16915_v37  ;;  %v18204_v39 = vunpack.i.h.bf16 %v15901_v43  ;;  %v18205_v7 = vunpack.i.l.bf16 %v15901_v43  ;;  %8312 = vmatpush1.bf16.msra.mxu0 %v8311_v21  ;;  %v10437_v27 = vpop.permute.xlu1 %10436 }
 0x8f6   :  { %v6449_v23 = vsel %vm178_vm6, %v10429_v41, %v10434_v22  ;;  %8262 = vmatprep.subr.bf16.mxu1 %v8261_v4  ;;  %8314 = vmatprep.subr.bf16.mxu0 %v8313_v14  ;;  %v8315_v37 = vpack.c.bf16 %v6233_v16, %v6232_v17  ;;  %v10438_v56 = vunpack.i.l.bf16 %v10437_v27  ;;  %v18206_v43 = vunpack.i.l.bf16 %v16035_v36  ;;  %v18211_v14 = vld [vmem:[#allocation16_spill] sm:$0xff] }
 0x8f7   :  { %v6453_v6 = vsel %vm178_vm6, %v18204_v39, %v10429_v41  ;;  %v6452_v51 = vsel %vm178_vm6, %v18205_v7, %v10428_v47  ;;  %v8265_v35 = vpack.c.bf16 %v6449_v23, %v6448_v9  ;;  %8264 = vmatpush1.bf16.msra.mxu1 %v8263_v57  ;;  %v18207_v49 = vunpack.i.h.bf16 %v16035_v36  ;;  %v16993_v42 = vpop.permute.xlu0 %10471  ;;  %v18212_v57 = vld [vmem:[#allocation18_spill] sm:$0xff] }
 0x8f8   :  { %v8267_v46 = vpack.c.bf16 %v6453_v6, %v6452_v51  ;;  %v6546_v54 = vsel %vm203_vm5, %v18206_v43, %v10443_v15  ;;  %v10439_v30 = vunpack.i.h.bf16 %v10437_v27  ;;  %v18210_v34 = vpack.c.bf16 %v18208_v61, %v18209_v28  ;;  %v18216_v51 = vld [vmem:[#allocation11_spill] sm:$0xff]  ;;  %v18222_v61 = vld [vmem:[#allocation21_spill] sm:$0xff] }
 0x8f9   :  { %v6547_v13 = vsel %vm203_vm5, %v18207_v49, %v10444_v59  ;;  %8266 = vmatprep.subr.bf16.mxu1 %v8265_v35  ;;  %8316 = vmatpush1.bf16.msra.mxu0 %v8315_v37  ;;  %v16995_v17 = vpop.permute.xlu1 %10446  ;;  %v10469_v48 = vunpack.i.h.bf16 %v10467_v33  ;;  %v10468_v36 = vunpack.i.l.bf16 %v10467_v33  ;;  %v6346_v41 = vsel %vm153_vm4, %v10398_v50, %v10438_v56  ;;  %v18217_v33 = vld [vmem:[#allocation23_spill] sm:$0xff] }
 0x8fa   :  { %8318 = vmatprep.subr.bf16.mxu0 %v18210_v34  ;;  %v10449_v26 = vunpack.i.h.bf16 %v16995_v17  ;;  %v10448_v11 = vunpack.i.l.bf16 %v16995_v17  ;;  %v8271_v16 = vpack.c.bf16 %v6547_v13, %v6546_v54  ;;  %v6347_v20 = vsel %vm153_vm4, %v10399_v1, %v10439_v30 }
 0x8fb   :  { %8268 = vmatpush1.bf16.msra.mxu1 %v8267_v46  ;;  %v18213_v4 = vpack.c.bf16 %v18211_v14, %v18212_v57  ;;  %v10487_v50 = vpop.permute.xlu0 %10486  ;;  %v18214_v6 = vunpack.i.l.bf16 %v15959_v45  ;;  %v18215_v7 = vunpack.i.h.bf16 %v15959_v45  ;;  %v10473_v1 = vunpack.i.l.bf16 %v16993_v42 }
 0x8fc   :  { %v6542_v47 = vsel %vm203_vm5, %v10443_v15, %v10448_v11  ;;  %v6543_v21 = vsel %vm203_vm5, %v10444_v59, %v10449_v26  ;;  %v10459_v59 = vunpack.i.h.bf16 %v16951_v44  ;;  %v18218_v27 = vpack.c.bf16 %v18216_v51, %v18217_v33 }
 0x8fd   :  { %8320 = vmatpush1.bf16.msra.mxu0 %v18213_v4  ;;  %v10452_v9 = vpop.permute.xlu1 %10451  ;;  %v8269_v39 = vpack.c.bf16 %v6543_v21, %v6542_v47  ;;  %v6366_v15 = vsel %vm153_vm4, %v10438_v56, %v18214_v6  ;;  %v6367_v3 = vsel %vm153_vm4, %v10439_v30, %v18215_v7  ;;  %v10458_v35 = vunpack.i.l.bf16 %v16951_v44 }
 0x8fe   :  { %8322 = vmatprep.subr.bf16.mxu0 %v18218_v27  ;;  %v10454_v23 = vunpack.i.h.bf16 %v10452_v9  ;;  %v10453_v37 = vunpack.i.l.bf16 %v10452_v9  ;;  %v6348_v45 = vsel %vm153_vm4, %v10413_v18, %v10468_v36  ;;  %v6349_v46 = vsel %vm153_vm4, %v10414_v10, %v10469_v48 }
 0x8ff   :  { %v10474_v56 = vunpack.i.h.bf16 %v16993_v42  ;;  %8270 = vmatprep.subr.bf16.mxu1 %v8269_v39  ;;  %v8327_v43 = vpack.c.bf16 %v6347_v20, %v6346_v41  ;;  %v18219_v54 = vunpack.i.l.bf16 %v16286_v32  ;;  %v18220_v13 = vunpack.i.h.bf16 %v16286_v32  ;;  %v17055_v10 = vpop.permute.xlu0 %10491 }
 0x900   :  { %8272 = vmatpush1.bf16.msra.mxu1 %v8271_v16  ;;  %v8325_v18 = vpack.c.bf16 %v6367_v3, %v6366_v15  ;;  %v18223_v28 = vpack.c.bf16 %v18221_v53, %v18222_v61  ;;  %v6544_v34 = vsel %vm203_vm5, %v10453_v37, %v10458_v35  ;;  %v6545_v32 = vsel %vm203_vm5, %v10454_v23, %v10459_v59 }
 0x901   :  { %v6548_v49 = vsel %vm203_vm5, %v18219_v54, %v10453_v37  ;;  %v6549_v30 = vsel %vm203_vm5, %v18220_v13, %v10454_v23  ;;  %v10462_v42 = vpop.permute.xlu1 %10461  ;;  %v18224_v16 = vunpack.i.l.bf16 %v15973_v12  ;;  %v18225_v47 = vunpack.i.h.bf16 %v15973_v12 }
 0x902   :  { %8324 = vmatpush1.bf16.msra.mxu0 %v18223_v28  ;;  %v18226_v20 = vunpack.i.l.bf16 %v16284_v2  ;;  %v8275_v57 = vpack.c.bf16 %v6549_v30, %v6548_v49  ;;  %v10464_v4 = vunpack.i.h.bf16 %v10462_v42  ;;  %v10463_v9 = vunpack.i.l.bf16 %v10462_v42 }
 0x903   :  { %v6368_v41 = vsel %vm153_vm4, %v10468_v36, %v18224_v16  ;;  %v6369_v21 = vsel %vm153_vm4, %v10469_v48, %v18225_v47  ;;  %8326 = vmatprep.subr.bf16.mxu0 %v8325_v18  ;;  %v18227_v39 = vunpack.i.h.bf16 %v16284_v2  ;;  %v10489_v36 = vunpack.i.h.bf16 %v10487_v50  ;;  %v10502_v2 = vpop.permute.xlu0 %10501 }
 0x904   :  { %v6642_v14 = vsel %vm228_vm7, %v18226_v20, %v10473_v1  ;;  %v10488_v15 = vunpack.i.l.bf16 %v10487_v50  ;;  %v8273_v12 = vpack.c.bf16 %v6545_v32, %v6544_v34  ;;  %v8329_v7 = vpack.c.bf16 %v6369_v21, %v6368_v41 }
 0x905   :  { %v6643_v6 = vsel %vm228_vm7, %v18227_v39, %v10474_v56  ;;  %v18228_v48 = vunpack.i.l.bf16 %v15967_v63  ;;  %v18229_v51 = vunpack.i.h.bf16 %v15967_v63  ;;  %v8331_v27 = vpack.c.bf16 %v6349_v46, %v6348_v45  ;;  %v10477_v23 = vpop.permute.xlu1 %10476 }
 0x906   :  { %8274 = vmatprep.subr.bf16.mxu1 %v8273_v12  ;;  %8328 = vmatpush1.bf16.msra.mxu0 %v8327_v43  ;;  %v8279_v37 = vpack.c.bf16 %v6643_v6, %v6642_v14  ;;  %v10479_v50 = vunpack.i.h.bf16 %v10477_v23  ;;  %v10478_v54 = vunpack.i.l.bf16 %v10477_v23  ;;  %v6443_v13 = vsel %vm178_vm6, %v10424_v62, %v10464_v4 }
 0x907   :  { %v6462_v3 = vsel %vm178_vm6, %v10463_v9, %v18228_v48  ;;  %v6463_v33 = vsel %vm178_vm6, %v10464_v4, %v18229_v51  ;;  %8276 = vmatpush1.bf16.msra.mxu1 %v8275_v57  ;;  %8330 = vmatprep.subr.bf16.mxu0 %v8329_v7  ;;  %v6442_v63 = vsel %vm178_vm6, %v10423_v38, %v10463_v9  ;;  %v18230_v45 = vunpack.i.l.bf16 %v15981_v8  ;;  %v10512_v61 = vpop.permute.xlu0 %10511 }
 0x908   :  { %v8333_v49 = vpack.c.bf16 %v6463_v33, %v6462_v3  ;;  %v18231_v43 = vunpack.i.h.bf16 %v15981_v8  ;;  %v10504_v18 = vunpack.i.h.bf16 %v10502_v2  ;;  %v10503_v53 = vunpack.i.l.bf16 %v10502_v2 }
 0x909   :  { %v6464_v46 = vsel %vm178_vm6, %v10488_v15, %v18230_v45  ;;  %v6638_v62 = vsel %vm228_vm7, %v10473_v1, %v10478_v54  ;;  %v6639_v0 = vsel %vm228_vm7, %v10474_v56, %v10479_v50  ;;  %v6444_v38 = vsel %vm178_vm6, %v10433_v60, %v10488_v15  ;;  %v10482_v28 = vpop.permute.xlu1 %10481 }
 0x90a   :  { %v6465_v30 = vsel %vm178_vm6, %v10489_v36, %v18231_v43  ;;  %v6445_v8 = vsel %vm178_vm6, %v10434_v22, %v10489_v36  ;;  %8332 = vmatpush1.bf16.msra.mxu0 %v8331_v27  ;;  %7117 = vmatmul.mubr.f32.vlgmr.msra.gmra.mrb[48].mxu1 %v16654_v55  ;;  %v8277_v42 = vpack.c.bf16 %v6639_v0, %v6638_v62  ;;  %v10494_v1 = vunpack.i.h.bf16 %v17055_v10 }
 0x90b   :  { %v10493_v56 = vunpack.i.l.bf16 %v17055_v10  ;;  %8334 = vmatprep.subr.bf16.mxu0 %v8333_v49  ;;  %v10484_v34 = vunpack.i.h.bf16 %v10482_v28  ;;  %v10483_v32 = vunpack.i.l.bf16 %v10482_v28  ;;  %7187 = vmatprep.mubr.f32.mxu1 %v18149_v40  ;;  %v8335_v60 = vpack.c.bf16 %v6443_v13, %v6442_v63 }
 0x90c   :  { %v10514_v52 = vunpack.i.h.bf16 %v10512_v61  ;;  %v10513_v16 = vunpack.i.l.bf16 %v10512_v61  ;;  %8278 = vmatprep.subr.bf16.mxu1 %v8277_v42  ;;  %v8337_v22 = vpack.c.bf16 %v6465_v30, %v6464_v46  ;;  %v18232_v41 = vunpack.i.l.bf16 %v16458_v58 }
 0x90d   :  { %v18233_v21 = vunpack.i.h.bf16 %v16458_v58  ;;  %8280 = vmatpush1.bf16.msra.mxu1 %v8279_v37  ;;  %v18234_v20 = vunpack.i.l.bf16 %v16376_v5  ;;  %v18235_v57 = vunpack.i.h.bf16 %v16376_v5  ;;  %v8339_v9 = vpack.c.bf16 %v6445_v8, %v6444_v38  ;;  %v10497_v6 = vpop.permute.xlu1 %10496 }
 0x90e   :  { %v6644_v47 = vsel %vm228_vm7, %v18232_v41, %v10483_v32  ;;  %8336 = vmatpush1.bf16.msra.mxu0 %v8335_v60  ;;  %v6640_v58 = vsel %vm228_vm7, %v10483_v32, %v10493_v56  ;;  %v6641_v36 = vsel %vm228_vm7, %v10484_v34, %v10494_v1  ;;  %v6635_v15 = vsel %vm228_vm7, %v10479_v50, %v10504_v18 }
 0x90f   :  { %v6645_v10 = vsel %vm228_vm7, %v18233_v21, %v10484_v34  ;;  %v6654_v14 = vsel %vm228_vm7, %v10503_v53, %v18234_v20  ;;  %v6655_v4 = vsel %vm228_vm7, %v10504_v18, %v18235_v57  ;;  %8338 = vmatprep.subr.bf16.mxu0 %v8337_v22  ;;  %v10499_v12 = vunpack.i.h.bf16 %v10497_v6 }
 0x910   :  { %v8283_v39 = vpack.c.bf16 %v6645_v10, %v6644_v47  ;;  %v10498_v7 = vunpack.i.l.bf16 %v10497_v6  ;;  %v8281_v5 = vpack.c.bf16 %v6641_v36, %v6640_v58  ;;  %v6634_v48 = vsel %vm228_vm7, %v10478_v54, %v10503_v53 }
 0x911   :  { %v8349_v3 = vpack.c.bf16 %v6655_v4, %v6654_v14  ;;  %v18236_v51 = vunpack.i.l.bf16 %v16374_v29  ;;  %v18237_v27 = vunpack.i.h.bf16 %v16374_v29  ;;  %v6539_v37 = vsel %vm203_vm5, %v10449_v26, %v10499_v12 }
 0x912   :  { %v6538_v23 = vsel %vm203_vm5, %v10448_v11, %v10498_v7  ;;  %8282 = vmatprep.subr.bf16.mxu1 %v8281_v5  ;;  %v18238_v50 = vunpack.i.l.bf16 %v16224_v24  ;;  %v18239_v29 = vunpack.i.h.bf16 %v16224_v24  ;;  %8340 = vmatpush1.bf16.msra.mxu0 %v8339_v9  ;;  %v10507_v11 = vpop.permute.xlu1 %10506  ;;  %v8351_v26 = vpack.c.bf16 %v6635_v15, %v6634_v48 }
 0x913   :  { %v6656_v33 = vsel %vm228_vm7, %v10513_v16, %v18236_v51  ;;  %v6657_v2 = vsel %vm228_vm7, %v10514_v52, %v18237_v27  ;;  %v8343_v13 = vpack.c.bf16 %v6539_v37, %v6538_v23  ;;  %8284 = vmatpush1.bf16.msra.mxu1 %v8283_v39  ;;  %v10509_v17 = vunpack.i.h.bf16 %v10507_v11 }
 0x914   :  { %v6558_v54 = vsel %vm203_vm5, %v10498_v7, %v18238_v50  ;;  %v6559_v49 = vsel %vm203_vm5, %v10499_v12, %v18239_v29  ;;  %v10508_v45 = vunpack.i.l.bf16 %v10507_v11  ;;  %8350 = vmatprep.subr.bf16.mxu1 %v8349_v3  ;;  %v6636_v46 = vsel %vm228_vm7, %v10493_v56, %v10513_v16 }
 0x915   :  { %v8341_v63 = vpack.c.bf16 %v6559_v49, %v6558_v54  ;;  %v6637_v43 = vsel %vm228_vm7, %v10494_v1, %v10514_v52  ;;  %v8353_v24 = vpack.c.bf16 %v6657_v2, %v6656_v33  ;;  %v6541_v30 = vsel %vm203_vm5, %v10459_v59, %v10509_v17 }
 0x916   :  { %v6540_v18 = vsel %vm203_vm5, %v10458_v35, %v10508_v45  ;;  %7443 = vmatmul.mubr.msk.f32.vlgmr.msra.gmra.mrb[48].mxu1 %vm1799_vm9, %v16728_v31  ;;  %v18240_v53 = vunpack.i.l.bf16 %v16222_v25  ;;  %v18241_v0 = vunpack.i.h.bf16 %v16222_v25  ;;  %v8355_v59 = vpack.c.bf16 %v6637_v43, %v6636_v46 }
 0x917   :  { %8342 = vmatprep.subr.bf16.mxu0 %v8341_v63  ;;  %v8347_v8 = vpack.c.bf16 %v6541_v30, %v6540_v18  ;;  %8352 = vmatpush1.bf16.msra.mxu1 %v8351_v26 }
 0x918   :  { %v6560_v62 = vsel %vm203_vm5, %v10508_v45, %v18240_v53  ;;  %v6561_v38 = vsel %vm203_vm5, %v10509_v17, %v18241_v0  ;;  %8344 = vmatpush1.bf16.msra.mxu0 %v8343_v13  ;;  %8354 = vmatprep.subr.bf16.mxu1 %v8353_v24 }
 0x919   :  { %v8345_v44 = vpack.c.bf16 %v6561_v38, %v6560_v62  ;;  %7329 = vmatprep.mubr.f32.mxu1 %v18149_v40 }
 0x91b   :  { %8346 = vmatprep.subr.bf16.mxu0 %v8345_v44  ;;  %8356 = vmatpush1.bf16.msra.mxu1 %v8355_v59  ;;  %v6905_v25 = vpop.permute.xlu1 %6904 }
 0x91c   :  { %8348 = vmatpush1.bf16.msra.mxu0 %v8347_v8 }
 0x91e   :  { %7444 = vmatmul.mubr.msk.f32.vlgmr.msra.gmra.mrb[50].mxu1 %vm1799_vm9, %v16728_v31 }
 0x91f   :  { %7259 = vmatmul.mubr.f32.vlgmr.msra.gmra.mrb[50].mxu0 %v16654_v55 }
 0x9a9   :  { %v7047_v35 = vpop.f32.mrb[48].mxu0 }
 0x9aa   :  { %v8429_v19 = vadd.f32 %v7047_v35, %v6905_v25  ;;  %v7049_v61 = vpop.f32.mrb[49].mxu0 }
 0x9ab   :  { %v8430_v28 = vadd.f32 %v7049_v61, %v6905_v25 }
 0x9ac   :  { %v7336_v42 = vmul.f32 0.01, %v8429_v19 }
 0x9ad   :  { %v7337_v1 = vmul.f32 0.01, %v8430_v28 }
 0x9ae   :  { %v7342_v56 = vmax.f32 %v8429_v19, %v7336_v42 }
 0x9af   :  { %v7343_v34 = vmax.f32 %v8430_v28, %v7337_v1 }
 0x9b0   :  { %7348 = vst [vmem:[%s17220_s7] sm:$0xff] %v7342_v56 }
 0x9b1   :  { %7349 = vst [vmem:[%s17220_s7 + $0x8] sm:$0xff] %v7343_v34 }
 0x9e9   :  { %v7189_v55 = vpop.f32.mrb[48].mxu1 }
 0x9ea   :  { %v8431_v40 = vadd.f32 %v7189_v55, %v6905_v25  ;;  %v7191_v31 = vpop.f32.mrb[49].mxu1 }
 0x9eb   :  { %v8432_v32 = vadd.f32 %v7191_v31, %v6905_v25 }
 0x9ec   :  { %v7338_v60 = vmul.f32 0.01, %v8431_v40 }
 0x9ed   :  { %v7339_v52 = vmul.f32 0.01, %v8432_v32 }
 0x9ee   :  { %v7344_v16 = vmax.f32 %v8431_v40, %v7338_v60 }
 0x9ef   :  { %v7345_v22 = vmax.f32 %v8432_v32, %v7339_v52 }
 0x9f0   :  { %7350 = vst [vmem:[%s17220_s7 + $0x10] sm:$0xff] %v7344_v16 }
 0x9f1   :  { %7351 = vst [vmem:[%s17220_s7 + $0x18] sm:$0xff] %v7345_v22  ;;  %v7331_v47 = vpop.f32.mrb[50].mxu1 }
 0x9f2   :  { %v7260_v41 = vpop.f32.mrb[50].mxu0  ;;  %v7333_v20 = vpop.f32.mrb[51].mxu1 }
 0x9f3   :  { %v7261_v21 = vadd.f32 %v7260_v41, %v6905_v25  ;;  %v7262_v10 = vpop.f32.mrb[51].mxu0 }
 0x9f4   :  { %v7263_v14 = vadd.f32 %v7262_v10, %v6905_v25 }
 0x9f5   :  { %v7332_v57 = vadd.f32 %v7331_v47, %v7261_v21 }
 0x9f6   :  { %v7334_v4 = vadd.f32 %v7333_v20, %v7263_v14 }
 0x9f7   :  { %v7340_v9 = vmul.f32 0.01, %v7332_v57 }
 0x9f8   :  { %v7341_v39 = vmul.f32 0.01, %v7334_v4 }
 0x9f9   :  { %v7346_v6 = vmax.f32 %v7332_v57, %v7340_v9 }
 0x9fa   :  { %v7347_v58 = vmax.f32 %v7334_v4, %v7341_v39 }
 0x9fb   :  { %7352 = vst [vmem:[%s17220_s7 + $0x20] sm:$0xff] %v7346_v6 }
 0x9fc   :  { %7353 = vst [vmem:[%s17220_s7 + $0x28] sm:$0xff] %v7347_v58 }

</bundles_post_ra>
